<compile_context>
chip_gen: v6e
topology: v6e:2x2x1
jax: 0.10.0
libtpu: 0.0.40
codegen_flags: <defaults>
</compile_context>

<pallas_src>
import math

import jax
import jax.numpy as jnp
from jax import lax
from jax.experimental import pallas as pl
from jax.experimental.pallas import tpu as pltpu

EPS = 1e-6


def _compiler_params(vmem_limit):
    cls = getattr(pltpu, "CompilerParams", None) or getattr(
        pltpu, "TPUCompilerParams", None)
    if cls is None:
        return None
    return cls(dimension_semantics=("parallel",), vmem_limit_bytes=vmem_limit)


def _recip(x):
    # EUP reciprocal when available; approx => softmax rows sum to 1 +- ~1e-3.
    if hasattr(pl, "reciprocal"):
        return pl.reciprocal(x, approx=True)
    return 1.0 / x


def _layernorm(v, g, b):
    mu = jnp.mean(v, axis=-1, keepdims=True)
    var = jnp.mean((v - mu) ** 2, axis=-1, keepdims=True)
    return (v - mu) * lax.rsqrt(var + EPS) * g + b


def _vmem_budget_bytes():
    """Generation-aware VMEM budget (never request the whole physical VMEM)."""
    cap = None
    if hasattr(pltpu, "get_tpu_info"):
        try:
            cap = getattr(pltpu.get_tpu_info(), "vmem_capacity_bytes", None)
        except Exception:
            cap = None
    if not cap:
        kind = jax.devices()[0].device_kind.lower()
        cap = (64 << 20) if "v7" in kind else (128 << 20)
    # 3/4 of physical, capped at 100 MiB: ~48 MiB on v7x, ~96 MiB on v5e/v6e.
    return int(min(cap * 3 // 4, 100 << 20))


def _pick_batch_tile(B, S, D, M, H, use_external_q, vmem_budget):
    """Largest batch tile whose per-step working set fits the VMEM budget."""
    f32, bf16 = 4, 2
    n_dd = 3 if use_external_q else 4
    # bf16 weights; x2 for pipeline buffers (Buffered(1) halves this when used).
    weight_bytes = 2 * (n_dd * D * D + 2 * D * M) * bf16
    # Pipelined per-batch-element blocks (x2 double buffering) ...
    n_in = 2 if use_external_q else 1
    io_blocks = (n_in + 2) * S * D * f32 + H * S * S * bf16
    # ... plus live values / scratch (x, xn, q, k, v, A, h1, per-head probs, qkv).
    live = 6 * S * D * f32 + 3 * S * D * bf16 + S * M * f32 + 2 * S * S * f32
    per_b = 2 * io_blocks + live
    avail = max(vmem_budget - weight_bytes - (4 << 20), per_b)
    bt = int(min(B, avail // per_b, max(1, 256 // max(S, 1))))
    if B >= 2:
        bt = min(bt, max(1, B // 2))   # keep >= 2 parallel steps for megacore
    bt = max(bt, 1)
    while B % bt:                      # bt must divide B (no dropped batches)
        bt -= 1
    return bt


def _make_kernel(num_heads, head_dim, bt, seq, hidden, use_external_q,
                 exact_gelu, weights_dtype):
    scale = 1.0 / math.sqrt(head_dim)
    n_rows = bt * seq
    inv_sqrt2 = 1.0 / math.sqrt(2.0)

    def gelu_fn(u):
        if exact_gelu:                      # torch F.gelu default (erf)
            return 0.5 * u * (1.0 + lax.erf(u * inv_sqrt2))
        return jax.nn.gelu(u, approximate=True)   # tanh fallback (EUP slot)

    def kernel(*refs):
        it = iter(refs)
        x_ref = next(it)
        q_ext_ref = next(it) if use_external_q else None
        ln1_g_ref = next(it); ln1_b_ref = next(it)
        if use_external_q:
            wq_ref = bq_ref = None
        else:
            wq_ref = next(it); bq_ref = next(it)
        wk_ref = next(it); bk_ref = next(it)
        wv_ref = next(it); bv_ref = next(it)
        wo_ref = next(it); bo_ref = next(it)
        ln2_g_ref = next(it); ln2_b_ref = next(it)
        w1_ref = next(it); b1_ref = next(it)
        w2_ref = next(it); b2_ref = next(it)
        out_ref = next(it)        # (bt, S, D)   Attention_matrix
        weights_ref = next(it)    # (bt, H, S, S) attention probs (bf16)
        ctx_ref = next(it)        # (bt, S, D)   lane-dense context
        q_s = next(it); k_s = next(it); v_s = next(it)   # (bt, S, D) bf16 scratch

        # ---- attention_norm on flattened rows (bt*S, D) ----
        x = x_ref[...].reshape(n_rows, hidden)                        # f32
        xn = _layernorm(x, ln1_g_ref[0], ln1_b_ref[0])
        xn_b = xn.astype(jnp.bfloat16)

        def proj(a_b, w_ref, b_ref):   # bf16 MXU inputs, f32 accumulation
            return jnp.dot(a_b, w_ref[...],
                           preferred_element_type=jnp.float32) + b_ref[0]

        # ---- q / k / v projections ----
        k = proj(xn_b, wk_ref, bk_ref)
        v = proj(xn_b, wv_ref, bv_ref)
        if use_external_q:
            q = q_ext_ref[...].reshape(n_rows, hidden)
        else:
            q = proj(xn_b, wq_ref, bq_ref)

        # Fold 1/sqrt(head_dim) into q once; park q/k/v in bf16 VMEM scratch so
        # the per-head loop slices refs (cheap) rather than big live values.
        q_s[...] = (q * scale).astype(jnp.bfloat16).reshape(bt, seq, hidden)
        k_s[...] = k.astype(jnp.bfloat16).reshape(bt, seq, hidden)
        v_s[...] = v.astype(jnp.bfloat16).reshape(bt, seq, hidden)

        # ---- per-head attention, batched over the batch tile ----
        # TODO(synk): batch >=2 heads per MXU pass (head-major relayout) to fill
        # the 256-wide MXU contraction when head_dim < 256.
        ctx_parts = []
        for h in range(num_heads):
            lo, hi = h * head_dim, (h + 1) * head_dim
            qh = q_s[:, :, lo:hi]                      # (bt, S, hd) bf16
            kh = k_s[:, :, lo:hi]
            vh = v_s[:, :, lo:hi]
            s = jnp.einsum("bqd,bkd->bqk", qh, kh,
                           preferred_element_type=jnp.float32)
            m = jnp.max(s, axis=-1, keepdims=True)
            e = jnp.exp(s - m)
            p = e * _recip(jnp.sum(e, axis=-1, keepdims=True))
            weights_ref[:, h, :, :] = p.astype(weights_dtype)
            ctx_parts.append(jnp.einsum("bqk,bkd->bqd", p.astype(jnp.bfloat16),
                                        vh, preferred_element_type=jnp.float32))
        # Lane-dense (bt, S, D) context; matches torch permute(0,2,1,3).reshape.
        ctx = jnp.concatenate(ctx_parts, axis=-1)
        ctx_ref[...] = ctx                              # single unmasked store

        # ---- output projection + residual (Wo fed from the value, no readback) ----
        ctx_b = ctx.reshape(n_rows, hidden).astype(jnp.bfloat16)
        attn_out = jnp.dot(ctx_b, wo_ref[...],
                           preferred_element_type=jnp.float32) + bo_ref[0]
        A = attn_out + x

        # ---- ffn_norm + MLP + residual ----
        an = _layernorm(A, ln2_g_ref[0], ln2_b_ref[0])
        h1 = jnp.dot(an.astype(jnp.bfloat16), w1_ref[...],
                     preferred_element_type=jnp.float32) + b1_ref[0]
        h1 = gelu_fn(h1)
        h2 = jnp.dot(h1.astype(jnp.bfloat16), w2_ref[...],
                     preferred_element_type=jnp.float32) + b2_ref[0]
        out_ref[...] = (h2 + A).reshape(bt, seq, hidden)

    return kernel


def _build_block_call(B, S, D, M, H, bt, use_external_q, weights_dtype,
                      exact_gelu, single_buffer_weights, vmem_limit):
    per_b3 = lambda i: (i, 0, 0)
    per_b4 = lambda i: (i, 0, 0, 0)

    def const_spec(shape):
        # Constant-index blocks: single-buffer them when the API allows it.
        kwargs = {}
        if single_buffer_weights and hasattr(pl, "Buffered"):
            kwargs["pipeline_mode"] = pl.Buffered(1)
        return pl.BlockSpec(shape, lambda i: (0,) * len(shape), **kwargs)

    in_specs = [pl.BlockSpec((bt, S, D), per_b3)]
    if use_external_q:
        in_specs.append(pl.BlockSpec((bt, S, D), per_b3))
    in_specs += [const_spec((1, D)), const_spec((1, D))]             # ln1 g, b
    if not use_external_q:
        in_specs += [const_spec((D, D)), const_spec((1, D))]         # Wq, bq
    in_specs += [
        const_spec((D, D)), const_spec((1, D)),                      # Wk, bk
        const_spec((D, D)), const_spec((1, D)),                      # Wv, bv
        const_spec((D, D)), const_spec((1, D)),                      # Wo, bo
        const_spec((1, D)), const_spec((1, D)),                      # ln2 g, b
        const_spec((D, M)), const_spec((1, M)),                      # W1, b1
        const_spec((M, D)), const_spec((1, D)),                      # W2, b2
    ]
    out_specs = [
        pl.BlockSpec((bt, S, D), per_b3),            # Attention_matrix
        pl.BlockSpec((bt, H, S, S), per_b4),         # attention probs
        pl.BlockSpec((bt, S, D), per_b3),            # lane-dense context
    ]
    out_shape = [
        jax.ShapeDtypeStruct((B, S, D), jnp.float32),
        jax.ShapeDtypeStruct((B, H, S, S), weights_dtype),
        jax.ShapeDtypeStruct((B, S, D), jnp.float32),
    ]
    kern = _make_kernel(H, D // H, bt, S, D, use_external_q, exact_gelu,
                        weights_dtype)
    return pl.pallas_call(
        kern,
        out_shape=out_shape,
        grid_spec=pltpu.PrefetchScalarGridSpec(
            num_scalar_prefetch=0,
            grid=(B // bt,),
            in_specs=in_specs,
            out_specs=out_specs,
            scratch_shapes=[pltpu.VMEM((bt, S, D), jnp.bfloat16)
                            for _ in range(3)],
        ),
        compiler_params=_compiler_params(vmem_limit),
    )


def block_forward(query, x, params, *, num_heads, batch_tile=None,
                  weights_dtype=jnp.bfloat16):
    """query: [B,S,D] or None ; x: [B,S,D]. Returns (out, weights, reception_field)."""
    B, S, D = x.shape
    assert D % num_heads == 0, "hidden size must be divisible by num_heads"
    M = params["w1"].shape[1]
    use_external_q = query is not None

    vmem_budget = _vmem_budget_bytes()
    if batch_tile is None:
        bt = _pick_batch_tile(B, S, D, M, num_heads, use_external_q, vmem_budget)
    else:
        assert B % batch_tile == 0, "batch_tile must divide the batch size"
        bt = batch_tile

    bf16 = jnp.bfloat16
    # Weight matrices go in as bf16 (in production keep the params in bf16);
    # biases / LayerNorm params stay f32 (added after f32 accumulation).
    args = [x]
    if use_external_q:
        args.append(query)
    args += [params["ln1_g"], params["ln1_b"]]
    if not use_external_q:
        args += [params["wq"].astype(bf16), params["bq"]]
    args += [params["wk"].astype(bf16), params["bk"],
             params["wv"].astype(bf16), params["bv"],
             params["wo"].astype(bf16), params["bo"],
             params["ln2_g"], params["ln2_b"],
             params["w1"].astype(bf16), params["b1"],
             params["w2"].astype(bf16), params["b2"]]

    # Config fallbacks: exact-erf GELU and single-buffered constant weights are
    # used when the installed Mosaic supports them, otherwise degrade gracefully.
    configs = [(True, True), (True, False), (False, True), (False, False)]
    if not hasattr(pl, "Buffered"):
        configs = [(True, False), (False, False)]
    first_err = None
    out = weights = ctx = None
    for exact_gelu, single_buf in configs:
        try:
            call = _build_block_call(B, S, D, M, num_heads, bt, use_external_q,
                                     weights_dtype, exact_gelu, single_buf,
                                     vmem_budget)
            out, weights, ctx = call(*args)
            break
        except Exception as e:          # unsupported feature -> next config
            if first_err is None:
                first_err = e
    else:
        raise first_err

    # reception_field = context before the (0,2,1,3) permute: (B, H, S, hd).
    # Layout plumbing kept outside the kernel so the kernel's store stays
    # lane-dense.
    hd = D // num_heads
    recep = ctx.reshape(B, S, num_heads, hd).transpose(0, 2, 1, 3)
    return out, weights, recep


# ---------------- pure-JAX reference (matches the PyTorch Block, eval mode) ----------------
def block_reference(query, x, params, *, num_heads):
    B, S, D = x.shape
    hd = D // num_heads

    def ln(v, g, b):
        mu = jnp.mean(v, -1, keepdims=True)
        var = jnp.mean((v - mu) ** 2, -1, keepdims=True)
        return (v - mu) / jnp.sqrt(var + EPS) * g[0] + b[0]

    xn = ln(x, params["ln1_g"], params["ln1_b"])
    q = query if query is not None else xn @ params["wq"] + params["bq"][0]
    k = xn @ params["wk"] + params["bk"][0]
    v = xn @ params["wv"] + params["bv"][0]

    def heads(t):  # (B,S,D) -> (B,H,S,hd)
        return t.reshape(B, S, num_heads, hd).transpose(0, 2, 1, 3)

    qh, kh, vh = heads(q), heads(k), heads(v)
    scores = jnp.einsum("bhsd,bhtd->bhst", qh, kh) / math.sqrt(hd)
    probs = jax.nn.softmax(scores, axis=-1)
    ctx = jnp.einsum("bhst,bhtd->bhsd", probs, vh)          # reception_field
    merged = ctx.transpose(0, 2, 1, 3).reshape(B, S, D)
    attn_out = merged @ params["wo"] + params["bo"][0]
    A = attn_out + x
    an = ln(A, params["ln2_g"], params["ln2_b"])
    h1 = jax.nn.gelu(an @ params["w1"] + params["b1"][0], approximate=False)
    out = h1 @ params["w2"] + params["b2"][0] + A
    return out, probs, ctx


if __name__ == "__main__":
    B, S, D, H, M = 2, 8, 32, 4, 64   # batch, seq, hidden, heads, mlp_dim

    key = jax.random.PRNGKey(0)
    ks = jax.random.split(key, 16)

    def w(k, shape, scale=0.05):
        return (scale * jax.random.normal(k, shape)).astype(jnp.float32)

    params = {
        "ln1_g": jnp.ones((1, D), jnp.float32),
        "ln1_b": jnp.zeros((1, D), jnp.float32),
        "wq": w(ks[0], (D, D)), "bq": w(ks[1], (1, D), 0.01),
        "wk": w(ks[2], (D, D)), "bk": w(ks[3], (1, D), 0.01),
        "wv": w(ks[4], (D, D)), "bv": w(ks[5], (1, D), 0.01),
        "wo": w(ks[6], (D, D)), "bo": w(ks[7], (1, D), 0.01),
        "ln2_g": jnp.ones((1, D), jnp.float32),
        "ln2_b": jnp.zeros((1, D), jnp.float32),
        "w1": w(ks[8], (D, M)), "b1": w(ks[9], (1, M), 1e-6),
        "w2": w(ks[10], (M, D)), "b2": w(ks[11], (1, D), 1e-6),
    }

    x = jax.random.normal(ks[12], (B, S, D), jnp.float32)
    q_ext = 0.1 * jax.random.normal(ks[13], (B, S, D), jnp.float32)

    TOL = dict(atol=2e-2, rtol=2e-2)   # bf16 MXU inputs + bf16 probs output

    # ---- path 1: query=None (q computed by the attn.query Linear) ----
    out, weights, recep = block_forward(None, x, params, num_heads=H)
    jax.block_until_ready((out, weights, recep))
    ref_out, ref_w, ref_r = block_reference(None, x, params, num_heads=H)
    assert out.shape == (B, S, D)
    assert weights.shape == (B, H, S, S)
    assert recep.shape == (B, H, S, D // H)
    assert jnp.allclose(out, ref_out, **TOL)
    assert jnp.allclose(weights.astype(jnp.float32), ref_w, **TOL)
    assert jnp.allclose(recep, ref_r, **TOL)

    # ---- path 2: external query (Wq/bq not even DMA'd) ----
    out2, weights2, recep2 = block_forward(q_ext, x, params, num_heads=H)
    jax.block_until_ready((out2, weights2, recep2))
    ref_out2, ref_w2, ref_r2 = block_reference(q_ext, x, params, num_heads=H)
    assert jnp.allclose(out2, ref_out2, **TOL)
    assert jnp.allclose(weights2.astype(jnp.float32), ref_w2, **TOL)
    assert jnp.allclose(recep2, ref_r2, **TOL)

    print("KERNEL_OK")
</pallas_src>

<mosaic_0001>
module attributes {stable_mosaic.version = 11 : i64} {
  func.func @kernel(%arg0: i32, %arg1: memref<1x8x32xf32, #tpu.memory_space<vmem>>, %arg2: memref<1x32xf32, #tpu.memory_space<vmem>>, %arg3: memref<1x32xf32, #tpu.memory_space<vmem>>, %arg4: memref<32x32xbf16, #tpu.memory_space<vmem>>, %arg5: memref<1x32xf32, #tpu.memory_space<vmem>>, %arg6: memref<32x32xbf16, #tpu.memory_space<vmem>>, %arg7: memref<1x32xf32, #tpu.memory_space<vmem>>, %arg8: memref<32x32xbf16, #tpu.memory_space<vmem>>, %arg9: memref<1x32xf32, #tpu.memory_space<vmem>>, %arg10: memref<32x32xbf16, #tpu.memory_space<vmem>>, %arg11: memref<1x32xf32, #tpu.memory_space<vmem>>, %arg12: memref<1x32xf32, #tpu.memory_space<vmem>>, %arg13: memref<1x32xf32, #tpu.memory_space<vmem>>, %arg14: memref<32x64xbf16, #tpu.memory_space<vmem>>, %arg15: memref<1x64xf32, #tpu.memory_space<vmem>>, %arg16: memref<64x32xbf16, #tpu.memory_space<vmem>>, %arg17: memref<1x32xf32, #tpu.memory_space<vmem>>, %arg18: memref<1x8x32xf32, #tpu.memory_space<vmem>>, %arg19: memref<1x4x8x8xbf16, #tpu.memory_space<vmem>>, %arg20: memref<1x8x32xf32, #tpu.memory_space<vmem>>, %arg21: memref<1x8x32xbf16, #tpu.memory_space<vmem>>, %arg22: memref<1x8x32xbf16, #tpu.memory_space<vmem>>, %arg23: memref<1x8x32xbf16, #tpu.memory_space<vmem>>) attributes {dimension_semantics = [#tpu.dimension_semantics<parallel>], iteration_bounds = array<i64: 2>, scalar_prefetch = 0 : i64, scratch_operands = 3 : i64, tpu.core_type = #tpu.core_type<tc>, window_params = [{transform_indices = @transform_0, window_bounds = array<i64: 1, 8, 32>}, {pipeline_mode = #tpu.pipeline_mode<synchronous>, transform_indices = @transform_1, window_bounds = array<i64: 1, 32>}, {pipeline_mode = #tpu.pipeline_mode<synchronous>, transform_indices = @transform_2, window_bounds = array<i64: 1, 32>}, {pipeline_mode = #tpu.pipeline_mode<synchronous>, transform_indices = @transform_3, window_bounds = array<i64: 32, 32>}, {pipeline_mode = #tpu.pipeline_mode<synchronous>, transform_indices = @transform_4, window_bounds = array<i64: 1, 32>}, {pipeline_mode = #tpu.pipeline_mode<synchronous>, transform_indices = @transform_5, window_bounds = array<i64: 32, 32>}, {pipeline_mode = #tpu.pipeline_mode<synchronous>, transform_indices = @transform_6, window_bounds = array<i64: 1, 32>}, {pipeline_mode = #tpu.pipeline_mode<synchronous>, transform_indices = @transform_7, window_bounds = array<i64: 32, 32>}, {pipeline_mode = #tpu.pipeline_mode<synchronous>, transform_indices = @transform_8, window_bounds = array<i64: 1, 32>}, {pipeline_mode = #tpu.pipeline_mode<synchronous>, transform_indices = @transform_9, window_bounds = array<i64: 32, 32>}, {pipeline_mode = #tpu.pipeline_mode<synchronous>, transform_indices = @transform_10, window_bounds = array<i64: 1, 32>}, {pipeline_mode = #tpu.pipeline_mode<synchronous>, transform_indices = @transform_11, window_bounds = array<i64: 1, 32>}, {pipeline_mode = #tpu.pipeline_mode<synchronous>, transform_indices = @transform_12, window_bounds = array<i64: 1, 32>}, {pipeline_mode = #tpu.pipeline_mode<synchronous>, transform_indices = @transform_13, window_bounds = array<i64: 32, 64>}, {pipeline_mode = #tpu.pipeline_mode<synchronous>, transform_indices = @transform_14, window_bounds = array<i64: 1, 64>}, {pipeline_mode = #tpu.pipeline_mode<synchronous>, transform_indices = @transform_15, window_bounds = array<i64: 64, 32>}, {pipeline_mode = #tpu.pipeline_mode<synchronous>, transform_indices = @transform_16, window_bounds = array<i64: 1, 32>}, {transform_indices = @transform_17, window_bounds = array<i64: 1, 8, 32>}, {transform_indices = @transform_18, window_bounds = array<i64: 1, 4, 8, 8>}, {transform_indices = @transform_19, window_bounds = array<i64: 1, 8, 32>}]} {
    %c0 = arith.constant 0 : index
    %c0_0 = arith.constant 0 : index
    %c0_1 = arith.constant 0 : index
    %0 = vector.load %arg1[%c0, %c0_0, %c0_1] : memref<1x8x32xf32, #tpu.memory_space<vmem>>, vector<1x8x32xf32>
    %1 = vector.shape_cast %0 : vector<1x8x32xf32> to vector<8x32xf32>
    %c0_2 = arith.constant 0 : index
    %c0_3 = arith.constant 0 : index
    %2 = vector.load %arg2[%c0_2, %c0_3] : memref<1x32xf32, #tpu.memory_space<vmem>>, vector<1x32xf32>
    %3 = vector.shape_cast %2 : vector<1x32xf32> to vector<32xf32>
    %c0_4 = arith.constant 0 : index
    %c0_5 = arith.constant 0 : index
    %4 = vector.load %arg3[%c0_4, %c0_5] : memref<1x32xf32, #tpu.memory_space<vmem>>, vector<1x32xf32>
    %5 = vector.shape_cast %4 : vector<1x32xf32> to vector<32xf32>
    %cst = arith.constant dense<0.000000e+00> : vector<8xf32>
    %6 = vector.multi_reduction <add>, %1, %cst [1] : vector<8x32xf32> to vector<8xf32>
    %7 = vector.shape_cast %6 : vector<8xf32> to vector<8x1xf32>
    %cst_6 = arith.constant 3.200000e+01 : f32
    %8 = vector.broadcast %cst_6 : f32 to vector<8x1xf32>
    %9 = arith.divf %7, %8 : vector<8x1xf32>
    %10 = vector.broadcast %9 : vector<8x1xf32> to vector<8x32xf32>
    %11 = arith.subf %1, %10 : vector<8x32xf32>
    %12 = arith.mulf %11, %11 : vector<8x32xf32>
    %cst_7 = arith.constant dense<0.000000e+00> : vector<8xf32>
    %13 = vector.multi_reduction <add>, %12, %cst_7 [1] : vector<8x32xf32> to vector<8xf32>
    %14 = vector.shape_cast %13 : vector<8xf32> to vector<8x1xf32>
    %cst_8 = arith.constant 3.200000e+01 : f32
    %15 = vector.broadcast %cst_8 : f32 to vector<8x1xf32>
    %16 = arith.divf %14, %15 : vector<8x1xf32>
    %17 = vector.broadcast %9 : vector<8x1xf32> to vector<8x32xf32>
    %18 = arith.subf %1, %17 : vector<8x32xf32>
    %cst_9 = arith.constant 9.99999997E-7 : f32
    %19 = vector.broadcast %cst_9 : f32 to vector<8x1xf32>
    %20 = arith.addf %16, %19 : vector<8x1xf32>
    %21 = math.rsqrt %20 : vector<8x1xf32>
    %22 = vector.broadcast %21 : vector<8x1xf32> to vector<8x32xf32>
    %23 = arith.mulf %18, %22 : vector<8x32xf32>
    %24 = vector.shape_cast %3 : vector<32xf32> to vector<1x32xf32>
    %25 = vector.broadcast %24 : vector<1x32xf32> to vector<8x32xf32>
    %26 = arith.mulf %23, %25 : vector<8x32xf32>
    %27 = vector.shape_cast %5 : vector<32xf32> to vector<1x32xf32>
    %28 = vector.broadcast %27 : vector<1x32xf32> to vector<8x32xf32>
    %29 = arith.addf %26, %28 : vector<8x32xf32>
    %30 = arith.truncf %29 : vector<8x32xf32> to vector<8x32xbf16>
    %c0_10 = arith.constant 0 : index
    %c0_11 = arith.constant 0 : index
    %31 = vector.load %arg6[%c0_10, %c0_11] : memref<32x32xbf16, #tpu.memory_space<vmem>>, vector<32x32xbf16>
    %cst_12 = arith.constant dense<0.000000e+00> : vector<8x32xf32>
    %32 = tpu.matmul %30, %31, %cst_12 {dimension_numbers = #tpu.dot_dimension_numbers<[1], [0], [0], [1], [0, 0, 1, 1], [], []>} : vector<8x32xbf16>, vector<32x32xbf16>, vector<8x32xf32> -> vector<8x32xf32>
    %c0_13 = arith.constant 0 : index
    %c0_14 = arith.constant 0 : index
    %33 = vector.load %arg7[%c0_13, %c0_14] : memref<1x32xf32, #tpu.memory_space<vmem>>, vector<1x32xf32>
    %34 = vector.shape_cast %33 : vector<1x32xf32> to vector<32xf32>
    %35 = vector.shape_cast %34 : vector<32xf32> to vector<1x32xf32>
    %36 = vector.broadcast %35 : vector<1x32xf32> to vector<8x32xf32>
    %37 = arith.addf %32, %36 : vector<8x32xf32>
    %c0_15 = arith.constant 0 : index
    %c0_16 = arith.constant 0 : index
    %38 = vector.load %arg8[%c0_15, %c0_16] : memref<32x32xbf16, #tpu.memory_space<vmem>>, vector<32x32xbf16>
    %cst_17 = arith.constant dense<0.000000e+00> : vector<8x32xf32>
    %39 = tpu.matmul %30, %38, %cst_17 {dimension_numbers = #tpu.dot_dimension_numbers<[1], [0], [0], [1], [0, 0, 1, 1], [], []>} : vector<8x32xbf16>, vector<32x32xbf16>, vector<8x32xf32> -> vector<8x32xf32>
    %c0_18 = arith.constant 0 : index
    %c0_19 = arith.constant 0 : index
    %40 = vector.load %arg9[%c0_18, %c0_19] : memref<1x32xf32, #tpu.memory_space<vmem>>, vector<1x32xf32>
    %41 = vector.shape_cast %40 : vector<1x32xf32> to vector<32xf32>
    %42 = vector.shape_cast %41 : vector<32xf32> to vector<1x32xf32>
    %43 = vector.broadcast %42 : vector<1x32xf32> to vector<8x32xf32>
    %44 = arith.addf %39, %43 : vector<8x32xf32>
    %c0_20 = arith.constant 0 : index
    %c0_21 = arith.constant 0 : index
    %45 = vector.load %arg4[%c0_20, %c0_21] : memref<32x32xbf16, #tpu.memory_space<vmem>>, vector<32x32xbf16>
    %cst_22 = arith.constant dense<0.000000e+00> : vector<8x32xf32>
    %46 = tpu.matmul %30, %45, %cst_22 {dimension_numbers = #tpu.dot_dimension_numbers<[1], [0], [0], [1], [0, 0, 1, 1], [], []>} : vector<8x32xbf16>, vector<32x32xbf16>, vector<8x32xf32> -> vector<8x32xf32>
    %c0_23 = arith.constant 0 : index
    %c0_24 = arith.constant 0 : index
    %47 = vector.load %arg5[%c0_23, %c0_24] : memref<1x32xf32, #tpu.memory_space<vmem>>, vector<1x32xf32>
    %48 = vector.shape_cast %47 : vector<1x32xf32> to vector<32xf32>
    %49 = vector.shape_cast %48 : vector<32xf32> to vector<1x32xf32>
    %50 = vector.broadcast %49 : vector<1x32xf32> to vector<8x32xf32>
    %51 = arith.addf %46, %50 : vector<8x32xf32>
    %cst_25 = arith.constant 0.353553385 : f32
    %52 = vector.broadcast %cst_25 : f32 to vector<8x32xf32>
    %53 = arith.mulf %51, %52 : vector<8x32xf32>
    %54 = arith.truncf %53 : vector<8x32xf32> to vector<8x32xbf16>
    %55 = vector.shape_cast %54 : vector<8x32xbf16> to vector<1x8x32xbf16>
    %c0_26 = arith.constant 0 : index
    %c0_27 = arith.constant 0 : index
    %c0_28 = arith.constant 0 : index
    %56 = vector.load %arg21[%c0_26, %c0_27, %c0_28] : memref<1x8x32xbf16, #tpu.memory_space<vmem>>, vector<1x8x32xbf16>
    tpu.vector_store %arg21[%c0_26, %c0_27, %c0_28], %55 {strides = array<i32>} : memref<1x8x32xbf16, #tpu.memory_space<vmem>>, vector<1x8x32xbf16>,
    %57 = arith.truncf %37 : vector<8x32xf32> to vector<8x32xbf16>
    %58 = vector.shape_cast %57 : vector<8x32xbf16> to vector<1x8x32xbf16>
    %c0_29 = arith.constant 0 : index
    %c0_30 = arith.constant 0 : index
    %c0_31 = arith.constant 0 : index
    %59 = vector.load %arg22[%c0_29, %c0_30, %c0_31] : memref<1x8x32xbf16, #tpu.memory_space<vmem>>, vector<1x8x32xbf16>
    tpu.vector_store %arg22[%c0_29, %c0_30, %c0_31], %58 {strides = array<i32>} : memref<1x8x32xbf16, #tpu.memory_space<vmem>>, vector<1x8x32xbf16>,
    %60 = arith.truncf %44 : vector<8x32xf32> to vector<8x32xbf16>
    %61 = vector.shape_cast %60 : vector<8x32xbf16> to vector<1x8x32xbf16>
    %c0_32 = arith.constant 0 : index
    %c0_33 = arith.constant 0 : index
    %c0_34 = arith.constant 0 : index
    %62 = vector.load %arg23[%c0_32, %c0_33, %c0_34] : memref<1x8x32xbf16, #tpu.memory_space<vmem>>, vector<1x8x32xbf16>
    tpu.vector_store %arg23[%c0_32, %c0_33, %c0_34], %61 {strides = array<i32>} : memref<1x8x32xbf16, #tpu.memory_space<vmem>>, vector<1x8x32xbf16>,
    %c0_35 = arith.constant 0 : index
    %c0_36 = arith.constant 0 : index
    %c0_37 = arith.constant 0 : index
    %63 = vector.load %arg21[%c0_35, %c0_36, %c0_37] : memref<1x8x32xbf16, #tpu.memory_space<vmem>>, vector<1x8x8xbf16>
    %c0_38 = arith.constant 0 : index
    %c0_39 = arith.constant 0 : index
    %c0_40 = arith.constant 0 : index
    %64 = vector.load %arg22[%c0_38, %c0_39, %c0_40] : memref<1x8x32xbf16, #tpu.memory_space<vmem>>, vector<1x8x8xbf16>
    %c0_41 = arith.constant 0 : index
    %c0_42 = arith.constant 0 : index
    %c0_43 = arith.constant 0 : index
    %65 = vector.load %arg23[%c0_41, %c0_42, %c0_43] : memref<1x8x32xbf16, #tpu.memory_space<vmem>>, vector<1x8x8xbf16>
    "tpu.trace_start"() <{level = 10 : i32, message = "bqd,bkd->bqk"}> : () -> ()
    %cst_44 = arith.constant dense<0.000000e+00> : vector<1x8x8xf32>
    %66 = tpu.matmul %63, %64, %cst_44 {dimension_numbers = #tpu.dot_dimension_numbers<[2], [2], [1], [1], [0, 0, 0, 1, 1, 1], [0], [0]>} : vector<1x8x8xbf16>, vector<1x8x8xbf16>, vector<1x8x8xf32> -> vector<1x8x8xf32>
    "tpu.trace_stop"() : () -> ()
    %cst_45 = arith.constant dense<0xFF800000> : vector<1x8xf32>
    %67 = vector.multi_reduction <maximumf>, %66, %cst_45 [2] : vector<1x8x8xf32> to vector<1x8xf32>
    %68 = vector.shape_cast %67 : vector<1x8xf32> to vector<1x8x1xf32>
    %69 = vector.broadcast %68 : vector<1x8x1xf32> to vector<1x8x8xf32>
    %70 = arith.subf %66, %69 : vector<1x8x8xf32>
    %71 = math.exp %70 : vector<1x8x8xf32>
    %cst_46 = arith.constant dense<0.000000e+00> : vector<1x8xf32>
    %72 = vector.multi_reduction <add>, %71, %cst_46 [2] : vector<1x8x8xf32> to vector<1x8xf32>
    %73 = vector.shape_cast %72 : vector<1x8xf32> to vector<1x8x1xf32>
    %74 = tpu.reciprocal %73 {approx = true} : vector<1x8x1xf32> -> vector<1x8x1xf32>
    %75 = vector.broadcast %74 : vector<1x8x1xf32> to vector<1x8x8xf32>
    %76 = arith.mulf %71, %75 : vector<1x8x8xf32>
    %77 = arith.truncf %76 : vector<1x8x8xf32> to vector<1x8x8xbf16>
    %c0_47 = arith.constant 0 : index
    %c0_48 = arith.constant 0 : index
    %c0_49 = arith.constant 0 : index
    %c0_50 = arith.constant 0 : index
    %78 = vector.load %arg19[%c0_47, %c0_48, %c0_49, %c0_50] : memref<1x4x8x8xbf16, #tpu.memory_space<vmem>>, vector<1x1x8x8xbf16>
    %79 = vector.shape_cast %78 : vector<1x1x8x8xbf16> to vector<1x8x8xbf16>
    %80 = vector.shape_cast %77 : vector<1x8x8xbf16> to vector<1x1x8x8xbf16>
    tpu.vector_store %arg19[%c0_47, %c0_48, %c0_49, %c0_50], %80 {strides = array<i32>} : memref<1x4x8x8xbf16, #tpu.memory_space<vmem>>, vector<1x1x8x8xbf16>,
    %81 = arith.truncf %76 : vector<1x8x8xf32> to vector<1x8x8xbf16>
    "tpu.trace_start"() <{level = 10 : i32, message = "bqk,bkd->bqd"}> : () -> ()
    %cst_51 = arith.constant dense<0.000000e+00> : vector<1x8x8xf32>
    %82 = tpu.matmul %81, %65, %cst_51 {dimension_numbers = #tpu.dot_dimension_numbers<[2], [1], [1], [2], [0, 0, 0, 1, 1, 2], [0], [0]>} : vector<1x8x8xbf16>, vector<1x8x8xbf16>, vector<1x8x8xf32> -> vector<1x8x8xf32>
    "tpu.trace_stop"() : () -> ()
    %c0_52 = arith.constant 0 : index
    %c0_53 = arith.constant 0 : index
    %c8 = arith.constant 8 : index
    %83 = vector.load %arg21[%c0_52, %c0_53, %c8] : memref<1x8x32xbf16, #tpu.memory_space<vmem>>, vector<1x8x8xbf16>
    %c0_54 = arith.constant 0 : index
    %c0_55 = arith.constant 0 : index
    %c8_56 = arith.constant 8 : index
    %84 = vector.load %arg22[%c0_54, %c0_55, %c8_56] : memref<1x8x32xbf16, #tpu.memory_space<vmem>>, vector<1x8x8xbf16>
    %c0_57 = arith.constant 0 : index
    %c0_58 = arith.constant 0 : index
    %c8_59 = arith.constant 8 : index
    %85 = vector.load %arg23[%c0_57, %c0_58, %c8_59] : memref<1x8x32xbf16, #tpu.memory_space<vmem>>, vector<1x8x8xbf16>
    "tpu.trace_start"() <{level = 10 : i32, message = "bqd,bkd->bqk"}> : () -> ()
    %cst_60 = arith.constant dense<0.000000e+00> : vector<1x8x8xf32>
    %86 = tpu.matmul %83, %84, %cst_60 {dimension_numbers = #tpu.dot_dimension_numbers<[2], [2], [1], [1], [0, 0, 0, 1, 1, 1], [0], [0]>} : vector<1x8x8xbf16>, vector<1x8x8xbf16>, vector<1x8x8xf32> -> vector<1x8x8xf32>
    "tpu.trace_stop"() : () -> ()
    %cst_61 = arith.constant dense<0xFF800000> : vector<1x8xf32>
    %87 = vector.multi_reduction <maximumf>, %86, %cst_61 [2] : vector<1x8x8xf32> to vector<1x8xf32>
    %88 = vector.shape_cast %87 : vector<1x8xf32> to vector<1x8x1xf32>
    %89 = vector.broadcast %88 : vector<1x8x1xf32> to vector<1x8x8xf32>
    %90 = arith.subf %86, %89 : vector<1x8x8xf32>
    %91 = math.exp %90 : vector<1x8x8xf32>
    %cst_62 = arith.constant dense<0.000000e+00> : vector<1x8xf32>
    %92 = vector.multi_reduction <add>, %91, %cst_62 [2] : vector<1x8x8xf32> to vector<1x8xf32>
    %93 = vector.shape_cast %92 : vector<1x8xf32> to vector<1x8x1xf32>
    %94 = tpu.reciprocal %93 {approx = true} : vector<1x8x1xf32> -> vector<1x8x1xf32>
    %95 = vector.broadcast %94 : vector<1x8x1xf32> to vector<1x8x8xf32>
    %96 = arith.mulf %91, %95 : vector<1x8x8xf32>
    %97 = arith.truncf %96 : vector<1x8x8xf32> to vector<1x8x8xbf16>
    %c0_63 = arith.constant 0 : index
    %c1 = arith.constant 1 : index
    %c0_64 = arith.constant 0 : index
    %c0_65 = arith.constant 0 : index
    %98 = vector.load %arg19[%c0_63, %c1, %c0_64, %c0_65] : memref<1x4x8x8xbf16, #tpu.memory_space<vmem>>, vector<1x1x8x8xbf16>
    %99 = vector.shape_cast %98 : vector<1x1x8x8xbf16> to vector<1x8x8xbf16>
    %100 = vector.shape_cast %97 : vector<1x8x8xbf16> to vector<1x1x8x8xbf16>
    tpu.vector_store %arg19[%c0_63, %c1, %c0_64, %c0_65], %100 {strides = array<i32>} : memref<1x4x8x8xbf16, #tpu.memory_space<vmem>>, vector<1x1x8x8xbf16>,
    %101 = arith.truncf %96 : vector<1x8x8xf32> to vector<1x8x8xbf16>
    "tpu.trace_start"() <{level = 10 : i32, message = "bqk,bkd->bqd"}> : () -> ()
    %cst_66 = arith.constant dense<0.000000e+00> : vector<1x8x8xf32>
    %102 = tpu.matmul %101, %85, %cst_66 {dimension_numbers = #tpu.dot_dimension_numbers<[2], [1], [1], [2], [0, 0, 0, 1, 1, 2], [0], [0]>} : vector<1x8x8xbf16>, vector<1x8x8xbf16>, vector<1x8x8xf32> -> vector<1x8x8xf32>
    "tpu.trace_stop"() : () -> ()
    %c0_67 = arith.constant 0 : index
    %c0_68 = arith.constant 0 : index
    %c16 = arith.constant 16 : index
    %103 = vector.load %arg21[%c0_67, %c0_68, %c16] : memref<1x8x32xbf16, #tpu.memory_space<vmem>>, vector<1x8x8xbf16>
    %c0_69 = arith.constant 0 : index
    %c0_70 = arith.constant 0 : index
    %c16_71 = arith.constant 16 : index
    %104 = vector.load %arg22[%c0_69, %c0_70, %c16_71] : memref<1x8x32xbf16, #tpu.memory_space<vmem>>, vector<1x8x8xbf16>
    %c0_72 = arith.constant 0 : index
    %c0_73 = arith.constant 0 : index
    %c16_74 = arith.constant 16 : index
    %105 = vector.load %arg23[%c0_72, %c0_73, %c16_74] : memref<1x8x32xbf16, #tpu.memory_space<vmem>>, vector<1x8x8xbf16>
    "tpu.trace_start"() <{level = 10 : i32, message = "bqd,bkd->bqk"}> : () -> ()
    %cst_75 = arith.constant dense<0.000000e+00> : vector<1x8x8xf32>
    %106 = tpu.matmul %103, %104, %cst_75 {dimension_numbers = #tpu.dot_dimension_numbers<[2], [2], [1], [1], [0, 0, 0, 1, 1, 1], [0], [0]>} : vector<1x8x8xbf16>, vector<1x8x8xbf16>, vector<1x8x8xf32> -> vector<1x8x8xf32>
    "tpu.trace_stop"() : () -> ()
    %cst_76 = arith.constant dense<0xFF800000> : vector<1x8xf32>
    %107 = vector.multi_reduction <maximumf>, %106, %cst_76 [2] : vector<1x8x8xf32> to vector<1x8xf32>
    %108 = vector.shape_cast %107 : vector<1x8xf32> to vector<1x8x1xf32>
    %109 = vector.broadcast %108 : vector<1x8x1xf32> to vector<1x8x8xf32>
    %110 = arith.subf %106, %109 : vector<1x8x8xf32>
    %111 = math.exp %110 : vector<1x8x8xf32>
    %cst_77 = arith.constant dense<0.000000e+00> : vector<1x8xf32>
    %112 = vector.multi_reduction <add>, %111, %cst_77 [2] : vector<1x8x8xf32> to vector<1x8xf32>
    %113 = vector.shape_cast %112 : vector<1x8xf32> to vector<1x8x1xf32>
    %114 = tpu.reciprocal %113 {approx = true} : vector<1x8x1xf32> -> vector<1x8x1xf32>
    %115 = vector.broadcast %114 : vector<1x8x1xf32> to vector<1x8x8xf32>
    %116 = arith.mulf %111, %115 : vector<1x8x8xf32>
    %117 = arith.truncf %116 : vector<1x8x8xf32> to vector<1x8x8xbf16>
    %c0_78 = arith.constant 0 : index
    %c2 = arith.constant 2 : index
    %c0_79 = arith.constant 0 : index
    %c0_80 = arith.constant 0 : index
    %118 = vector.load %arg19[%c0_78, %c2, %c0_79, %c0_80] : memref<1x4x8x8xbf16, #tpu.memory_space<vmem>>, vector<1x1x8x8xbf16>
    %119 = vector.shape_cast %118 : vector<1x1x8x8xbf16> to vector<1x8x8xbf16>
    %120 = vector.shape_cast %117 : vector<1x8x8xbf16> to vector<1x1x8x8xbf16>
    tpu.vector_store %arg19[%c0_78, %c2, %c0_79, %c0_80], %120 {strides = array<i32>} : memref<1x4x8x8xbf16, #tpu.memory_space<vmem>>, vector<1x1x8x8xbf16>,
    %121 = arith.truncf %116 : vector<1x8x8xf32> to vector<1x8x8xbf16>
    "tpu.trace_start"() <{level = 10 : i32, message = "bqk,bkd->bqd"}> : () -> ()
    %cst_81 = arith.constant dense<0.000000e+00> : vector<1x8x8xf32>
    %122 = tpu.matmul %121, %105, %cst_81 {dimension_numbers = #tpu.dot_dimension_numbers<[2], [1], [1], [2], [0, 0, 0, 1, 1, 2], [0], [0]>} : vector<1x8x8xbf16>, vector<1x8x8xbf16>, vector<1x8x8xf32> -> vector<1x8x8xf32>
    "tpu.trace_stop"() : () -> ()
    %c0_82 = arith.constant 0 : index
    %c0_83 = arith.constant 0 : index
    %c24 = arith.constant 24 : index
    %123 = vector.load %arg21[%c0_82, %c0_83, %c24] : memref<1x8x32xbf16, #tpu.memory_space<vmem>>, vector<1x8x8xbf16>
    %c0_84 = arith.constant 0 : index
    %c0_85 = arith.constant 0 : index
    %c24_86 = arith.constant 24 : index
    %124 = vector.load %arg22[%c0_84, %c0_85, %c24_86] : memref<1x8x32xbf16, #tpu.memory_space<vmem>>, vector<1x8x8xbf16>
    %c0_87 = arith.constant 0 : index
    %c0_88 = arith.constant 0 : index
    %c24_89 = arith.constant 24 : index
    %125 = vector.load %arg23[%c0_87, %c0_88, %c24_89] : memref<1x8x32xbf16, #tpu.memory_space<vmem>>, vector<1x8x8xbf16>
    "tpu.trace_start"() <{level = 10 : i32, message = "bqd,bkd->bqk"}> : () -> ()
    %cst_90 = arith.constant dense<0.000000e+00> : vector<1x8x8xf32>
    %126 = tpu.matmul %123, %124, %cst_90 {dimension_numbers = #tpu.dot_dimension_numbers<[2], [2], [1], [1], [0, 0, 0, 1, 1, 1], [0], [0]>} : vector<1x8x8xbf16>, vector<1x8x8xbf16>, vector<1x8x8xf32> -> vector<1x8x8xf32>
    "tpu.trace_stop"() : () -> ()
    %cst_91 = arith.constant dense<0xFF800000> : vector<1x8xf32>
    %127 = vector.multi_reduction <maximumf>, %126, %cst_91 [2] : vector<1x8x8xf32> to vector<1x8xf32>
    %128 = vector.shape_cast %127 : vector<1x8xf32> to vector<1x8x1xf32>
    %129 = vector.broadcast %128 : vector<1x8x1xf32> to vector<1x8x8xf32>
    %130 = arith.subf %126, %129 : vector<1x8x8xf32>
    %131 = math.exp %130 : vector<1x8x8xf32>
    %cst_92 = arith.constant dense<0.000000e+00> : vector<1x8xf32>
    %132 = vector.multi_reduction <add>, %131, %cst_92 [2] : vector<1x8x8xf32> to vector<1x8xf32>
    %133 = vector.shape_cast %132 : vector<1x8xf32> to vector<1x8x1xf32>
    %134 = tpu.reciprocal %133 {approx = true} : vector<1x8x1xf32> -> vector<1x8x1xf32>
    %135 = vector.broadcast %134 : vector<1x8x1xf32> to vector<1x8x8xf32>
    %136 = arith.mulf %131, %135 : vector<1x8x8xf32>
    %137 = arith.truncf %136 : vector<1x8x8xf32> to vector<1x8x8xbf16>
    %c0_93 = arith.constant 0 : index
    %c3 = arith.constant 3 : index
    %c0_94 = arith.constant 0 : index
    %c0_95 = arith.constant 0 : index
    %138 = vector.load %arg19[%c0_93, %c3, %c0_94, %c0_95] : memref<1x4x8x8xbf16, #tpu.memory_space<vmem>>, vector<1x1x8x8xbf16>
    %139 = vector.shape_cast %138 : vector<1x1x8x8xbf16> to vector<1x8x8xbf16>
    %140 = vector.shape_cast %137 : vector<1x8x8xbf16> to vector<1x1x8x8xbf16>
    tpu.vector_store %arg19[%c0_93, %c3, %c0_94, %c0_95], %140 {strides = array<i32>} : memref<1x4x8x8xbf16, #tpu.memory_space<vmem>>, vector<1x1x8x8xbf16>,
    %141 = arith.truncf %136 : vector<1x8x8xf32> to vector<1x8x8xbf16>
    "tpu.trace_start"() <{level = 10 : i32, message = "bqk,bkd->bqd"}> : () -> ()
    %cst_96 = arith.constant dense<0.000000e+00> : vector<1x8x8xf32>
    %142 = tpu.matmul %141, %125, %cst_96 {dimension_numbers = #tpu.dot_dimension_numbers<[2], [1], [1], [2], [0, 0, 0, 1, 1, 2], [0], [0]>} : vector<1x8x8xbf16>, vector<1x8x8xbf16>, vector<1x8x8xf32> -> vector<1x8x8xf32>
    "tpu.trace_stop"() : () -> ()
    %143 = tpu.concatenate %82, %102, %122, %142 in 2 : vector<1x8x8xf32>, vector<1x8x8xf32>, vector<1x8x8xf32>, vector<1x8x8xf32> -> vector<1x8x32xf32>
    %c0_97 = arith.constant 0 : index
    %c0_98 = arith.constant 0 : index
    %c0_99 = arith.constant 0 : index
    %144 = vector.load %arg20[%c0_97, %c0_98, %c0_99] : memref<1x8x32xf32, #tpu.memory_space<vmem>>, vector<1x8x32xf32>
    tpu.vector_store %arg20[%c0_97, %c0_98, %c0_99], %143 {strides = array<i32>} : memref<1x8x32xf32, #tpu.memory_space<vmem>>, vector<1x8x32xf32>,
    %145 = vector.shape_cast %143 : vector<1x8x32xf32> to vector<8x32xf32>
    %146 = arith.truncf %145 : vector<8x32xf32> to vector<8x32xbf16>
    %c0_100 = arith.constant 0 : index
    %c0_101 = arith.constant 0 : index
    %147 = vector.load %arg10[%c0_100, %c0_101] : memref<32x32xbf16, #tpu.memory_space<vmem>>, vector<32x32xbf16>
    %cst_102 = arith.constant dense<0.000000e+00> : vector<8x32xf32>
    %148 = tpu.matmul %146, %147, %cst_102 {dimension_numbers = #tpu.dot_dimension_numbers<[1], [0], [0], [1], [0, 0, 1, 1], [], []>} : vector<8x32xbf16>, vector<32x32xbf16>, vector<8x32xf32> -> vector<8x32xf32>
    %c0_103 = arith.constant 0 : index
    %c0_104 = arith.constant 0 : index
    %149 = vector.load %arg11[%c0_103, %c0_104] : memref<1x32xf32, #tpu.memory_space<vmem>>, vector<1x32xf32>
    %150 = vector.shape_cast %149 : vector<1x32xf32> to vector<32xf32>
    %151 = vector.shape_cast %150 : vector<32xf32> to vector<1x32xf32>
    %152 = vector.broadcast %151 : vector<1x32xf32> to vector<8x32xf32>
    %153 = arith.addf %148, %152 : vector<8x32xf32>
    %154 = arith.addf %153, %1 : vector<8x32xf32>
    %c0_105 = arith.constant 0 : index
    %c0_106 = arith.constant 0 : index
    %155 = vector.load %arg12[%c0_105, %c0_106] : memref<1x32xf32, #tpu.memory_space<vmem>>, vector<1x32xf32>
    %156 = vector.shape_cast %155 : vector<1x32xf32> to vector<32xf32>
    %c0_107 = arith.constant 0 : index
    %c0_108 = arith.constant 0 : index
    %157 = vector.load %arg13[%c0_107, %c0_108] : memref<1x32xf32, #tpu.memory_space<vmem>>, vector<1x32xf32>
    %158 = vector.shape_cast %157 : vector<1x32xf32> to vector<32xf32>
    %cst_109 = arith.constant dense<0.000000e+00> : vector<8xf32>
    %159 = vector.multi_reduction <add>, %154, %cst_109 [1] : vector<8x32xf32> to vector<8xf32>
    %160 = vector.shape_cast %159 : vector<8xf32> to vector<8x1xf32>
    %cst_110 = arith.constant 3.200000e+01 : f32
    %161 = vector.broadcast %cst_110 : f32 to vector<8x1xf32>
    %162 = arith.divf %160, %161 : vector<8x1xf32>
    %163 = vector.broadcast %162 : vector<8x1xf32> to vector<8x32xf32>
    %164 = arith.subf %154, %163 : vector<8x32xf32>
    %165 = arith.mulf %164, %164 : vector<8x32xf32>
    %cst_111 = arith.constant dense<0.000000e+00> : vector<8xf32>
    %166 = vector.multi_reduction <add>, %165, %cst_111 [1] : vector<8x32xf32> to vector<8xf32>
    %167 = vector.shape_cast %166 : vector<8xf32> to vector<8x1xf32>
    %cst_112 = arith.constant 3.200000e+01 : f32
    %168 = vector.broadcast %cst_112 : f32 to vector<8x1xf32>
    %169 = arith.divf %167, %168 : vector<8x1xf32>
    %170 = vector.broadcast %162 : vector<8x1xf32> to vector<8x32xf32>
    %171 = arith.subf %154, %170 : vector<8x32xf32>
    %cst_113 = arith.constant 9.99999997E-7 : f32
    %172 = vector.broadcast %cst_113 : f32 to vector<8x1xf32>
    %173 = arith.addf %169, %172 : vector<8x1xf32>
    %174 = math.rsqrt %173 : vector<8x1xf32>
    %175 = vector.broadcast %174 : vector<8x1xf32> to vector<8x32xf32>
    %176 = arith.mulf %171, %175 : vector<8x32xf32>
    %177 = vector.shape_cast %156 : vector<32xf32> to vector<1x32xf32>
    %178 = vector.broadcast %177 : vector<1x32xf32> to vector<8x32xf32>
    %179 = arith.mulf %176, %178 : vector<8x32xf32>
    %180 = vector.shape_cast %158 : vector<32xf32> to vector<1x32xf32>
    %181 = vector.broadcast %180 : vector<1x32xf32> to vector<8x32xf32>
    %182 = arith.addf %179, %181 : vector<8x32xf32>
    %183 = arith.truncf %182 : vector<8x32xf32> to vector<8x32xbf16>
    %c0_114 = arith.constant 0 : index
    %c0_115 = arith.constant 0 : index
    %184 = vector.load %arg14[%c0_114, %c0_115] : memref<32x64xbf16, #tpu.memory_space<vmem>>, vector<32x64xbf16>
    %cst_116 = arith.constant dense<0.000000e+00> : vector<8x64xf32>
    %185 = tpu.matmul %183, %184, %cst_116 {dimension_numbers = #tpu.dot_dimension_numbers<[1], [0], [0], [1], [0, 0, 1, 1], [], []>} : vector<8x32xbf16>, vector<32x64xbf16>, vector<8x64xf32> -> vector<8x64xf32>
    %c0_117 = arith.constant 0 : index
    %c0_118 = arith.constant 0 : index
    %186 = vector.load %arg15[%c0_117, %c0_118] : memref<1x64xf32, #tpu.memory_space<vmem>>, vector<1x64xf32>
    %187 = vector.shape_cast %186 : vector<1x64xf32> to vector<64xf32>
    %188 = vector.shape_cast %187 : vector<64xf32> to vector<1x64xf32>
    %189 = vector.broadcast %188 : vector<1x64xf32> to vector<8x64xf32>
    %190 = arith.addf %185, %189 : vector<8x64xf32>
    %cst_119 = arith.constant 5.000000e-01 : f32
    %191 = vector.broadcast %cst_119 : f32 to vector<8x64xf32>
    %192 = arith.mulf %191, %190 : vector<8x64xf32>
    %cst_120 = arith.constant 0.707106769 : f32
    %193 = vector.broadcast %cst_120 : f32 to vector<8x64xf32>
    %194 = arith.mulf %190, %193 : vector<8x64xf32>
    %195 = math.erf %194 : vector<8x64xf32>
    %cst_121 = arith.constant 1.000000e+00 : f32
    %196 = vector.broadcast %cst_121 : f32 to vector<8x64xf32>
    %197 = arith.addf %196, %195 : vector<8x64xf32>
    %198 = arith.mulf %192, %197 : vector<8x64xf32>
    %199 = arith.truncf %198 : vector<8x64xf32> to vector<8x64xbf16>
    %c0_122 = arith.constant 0 : index
    %c0_123 = arith.constant 0 : index
    %200 = vector.load %arg16[%c0_122, %c0_123] : memref<64x32xbf16, #tpu.memory_space<vmem>>, vector<64x32xbf16>
    %cst_124 = arith.constant dense<0.000000e+00> : vector<8x32xf32>
    %201 = tpu.matmul %199, %200, %cst_124 {dimension_numbers = #tpu.dot_dimension_numbers<[1], [0], [0], [1], [0, 0, 1, 1], [], []>} : vector<8x64xbf16>, vector<64x32xbf16>, vector<8x32xf32> -> vector<8x32xf32>
    %c0_125 = arith.constant 0 : index
    %c0_126 = arith.constant 0 : index
    %202 = vector.load %arg17[%c0_125, %c0_126] : memref<1x32xf32, #tpu.memory_space<vmem>>, vector<1x32xf32>
    %203 = vector.shape_cast %202 : vector<1x32xf32> to vector<32xf32>
    %204 = vector.shape_cast %203 : vector<32xf32> to vector<1x32xf32>
    %205 = vector.broadcast %204 : vector<1x32xf32> to vector<8x32xf32>
    %206 = arith.addf %201, %205 : vector<8x32xf32>
    %207 = arith.addf %206, %154 : vector<8x32xf32>
    %208 = vector.shape_cast %207 : vector<8x32xf32> to vector<1x8x32xf32>
    %c0_127 = arith.constant 0 : index
    %c0_128 = arith.constant 0 : index
    %c0_129 = arith.constant 0 : index
    %209 = vector.load %arg18[%c0_127, %c0_128, %c0_129] : memref<1x8x32xf32, #tpu.memory_space<vmem>>, vector<1x8x32xf32>
    tpu.vector_store %arg18[%c0_127, %c0_128, %c0_129], %208 {strides = array<i32>} : memref<1x8x32xf32, #tpu.memory_space<vmem>>, vector<1x8x32xf32>,
    return
  }
  func.func @transform_0(%arg0: i32) -> (i32, i32, i32) {
    %c0_i32 = arith.constant 0 : i32
    %c0_i32_0 = arith.constant 0 : i32
    %c0_i32_1 = arith.constant 0 : i32
    return %arg0, %c0_i32, %c0_i32_0 : i32, i32, i32
  }
  func.func @transform_1(%arg0: i32) -> (i32, i32) {
    %c0_i32 = arith.constant 0 : i32
    %c0_i32_0 = arith.constant 0 : i32
    %c0_i32_1 = arith.constant 0 : i32
    return %c0_i32, %c0_i32_0 : i32, i32
  }
  func.func @transform_2(%arg0: i32) -> (i32, i32) {
    %c0_i32 = arith.constant 0 : i32
    %c0_i32_0 = arith.constant 0 : i32
    %c0_i32_1 = arith.constant 0 : i32
    return %c0_i32, %c0_i32_0 : i32, i32
  }
  func.func @transform_3(%arg0: i32) -> (i32, i32) {
    %c0_i32 = arith.constant 0 : i32
    %c0_i32_0 = arith.constant 0 : i32
    %c0_i32_1 = arith.constant 0 : i32
    return %c0_i32, %c0_i32_0 : i32, i32
  }
  func.func @transform_4(%arg0: i32) -> (i32, i32) {
    %c0_i32 = arith.constant 0 : i32
    %c0_i32_0 = arith.constant 0 : i32
    %c0_i32_1 = arith.constant 0 : i32
    return %c0_i32, %c0_i32_0 : i32, i32
  }
  func.func @transform_5(%arg0: i32) -> (i32, i32) {
    %c0_i32 = arith.constant 0 : i32
    %c0_i32_0 = arith.constant 0 : i32
    %c0_i32_1 = arith.constant 0 : i32
    return %c0_i32, %c0_i32_0 : i32, i32
  }
  func.func @transform_6(%arg0: i32) -> (i32, i32) {
    %c0_i32 = arith.constant 0 : i32
    %c0_i32_0 = arith.constant 0 : i32
    %c0_i32_1 = arith.constant 0 : i32
    return %c0_i32, %c0_i32_0 : i32, i32
  }
  func.func @transform_7(%arg0: i32) -> (i32, i32) {
    %c0_i32 = arith.constant 0 : i32
    %c0_i32_0 = arith.constant 0 : i32
    %c0_i32_1 = arith.constant 0 : i32
    return %c0_i32, %c0_i32_0 : i32, i32
  }
  func.func @transform_8(%arg0: i32) -> (i32, i32) {
    %c0_i32 = arith.constant 0 : i32
    %c0_i32_0 = arith.constant 0 : i32
    %c0_i32_1 = arith.constant 0 : i32
    return %c0_i32, %c0_i32_0 : i32, i32
  }
  func.func @transform_9(%arg0: i32) -> (i32, i32) {
    %c0_i32 = arith.constant 0 : i32
    %c0_i32_0 = arith.constant 0 : i32
    %c0_i32_1 = arith.constant 0 : i32
    return %c0_i32, %c0_i32_0 : i32, i32
  }
  func.func @transform_10(%arg0: i32) -> (i32, i32) {
    %c0_i32 = arith.constant 0 : i32
    %c0_i32_0 = arith.constant 0 : i32
    %c0_i32_1 = arith.constant 0 : i32
    return %c0_i32, %c0_i32_0 : i32, i32
  }
  func.func @transform_11(%arg0: i32) -> (i32, i32) {
    %c0_i32 = arith.constant 0 : i32
    %c0_i32_0 = arith.constant 0 : i32
    %c0_i32_1 = arith.constant 0 : i32
    return %c0_i32, %c0_i32_0 : i32, i32
  }
  func.func @transform_12(%arg0: i32) -> (i32, i32) {
    %c0_i32 = arith.constant 0 : i32
    %c0_i32_0 = arith.constant 0 : i32
    %c0_i32_1 = arith.constant 0 : i32
    return %c0_i32, %c0_i32_0 : i32, i32
  }
  func.func @transform_13(%arg0: i32) -> (i32, i32) {
    %c0_i32 = arith.constant 0 : i32
    %c0_i32_0 = arith.constant 0 : i32
    %c0_i32_1 = arith.constant 0 : i32
    return %c0_i32, %c0_i32_0 : i32, i32
  }
  func.func @transform_14(%arg0: i32) -> (i32, i32) {
    %c0_i32 = arith.constant 0 : i32
    %c0_i32_0 = arith.constant 0 : i32
    %c0_i32_1 = arith.constant 0 : i32
    return %c0_i32, %c0_i32_0 : i32, i32
  }
  func.func @transform_15(%arg0: i32) -> (i32, i32) {
    %c0_i32 = arith.constant 0 : i32
    %c0_i32_0 = arith.constant 0 : i32
    %c0_i32_1 = arith.constant 0 : i32
    return %c0_i32, %c0_i32_0 : i32, i32
  }
  func.func @transform_16(%arg0: i32) -> (i32, i32) {
    %c0_i32 = arith.constant 0 : i32
    %c0_i32_0 = arith.constant 0 : i32
    %c0_i32_1 = arith.constant 0 : i32
    return %c0_i32, %c0_i32_0 : i32, i32
  }
  func.func @transform_17(%arg0: i32) -> (i32, i32, i32) {
    %c0_i32 = arith.constant 0 : i32
    %c0_i32_0 = arith.constant 0 : i32
    %c0_i32_1 = arith.constant 0 : i32
    return %arg0, %c0_i32, %c0_i32_0 : i32, i32, i32
  }
  func.func @transform_18(%arg0: i32) -> (i32, i32, i32, i32) {
    %c0_i32 = arith.constant 0 : i32
    %c0_i32_0 = arith.constant 0 : i32
    %c0_i32_1 = arith.constant 0 : i32
    %c0_i32_2 = arith.constant 0 : i32
    return %arg0, %c0_i32, %c0_i32_0, %c0_i32_1 : i32, i32, i32, i32
  }
  func.func @transform_19(%arg0: i32) -> (i32, i32, i32) {
    %c0_i32 = arith.constant 0 : i32
    %c0_i32_0 = arith.constant 0 : i32
    %c0_i32_1 = arith.constant 0 : i32
    return %arg0, %c0_i32, %c0_i32_0 : i32, i32, i32
  }
}

module attributes {stable_mosaic.version = 11 : i64} {
  func.func @kernel(%arg0: i32, %arg1: memref<1x8x32xf32, #tpu.memory_space<vmem>>, %arg2: memref<1x32xf32, #tpu.memory_space<vmem>>, %arg3: memref<1x32xf32, #tpu.memory_space<vmem>>, %arg4: memref<32x32xbf16, #tpu.memory_space<vmem>>, %arg5: memref<1x32xf32, #tpu.memory_space<vmem>>, %arg6: memref<32x32xbf16, #tpu.memory_space<vmem>>, %arg7: memref<1x32xf32, #tpu.memory_space<vmem>>, %arg8: memref<32x32xbf16, #tpu.memory_space<vmem>>, %arg9: memref<1x32xf32, #tpu.memory_space<vmem>>, %arg10: memref<32x32xbf16, #tpu.memory_space<vmem>>, %arg11: memref<1x32xf32, #tpu.memory_space<vmem>>, %arg12: memref<1x32xf32, #tpu.memory_space<vmem>>, %arg13: memref<1x32xf32, #tpu.memory_space<vmem>>, %arg14: memref<32x64xbf16, #tpu.memory_space<vmem>>, %arg15: memref<1x64xf32, #tpu.memory_space<vmem>>, %arg16: memref<64x32xbf16, #tpu.memory_space<vmem>>, %arg17: memref<1x32xf32, #tpu.memory_space<vmem>>, %arg18: memref<1x8x32xf32, #tpu.memory_space<vmem>>, %arg19: memref<1x4x8x8xbf16, #tpu.memory_space<vmem>>, %arg20: memref<1x8x32xf32, #tpu.memory_space<vmem>>, %arg21: memref<1x8x32xbf16, #tpu.memory_space<vmem>>, %arg22: memref<1x8x32xbf16, #tpu.memory_space<vmem>>, %arg23: memref<1x8x32xbf16, #tpu.memory_space<vmem>>) attributes {dimension_semantics = [#tpu.dimension_semantics<parallel>], iteration_bounds = array<i64: 2>, scalar_prefetch = 0 : i64, scratch_operands = 3 : i64, tpu.core_type = #tpu.core_type<tc>, window_params = [{transform_indices = @transform_0, window_bounds = array<i64: 1, 8, 32>}, {pipeline_mode = #tpu.pipeline_mode<synchronous>, transform_indices = @transform_1, window_bounds = array<i64: 1, 32>}, {pipeline_mode = #tpu.pipeline_mode<synchronous>, transform_indices = @transform_2, window_bounds = array<i64: 1, 32>}, {pipeline_mode = #tpu.pipeline_mode<synchronous>, transform_indices = @transform_3, window_bounds = array<i64: 32, 32>}, {pipeline_mode = #tpu.pipeline_mode<synchronous>, transform_indices = @transform_4, window_bounds = array<i64: 1, 32>}, {pipeline_mode = #tpu.pipeline_mode<synchronous>, transform_indices = @transform_5, window_bounds = array<i64: 32, 32>}, {pipeline_mode = #tpu.pipeline_mode<synchronous>, transform_indices = @transform_6, window_bounds = array<i64: 1, 32>}, {pipeline_mode = #tpu.pipeline_mode<synchronous>, transform_indices = @transform_7, window_bounds = array<i64: 32, 32>}, {pipeline_mode = #tpu.pipeline_mode<synchronous>, transform_indices = @transform_8, window_bounds = array<i64: 1, 32>}, {pipeline_mode = #tpu.pipeline_mode<synchronous>, transform_indices = @transform_9, window_bounds = array<i64: 32, 32>}, {pipeline_mode = #tpu.pipeline_mode<synchronous>, transform_indices = @transform_10, window_bounds = array<i64: 1, 32>}, {pipeline_mode = #tpu.pipeline_mode<synchronous>, transform_indices = @transform_11, window_bounds = array<i64: 1, 32>}, {pipeline_mode = #tpu.pipeline_mode<synchronous>, transform_indices = @transform_12, window_bounds = array<i64: 1, 32>}, {pipeline_mode = #tpu.pipeline_mode<synchronous>, transform_indices = @transform_13, window_bounds = array<i64: 32, 64>}, {pipeline_mode = #tpu.pipeline_mode<synchronous>, transform_indices = @transform_14, window_bounds = array<i64: 1, 64>}, {pipeline_mode = #tpu.pipeline_mode<synchronous>, transform_indices = @transform_15, window_bounds = array<i64: 64, 32>}, {pipeline_mode = #tpu.pipeline_mode<synchronous>, transform_indices = @transform_16, window_bounds = array<i64: 1, 32>}, {transform_indices = @transform_17, window_bounds = array<i64: 1, 8, 32>}, {transform_indices = @transform_18, window_bounds = array<i64: 1, 4, 8, 8>}, {transform_indices = @transform_19, window_bounds = array<i64: 1, 8, 32>}]} {
    %c0 = arith.constant 0 : index
    %c0_0 = arith.constant 0 : index
    %c0_1 = arith.constant 0 : index
    %0 = vector.load %arg1[%c0, %c0_0, %c0_1] : memref<1x8x32xf32, #tpu.memory_space<vmem>>, vector<1x8x32xf32>
    %1 = vector.shape_cast %0 : vector<1x8x32xf32> to vector<8x32xf32>
    %c0_2 = arith.constant 0 : index
    %c0_3 = arith.constant 0 : index
    %2 = vector.load %arg2[%c0_2, %c0_3] : memref<1x32xf32, #tpu.memory_space<vmem>>, vector<1x32xf32>
    %3 = vector.shape_cast %2 : vector<1x32xf32> to vector<32xf32>
    %c0_4 = arith.constant 0 : index
    %c0_5 = arith.constant 0 : index
    %4 = vector.load %arg3[%c0_4, %c0_5] : memref<1x32xf32, #tpu.memory_space<vmem>>, vector<1x32xf32>
    %5 = vector.shape_cast %4 : vector<1x32xf32> to vector<32xf32>
    %cst = arith.constant dense<0.000000e+00> : vector<8xf32>
    %6 = vector.multi_reduction <add>, %1, %cst [1] : vector<8x32xf32> to vector<8xf32>
    %7 = vector.shape_cast %6 : vector<8xf32> to vector<8x1xf32>
    %cst_6 = arith.constant 3.200000e+01 : f32
    %8 = vector.broadcast %cst_6 : f32 to vector<8x1xf32>
    %9 = arith.divf %7, %8 : vector<8x1xf32>
    %10 = vector.broadcast %9 : vector<8x1xf32> to vector<8x32xf32>
    %11 = arith.subf %1, %10 : vector<8x32xf32>
    %12 = arith.mulf %11, %11 : vector<8x32xf32>
    %cst_7 = arith.constant dense<0.000000e+00> : vector<8xf32>
    %13 = vector.multi_reduction <add>, %12, %cst_7 [1] : vector<8x32xf32> to vector<8xf32>
    %14 = vector.shape_cast %13 : vector<8xf32> to vector<8x1xf32>
    %cst_8 = arith.constant 3.200000e+01 : f32
    %15 = vector.broadcast %cst_8 : f32 to vector<8x1xf32>
    %16 = arith.divf %14, %15 : vector<8x1xf32>
    %17 = vector.broadcast %9 : vector<8x1xf32> to vector<8x32xf32>
    %18 = arith.subf %1, %17 : vector<8x32xf32>
    %cst_9 = arith.constant 9.99999997E-7 : f32
    %19 = vector.broadcast %cst_9 : f32 to vector<8x1xf32>
    %20 = arith.addf %16, %19 : vector<8x1xf32>
    %21 = math.rsqrt %20 : vector<8x1xf32>
    %22 = vector.broadcast %21 : vector<8x1xf32> to vector<8x32xf32>
    %23 = arith.mulf %18, %22 : vector<8x32xf32>
    %24 = vector.shape_cast %3 : vector<32xf32> to vector<1x32xf32>
    %25 = vector.broadcast %24 : vector<1x32xf32> to vector<8x32xf32>
    %26 = arith.mulf %23, %25 : vector<8x32xf32>
    %27 = vector.shape_cast %5 : vector<32xf32> to vector<1x32xf32>
    %28 = vector.broadcast %27 : vector<1x32xf32> to vector<8x32xf32>
    %29 = arith.addf %26, %28 : vector<8x32xf32>
    %30 = arith.truncf %29 : vector<8x32xf32> to vector<8x32xbf16>
    %c0_10 = arith.constant 0 : index
    %c0_11 = arith.constant 0 : index
    %31 = vector.load %arg6[%c0_10, %c0_11] : memref<32x32xbf16, #tpu.memory_space<vmem>>, vector<32x32xbf16>
    %cst_12 = arith.constant dense<0.000000e+00> : vector<8x32xf32>
    %32 = tpu.matmul %30, %31, %cst_12 {dimension_numbers = #tpu.dot_dimension_numbers<[1], [0], [0], [1], [0, 0, 1, 1], [], []>} : vector<8x32xbf16>, vector<32x32xbf16>, vector<8x32xf32> -> vector<8x32xf32>
    %c0_13 = arith.constant 0 : index
    %c0_14 = arith.constant 0 : index
    %33 = vector.load %arg7[%c0_13, %c0_14] : memref<1x32xf32, #tpu.memory_space<vmem>>, vector<1x32xf32>
    %34 = vector.shape_cast %33 : vector<1x32xf32> to vector<32xf32>
    %35 = vector.shape_cast %34 : vector<32xf32> to vector<1x32xf32>
    %36 = vector.broadcast %35 : vector<1x32xf32> to vector<8x32xf32>
    %37 = arith.addf %32, %36 : vector<8x32xf32>
    %c0_15 = arith.constant 0 : index
    %c0_16 = arith.constant 0 : index
    %38 = vector.load %arg8[%c0_15, %c0_16] : memref<32x32xbf16, #tpu.memory_space<vmem>>, vector<32x32xbf16>
    %cst_17 = arith.constant dense<0.000000e+00> : vector<8x32xf32>
    %39 = tpu.matmul %30, %38, %cst_17 {dimension_numbers = #tpu.dot_dimension_numbers<[1], [0], [0], [1], [0, 0, 1, 1], [], []>} : vector<8x32xbf16>, vector<32x32xbf16>, vector<8x32xf32> -> vector<8x32xf32>
    %c0_18 = arith.constant 0 : index
    %c0_19 = arith.constant 0 : index
    %40 = vector.load %arg9[%c0_18, %c0_19] : memref<1x32xf32, #tpu.memory_space<vmem>>, vector<1x32xf32>
    %41 = vector.shape_cast %40 : vector<1x32xf32> to vector<32xf32>
    %42 = vector.shape_cast %41 : vector<32xf32> to vector<1x32xf32>
    %43 = vector.broadcast %42 : vector<1x32xf32> to vector<8x32xf32>
    %44 = arith.addf %39, %43 : vector<8x32xf32>
    %c0_20 = arith.constant 0 : index
    %c0_21 = arith.constant 0 : index
    %45 = vector.load %arg4[%c0_20, %c0_21] : memref<32x32xbf16, #tpu.memory_space<vmem>>, vector<32x32xbf16>
    %cst_22 = arith.constant dense<0.000000e+00> : vector<8x32xf32>
    %46 = tpu.matmul %30, %45, %cst_22 {dimension_numbers = #tpu.dot_dimension_numbers<[1], [0], [0], [1], [0, 0, 1, 1], [], []>} : vector<8x32xbf16>, vector<32x32xbf16>, vector<8x32xf32> -> vector<8x32xf32>
    %c0_23 = arith.constant 0 : index
    %c0_24 = arith.constant 0 : index
    %47 = vector.load %arg5[%c0_23, %c0_24] : memref<1x32xf32, #tpu.memory_space<vmem>>, vector<1x32xf32>
    %48 = vector.shape_cast %47 : vector<1x32xf32> to vector<32xf32>
    %49 = vector.shape_cast %48 : vector<32xf32> to vector<1x32xf32>
    %50 = vector.broadcast %49 : vector<1x32xf32> to vector<8x32xf32>
    %51 = arith.addf %46, %50 : vector<8x32xf32>
    %cst_25 = arith.constant 0.353553385 : f32
    %52 = vector.broadcast %cst_25 : f32 to vector<8x32xf32>
    %53 = arith.mulf %51, %52 : vector<8x32xf32>
    %54 = arith.truncf %53 : vector<8x32xf32> to vector<8x32xbf16>
    %55 = vector.shape_cast %54 : vector<8x32xbf16> to vector<1x8x32xbf16>
    %c0_26 = arith.constant 0 : index
    %c0_27 = arith.constant 0 : index
    %c0_28 = arith.constant 0 : index
    %56 = vector.load %arg21[%c0_26, %c0_27, %c0_28] : memref<1x8x32xbf16, #tpu.memory_space<vmem>>, vector<1x8x32xbf16>
    tpu.vector_store %arg21[%c0_26, %c0_27, %c0_28], %55 {strides = array<i32>} : memref<1x8x32xbf16, #tpu.memory_space<vmem>>, vector<1x8x32xbf16>,
    %57 = arith.truncf %37 : vector<8x32xf32> to vector<8x32xbf16>
    %58 = vector.shape_cast %57 : vector<8x32xbf16> to vector<1x8x32xbf16>
    %c0_29 = arith.constant 0 : index
    %c0_30 = arith.constant 0 : index
    %c0_31 = arith.constant 0 : index
    %59 = vector.load %arg22[%c0_29, %c0_30, %c0_31] : memref<1x8x32xbf16, #tpu.memory_space<vmem>>, vector<1x8x32xbf16>
    tpu.vector_store %arg22[%c0_29, %c0_30, %c0_31], %58 {strides = array<i32>} : memref<1x8x32xbf16, #tpu.memory_space<vmem>>, vector<1x8x32xbf16>,
    %60 = arith.truncf %44 : vector<8x32xf32> to vector<8x32xbf16>
    %61 = vector.shape_cast %60 : vector<8x32xbf16> to vector<1x8x32xbf16>
    %c0_32 = arith.constant 0 : index
    %c0_33 = arith.constant 0 : index
    %c0_34 = arith.constant 0 : index
    %62 = vector.load %arg23[%c0_32, %c0_33, %c0_34] : memref<1x8x32xbf16, #tpu.memory_space<vmem>>, vector<1x8x32xbf16>
    tpu.vector_store %arg23[%c0_32, %c0_33, %c0_34], %61 {strides = array<i32>} : memref<1x8x32xbf16, #tpu.memory_space<vmem>>, vector<1x8x32xbf16>,
    %c0_35 = arith.constant 0 : index
    %c0_36 = arith.constant 0 : index
    %c0_37 = arith.constant 0 : index
    %63 = vector.load %arg21[%c0_35, %c0_36, %c0_37] : memref<1x8x32xbf16, #tpu.memory_space<vmem>>, vector<1x8x8xbf16>
    %c0_38 = arith.constant 0 : index
    %c0_39 = arith.constant 0 : index
    %c0_40 = arith.constant 0 : index
    %64 = vector.load %arg22[%c0_38, %c0_39, %c0_40] : memref<1x8x32xbf16, #tpu.memory_space<vmem>>, vector<1x8x8xbf16>
    %c0_41 = arith.constant 0 : index
    %c0_42 = arith.constant 0 : index
    %c0_43 = arith.constant 0 : index
    %65 = vector.load %arg23[%c0_41, %c0_42, %c0_43] : memref<1x8x32xbf16, #tpu.memory_space<vmem>>, vector<1x8x8xbf16>
    "tpu.trace_start"() <{level = 10 : i32, message = "bqd,bkd->bqk"}> : () -> ()
    %cst_44 = arith.constant dense<0.000000e+00> : vector<1x8x8xf32>
    %66 = tpu.matmul %63, %64, %cst_44 {dimension_numbers = #tpu.dot_dimension_numbers<[2], [2], [1], [1], [0, 0, 0, 1, 1, 1], [0], [0]>} : vector<1x8x8xbf16>, vector<1x8x8xbf16>, vector<1x8x8xf32> -> vector<1x8x8xf32>
    "tpu.trace_stop"() : () -> ()
    %cst_45 = arith.constant dense<0xFF800000> : vector<1x8xf32>
    %67 = vector.multi_reduction <maximumf>, %66, %cst_45 [2] : vector<1x8x8xf32> to vector<1x8xf32>
    %68 = vector.shape_cast %67 : vector<1x8xf32> to vector<1x8x1xf32>
    %69 = vector.broadcast %68 : vector<1x8x1xf32> to vector<1x8x8xf32>
    %70 = arith.subf %66, %69 : vector<1x8x8xf32>
    %71 = math.exp %70 : vector<1x8x8xf32>
    %cst_46 = arith.constant dense<0.000000e+00> : vector<1x8xf32>
    %72 = vector.multi_reduction <add>, %71, %cst_46 [2] : vector<1x8x8xf32> to vector<1x8xf32>
    %73 = vector.shape_cast %72 : vector<1x8xf32> to vector<1x8x1xf32>
    %74 = tpu.reciprocal %73 {approx = true} : vector<1x8x1xf32> -> vector<1x8x1xf32>
    %75 = vector.broadcast %74 : vector<1x8x1xf32> to vector<1x8x8xf32>
    %76 = arith.mulf %71, %75 : vector<1x8x8xf32>
    %77 = arith.truncf %76 : vector<1x8x8xf32> to vector<1x8x8xbf16>
    %c0_47 = arith.constant 0 : index
    %c0_48 = arith.constant 0 : index
    %c0_49 = arith.constant 0 : index
    %c0_50 = arith.constant 0 : index
    %78 = vector.load %arg19[%c0_47, %c0_48, %c0_49, %c0_50] : memref<1x4x8x8xbf16, #tpu.memory_space<vmem>>, vector<1x1x8x8xbf16>
    %79 = vector.shape_cast %78 : vector<1x1x8x8xbf16> to vector<1x8x8xbf16>
    %80 = vector.shape_cast %77 : vector<1x8x8xbf16> to vector<1x1x8x8xbf16>
    tpu.vector_store %arg19[%c0_47, %c0_48, %c0_49, %c0_50], %80 {strides = array<i32>} : memref<1x4x8x8xbf16, #tpu.memory_space<vmem>>, vector<1x1x8x8xbf16>,
    %81 = arith.truncf %76 : vector<1x8x8xf32> to vector<1x8x8xbf16>
    "tpu.trace_start"() <{level = 10 : i32, message = "bqk,bkd->bqd"}> : () -> ()
    %cst_51 = arith.constant dense<0.000000e+00> : vector<1x8x8xf32>
    %82 = tpu.matmul %81, %65, %cst_51 {dimension_numbers = #tpu.dot_dimension_numbers<[2], [1], [1], [2], [0, 0, 0, 1, 1, 2], [0], [0]>} : vector<1x8x8xbf16>, vector<1x8x8xbf16>, vector<1x8x8xf32> -> vector<1x8x8xf32>
    "tpu.trace_stop"() : () -> ()
    %c0_52 = arith.constant 0 : index
    %c0_53 = arith.constant 0 : index
    %c8 = arith.constant 8 : index
    %83 = vector.load %arg21[%c0_52, %c0_53, %c8] : memref<1x8x32xbf16, #tpu.memory_space<vmem>>, vector<1x8x8xbf16>
    %c0_54 = arith.constant 0 : index
    %c0_55 = arith.constant 0 : index
    %c8_56 = arith.constant 8 : index
    %84 = vector.load %arg22[%c0_54, %c0_55, %c8_56] : memref<1x8x32xbf16, #tpu.memory_space<vmem>>, vector<1x8x8xbf16>
    %c0_57 = arith.constant 0 : index
    %c0_58 = arith.constant 0 : index
    %c8_59 = arith.constant 8 : index
    %85 = vector.load %arg23[%c0_57, %c0_58, %c8_59] : memref<1x8x32xbf16, #tpu.memory_space<vmem>>, vector<1x8x8xbf16>
    "tpu.trace_start"() <{level = 10 : i32, message = "bqd,bkd->bqk"}> : () -> ()
    %cst_60 = arith.constant dense<0.000000e+00> : vector<1x8x8xf32>
    %86 = tpu.matmul %83, %84, %cst_60 {dimension_numbers = #tpu.dot_dimension_numbers<[2], [2], [1], [1], [0, 0, 0, 1, 1, 1], [0], [0]>} : vector<1x8x8xbf16>, vector<1x8x8xbf16>, vector<1x8x8xf32> -> vector<1x8x8xf32>
    "tpu.trace_stop"() : () -> ()
    %cst_61 = arith.constant dense<0xFF800000> : vector<1x8xf32>
    %87 = vector.multi_reduction <maximumf>, %86, %cst_61 [2] : vector<1x8x8xf32> to vector<1x8xf32>
    %88 = vector.shape_cast %87 : vector<1x8xf32> to vector<1x8x1xf32>
    %89 = vector.broadcast %88 : vector<1x8x1xf32> to vector<1x8x8xf32>
    %90 = arith.subf %86, %89 : vector<1x8x8xf32>
    %91 = math.exp %90 : vector<1x8x8xf32>
    %cst_62 = arith.constant dense<0.000000e+00> : vector<1x8xf32>
    %92 = vector.multi_reduction <add>, %91, %cst_62 [2] : vector<1x8x8xf32> to vector<1x8xf32>
    %93 = vector.shape_cast %92 : vector<1x8xf32> to vector<1x8x1xf32>
    %94 = tpu.reciprocal %93 {approx = true} : vector<1x8x1xf32> -> vector<1x8x1xf32>
    %95 = vector.broadcast %94 : vector<1x8x1xf32> to vector<1x8x8xf32>
    %96 = arith.mulf %91, %95 : vector<1x8x8xf32>
    %97 = arith.truncf %96 : vector<1x8x8xf32> to vector<1x8x8xbf16>
    %c0_63 = arith.constant 0 : index
    %c1 = arith.constant 1 : index
    %c0_64 = arith.constant 0 : index
    %c0_65 = arith.constant 0 : index
    %98 = vector.load %arg19[%c0_63, %c1, %c0_64, %c0_65] : memref<1x4x8x8xbf16, #tpu.memory_space<vmem>>, vector<1x1x8x8xbf16>
    %99 = vector.shape_cast %98 : vector<1x1x8x8xbf16> to vector<1x8x8xbf16>
    %100 = vector.shape_cast %97 : vector<1x8x8xbf16> to vector<1x1x8x8xbf16>
    tpu.vector_store %arg19[%c0_63, %c1, %c0_64, %c0_65], %100 {strides = array<i32>} : memref<1x4x8x8xbf16, #tpu.memory_space<vmem>>, vector<1x1x8x8xbf16>,
    %101 = arith.truncf %96 : vector<1x8x8xf32> to vector<1x8x8xbf16>
    "tpu.trace_start"() <{level = 10 : i32, message = "bqk,bkd->bqd"}> : () -> ()
    %cst_66 = arith.constant dense<0.000000e+00> : vector<1x8x8xf32>
    %102 = tpu.matmul %101, %85, %cst_66 {dimension_numbers = #tpu.dot_dimension_numbers<[2], [1], [1], [2], [0, 0, 0, 1, 1, 2], [0], [0]>} : vector<1x8x8xbf16>, vector<1x8x8xbf16>, vector<1x8x8xf32> -> vector<1x8x8xf32>
    "tpu.trace_stop"() : () -> ()
    %c0_67 = arith.constant 0 : index
    %c0_68 = arith.constant 0 : index
    %c16 = arith.constant 16 : index
    %103 = vector.load %arg21[%c0_67, %c0_68, %c16] : memref<1x8x32xbf16, #tpu.memory_space<vmem>>, vector<1x8x8xbf16>
    %c0_69 = arith.constant 0 : index
    %c0_70 = arith.constant 0 : index
    %c16_71 = arith.constant 16 : index
    %104 = vector.load %arg22[%c0_69, %c0_70, %c16_71] : memref<1x8x32xbf16, #tpu.memory_space<vmem>>, vector<1x8x8xbf16>
    %c0_72 = arith.constant 0 : index
    %c0_73 = arith.constant 0 : index
    %c16_74 = arith.constant 16 : index
    %105 = vector.load %arg23[%c0_72, %c0_73, %c16_74] : memref<1x8x32xbf16, #tpu.memory_space<vmem>>, vector<1x8x8xbf16>
    "tpu.trace_start"() <{level = 10 : i32, message = "bqd,bkd->bqk"}> : () -> ()
    %cst_75 = arith.constant dense<0.000000e+00> : vector<1x8x8xf32>
    %106 = tpu.matmul %103, %104, %cst_75 {dimension_numbers = #tpu.dot_dimension_numbers<[2], [2], [1], [1], [0, 0, 0, 1, 1, 1], [0], [0]>} : vector<1x8x8xbf16>, vector<1x8x8xbf16>, vector<1x8x8xf32> -> vector<1x8x8xf32>
    "tpu.trace_stop"() : () -> ()
    %cst_76 = arith.constant dense<0xFF800000> : vector<1x8xf32>
    %107 = vector.multi_reduction <maximumf>, %106, %cst_76 [2] : vector<1x8x8xf32> to vector<1x8xf32>
    %108 = vector.shape_cast %107 : vector<1x8xf32> to vector<1x8x1xf32>
    %109 = vector.broadcast %108 : vector<1x8x1xf32> to vector<1x8x8xf32>
    %110 = arith.subf %106, %109 : vector<1x8x8xf32>
    %111 = math.exp %110 : vector<1x8x8xf32>
    %cst_77 = arith.constant dense<0.000000e+00> : vector<1x8xf32>
    %112 = vector.multi_reduction <add>, %111, %cst_77 [2] : vector<1x8x8xf32> to vector<1x8xf32>
    %113 = vector.shape_cast %112 : vector<1x8xf32> to vector<1x8x1xf32>
    %114 = tpu.reciprocal %113 {approx = true} : vector<1x8x1xf32> -> vector<1x8x1xf32>
    %115 = vector.broadcast %114 : vector<1x8x1xf32> to vector<1x8x8xf32>
    %116 = arith.mulf %111, %115 : vector<1x8x8xf32>
    %117 = arith.truncf %116 : vector<1x8x8xf32> to vector<1x8x8xbf16>
    %c0_78 = arith.constant 0 : index
    %c2 = arith.constant 2 : index
    %c0_79 = arith.constant 0 : index
    %c0_80 = arith.constant 0 : index
    %118 = vector.load %arg19[%c0_78, %c2, %c0_79, %c0_80] : memref<1x4x8x8xbf16, #tpu.memory_space<vmem>>, vector<1x1x8x8xbf16>
    %119 = vector.shape_cast %118 : vector<1x1x8x8xbf16> to vector<1x8x8xbf16>
    %120 = vector.shape_cast %117 : vector<1x8x8xbf16> to vector<1x1x8x8xbf16>
    tpu.vector_store %arg19[%c0_78, %c2, %c0_79, %c0_80], %120 {strides = array<i32>} : memref<1x4x8x8xbf16, #tpu.memory_space<vmem>>, vector<1x1x8x8xbf16>,
    %121 = arith.truncf %116 : vector<1x8x8xf32> to vector<1x8x8xbf16>
    "tpu.trace_start"() <{level = 10 : i32, message = "bqk,bkd->bqd"}> : () -> ()
    %cst_81 = arith.constant dense<0.000000e+00> : vector<1x8x8xf32>
    %122 = tpu.matmul %121, %105, %cst_81 {dimension_numbers = #tpu.dot_dimension_numbers<[2], [1], [1], [2], [0, 0, 0, 1, 1, 2], [0], [0]>} : vector<1x8x8xbf16>, vector<1x8x8xbf16>, vector<1x8x8xf32> -> vector<1x8x8xf32>
    "tpu.trace_stop"() : () -> ()
    %c0_82 = arith.constant 0 : index
    %c0_83 = arith.constant 0 : index
    %c24 = arith.constant 24 : index
    %123 = vector.load %arg21[%c0_82, %c0_83, %c24] : memref<1x8x32xbf16, #tpu.memory_space<vmem>>, vector<1x8x8xbf16>
    %c0_84 = arith.constant 0 : index
    %c0_85 = arith.constant 0 : index
    %c24_86 = arith.constant 24 : index
    %124 = vector.load %arg22[%c0_84, %c0_85, %c24_86] : memref<1x8x32xbf16, #tpu.memory_space<vmem>>, vector<1x8x8xbf16>
    %c0_87 = arith.constant 0 : index
    %c0_88 = arith.constant 0 : index
    %c24_89 = arith.constant 24 : index
    %125 = vector.load %arg23[%c0_87, %c0_88, %c24_89] : memref<1x8x32xbf16, #tpu.memory_space<vmem>>, vector<1x8x8xbf16>
    "tpu.trace_start"() <{level = 10 : i32, message = "bqd,bkd->bqk"}> : () -> ()
    %cst_90 = arith.constant dense<0.000000e+00> : vector<1x8x8xf32>
    %126 = tpu.matmul %123, %124, %cst_90 {dimension_numbers = #tpu.dot_dimension_numbers<[2], [2], [1], [1], [0, 0, 0, 1, 1, 1], [0], [0]>} : vector<1x8x8xbf16>, vector<1x8x8xbf16>, vector<1x8x8xf32> -> vector<1x8x8xf32>
    "tpu.trace_stop"() : () -> ()
    %cst_91 = arith.constant dense<0xFF800000> : vector<1x8xf32>
    %127 = vector.multi_reduction <maximumf>, %126, %cst_91 [2] : vector<1x8x8xf32> to vector<1x8xf32>
    %128 = vector.shape_cast %127 : vector<1x8xf32> to vector<1x8x1xf32>
    %129 = vector.broadcast %128 : vector<1x8x1xf32> to vector<1x8x8xf32>
    %130 = arith.subf %126, %129 : vector<1x8x8xf32>
    %131 = math.exp %130 : vector<1x8x8xf32>
    %cst_92 = arith.constant dense<0.000000e+00> : vector<1x8xf32>
    %132 = vector.multi_reduction <add>, %131, %cst_92 [2] : vector<1x8x8xf32> to vector<1x8xf32>
    %133 = vector.shape_cast %132 : vector<1x8xf32> to vector<1x8x1xf32>
    %134 = tpu.reciprocal %133 {approx = true} : vector<1x8x1xf32> -> vector<1x8x1xf32>
    %135 = vector.broadcast %134 : vector<1x8x1xf32> to vector<1x8x8xf32>
    %136 = arith.mulf %131, %135 : vector<1x8x8xf32>
    %137 = arith.truncf %136 : vector<1x8x8xf32> to vector<1x8x8xbf16>
    %c0_93 = arith.constant 0 : index
    %c3 = arith.constant 3 : index
    %c0_94 = arith.constant 0 : index
    %c0_95 = arith.constant 0 : index
    %138 = vector.load %arg19[%c0_93, %c3, %c0_94, %c0_95] : memref<1x4x8x8xbf16, #tpu.memory_space<vmem>>, vector<1x1x8x8xbf16>
    %139 = vector.shape_cast %138 : vector<1x1x8x8xbf16> to vector<1x8x8xbf16>
    %140 = vector.shape_cast %137 : vector<1x8x8xbf16> to vector<1x1x8x8xbf16>
    tpu.vector_store %arg19[%c0_93, %c3, %c0_94, %c0_95], %140 {strides = array<i32>} : memref<1x4x8x8xbf16, #tpu.memory_space<vmem>>, vector<1x1x8x8xbf16>,
    %141 = arith.truncf %136 : vector<1x8x8xf32> to vector<1x8x8xbf16>
    "tpu.trace_start"() <{level = 10 : i32, message = "bqk,bkd->bqd"}> : () -> ()
    %cst_96 = arith.constant dense<0.000000e+00> : vector<1x8x8xf32>
    %142 = tpu.matmul %141, %125, %cst_96 {dimension_numbers = #tpu.dot_dimension_numbers<[2], [1], [1], [2], [0, 0, 0, 1, 1, 2], [0], [0]>} : vector<1x8x8xbf16>, vector<1x8x8xbf16>, vector<1x8x8xf32> -> vector<1x8x8xf32>
    "tpu.trace_stop"() : () -> ()
    %143 = tpu.concatenate %82, %102, %122, %142 in 2 : vector<1x8x8xf32>, vector<1x8x8xf32>, vector<1x8x8xf32>, vector<1x8x8xf32> -> vector<1x8x32xf32>
    %c0_97 = arith.constant 0 : index
    %c0_98 = arith.constant 0 : index
    %c0_99 = arith.constant 0 : index
    %144 = vector.load %arg20[%c0_97, %c0_98, %c0_99] : memref<1x8x32xf32, #tpu.memory_space<vmem>>, vector<1x8x32xf32>
    tpu.vector_store %arg20[%c0_97, %c0_98, %c0_99], %143 {strides = array<i32>} : memref<1x8x32xf32, #tpu.memory_space<vmem>>, vector<1x8x32xf32>,
    %145 = vector.shape_cast %143 : vector<1x8x32xf32> to vector<8x32xf32>
    %146 = arith.truncf %145 : vector<8x32xf32> to vector<8x32xbf16>
    %c0_100 = arith.constant 0 : index
    %c0_101 = arith.constant 0 : index
    %147 = vector.load %arg10[%c0_100, %c0_101] : memref<32x32xbf16, #tpu.memory_space<vmem>>, vector<32x32xbf16>
    %cst_102 = arith.constant dense<0.000000e+00> : vector<8x32xf32>
    %148 = tpu.matmul %146, %147, %cst_102 {dimension_numbers = #tpu.dot_dimension_numbers<[1], [0], [0], [1], [0, 0, 1, 1], [], []>} : vector<8x32xbf16>, vector<32x32xbf16>, vector<8x32xf32> -> vector<8x32xf32>
    %c0_103 = arith.constant 0 : index
    %c0_104 = arith.constant 0 : index
    %149 = vector.load %arg11[%c0_103, %c0_104] : memref<1x32xf32, #tpu.memory_space<vmem>>, vector<1x32xf32>
    %150 = vector.shape_cast %149 : vector<1x32xf32> to vector<32xf32>
    %151 = vector.shape_cast %150 : vector<32xf32> to vector<1x32xf32>
    %152 = vector.broadcast %151 : vector<1x32xf32> to vector<8x32xf32>
    %153 = arith.addf %148, %152 : vector<8x32xf32>
    %154 = arith.addf %153, %1 : vector<8x32xf32>
    %c0_105 = arith.constant 0 : index
    %c0_106 = arith.constant 0 : index
    %155 = vector.load %arg12[%c0_105, %c0_106] : memref<1x32xf32, #tpu.memory_space<vmem>>, vector<1x32xf32>
    %156 = vector.shape_cast %155 : vector<1x32xf32> to vector<32xf32>
    %c0_107 = arith.constant 0 : index
    %c0_108 = arith.constant 0 : index
    %157 = vector.load %arg13[%c0_107, %c0_108] : memref<1x32xf32, #tpu.memory_space<vmem>>, vector<1x32xf32>
    %158 = vector.shape_cast %157 : vector<1x32xf32> to vector<32xf32>
    %cst_109 = arith.constant dense<0.000000e+00> : vector<8xf32>
    %159 = vector.multi_reduction <add>, %154, %cst_109 [1] : vector<8x32xf32> to vector<8xf32>
    %160 = vector.shape_cast %159 : vector<8xf32> to vector<8x1xf32>
    %cst_110 = arith.constant 3.200000e+01 : f32
    %161 = vector.broadcast %cst_110 : f32 to vector<8x1xf32>
    %162 = arith.divf %160, %161 : vector<8x1xf32>
    %163 = vector.broadcast %162 : vector<8x1xf32> to vector<8x32xf32>
    %164 = arith.subf %154, %163 : vector<8x32xf32>
    %165 = arith.mulf %164, %164 : vector<8x32xf32>
    %cst_111 = arith.constant dense<0.000000e+00> : vector<8xf32>
    %166 = vector.multi_reduction <add>, %165, %cst_111 [1] : vector<8x32xf32> to vector<8xf32>
    %167 = vector.shape_cast %166 : vector<8xf32> to vector<8x1xf32>
    %cst_112 = arith.constant 3.200000e+01 : f32
    %168 = vector.broadcast %cst_112 : f32 to vector<8x1xf32>
    %169 = arith.divf %167, %168 : vector<8x1xf32>
    %170 = vector.broadcast %162 : vector<8x1xf32> to vector<8x32xf32>
    %171 = arith.subf %154, %170 : vector<8x32xf32>
    %cst_113 = arith.constant 9.99999997E-7 : f32
    %172 = vector.broadcast %cst_113 : f32 to vector<8x1xf32>
    %173 = arith.addf %169, %172 : vector<8x1xf32>
    %174 = math.rsqrt %173 : vector<8x1xf32>
    %175 = vector.broadcast %174 : vector<8x1xf32> to vector<8x32xf32>
    %176 = arith.mulf %171, %175 : vector<8x32xf32>
    %177 = vector.shape_cast %156 : vector<32xf32> to vector<1x32xf32>
    %178 = vector.broadcast %177 : vector<1x32xf32> to vector<8x32xf32>
    %179 = arith.mulf %176, %178 : vector<8x32xf32>
    %180 = vector.shape_cast %158 : vector<32xf32> to vector<1x32xf32>
    %181 = vector.broadcast %180 : vector<1x32xf32> to vector<8x32xf32>
    %182 = arith.addf %179, %181 : vector<8x32xf32>
    %183 = arith.truncf %182 : vector<8x32xf32> to vector<8x32xbf16>
    %c0_114 = arith.constant 0 : index
    %c0_115 = arith.constant 0 : index
    %184 = vector.load %arg14[%c0_114, %c0_115] : memref<32x64xbf16, #tpu.memory_space<vmem>>, vector<32x64xbf16>
    %cst_116 = arith.constant dense<0.000000e+00> : vector<8x64xf32>
    %185 = tpu.matmul %183, %184, %cst_116 {dimension_numbers = #tpu.dot_dimension_numbers<[1], [0], [0], [1], [0, 0, 1, 1], [], []>} : vector<8x32xbf16>, vector<32x64xbf16>, vector<8x64xf32> -> vector<8x64xf32>
    %c0_117 = arith.constant 0 : index
    %c0_118 = arith.constant 0 : index
    %186 = vector.load %arg15[%c0_117, %c0_118] : memref<1x64xf32, #tpu.memory_space<vmem>>, vector<1x64xf32>
    %187 = vector.shape_cast %186 : vector<1x64xf32> to vector<64xf32>
    %188 = vector.shape_cast %187 : vector<64xf32> to vector<1x64xf32>
    %189 = vector.broadcast %188 : vector<1x64xf32> to vector<8x64xf32>
    %190 = arith.addf %185, %189 : vector<8x64xf32>
    %cst_119 = arith.constant 5.000000e-01 : f32
    %191 = vector.broadcast %cst_119 : f32 to vector<8x64xf32>
    %192 = arith.mulf %191, %190 : vector<8x64xf32>
    %cst_120 = arith.constant 0.707106769 : f32
    %193 = vector.broadcast %cst_120 : f32 to vector<8x64xf32>
    %194 = arith.mulf %190, %193 : vector<8x64xf32>
    %195 = math.erf %194 : vector<8x64xf32>
    %cst_121 = arith.constant 1.000000e+00 : f32
    %196 = vector.broadcast %cst_121 : f32 to vector<8x64xf32>
    %197 = arith.addf %196, %195 : vector<8x64xf32>
    %198 = arith.mulf %192, %197 : vector<8x64xf32>
    %199 = arith.truncf %198 : vector<8x64xf32> to vector<8x64xbf16>
    %c0_122 = arith.constant 0 : index
    %c0_123 = arith.constant 0 : index
    %200 = vector.load %arg16[%c0_122, %c0_123] : memref<64x32xbf16, #tpu.memory_space<vmem>>, vector<64x32xbf16>
    %cst_124 = arith.constant dense<0.000000e+00> : vector<8x32xf32>
    %201 = tpu.matmul %199, %200, %cst_124 {dimension_numbers = #tpu.dot_dimension_numbers<[1], [0], [0], [1], [0, 0, 1, 1], [], []>} : vector<8x64xbf16>, vector<64x32xbf16>, vector<8x32xf32> -> vector<8x32xf32>
    %c0_125 = arith.constant 0 : index
    %c0_126 = arith.constant 0 : index
    %202 = vector.load %arg17[%c0_125, %c0_126] : memref<1x32xf32, #tpu.memory_space<vmem>>, vector<1x32xf32>
    %203 = vector.shape_cast %202 : vector<1x32xf32> to vector<32xf32>
    %204 = vector.shape_cast %203 : vector<32xf32> to vector<1x32xf32>
    %205 = vector.broadcast %204 : vector<1x32xf32> to vector<8x32xf32>
    %206 = arith.addf %201, %205 : vector<8x32xf32>
    %207 = arith.addf %206, %154 : vector<8x32xf32>
    %208 = vector.shape_cast %207 : vector<8x32xf32> to vector<1x8x32xf32>
    %c0_127 = arith.constant 0 : index
    %c0_128 = arith.constant 0 : index
    %c0_129 = arith.constant 0 : index
    %209 = vector.load %arg18[%c0_127, %c0_128, %c0_129] : memref<1x8x32xf32, #tpu.memory_space<vmem>>, vector<1x8x32xf32>
    tpu.vector_store %arg18[%c0_127, %c0_128, %c0_129], %208 {strides = array<i32>} : memref<1x8x32xf32, #tpu.memory_space<vmem>>, vector<1x8x32xf32>,
    return
  }
  func.func @transform_0(%arg0: i32) -> (i32, i32, i32) {
    %c0_i32 = arith.constant 0 : i32
    %c0_i32_0 = arith.constant 0 : i32
    %c0_i32_1 = arith.constant 0 : i32
    return %arg0, %c0_i32, %c0_i32_0 : i32, i32, i32
  }
  func.func @transform_1(%arg0: i32) -> (i32, i32) {
    %c0_i32 = arith.constant 0 : i32
    %c0_i32_0 = arith.constant 0 : i32
    %c0_i32_1 = arith.constant 0 : i32
    return %c0_i32, %c0_i32_0 : i32, i32
  }
  func.func @transform_2(%arg0: i32) -> (i32, i32) {
    %c0_i32 = arith.constant 0 : i32
    %c0_i32_0 = arith.constant 0 : i32
    %c0_i32_1 = arith.constant 0 : i32
    return %c0_i32, %c0_i32_0 : i32, i32
  }
  func.func @transform_3(%arg0: i32) -> (i32, i32) {
    %c0_i32 = arith.constant 0 : i32
    %c0_i32_0 = arith.constant 0 : i32
    %c0_i32_1 = arith.constant 0 : i32
    return %c0_i32, %c0_i32_0 : i32, i32
  }
  func.func @transform_4(%arg0: i32) -> (i32, i32) {
    %c0_i32 = arith.constant 0 : i32
    %c0_i32_0 = arith.constant 0 : i32
    %c0_i32_1 = arith.constant 0 : i32
    return %c0_i32, %c0_i32_0 : i32, i32
  }
  func.func @transform_5(%arg0: i32) -> (i32, i32) {
    %c0_i32 = arith.constant 0 : i32
    %c0_i32_0 = arith.constant 0 : i32
    %c0_i32_1 = arith.constant 0 : i32
    return %c0_i32, %c0_i32_0 : i32, i32
  }
  func.func @transform_6(%arg0: i32) -> (i32, i32) {
    %c0_i32 = arith.constant 0 : i32
    %c0_i32_0 = arith.constant 0 : i32
    %c0_i32_1 = arith.constant 0 : i32
    return %c0_i32, %c0_i32_0 : i32, i32
  }
  func.func @transform_7(%arg0: i32) -> (i32, i32) {
    %c0_i32 = arith.constant 0 : i32
    %c0_i32_0 = arith.constant 0 : i32
    %c0_i32_1 = arith.constant 0 : i32
    return %c0_i32, %c0_i32_0 : i32, i32
  }
  func.func @transform_8(%arg0: i32) -> (i32, i32) {
    %c0_i32 = arith.constant 0 : i32
    %c0_i32_0 = arith.constant 0 : i32
    %c0_i32_1 = arith.constant 0 : i32
    return %c0_i32, %c0_i32_0 : i32, i32
  }
  func.func @transform_9(%arg0: i32) -> (i32, i32) {
    %c0_i32 = arith.constant 0 : i32
    %c0_i32_0 = arith.constant 0 : i32
    %c0_i32_1 = arith.constant 0 : i32
    return %c0_i32, %c0_i32_0 : i32, i32
  }
  func.func @transform_10(%arg0: i32) -> (i32, i32) {
    %c0_i32 = arith.constant 0 : i32
    %c0_i32_0 = arith.constant 0 : i32
    %c0_i32_1 = arith.constant 0 : i32
    return %c0_i32, %c0_i32_0 : i32, i32
  }
  func.func @transform_11(%arg0: i32) -> (i32, i32) {
    %c0_i32 = arith.constant 0 : i32
    %c0_i32_0 = arith.constant 0 : i32
    %c0_i32_1 = arith.constant 0 : i32
    return %c0_i32, %c0_i32_0 : i32, i32
  }
  func.func @transform_12(%arg0: i32) -> (i32, i32) {
    %c0_i32 = arith.constant 0 : i32
    %c0_i32_0 = arith.constant 0 : i32
    %c0_i32_1 = arith.constant 0 : i32
    return %c0_i32, %c0_i32_0 : i32, i32
  }
  func.func @transform_13(%arg0: i32) -> (i32, i32) {
    %c0_i32 = arith.constant 0 : i32
    %c0_i32_0 = arith.constant 0 : i32
    %c0_i32_1 = arith.constant 0 : i32
    return %c0_i32, %c0_i32_0 : i32, i32
  }
  func.func @transform_14(%arg0: i32) -> (i32, i32) {
    %c0_i32 = arith.constant 0 : i32
    %c0_i32_0 = arith.constant 0 : i32
    %c0_i32_1 = arith.constant 0 : i32
    return %c0_i32, %c0_i32_0 : i32, i32
  }
  func.func @transform_15(%arg0: i32) -> (i32, i32) {
    %c0_i32 = arith.constant 0 : i32
    %c0_i32_0 = arith.constant 0 : i32
    %c0_i32_1 = arith.constant 0 : i32
    return %c0_i32, %c0_i32_0 : i32, i32
  }
  func.func @transform_16(%arg0: i32) -> (i32, i32) {
    %c0_i32 = arith.constant 0 : i32
    %c0_i32_0 = arith.constant 0 : i32
    %c0_i32_1 = arith.constant 0 : i32
    return %c0_i32, %c0_i32_0 : i32, i32
  }
  func.func @transform_17(%arg0: i32) -> (i32, i32, i32) {
    %c0_i32 = arith.constant 0 : i32
    %c0_i32_0 = arith.constant 0 : i32
    %c0_i32_1 = arith.constant 0 : i32
    return %arg0, %c0_i32, %c0_i32_0 : i32, i32, i32
  }
  func.func @transform_18(%arg0: i32) -> (i32, i32, i32, i32) {
    %c0_i32 = arith.constant 0 : i32
    %c0_i32_0 = arith.constant 0 : i32
    %c0_i32_1 = arith.constant 0 : i32
    %c0_i32_2 = arith.constant 0 : i32
    return %arg0, %c0_i32, %c0_i32_0, %c0_i32_1 : i32, i32, i32, i32
  }
  func.func @transform_19(%arg0: i32) -> (i32, i32, i32) {
    %c0_i32 = arith.constant 0 : i32
    %c0_i32_0 = arith.constant 0 : i32
    %c0_i32_1 = arith.constant 0 : i32
    return %arg0, %c0_i32, %c0_i32_0 : i32, i32, i32
  }
}

module attributes {stable_mosaic.version = 11 : i64} {
  func.func @kernel(%arg0: i32, %arg1: memref<1x8x32xf32, #tpu.memory_space<vmem>>, %arg2: memref<1x32xf32, #tpu.memory_space<vmem>>, %arg3: memref<1x32xf32, #tpu.memory_space<vmem>>, %arg4: memref<32x32xbf16, #tpu.memory_space<vmem>>, %arg5: memref<1x32xf32, #tpu.memory_space<vmem>>, %arg6: memref<32x32xbf16, #tpu.memory_space<vmem>>, %arg7: memref<1x32xf32, #tpu.memory_space<vmem>>, %arg8: memref<32x32xbf16, #tpu.memory_space<vmem>>, %arg9: memref<1x32xf32, #tpu.memory_space<vmem>>, %arg10: memref<32x32xbf16, #tpu.memory_space<vmem>>, %arg11: memref<1x32xf32, #tpu.memory_space<vmem>>, %arg12: memref<1x32xf32, #tpu.memory_space<vmem>>, %arg13: memref<1x32xf32, #tpu.memory_space<vmem>>, %arg14: memref<32x64xbf16, #tpu.memory_space<vmem>>, %arg15: memref<1x64xf32, #tpu.memory_space<vmem>>, %arg16: memref<64x32xbf16, #tpu.memory_space<vmem>>, %arg17: memref<1x32xf32, #tpu.memory_space<vmem>>, %arg18: memref<1x8x32xf32, #tpu.memory_space<vmem>>, %arg19: memref<1x4x8x8xbf16, #tpu.memory_space<vmem>>, %arg20: memref<1x8x32xf32, #tpu.memory_space<vmem>>, %arg21: memref<1x8x32xbf16, #tpu.memory_space<vmem>>, %arg22: memref<1x8x32xbf16, #tpu.memory_space<vmem>>, %arg23: memref<1x8x32xbf16, #tpu.memory_space<vmem>>) attributes {dimension_semantics = [#tpu.dimension_semantics<parallel>], iteration_bounds = array<i64: 2>, scalar_prefetch = 0 : i64, scratch_operands = 3 : i64, tpu.core_type = #tpu.core_type<tc>, window_params = [{transform_indices = @transform_0, window_bounds = array<i64: 1, 8, 32>}, {pipeline_mode = #tpu.pipeline_mode<synchronous>, transform_indices = @transform_1, window_bounds = array<i64: 1, 32>}, {pipeline_mode = #tpu.pipeline_mode<synchronous>, transform_indices = @transform_2, window_bounds = array<i64: 1, 32>}, {pipeline_mode = #tpu.pipeline_mode<synchronous>, transform_indices = @transform_3, window_bounds = array<i64: 32, 32>}, {pipeline_mode = #tpu.pipeline_mode<synchronous>, transform_indices = @transform_4, window_bounds = array<i64: 1, 32>}, {pipeline_mode = #tpu.pipeline_mode<synchronous>, transform_indices = @transform_5, window_bounds = array<i64: 32, 32>}, {pipeline_mode = #tpu.pipeline_mode<synchronous>, transform_indices = @transform_6, window_bounds = array<i64: 1, 32>}, {pipeline_mode = #tpu.pipeline_mode<synchronous>, transform_indices = @transform_7, window_bounds = array<i64: 32, 32>}, {pipeline_mode = #tpu.pipeline_mode<synchronous>, transform_indices = @transform_8, window_bounds = array<i64: 1, 32>}, {pipeline_mode = #tpu.pipeline_mode<synchronous>, transform_indices = @transform_9, window_bounds = array<i64: 32, 32>}, {pipeline_mode = #tpu.pipeline_mode<synchronous>, transform_indices = @transform_10, window_bounds = array<i64: 1, 32>}, {pipeline_mode = #tpu.pipeline_mode<synchronous>, transform_indices = @transform_11, window_bounds = array<i64: 1, 32>}, {pipeline_mode = #tpu.pipeline_mode<synchronous>, transform_indices = @transform_12, window_bounds = array<i64: 1, 32>}, {pipeline_mode = #tpu.pipeline_mode<synchronous>, transform_indices = @transform_13, window_bounds = array<i64: 32, 64>}, {pipeline_mode = #tpu.pipeline_mode<synchronous>, transform_indices = @transform_14, window_bounds = array<i64: 1, 64>}, {pipeline_mode = #tpu.pipeline_mode<synchronous>, transform_indices = @transform_15, window_bounds = array<i64: 64, 32>}, {pipeline_mode = #tpu.pipeline_mode<synchronous>, transform_indices = @transform_16, window_bounds = array<i64: 1, 32>}, {transform_indices = @transform_17, window_bounds = array<i64: 1, 8, 32>}, {transform_indices = @transform_18, window_bounds = array<i64: 1, 4, 8, 8>}, {transform_indices = @transform_19, window_bounds = array<i64: 1, 8, 32>}]} {
    %c0 = arith.constant 0 : index
    %c0_0 = arith.constant 0 : index
    %c0_1 = arith.constant 0 : index
    %0 = vector.load %arg1[%c0, %c0_0, %c0_1] : memref<1x8x32xf32, #tpu.memory_space<vmem>>, vector<1x8x32xf32>
    %1 = vector.shape_cast %0 : vector<1x8x32xf32> to vector<8x32xf32>
    %c0_2 = arith.constant 0 : index
    %c0_3 = arith.constant 0 : index
    %2 = vector.load %arg2[%c0_2, %c0_3] : memref<1x32xf32, #tpu.memory_space<vmem>>, vector<1x32xf32>
    %3 = vector.shape_cast %2 : vector<1x32xf32> to vector<32xf32>
    %c0_4 = arith.constant 0 : index
    %c0_5 = arith.constant 0 : index
    %4 = vector.load %arg3[%c0_4, %c0_5] : memref<1x32xf32, #tpu.memory_space<vmem>>, vector<1x32xf32>
    %5 = vector.shape_cast %4 : vector<1x32xf32> to vector<32xf32>
    %cst = arith.constant dense<0.000000e+00> : vector<8xf32>
    %6 = vector.multi_reduction <add>, %1, %cst [1] : vector<8x32xf32> to vector<8xf32>
    %7 = vector.shape_cast %6 : vector<8xf32> to vector<8x1xf32>
    %cst_6 = arith.constant 3.200000e+01 : f32
    %8 = vector.broadcast %cst_6 : f32 to vector<8x1xf32>
    %9 = arith.divf %7, %8 : vector<8x1xf32>
    %10 = vector.broadcast %9 : vector<8x1xf32> to vector<8x32xf32>
    %11 = arith.subf %1, %10 : vector<8x32xf32>
    %12 = arith.mulf %11, %11 : vector<8x32xf32>
    %cst_7 = arith.constant dense<0.000000e+00> : vector<8xf32>
    %13 = vector.multi_reduction <add>, %12, %cst_7 [1] : vector<8x32xf32> to vector<8xf32>
    %14 = vector.shape_cast %13 : vector<8xf32> to vector<8x1xf32>
    %cst_8 = arith.constant 3.200000e+01 : f32
    %15 = vector.broadcast %cst_8 : f32 to vector<8x1xf32>
    %16 = arith.divf %14, %15 : vector<8x1xf32>
    %17 = vector.broadcast %9 : vector<8x1xf32> to vector<8x32xf32>
    %18 = arith.subf %1, %17 : vector<8x32xf32>
    %cst_9 = arith.constant 9.99999997E-7 : f32
    %19 = vector.broadcast %cst_9 : f32 to vector<8x1xf32>
    %20 = arith.addf %16, %19 : vector<8x1xf32>
    %21 = math.rsqrt %20 : vector<8x1xf32>
    %22 = vector.broadcast %21 : vector<8x1xf32> to vector<8x32xf32>
    %23 = arith.mulf %18, %22 : vector<8x32xf32>
    %24 = vector.shape_cast %3 : vector<32xf32> to vector<1x32xf32>
    %25 = vector.broadcast %24 : vector<1x32xf32> to vector<8x32xf32>
    %26 = arith.mulf %23, %25 : vector<8x32xf32>
    %27 = vector.shape_cast %5 : vector<32xf32> to vector<1x32xf32>
    %28 = vector.broadcast %27 : vector<1x32xf32> to vector<8x32xf32>
    %29 = arith.addf %26, %28 : vector<8x32xf32>
    %30 = arith.truncf %29 : vector<8x32xf32> to vector<8x32xbf16>
    %c0_10 = arith.constant 0 : index
    %c0_11 = arith.constant 0 : index
    %31 = vector.load %arg6[%c0_10, %c0_11] : memref<32x32xbf16, #tpu.memory_space<vmem>>, vector<32x32xbf16>
    %cst_12 = arith.constant dense<0.000000e+00> : vector<8x32xf32>
    %32 = tpu.matmul %30, %31, %cst_12 {dimension_numbers = #tpu.dot_dimension_numbers<[1], [0], [0], [1], [0, 0, 1, 1], [], []>} : vector<8x32xbf16>, vector<32x32xbf16>, vector<8x32xf32> -> vector<8x32xf32>
    %c0_13 = arith.constant 0 : index
    %c0_14 = arith.constant 0 : index
    %33 = vector.load %arg7[%c0_13, %c0_14] : memref<1x32xf32, #tpu.memory_space<vmem>>, vector<1x32xf32>
    %34 = vector.shape_cast %33 : vector<1x32xf32> to vector<32xf32>
    %35 = vector.shape_cast %34 : vector<32xf32> to vector<1x32xf32>
    %36 = vector.broadcast %35 : vector<1x32xf32> to vector<8x32xf32>
    %37 = arith.addf %32, %36 : vector<8x32xf32>
    %c0_15 = arith.constant 0 : index
    %c0_16 = arith.constant 0 : index
    %38 = vector.load %arg8[%c0_15, %c0_16] : memref<32x32xbf16, #tpu.memory_space<vmem>>, vector<32x32xbf16>
    %cst_17 = arith.constant dense<0.000000e+00> : vector<8x32xf32>
    %39 = tpu.matmul %30, %38, %cst_17 {dimension_numbers = #tpu.dot_dimension_numbers<[1], [0], [0], [1], [0, 0, 1, 1], [], []>} : vector<8x32xbf16>, vector<32x32xbf16>, vector<8x32xf32> -> vector<8x32xf32>
    %c0_18 = arith.constant 0 : index
    %c0_19 = arith.constant 0 : index
    %40 = vector.load %arg9[%c0_18, %c0_19] : memref<1x32xf32, #tpu.memory_space<vmem>>, vector<1x32xf32>
    %41 = vector.shape_cast %40 : vector<1x32xf32> to vector<32xf32>
    %42 = vector.shape_cast %41 : vector<32xf32> to vector<1x32xf32>
    %43 = vector.broadcast %42 : vector<1x32xf32> to vector<8x32xf32>
    %44 = arith.addf %39, %43 : vector<8x32xf32>
    %c0_20 = arith.constant 0 : index
    %c0_21 = arith.constant 0 : index
    %45 = vector.load %arg4[%c0_20, %c0_21] : memref<32x32xbf16, #tpu.memory_space<vmem>>, vector<32x32xbf16>
    %cst_22 = arith.constant dense<0.000000e+00> : vector<8x32xf32>
    %46 = tpu.matmul %30, %45, %cst_22 {dimension_numbers = #tpu.dot_dimension_numbers<[1], [0], [0], [1], [0, 0, 1, 1], [], []>} : vector<8x32xbf16>, vector<32x32xbf16>, vector<8x32xf32> -> vector<8x32xf32>
    %c0_23 = arith.constant 0 : index
    %c0_24 = arith.constant 0 : index
    %47 = vector.load %arg5[%c0_23, %c0_24] : memref<1x32xf32, #tpu.memory_space<vmem>>, vector<1x32xf32>
    %48 = vector.shape_cast %47 : vector<1x32xf32> to vector<32xf32>
    %49 = vector.shape_cast %48 : vector<32xf32> to vector<1x32xf32>
    %50 = vector.broadcast %49 : vector<1x32xf32> to vector<8x32xf32>
    %51 = arith.addf %46, %50 : vector<8x32xf32>
    %cst_25 = arith.constant 0.353553385 : f32
    %52 = vector.broadcast %cst_25 : f32 to vector<8x32xf32>
    %53 = arith.mulf %51, %52 : vector<8x32xf32>
    %54 = arith.truncf %53 : vector<8x32xf32> to vector<8x32xbf16>
    %55 = vector.shape_cast %54 : vector<8x32xbf16> to vector<1x8x32xbf16>
    %c0_26 = arith.constant 0 : index
    %c0_27 = arith.constant 0 : index
    %c0_28 = arith.constant 0 : index
    %56 = vector.load %arg21[%c0_26, %c0_27, %c0_28] : memref<1x8x32xbf16, #tpu.memory_space<vmem>>, vector<1x8x32xbf16>
    tpu.vector_store %arg21[%c0_26, %c0_27, %c0_28], %55 {strides = array<i32>} : memref<1x8x32xbf16, #tpu.memory_space<vmem>>, vector<1x8x32xbf16>,
    %57 = arith.truncf %37 : vector<8x32xf32> to vector<8x32xbf16>
    %58 = vector.shape_cast %57 : vector<8x32xbf16> to vector<1x8x32xbf16>
    %c0_29 = arith.constant 0 : index
    %c0_30 = arith.constant 0 : index
    %c0_31 = arith.constant 0 : index
    %59 = vector.load %arg22[%c0_29, %c0_30, %c0_31] : memref<1x8x32xbf16, #tpu.memory_space<vmem>>, vector<1x8x32xbf16>
    tpu.vector_store %arg22[%c0_29, %c0_30, %c0_31], %58 {strides = array<i32>} : memref<1x8x32xbf16, #tpu.memory_space<vmem>>, vector<1x8x32xbf16>,
    %60 = arith.truncf %44 : vector<8x32xf32> to vector<8x32xbf16>
    %61 = vector.shape_cast %60 : vector<8x32xbf16> to vector<1x8x32xbf16>
    %c0_32 = arith.constant 0 : index
    %c0_33 = arith.constant 0 : index
    %c0_34 = arith.constant 0 : index
    %62 = vector.load %arg23[%c0_32, %c0_33, %c0_34] : memref<1x8x32xbf16, #tpu.memory_space<vmem>>, vector<1x8x32xbf16>
    tpu.vector_store %arg23[%c0_32, %c0_33, %c0_34], %61 {strides = array<i32>} : memref<1x8x32xbf16, #tpu.memory_space<vmem>>, vector<1x8x32xbf16>,
    %c0_35 = arith.constant 0 : index
    %c0_36 = arith.constant 0 : index
    %c0_37 = arith.constant 0 : index
    %63 = vector.load %arg21[%c0_35, %c0_36, %c0_37] : memref<1x8x32xbf16, #tpu.memory_space<vmem>>, vector<1x8x8xbf16>
    %c0_38 = arith.constant 0 : index
    %c0_39 = arith.constant 0 : index
    %c0_40 = arith.constant 0 : index
    %64 = vector.load %arg22[%c0_38, %c0_39, %c0_40] : memref<1x8x32xbf16, #tpu.memory_space<vmem>>, vector<1x8x8xbf16>
    %c0_41 = arith.constant 0 : index
    %c0_42 = arith.constant 0 : index
    %c0_43 = arith.constant 0 : index
    %65 = vector.load %arg23[%c0_41, %c0_42, %c0_43] : memref<1x8x32xbf16, #tpu.memory_space<vmem>>, vector<1x8x8xbf16>
    "tpu.trace_start"() <{level = 10 : i32, message = "bqd,bkd->bqk"}> : () -> ()
    %cst_44 = arith.constant dense<0.000000e+00> : vector<1x8x8xf32>
    %66 = tpu.matmul %63, %64, %cst_44 {dimension_numbers = #tpu.dot_dimension_numbers<[2], [2], [1], [1], [0, 0, 0, 1, 1, 1], [0], [0]>} : vector<1x8x8xbf16>, vector<1x8x8xbf16>, vector<1x8x8xf32> -> vector<1x8x8xf32>
    "tpu.trace_stop"() : () -> ()
    %cst_45 = arith.constant dense<0xFF800000> : vector<1x8xf32>
    %67 = vector.multi_reduction <maximumf>, %66, %cst_45 [2] : vector<1x8x8xf32> to vector<1x8xf32>
    %68 = vector.shape_cast %67 : vector<1x8xf32> to vector<1x8x1xf32>
    %69 = vector.broadcast %68 : vector<1x8x1xf32> to vector<1x8x8xf32>
    %70 = arith.subf %66, %69 : vector<1x8x8xf32>
    %71 = math.exp %70 : vector<1x8x8xf32>
    %cst_46 = arith.constant dense<0.000000e+00> : vector<1x8xf32>
    %72 = vector.multi_reduction <add>, %71, %cst_46 [2] : vector<1x8x8xf32> to vector<1x8xf32>
    %73 = vector.shape_cast %72 : vector<1x8xf32> to vector<1x8x1xf32>
    %74 = tpu.reciprocal %73 {approx = true} : vector<1x8x1xf32> -> vector<1x8x1xf32>
    %75 = vector.broadcast %74 : vector<1x8x1xf32> to vector<1x8x8xf32>
    %76 = arith.mulf %71, %75 : vector<1x8x8xf32>
    %77 = arith.truncf %76 : vector<1x8x8xf32> to vector<1x8x8xbf16>
    %c0_47 = arith.constant 0 : index
    %c0_48 = arith.constant 0 : index
    %c0_49 = arith.constant 0 : index
    %c0_50 = arith.constant 0 : index
    %78 = vector.load %arg19[%c0_47, %c0_48, %c0_49, %c0_50] : memref<1x4x8x8xbf16, #tpu.memory_space<vmem>>, vector<1x1x8x8xbf16>
    %79 = vector.shape_cast %78 : vector<1x1x8x8xbf16> to vector<1x8x8xbf16>
    %80 = vector.shape_cast %77 : vector<1x8x8xbf16> to vector<1x1x8x8xbf16>
    tpu.vector_store %arg19[%c0_47, %c0_48, %c0_49, %c0_50], %80 {strides = array<i32>} : memref<1x4x8x8xbf16, #tpu.memory_space<vmem>>, vector<1x1x8x8xbf16>,
    %81 = arith.truncf %76 : vector<1x8x8xf32> to vector<1x8x8xbf16>
    "tpu.trace_start"() <{level = 10 : i32, message = "bqk,bkd->bqd"}> : () -> ()
    %cst_51 = arith.constant dense<0.000000e+00> : vector<1x8x8xf32>
    %82 = tpu.matmul %81, %65, %cst_51 {dimension_numbers = #tpu.dot_dimension_numbers<[2], [1], [1], [2], [0, 0, 0, 1, 1, 2], [0], [0]>} : vector<1x8x8xbf16>, vector<1x8x8xbf16>, vector<1x8x8xf32> -> vector<1x8x8xf32>
    "tpu.trace_stop"() : () -> ()
    %c0_52 = arith.constant 0 : index
    %c0_53 = arith.constant 0 : index
    %c8 = arith.constant 8 : index
    %83 = vector.load %arg21[%c0_52, %c0_53, %c8] : memref<1x8x32xbf16, #tpu.memory_space<vmem>>, vector<1x8x8xbf16>
    %c0_54 = arith.constant 0 : index
    %c0_55 = arith.constant 0 : index
    %c8_56 = arith.constant 8 : index
    %84 = vector.load %arg22[%c0_54, %c0_55, %c8_56] : memref<1x8x32xbf16, #tpu.memory_space<vmem>>, vector<1x8x8xbf16>
    %c0_57 = arith.constant 0 : index
    %c0_58 = arith.constant 0 : index
    %c8_59 = arith.constant 8 : index
    %85 = vector.load %arg23[%c0_57, %c0_58, %c8_59] : memref<1x8x32xbf16, #tpu.memory_space<vmem>>, vector<1x8x8xbf16>
    "tpu.trace_start"() <{level = 10 : i32, message = "bqd,bkd->bqk"}> : () -> ()
    %cst_60 = arith.constant dense<0.000000e+00> : vector<1x8x8xf32>
    %86 = tpu.matmul %83, %84, %cst_60 {dimension_numbers = #tpu.dot_dimension_numbers<[2], [2], [1], [1], [0, 0, 0, 1, 1, 1], [0], [0]>} : vector<1x8x8xbf16>, vector<1x8x8xbf16>, vector<1x8x8xf32> -> vector<1x8x8xf32>
    "tpu.trace_stop"() : () -> ()
    %cst_61 = arith.constant dense<0xFF800000> : vector<1x8xf32>
    %87 = vector.multi_reduction <maximumf>, %86, %cst_61 [2] : vector<1x8x8xf32> to vector<1x8xf32>
    %88 = vector.shape_cast %87 : vector<1x8xf32> to vector<1x8x1xf32>
    %89 = vector.broadcast %88 : vector<1x8x1xf32> to vector<1x8x8xf32>
    %90 = arith.subf %86, %89 : vector<1x8x8xf32>
    %91 = math.exp %90 : vector<1x8x8xf32>
    %cst_62 = arith.constant dense<0.000000e+00> : vector<1x8xf32>
    %92 = vector.multi_reduction <add>, %91, %cst_62 [2] : vector<1x8x8xf32> to vector<1x8xf32>
    %93 = vector.shape_cast %92 : vector<1x8xf32> to vector<1x8x1xf32>
    %94 = tpu.reciprocal %93 {approx = true} : vector<1x8x1xf32> -> vector<1x8x1xf32>
    %95 = vector.broadcast %94 : vector<1x8x1xf32> to vector<1x8x8xf32>
    %96 = arith.mulf %91, %95 : vector<1x8x8xf32>
    %97 = arith.truncf %96 : vector<1x8x8xf32> to vector<1x8x8xbf16>
    %c0_63 = arith.constant 0 : index
    %c1 = arith.constant 1 : index
    %c0_64 = arith.constant 0 : index
    %c0_65 = arith.constant 0 : index
    %98 = vector.load %arg19[%c0_63, %c1, %c0_64, %c0_65] : memref<1x4x8x8xbf16, #tpu.memory_space<vmem>>, vector<1x1x8x8xbf16>
    %99 = vector.shape_cast %98 : vector<1x1x8x8xbf16> to vector<1x8x8xbf16>
    %100 = vector.shape_cast %97 : vector<1x8x8xbf16> to vector<1x1x8x8xbf16>
    tpu.vector_store %arg19[%c0_63, %c1, %c0_64, %c0_65], %100 {strides = array<i32>} : memref<1x4x8x8xbf16, #tpu.memory_space<vmem>>, vector<1x1x8x8xbf16>,
    %101 = arith.truncf %96 : vector<1x8x8xf32> to vector<1x8x8xbf16>
    "tpu.trace_start"() <{level = 10 : i32, message = "bqk,bkd->bqd"}> : () -> ()
    %cst_66 = arith.constant dense<0.000000e+00> : vector<1x8x8xf32>
    %102 = tpu.matmul %101, %85, %cst_66 {dimension_numbers = #tpu.dot_dimension_numbers<[2], [1], [1], [2], [0, 0, 0, 1, 1, 2], [0], [0]>} : vector<1x8x8xbf16>, vector<1x8x8xbf16>, vector<1x8x8xf32> -> vector<1x8x8xf32>
    "tpu.trace_stop"() : () -> ()
    %c0_67 = arith.constant 0 : index
    %c0_68 = arith.constant 0 : index
    %c16 = arith.constant 16 : index
    %103 = vector.load %arg21[%c0_67, %c0_68, %c16] : memref<1x8x32xbf16, #tpu.memory_space<vmem>>, vector<1x8x8xbf16>
    %c0_69 = arith.constant 0 : index
    %c0_70 = arith.constant 0 : index
    %c16_71 = arith.constant 16 : index
    %104 = vector.load %arg22[%c0_69, %c0_70, %c16_71] : memref<1x8x32xbf16, #tpu.memory_space<vmem>>, vector<1x8x8xbf16>
    %c0_72 = arith.constant 0 : index
    %c0_73 = arith.constant 0 : index
    %c16_74 = arith.constant 16 : index
    %105 = vector.load %arg23[%c0_72, %c0_73, %c16_74] : memref<1x8x32xbf16, #tpu.memory_space<vmem>>, vector<1x8x8xbf16>
    "tpu.trace_start"() <{level = 10 : i32, message = "bqd,bkd->bqk"}> : () -> ()
    %cst_75 = arith.constant dense<0.000000e+00> : vector<1x8x8xf32>
    %106 = tpu.matmul %103, %104, %cst_75 {dimension_numbers = #tpu.dot_dimension_numbers<[2], [2], [1], [1], [0, 0, 0, 1, 1, 1], [0], [0]>} : vector<1x8x8xbf16>, vector<1x8x8xbf16>, vector<1x8x8xf32> -> vector<1x8x8xf32>
    "tpu.trace_stop"() : () -> ()
    %cst_76 = arith.constant dense<0xFF800000> : vector<1x8xf32>
    %107 = vector.multi_reduction <maximumf>, %106, %cst_76 [2] : vector<1x8x8xf32> to vector<1x8xf32>
    %108 = vector.shape_cast %107 : vector<1x8xf32> to vector<1x8x1xf32>
    %109 = vector.broadcast %108 : vector<1x8x1xf32> to vector<1x8x8xf32>
    %110 = arith.subf %106, %109 : vector<1x8x8xf32>
    %111 = math.exp %110 : vector<1x8x8xf32>
    %cst_77 = arith.constant dense<0.000000e+00> : vector<1x8xf32>
    %112 = vector.multi_reduction <add>, %111, %cst_77 [2] : vector<1x8x8xf32> to vector<1x8xf32>
    %113 = vector.shape_cast %112 : vector<1x8xf32> to vector<1x8x1xf32>
    %114 = tpu.reciprocal %113 {approx = true} : vector<1x8x1xf32> -> vector<1x8x1xf32>
    %115 = vector.broadcast %114 : vector<1x8x1xf32> to vector<1x8x8xf32>
    %116 = arith.mulf %111, %115 : vector<1x8x8xf32>
    %117 = arith.truncf %116 : vector<1x8x8xf32> to vector<1x8x8xbf16>
    %c0_78 = arith.constant 0 : index
    %c2 = arith.constant 2 : index
    %c0_79 = arith.constant 0 : index
    %c0_80 = arith.constant 0 : index
    %118 = vector.load %arg19[%c0_78, %c2, %c0_79, %c0_80] : memref<1x4x8x8xbf16, #tpu.memory_space<vmem>>, vector<1x1x8x8xbf16>
    %119 = vector.shape_cast %118 : vector<1x1x8x8xbf16> to vector<1x8x8xbf16>
    %120 = vector.shape_cast %117 : vector<1x8x8xbf16> to vector<1x1x8x8xbf16>
    tpu.vector_store %arg19[%c0_78, %c2, %c0_79, %c0_80], %120 {strides = array<i32>} : memref<1x4x8x8xbf16, #tpu.memory_space<vmem>>, vector<1x1x8x8xbf16>,
    %121 = arith.truncf %116 : vector<1x8x8xf32> to vector<1x8x8xbf16>
    "tpu.trace_start"() <{level = 10 : i32, message = "bqk,bkd->bqd"}> : () -> ()
    %cst_81 = arith.constant dense<0.000000e+00> : vector<1x8x8xf32>
    %122 = tpu.matmul %121, %105, %cst_81 {dimension_numbers = #tpu.dot_dimension_numbers<[2], [1], [1], [2], [0, 0, 0, 1, 1, 2], [0], [0]>} : vector<1x8x8xbf16>, vector<1x8x8xbf16>, vector<1x8x8xf32> -> vector<1x8x8xf32>
    "tpu.trace_stop"() : () -> ()
    %c0_82 = arith.constant 0 : index
    %c0_83 = arith.constant 0 : index
    %c24 = arith.constant 24 : index
    %123 = vector.load %arg21[%c0_82, %c0_83, %c24] : memref<1x8x32xbf16, #tpu.memory_space<vmem>>, vector<1x8x8xbf16>
    %c0_84 = arith.constant 0 : index
    %c0_85 = arith.constant 0 : index
    %c24_86 = arith.constant 24 : index
    %124 = vector.load %arg22[%c0_84, %c0_85, %c24_86] : memref<1x8x32xbf16, #tpu.memory_space<vmem>>, vector<1x8x8xbf16>
    %c0_87 = arith.constant 0 : index
    %c0_88 = arith.constant 0 : index
    %c24_89 = arith.constant 24 : index
    %125 = vector.load %arg23[%c0_87, %c0_88, %c24_89] : memref<1x8x32xbf16, #tpu.memory_space<vmem>>, vector<1x8x8xbf16>
    "tpu.trace_start"() <{level = 10 : i32, message = "bqd,bkd->bqk"}> : () -> ()
    %cst_90 = arith.constant dense<0.000000e+00> : vector<1x8x8xf32>
    %126 = tpu.matmul %123, %124, %cst_90 {dimension_numbers = #tpu.dot_dimension_numbers<[2], [2], [1], [1], [0, 0, 0, 1, 1, 1], [0], [0]>} : vector<1x8x8xbf16>, vector<1x8x8xbf16>, vector<1x8x8xf32> -> vector<1x8x8xf32>
    "tpu.trace_stop"() : () -> ()
    %cst_91 = arith.constant dense<0xFF800000> : vector<1x8xf32>
    %127 = vector.multi_reduction <maximumf>, %126, %cst_91 [2] : vector<1x8x8xf32> to vector<1x8xf32>
    %128 = vector.shape_cast %127 : vector<1x8xf32> to vector<1x8x1xf32>
    %129 = vector.broadcast %128 : vector<1x8x1xf32> to vector<1x8x8xf32>
    %130 = arith.subf %126, %129 : vector<1x8x8xf32>
    %131 = math.exp %130 : vector<1x8x8xf32>
    %cst_92 = arith.constant dense<0.000000e+00> : vector<1x8xf32>
    %132 = vector.multi_reduction <add>, %131, %cst_92 [2] : vector<1x8x8xf32> to vector<1x8xf32>
    %133 = vector.shape_cast %132 : vector<1x8xf32> to vector<1x8x1xf32>
    %134 = tpu.reciprocal %133 {approx = true} : vector<1x8x1xf32> -> vector<1x8x1xf32>
    %135 = vector.broadcast %134 : vector<1x8x1xf32> to vector<1x8x8xf32>
    %136 = arith.mulf %131, %135 : vector<1x8x8xf32>
    %137 = arith.truncf %136 : vector<1x8x8xf32> to vector<1x8x8xbf16>
    %c0_93 = arith.constant 0 : index
    %c3 = arith.constant 3 : index
    %c0_94 = arith.constant 0 : index
    %c0_95 = arith.constant 0 : index
    %138 = vector.load %arg19[%c0_93, %c3, %c0_94, %c0_95] : memref<1x4x8x8xbf16, #tpu.memory_space<vmem>>, vector<1x1x8x8xbf16>
    %139 = vector.shape_cast %138 : vector<1x1x8x8xbf16> to vector<1x8x8xbf16>
    %140 = vector.shape_cast %137 : vector<1x8x8xbf16> to vector<1x1x8x8xbf16>
    tpu.vector_store %arg19[%c0_93, %c3, %c0_94, %c0_95], %140 {strides = array<i32>} : memref<1x4x8x8xbf16, #tpu.memory_space<vmem>>, vector<1x1x8x8xbf16>,
    %141 = arith.truncf %136 : vector<1x8x8xf32> to vector<1x8x8xbf16>
    "tpu.trace_start"() <{level = 10 : i32, message = "bqk,bkd->bqd"}> : () -> ()
    %cst_96 = arith.constant dense<0.000000e+00> : vector<1x8x8xf32>
    %142 = tpu.matmul %141, %125, %cst_96 {dimension_numbers = #tpu.dot_dimension_numbers<[2], [1], [1], [2], [0, 0, 0, 1, 1, 2], [0], [0]>} : vector<1x8x8xbf16>, vector<1x8x8xbf16>, vector<1x8x8xf32> -> vector<1x8x8xf32>
    "tpu.trace_stop"() : () -> ()
    %143 = tpu.concatenate %82, %102, %122, %142 in 2 : vector<1x8x8xf32>, vector<1x8x8xf32>, vector<1x8x8xf32>, vector<1x8x8xf32> -> vector<1x8x32xf32>
    %c0_97 = arith.constant 0 : index
    %c0_98 = arith.constant 0 : index
    %c0_99 = arith.constant 0 : index
    %144 = vector.load %arg20[%c0_97, %c0_98, %c0_99] : memref<1x8x32xf32, #tpu.memory_space<vmem>>, vector<1x8x32xf32>
    tpu.vector_store %arg20[%c0_97, %c0_98, %c0_99], %143 {strides = array<i32>} : memref<1x8x32xf32, #tpu.memory_space<vmem>>, vector<1x8x32xf32>,
    %145 = vector.shape_cast %143 : vector<1x8x32xf32> to vector<8x32xf32>
    %146 = arith.truncf %145 : vector<8x32xf32> to vector<8x32xbf16>
    %c0_100 = arith.constant 0 : index
    %c0_101 = arith.constant 0 : index
    %147 = vector.load %arg10[%c0_100, %c0_101] : memref<32x32xbf16, #tpu.memory_space<vmem>>, vector<32x32xbf16>
    %cst_102 = arith.constant dense<0.000000e+00> : vector<8x32xf32>
    %148 = tpu.matmul %146, %147, %cst_102 {dimension_numbers = #tpu.dot_dimension_numbers<[1], [0], [0], [1], [0, 0, 1, 1], [], []>} : vector<8x32xbf16>, vector<32x32xbf16>, vector<8x32xf32> -> vector<8x32xf32>
    %c0_103 = arith.constant 0 : index
    %c0_104 = arith.constant 0 : index
    %149 = vector.load %arg11[%c0_103, %c0_104] : memref<1x32xf32, #tpu.memory_space<vmem>>, vector<1x32xf32>
    %150 = vector.shape_cast %149 : vector<1x32xf32> to vector<32xf32>
    %151 = vector.shape_cast %150 : vector<32xf32> to vector<1x32xf32>
    %152 = vector.broadcast %151 : vector<1x32xf32> to vector<8x32xf32>
    %153 = arith.addf %148, %152 : vector<8x32xf32>
    %154 = arith.addf %153, %1 : vector<8x32xf32>
    %c0_105 = arith.constant 0 : index
    %c0_106 = arith.constant 0 : index
    %155 = vector.load %arg12[%c0_105, %c0_106] : memref<1x32xf32, #tpu.memory_space<vmem>>, vector<1x32xf32>
    %156 = vector.shape_cast %155 : vector<1x32xf32> to vector<32xf32>
    %c0_107 = arith.constant 0 : index
    %c0_108 = arith.constant 0 : index
    %157 = vector.load %arg13[%c0_107, %c0_108] : memref<1x32xf32, #tpu.memory_space<vmem>>, vector<1x32xf32>
    %158 = vector.shape_cast %157 : vector<1x32xf32> to vector<32xf32>
    %cst_109 = arith.constant dense<0.000000e+00> : vector<8xf32>
    %159 = vector.multi_reduction <add>, %154, %cst_109 [1] : vector<8x32xf32> to vector<8xf32>
    %160 = vector.shape_cast %159 : vector<8xf32> to vector<8x1xf32>
    %cst_110 = arith.constant 3.200000e+01 : f32
    %161 = vector.broadcast %cst_110 : f32 to vector<8x1xf32>
    %162 = arith.divf %160, %161 : vector<8x1xf32>
    %163 = vector.broadcast %162 : vector<8x1xf32> to vector<8x32xf32>
    %164 = arith.subf %154, %163 : vector<8x32xf32>
    %165 = arith.mulf %164, %164 : vector<8x32xf32>
    %cst_111 = arith.constant dense<0.000000e+00> : vector<8xf32>
    %166 = vector.multi_reduction <add>, %165, %cst_111 [1] : vector<8x32xf32> to vector<8xf32>
    %167 = vector.shape_cast %166 : vector<8xf32> to vector<8x1xf32>
    %cst_112 = arith.constant 3.200000e+01 : f32
    %168 = vector.broadcast %cst_112 : f32 to vector<8x1xf32>
    %169 = arith.divf %167, %168 : vector<8x1xf32>
    %170 = vector.broadcast %162 : vector<8x1xf32> to vector<8x32xf32>
    %171 = arith.subf %154, %170 : vector<8x32xf32>
    %cst_113 = arith.constant 9.99999997E-7 : f32
    %172 = vector.broadcast %cst_113 : f32 to vector<8x1xf32>
    %173 = arith.addf %169, %172 : vector<8x1xf32>
    %174 = math.rsqrt %173 : vector<8x1xf32>
    %175 = vector.broadcast %174 : vector<8x1xf32> to vector<8x32xf32>
    %176 = arith.mulf %171, %175 : vector<8x32xf32>
    %177 = vector.shape_cast %156 : vector<32xf32> to vector<1x32xf32>
    %178 = vector.broadcast %177 : vector<1x32xf32> to vector<8x32xf32>
    %179 = arith.mulf %176, %178 : vector<8x32xf32>
    %180 = vector.shape_cast %158 : vector<32xf32> to vector<1x32xf32>
    %181 = vector.broadcast %180 : vector<1x32xf32> to vector<8x32xf32>
    %182 = arith.addf %179, %181 : vector<8x32xf32>
    %183 = arith.truncf %182 : vector<8x32xf32> to vector<8x32xbf16>
    %c0_114 = arith.constant 0 : index
    %c0_115 = arith.constant 0 : index
    %184 = vector.load %arg14[%c0_114, %c0_115] : memref<32x64xbf16, #tpu.memory_space<vmem>>, vector<32x64xbf16>
    %cst_116 = arith.constant dense<0.000000e+00> : vector<8x64xf32>
    %185 = tpu.matmul %183, %184, %cst_116 {dimension_numbers = #tpu.dot_dimension_numbers<[1], [0], [0], [1], [0, 0, 1, 1], [], []>} : vector<8x32xbf16>, vector<32x64xbf16>, vector<8x64xf32> -> vector<8x64xf32>
    %c0_117 = arith.constant 0 : index
    %c0_118 = arith.constant 0 : index
    %186 = vector.load %arg15[%c0_117, %c0_118] : memref<1x64xf32, #tpu.memory_space<vmem>>, vector<1x64xf32>
    %187 = vector.shape_cast %186 : vector<1x64xf32> to vector<64xf32>
    %188 = vector.shape_cast %187 : vector<64xf32> to vector<1x64xf32>
    %189 = vector.broadcast %188 : vector<1x64xf32> to vector<8x64xf32>
    %190 = arith.addf %185, %189 : vector<8x64xf32>
    %191 = arith.mulf %190, %190 : vector<8x64xf32>
    %192 = arith.mulf %190, %191 : vector<8x64xf32>
    %cst_119 = arith.constant 4.471500e-02 : f32
    %193 = vector.broadcast %cst_119 : f32 to vector<8x64xf32>
    %194 = arith.mulf %193, %192 : vector<8x64xf32>
    %195 = arith.addf %190, %194 : vector<8x64xf32>
    %cst_120 = arith.constant 0.797884583 : f32
    %196 = vector.broadcast %cst_120 : f32 to vector<8x64xf32>
    %197 = arith.mulf %196, %195 : vector<8x64xf32>
    %198 = math.tanh %197 : vector<8x64xf32>
    %cst_121 = arith.constant 1.000000e+00 : f32
    %199 = vector.broadcast %cst_121 : f32 to vector<8x64xf32>
    %200 = arith.addf %199, %198 : vector<8x64xf32>
    %cst_122 = arith.constant 5.000000e-01 : f32
    %201 = vector.broadcast %cst_122 : f32 to vector<8x64xf32>
    %202 = arith.mulf %201, %200 : vector<8x64xf32>
    %203 = arith.mulf %190, %202 : vector<8x64xf32>
    %204 = arith.truncf %203 : vector<8x64xf32> to vector<8x64xbf16>
    %c0_123 = arith.constant 0 : index
    %c0_124 = arith.constant 0 : index
    %205 = vector.load %arg16[%c0_123, %c0_124] : memref<64x32xbf16, #tpu.memory_space<vmem>>, vector<64x32xbf16>
    %cst_125 = arith.constant dense<0.000000e+00> : vector<8x32xf32>
    %206 = tpu.matmul %204, %205, %cst_125 {dimension_numbers = #tpu.dot_dimension_numbers<[1], [0], [0], [1], [0, 0, 1, 1], [], []>} : vector<8x64xbf16>, vector<64x32xbf16>, vector<8x32xf32> -> vector<8x32xf32>
    %c0_126 = arith.constant 0 : index
    %c0_127 = arith.constant 0 : index
    %207 = vector.load %arg17[%c0_126, %c0_127] : memref<1x32xf32, #tpu.memory_space<vmem>>, vector<1x32xf32>
    %208 = vector.shape_cast %207 : vector<1x32xf32> to vector<32xf32>
    %209 = vector.shape_cast %208 : vector<32xf32> to vector<1x32xf32>
    %210 = vector.broadcast %209 : vector<1x32xf32> to vector<8x32xf32>
    %211 = arith.addf %206, %210 : vector<8x32xf32>
    %212 = arith.addf %211, %154 : vector<8x32xf32>
    %213 = vector.shape_cast %212 : vector<8x32xf32> to vector<1x8x32xf32>
    %c0_128 = arith.constant 0 : index
    %c0_129 = arith.constant 0 : index
    %c0_130 = arith.constant 0 : index
    %214 = vector.load %arg18[%c0_128, %c0_129, %c0_130] : memref<1x8x32xf32, #tpu.memory_space<vmem>>, vector<1x8x32xf32>
    tpu.vector_store %arg18[%c0_128, %c0_129, %c0_130], %213 {strides = array<i32>} : memref<1x8x32xf32, #tpu.memory_space<vmem>>, vector<1x8x32xf32>,
    return
  }
  func.func @transform_0(%arg0: i32) -> (i32, i32, i32) {
    %c0_i32 = arith.constant 0 : i32
    %c0_i32_0 = arith.constant 0 : i32
    %c0_i32_1 = arith.constant 0 : i32
    return %arg0, %c0_i32, %c0_i32_0 : i32, i32, i32
  }
  func.func @transform_1(%arg0: i32) -> (i32, i32) {
    %c0_i32 = arith.constant 0 : i32
    %c0_i32_0 = arith.constant 0 : i32
    %c0_i32_1 = arith.constant 0 : i32
    return %c0_i32, %c0_i32_0 : i32, i32
  }
  func.func @transform_2(%arg0: i32) -> (i32, i32) {
    %c0_i32 = arith.constant 0 : i32
    %c0_i32_0 = arith.constant 0 : i32
    %c0_i32_1 = arith.constant 0 : i32
    return %c0_i32, %c0_i32_0 : i32, i32
  }
  func.func @transform_3(%arg0: i32) -> (i32, i32) {
    %c0_i32 = arith.constant 0 : i32
    %c0_i32_0 = arith.constant 0 : i32
    %c0_i32_1 = arith.constant 0 : i32
    return %c0_i32, %c0_i32_0 : i32, i32
  }
  func.func @transform_4(%arg0: i32) -> (i32, i32) {
    %c0_i32 = arith.constant 0 : i32
    %c0_i32_0 = arith.constant 0 : i32
    %c0_i32_1 = arith.constant 0 : i32
    return %c0_i32, %c0_i32_0 : i32, i32
  }
  func.func @transform_5(%arg0: i32) -> (i32, i32) {
    %c0_i32 = arith.constant 0 : i32
    %c0_i32_0 = arith.constant 0 : i32
    %c0_i32_1 = arith.constant 0 : i32
    return %c0_i32, %c0_i32_0 : i32, i32
  }
  func.func @transform_6(%arg0: i32) -> (i32, i32) {
    %c0_i32 = arith.constant 0 : i32
    %c0_i32_0 = arith.constant 0 : i32
    %c0_i32_1 = arith.constant 0 : i32
    return %c0_i32, %c0_i32_0 : i32, i32
  }
  func.func @transform_7(%arg0: i32) -> (i32, i32) {
    %c0_i32 = arith.constant 0 : i32
    %c0_i32_0 = arith.constant 0 : i32
    %c0_i32_1 = arith.constant 0 : i32
    return %c0_i32, %c0_i32_0 : i32, i32
  }
  func.func @transform_8(%arg0: i32) -> (i32, i32) {
    %c0_i32 = arith.constant 0 : i32
    %c0_i32_0 = arith.constant 0 : i32
    %c0_i32_1 = arith.constant 0 : i32
    return %c0_i32, %c0_i32_0 : i32, i32
  }
  func.func @transform_9(%arg0: i32) -> (i32, i32) {
    %c0_i32 = arith.constant 0 : i32
    %c0_i32_0 = arith.constant 0 : i32
    %c0_i32_1 = arith.constant 0 : i32
    return %c0_i32, %c0_i32_0 : i32, i32
  }
  func.func @transform_10(%arg0: i32) -> (i32, i32) {
    %c0_i32 = arith.constant 0 : i32
    %c0_i32_0 = arith.constant 0 : i32
    %c0_i32_1 = arith.constant 0 : i32
    return %c0_i32, %c0_i32_0 : i32, i32
  }
  func.func @transform_11(%arg0: i32) -> (i32, i32) {
    %c0_i32 = arith.constant 0 : i32
    %c0_i32_0 = arith.constant 0 : i32
    %c0_i32_1 = arith.constant 0 : i32
    return %c0_i32, %c0_i32_0 : i32, i32
  }
  func.func @transform_12(%arg0: i32) -> (i32, i32) {
    %c0_i32 = arith.constant 0 : i32
    %c0_i32_0 = arith.constant 0 : i32
    %c0_i32_1 = arith.constant 0 : i32
    return %c0_i32, %c0_i32_0 : i32, i32
  }
  func.func @transform_13(%arg0: i32) -> (i32, i32) {
    %c0_i32 = arith.constant 0 : i32
    %c0_i32_0 = arith.constant 0 : i32
    %c0_i32_1 = arith.constant 0 : i32
    return %c0_i32, %c0_i32_0 : i32, i32
  }
  func.func @transform_14(%arg0: i32) -> (i32, i32) {
    %c0_i32 = arith.constant 0 : i32
    %c0_i32_0 = arith.constant 0 : i32
    %c0_i32_1 = arith.constant 0 : i32
    return %c0_i32, %c0_i32_0 : i32, i32
  }
  func.func @transform_15(%arg0: i32) -> (i32, i32) {
    %c0_i32 = arith.constant 0 : i32
    %c0_i32_0 = arith.constant 0 : i32
    %c0_i32_1 = arith.constant 0 : i32
    return %c0_i32, %c0_i32_0 : i32, i32
  }
  func.func @transform_16(%arg0: i32) -> (i32, i32) {
    %c0_i32 = arith.constant 0 : i32
    %c0_i32_0 = arith.constant 0 : i32
    %c0_i32_1 = arith.constant 0 : i32
    return %c0_i32, %c0_i32_0 : i32, i32
  }
  func.func @transform_17(%arg0: i32) -> (i32, i32, i32) {
    %c0_i32 = arith.constant 0 : i32
    %c0_i32_0 = arith.constant 0 : i32
    %c0_i32_1 = arith.constant 0 : i32
    return %arg0, %c0_i32, %c0_i32_0 : i32, i32, i32
  }
  func.func @transform_18(%arg0: i32) -> (i32, i32, i32, i32) {
    %c0_i32 = arith.constant 0 : i32
    %c0_i32_0 = arith.constant 0 : i32
    %c0_i32_1 = arith.constant 0 : i32
    %c0_i32_2 = arith.constant 0 : i32
    return %arg0, %c0_i32, %c0_i32_0, %c0_i32_1 : i32, i32, i32, i32
  }
  func.func @transform_19(%arg0: i32) -> (i32, i32, i32) {
    %c0_i32 = arith.constant 0 : i32
    %c0_i32_0 = arith.constant 0 : i32
    %c0_i32_1 = arith.constant 0 : i32
    return %arg0, %c0_i32, %c0_i32_0 : i32, i32, i32
  }
}

module attributes {stable_mosaic.version = 11 : i64} {
  func.func @kernel(%arg0: i32, %arg1: memref<1x8x32xf32, #tpu.memory_space<vmem>>, %arg2: memref<1x32xf32, #tpu.memory_space<vmem>>, %arg3: memref<1x32xf32, #tpu.memory_space<vmem>>, %arg4: memref<32x32xbf16, #tpu.memory_space<vmem>>, %arg5: memref<1x32xf32, #tpu.memory_space<vmem>>, %arg6: memref<32x32xbf16, #tpu.memory_space<vmem>>, %arg7: memref<1x32xf32, #tpu.memory_space<vmem>>, %arg8: memref<32x32xbf16, #tpu.memory_space<vmem>>, %arg9: memref<1x32xf32, #tpu.memory_space<vmem>>, %arg10: memref<32x32xbf16, #tpu.memory_space<vmem>>, %arg11: memref<1x32xf32, #tpu.memory_space<vmem>>, %arg12: memref<1x32xf32, #tpu.memory_space<vmem>>, %arg13: memref<1x32xf32, #tpu.memory_space<vmem>>, %arg14: memref<32x64xbf16, #tpu.memory_space<vmem>>, %arg15: memref<1x64xf32, #tpu.memory_space<vmem>>, %arg16: memref<64x32xbf16, #tpu.memory_space<vmem>>, %arg17: memref<1x32xf32, #tpu.memory_space<vmem>>, %arg18: memref<1x8x32xf32, #tpu.memory_space<vmem>>, %arg19: memref<1x4x8x8xbf16, #tpu.memory_space<vmem>>, %arg20: memref<1x8x32xf32, #tpu.memory_space<vmem>>, %arg21: memref<1x8x32xbf16, #tpu.memory_space<vmem>>, %arg22: memref<1x8x32xbf16, #tpu.memory_space<vmem>>, %arg23: memref<1x8x32xbf16, #tpu.memory_space<vmem>>) attributes {dimension_semantics = [#tpu.dimension_semantics<parallel>], iteration_bounds = array<i64: 2>, scalar_prefetch = 0 : i64, scratch_operands = 3 : i64, tpu.core_type = #tpu.core_type<tc>, window_params = [{transform_indices = @transform_0, window_bounds = array<i64: 1, 8, 32>}, {pipeline_mode = #tpu.pipeline_mode<synchronous>, transform_indices = @transform_1, window_bounds = array<i64: 1, 32>}, {pipeline_mode = #tpu.pipeline_mode<synchronous>, transform_indices = @transform_2, window_bounds = array<i64: 1, 32>}, {pipeline_mode = #tpu.pipeline_mode<synchronous>, transform_indices = @transform_3, window_bounds = array<i64: 32, 32>}, {pipeline_mode = #tpu.pipeline_mode<synchronous>, transform_indices = @transform_4, window_bounds = array<i64: 1, 32>}, {pipeline_mode = #tpu.pipeline_mode<synchronous>, transform_indices = @transform_5, window_bounds = array<i64: 32, 32>}, {pipeline_mode = #tpu.pipeline_mode<synchronous>, transform_indices = @transform_6, window_bounds = array<i64: 1, 32>}, {pipeline_mode = #tpu.pipeline_mode<synchronous>, transform_indices = @transform_7, window_bounds = array<i64: 32, 32>}, {pipeline_mode = #tpu.pipeline_mode<synchronous>, transform_indices = @transform_8, window_bounds = array<i64: 1, 32>}, {pipeline_mode = #tpu.pipeline_mode<synchronous>, transform_indices = @transform_9, window_bounds = array<i64: 32, 32>}, {pipeline_mode = #tpu.pipeline_mode<synchronous>, transform_indices = @transform_10, window_bounds = array<i64: 1, 32>}, {pipeline_mode = #tpu.pipeline_mode<synchronous>, transform_indices = @transform_11, window_bounds = array<i64: 1, 32>}, {pipeline_mode = #tpu.pipeline_mode<synchronous>, transform_indices = @transform_12, window_bounds = array<i64: 1, 32>}, {pipeline_mode = #tpu.pipeline_mode<synchronous>, transform_indices = @transform_13, window_bounds = array<i64: 32, 64>}, {pipeline_mode = #tpu.pipeline_mode<synchronous>, transform_indices = @transform_14, window_bounds = array<i64: 1, 64>}, {pipeline_mode = #tpu.pipeline_mode<synchronous>, transform_indices = @transform_15, window_bounds = array<i64: 64, 32>}, {pipeline_mode = #tpu.pipeline_mode<synchronous>, transform_indices = @transform_16, window_bounds = array<i64: 1, 32>}, {transform_indices = @transform_17, window_bounds = array<i64: 1, 8, 32>}, {transform_indices = @transform_18, window_bounds = array<i64: 1, 4, 8, 8>}, {transform_indices = @transform_19, window_bounds = array<i64: 1, 8, 32>}]} {
    %c0 = arith.constant 0 : index
    %c0_0 = arith.constant 0 : index
    %c0_1 = arith.constant 0 : index
    %0 = vector.load %arg1[%c0, %c0_0, %c0_1] : memref<1x8x32xf32, #tpu.memory_space<vmem>>, vector<1x8x32xf32>
    %1 = vector.shape_cast %0 : vector<1x8x32xf32> to vector<8x32xf32>
    %c0_2 = arith.constant 0 : index
    %c0_3 = arith.constant 0 : index
    %2 = vector.load %arg2[%c0_2, %c0_3] : memref<1x32xf32, #tpu.memory_space<vmem>>, vector<1x32xf32>
    %3 = vector.shape_cast %2 : vector<1x32xf32> to vector<32xf32>
    %c0_4 = arith.constant 0 : index
    %c0_5 = arith.constant 0 : index
    %4 = vector.load %arg3[%c0_4, %c0_5] : memref<1x32xf32, #tpu.memory_space<vmem>>, vector<1x32xf32>
    %5 = vector.shape_cast %4 : vector<1x32xf32> to vector<32xf32>
    %cst = arith.constant dense<0.000000e+00> : vector<8xf32>
    %6 = vector.multi_reduction <add>, %1, %cst [1] : vector<8x32xf32> to vector<8xf32>
    %7 = vector.shape_cast %6 : vector<8xf32> to vector<8x1xf32>
    %cst_6 = arith.constant 3.200000e+01 : f32
    %8 = vector.broadcast %cst_6 : f32 to vector<8x1xf32>
    %9 = arith.divf %7, %8 : vector<8x1xf32>
    %10 = vector.broadcast %9 : vector<8x1xf32> to vector<8x32xf32>
    %11 = arith.subf %1, %10 : vector<8x32xf32>
    %12 = arith.mulf %11, %11 : vector<8x32xf32>
    %cst_7 = arith.constant dense<0.000000e+00> : vector<8xf32>
    %13 = vector.multi_reduction <add>, %12, %cst_7 [1] : vector<8x32xf32> to vector<8xf32>
    %14 = vector.shape_cast %13 : vector<8xf32> to vector<8x1xf32>
    %cst_8 = arith.constant 3.200000e+01 : f32
    %15 = vector.broadcast %cst_8 : f32 to vector<8x1xf32>
    %16 = arith.divf %14, %15 : vector<8x1xf32>
    %17 = vector.broadcast %9 : vector<8x1xf32> to vector<8x32xf32>
    %18 = arith.subf %1, %17 : vector<8x32xf32>
    %cst_9 = arith.constant 9.99999997E-7 : f32
    %19 = vector.broadcast %cst_9 : f32 to vector<8x1xf32>
    %20 = arith.addf %16, %19 : vector<8x1xf32>
    %21 = math.rsqrt %20 : vector<8x1xf32>
    %22 = vector.broadcast %21 : vector<8x1xf32> to vector<8x32xf32>
    %23 = arith.mulf %18, %22 : vector<8x32xf32>
    %24 = vector.shape_cast %3 : vector<32xf32> to vector<1x32xf32>
    %25 = vector.broadcast %24 : vector<1x32xf32> to vector<8x32xf32>
    %26 = arith.mulf %23, %25 : vector<8x32xf32>
    %27 = vector.shape_cast %5 : vector<32xf32> to vector<1x32xf32>
    %28 = vector.broadcast %27 : vector<1x32xf32> to vector<8x32xf32>
    %29 = arith.addf %26, %28 : vector<8x32xf32>
    %30 = arith.truncf %29 : vector<8x32xf32> to vector<8x32xbf16>
    %c0_10 = arith.constant 0 : index
    %c0_11 = arith.constant 0 : index
    %31 = vector.load %arg6[%c0_10, %c0_11] : memref<32x32xbf16, #tpu.memory_space<vmem>>, vector<32x32xbf16>
    %cst_12 = arith.constant dense<0.000000e+00> : vector<8x32xf32>
    %32 = tpu.matmul %30, %31, %cst_12 {dimension_numbers = #tpu.dot_dimension_numbers<[1], [0], [0], [1], [0, 0, 1, 1], [], []>} : vector<8x32xbf16>, vector<32x32xbf16>, vector<8x32xf32> -> vector<8x32xf32>
    %c0_13 = arith.constant 0 : index
    %c0_14 = arith.constant 0 : index
    %33 = vector.load %arg7[%c0_13, %c0_14] : memref<1x32xf32, #tpu.memory_space<vmem>>, vector<1x32xf32>
    %34 = vector.shape_cast %33 : vector<1x32xf32> to vector<32xf32>
    %35 = vector.shape_cast %34 : vector<32xf32> to vector<1x32xf32>
    %36 = vector.broadcast %35 : vector<1x32xf32> to vector<8x32xf32>
    %37 = arith.addf %32, %36 : vector<8x32xf32>
    %c0_15 = arith.constant 0 : index
    %c0_16 = arith.constant 0 : index
    %38 = vector.load %arg8[%c0_15, %c0_16] : memref<32x32xbf16, #tpu.memory_space<vmem>>, vector<32x32xbf16>
    %cst_17 = arith.constant dense<0.000000e+00> : vector<8x32xf32>
    %39 = tpu.matmul %30, %38, %cst_17 {dimension_numbers = #tpu.dot_dimension_numbers<[1], [0], [0], [1], [0, 0, 1, 1], [], []>} : vector<8x32xbf16>, vector<32x32xbf16>, vector<8x32xf32> -> vector<8x32xf32>
    %c0_18 = arith.constant 0 : index
    %c0_19 = arith.constant 0 : index
    %40 = vector.load %arg9[%c0_18, %c0_19] : memref<1x32xf32, #tpu.memory_space<vmem>>, vector<1x32xf32>
    %41 = vector.shape_cast %40 : vector<1x32xf32> to vector<32xf32>
    %42 = vector.shape_cast %41 : vector<32xf32> to vector<1x32xf32>
    %43 = vector.broadcast %42 : vector<1x32xf32> to vector<8x32xf32>
    %44 = arith.addf %39, %43 : vector<8x32xf32>
    %c0_20 = arith.constant 0 : index
    %c0_21 = arith.constant 0 : index
    %45 = vector.load %arg4[%c0_20, %c0_21] : memref<32x32xbf16, #tpu.memory_space<vmem>>, vector<32x32xbf16>
    %cst_22 = arith.constant dense<0.000000e+00> : vector<8x32xf32>
    %46 = tpu.matmul %30, %45, %cst_22 {dimension_numbers = #tpu.dot_dimension_numbers<[1], [0], [0], [1], [0, 0, 1, 1], [], []>} : vector<8x32xbf16>, vector<32x32xbf16>, vector<8x32xf32> -> vector<8x32xf32>
    %c0_23 = arith.constant 0 : index
    %c0_24 = arith.constant 0 : index
    %47 = vector.load %arg5[%c0_23, %c0_24] : memref<1x32xf32, #tpu.memory_space<vmem>>, vector<1x32xf32>
    %48 = vector.shape_cast %47 : vector<1x32xf32> to vector<32xf32>
    %49 = vector.shape_cast %48 : vector<32xf32> to vector<1x32xf32>
    %50 = vector.broadcast %49 : vector<1x32xf32> to vector<8x32xf32>
    %51 = arith.addf %46, %50 : vector<8x32xf32>
    %cst_25 = arith.constant 0.353553385 : f32
    %52 = vector.broadcast %cst_25 : f32 to vector<8x32xf32>
    %53 = arith.mulf %51, %52 : vector<8x32xf32>
    %54 = arith.truncf %53 : vector<8x32xf32> to vector<8x32xbf16>
    %55 = vector.shape_cast %54 : vector<8x32xbf16> to vector<1x8x32xbf16>
    %c0_26 = arith.constant 0 : index
    %c0_27 = arith.constant 0 : index
    %c0_28 = arith.constant 0 : index
    %56 = vector.load %arg21[%c0_26, %c0_27, %c0_28] : memref<1x8x32xbf16, #tpu.memory_space<vmem>>, vector<1x8x32xbf16>
    tpu.vector_store %arg21[%c0_26, %c0_27, %c0_28], %55 {strides = array<i32>} : memref<1x8x32xbf16, #tpu.memory_space<vmem>>, vector<1x8x32xbf16>,
    %57 = arith.truncf %37 : vector<8x32xf32> to vector<8x32xbf16>
    %58 = vector.shape_cast %57 : vector<8x32xbf16> to vector<1x8x32xbf16>
    %c0_29 = arith.constant 0 : index
    %c0_30 = arith.constant 0 : index
    %c0_31 = arith.constant 0 : index
    %59 = vector.load %arg22[%c0_29, %c0_30, %c0_31] : memref<1x8x32xbf16, #tpu.memory_space<vmem>>, vector<1x8x32xbf16>
    tpu.vector_store %arg22[%c0_29, %c0_30, %c0_31], %58 {strides = array<i32>} : memref<1x8x32xbf16, #tpu.memory_space<vmem>>, vector<1x8x32xbf16>,
    %60 = arith.truncf %44 : vector<8x32xf32> to vector<8x32xbf16>
    %61 = vector.shape_cast %60 : vector<8x32xbf16> to vector<1x8x32xbf16>
    %c0_32 = arith.constant 0 : index
    %c0_33 = arith.constant 0 : index
    %c0_34 = arith.constant 0 : index
    %62 = vector.load %arg23[%c0_32, %c0_33, %c0_34] : memref<1x8x32xbf16, #tpu.memory_space<vmem>>, vector<1x8x32xbf16>
    tpu.vector_store %arg23[%c0_32, %c0_33, %c0_34], %61 {strides = array<i32>} : memref<1x8x32xbf16, #tpu.memory_space<vmem>>, vector<1x8x32xbf16>,
    %c0_35 = arith.constant 0 : index
    %c0_36 = arith.constant 0 : index
    %c0_37 = arith.constant 0 : index
    %63 = vector.load %arg21[%c0_35, %c0_36, %c0_37] : memref<1x8x32xbf16, #tpu.memory_space<vmem>>, vector<1x8x8xbf16>
    %c0_38 = arith.constant 0 : index
    %c0_39 = arith.constant 0 : index
    %c0_40 = arith.constant 0 : index
    %64 = vector.load %arg22[%c0_38, %c0_39, %c0_40] : memref<1x8x32xbf16, #tpu.memory_space<vmem>>, vector<1x8x8xbf16>
    %c0_41 = arith.constant 0 : index
    %c0_42 = arith.constant 0 : index
    %c0_43 = arith.constant 0 : index
    %65 = vector.load %arg23[%c0_41, %c0_42, %c0_43] : memref<1x8x32xbf16, #tpu.memory_space<vmem>>, vector<1x8x8xbf16>
    "tpu.trace_start"() <{level = 10 : i32, message = "bqd,bkd->bqk"}> : () -> ()
    %cst_44 = arith.constant dense<0.000000e+00> : vector<1x8x8xf32>
    %66 = tpu.matmul %63, %64, %cst_44 {dimension_numbers = #tpu.dot_dimension_numbers<[2], [2], [1], [1], [0, 0, 0, 1, 1, 1], [0], [0]>} : vector<1x8x8xbf16>, vector<1x8x8xbf16>, vector<1x8x8xf32> -> vector<1x8x8xf32>
    "tpu.trace_stop"() : () -> ()
    %cst_45 = arith.constant dense<0xFF800000> : vector<1x8xf32>
    %67 = vector.multi_reduction <maximumf>, %66, %cst_45 [2] : vector<1x8x8xf32> to vector<1x8xf32>
    %68 = vector.shape_cast %67 : vector<1x8xf32> to vector<1x8x1xf32>
    %69 = vector.broadcast %68 : vector<1x8x1xf32> to vector<1x8x8xf32>
    %70 = arith.subf %66, %69 : vector<1x8x8xf32>
    %71 = math.exp %70 : vector<1x8x8xf32>
    %cst_46 = arith.constant dense<0.000000e+00> : vector<1x8xf32>
    %72 = vector.multi_reduction <add>, %71, %cst_46 [2] : vector<1x8x8xf32> to vector<1x8xf32>
    %73 = vector.shape_cast %72 : vector<1x8xf32> to vector<1x8x1xf32>
    %74 = tpu.reciprocal %73 {approx = true} : vector<1x8x1xf32> -> vector<1x8x1xf32>
    %75 = vector.broadcast %74 : vector<1x8x1xf32> to vector<1x8x8xf32>
    %76 = arith.mulf %71, %75 : vector<1x8x8xf32>
    %77 = arith.truncf %76 : vector<1x8x8xf32> to vector<1x8x8xbf16>
    %c0_47 = arith.constant 0 : index
    %c0_48 = arith.constant 0 : index
    %c0_49 = arith.constant 0 : index
    %c0_50 = arith.constant 0 : index
    %78 = vector.load %arg19[%c0_47, %c0_48, %c0_49, %c0_50] : memref<1x4x8x8xbf16, #tpu.memory_space<vmem>>, vector<1x1x8x8xbf16>
    %79 = vector.shape_cast %78 : vector<1x1x8x8xbf16> to vector<1x8x8xbf16>
    %80 = vector.shape_cast %77 : vector<1x8x8xbf16> to vector<1x1x8x8xbf16>
    tpu.vector_store %arg19[%c0_47, %c0_48, %c0_49, %c0_50], %80 {strides = array<i32>} : memref<1x4x8x8xbf16, #tpu.memory_space<vmem>>, vector<1x1x8x8xbf16>,
    %81 = arith.truncf %76 : vector<1x8x8xf32> to vector<1x8x8xbf16>
    "tpu.trace_start"() <{level = 10 : i32, message = "bqk,bkd->bqd"}> : () -> ()
    %cst_51 = arith.constant dense<0.000000e+00> : vector<1x8x8xf32>
    %82 = tpu.matmul %81, %65, %cst_51 {dimension_numbers = #tpu.dot_dimension_numbers<[2], [1], [1], [2], [0, 0, 0, 1, 1, 2], [0], [0]>} : vector<1x8x8xbf16>, vector<1x8x8xbf16>, vector<1x8x8xf32> -> vector<1x8x8xf32>
    "tpu.trace_stop"() : () -> ()
    %c0_52 = arith.constant 0 : index
    %c0_53 = arith.constant 0 : index
    %c8 = arith.constant 8 : index
    %83 = vector.load %arg21[%c0_52, %c0_53, %c8] : memref<1x8x32xbf16, #tpu.memory_space<vmem>>, vector<1x8x8xbf16>
    %c0_54 = arith.constant 0 : index
    %c0_55 = arith.constant 0 : index
    %c8_56 = arith.constant 8 : index
    %84 = vector.load %arg22[%c0_54, %c0_55, %c8_56] : memref<1x8x32xbf16, #tpu.memory_space<vmem>>, vector<1x8x8xbf16>
    %c0_57 = arith.constant 0 : index
    %c0_58 = arith.constant 0 : index
    %c8_59 = arith.constant 8 : index
    %85 = vector.load %arg23[%c0_57, %c0_58, %c8_59] : memref<1x8x32xbf16, #tpu.memory_space<vmem>>, vector<1x8x8xbf16>
    "tpu.trace_start"() <{level = 10 : i32, message = "bqd,bkd->bqk"}> : () -> ()
    %cst_60 = arith.constant dense<0.000000e+00> : vector<1x8x8xf32>
    %86 = tpu.matmul %83, %84, %cst_60 {dimension_numbers = #tpu.dot_dimension_numbers<[2], [2], [1], [1], [0, 0, 0, 1, 1, 1], [0], [0]>} : vector<1x8x8xbf16>, vector<1x8x8xbf16>, vector<1x8x8xf32> -> vector<1x8x8xf32>
    "tpu.trace_stop"() : () -> ()
    %cst_61 = arith.constant dense<0xFF800000> : vector<1x8xf32>
    %87 = vector.multi_reduction <maximumf>, %86, %cst_61 [2] : vector<1x8x8xf32> to vector<1x8xf32>
    %88 = vector.shape_cast %87 : vector<1x8xf32> to vector<1x8x1xf32>
    %89 = vector.broadcast %88 : vector<1x8x1xf32> to vector<1x8x8xf32>
    %90 = arith.subf %86, %89 : vector<1x8x8xf32>
    %91 = math.exp %90 : vector<1x8x8xf32>
    %cst_62 = arith.constant dense<0.000000e+00> : vector<1x8xf32>
    %92 = vector.multi_reduction <add>, %91, %cst_62 [2] : vector<1x8x8xf32> to vector<1x8xf32>
    %93 = vector.shape_cast %92 : vector<1x8xf32> to vector<1x8x1xf32>
    %94 = tpu.reciprocal %93 {approx = true} : vector<1x8x1xf32> -> vector<1x8x1xf32>
    %95 = vector.broadcast %94 : vector<1x8x1xf32> to vector<1x8x8xf32>
    %96 = arith.mulf %91, %95 : vector<1x8x8xf32>
    %97 = arith.truncf %96 : vector<1x8x8xf32> to vector<1x8x8xbf16>
    %c0_63 = arith.constant 0 : index
    %c1 = arith.constant 1 : index
    %c0_64 = arith.constant 0 : index
    %c0_65 = arith.constant 0 : index
    %98 = vector.load %arg19[%c0_63, %c1, %c0_64, %c0_65] : memref<1x4x8x8xbf16, #tpu.memory_space<vmem>>, vector<1x1x8x8xbf16>
    %99 = vector.shape_cast %98 : vector<1x1x8x8xbf16> to vector<1x8x8xbf16>
    %100 = vector.shape_cast %97 : vector<1x8x8xbf16> to vector<1x1x8x8xbf16>
    tpu.vector_store %arg19[%c0_63, %c1, %c0_64, %c0_65], %100 {strides = array<i32>} : memref<1x4x8x8xbf16, #tpu.memory_space<vmem>>, vector<1x1x8x8xbf16>,
    %101 = arith.truncf %96 : vector<1x8x8xf32> to vector<1x8x8xbf16>
    "tpu.trace_start"() <{level = 10 : i32, message = "bqk,bkd->bqd"}> : () -> ()
    %cst_66 = arith.constant dense<0.000000e+00> : vector<1x8x8xf32>
    %102 = tpu.matmul %101, %85, %cst_66 {dimension_numbers = #tpu.dot_dimension_numbers<[2], [1], [1], [2], [0, 0, 0, 1, 1, 2], [0], [0]>} : vector<1x8x8xbf16>, vector<1x8x8xbf16>, vector<1x8x8xf32> -> vector<1x8x8xf32>
    "tpu.trace_stop"() : () -> ()
    %c0_67 = arith.constant 0 : index
    %c0_68 = arith.constant 0 : index
    %c16 = arith.constant 16 : index
    %103 = vector.load %arg21[%c0_67, %c0_68, %c16] : memref<1x8x32xbf16, #tpu.memory_space<vmem>>, vector<1x8x8xbf16>
    %c0_69 = arith.constant 0 : index
    %c0_70 = arith.constant 0 : index
    %c16_71 = arith.constant 16 : index
    %104 = vector.load %arg22[%c0_69, %c0_70, %c16_71] : memref<1x8x32xbf16, #tpu.memory_space<vmem>>, vector<1x8x8xbf16>
    %c0_72 = arith.constant 0 : index
    %c0_73 = arith.constant 0 : index
    %c16_74 = arith.constant 16 : index
    %105 = vector.load %arg23[%c0_72, %c0_73, %c16_74] : memref<1x8x32xbf16, #tpu.memory_space<vmem>>, vector<1x8x8xbf16>
    "tpu.trace_start"() <{level = 10 : i32, message = "bqd,bkd->bqk"}> : () -> ()
    %cst_75 = arith.constant dense<0.000000e+00> : vector<1x8x8xf32>
    %106 = tpu.matmul %103, %104, %cst_75 {dimension_numbers = #tpu.dot_dimension_numbers<[2], [2], [1], [1], [0, 0, 0, 1, 1, 1], [0], [0]>} : vector<1x8x8xbf16>, vector<1x8x8xbf16>, vector<1x8x8xf32> -> vector<1x8x8xf32>
    "tpu.trace_stop"() : () -> ()
    %cst_76 = arith.constant dense<0xFF800000> : vector<1x8xf32>
    %107 = vector.multi_reduction <maximumf>, %106, %cst_76 [2] : vector<1x8x8xf32> to vector<1x8xf32>
    %108 = vector.shape_cast %107 : vector<1x8xf32> to vector<1x8x1xf32>
    %109 = vector.broadcast %108 : vector<1x8x1xf32> to vector<1x8x8xf32>
    %110 = arith.subf %106, %109 : vector<1x8x8xf32>
    %111 = math.exp %110 : vector<1x8x8xf32>
    %cst_77 = arith.constant dense<0.000000e+00> : vector<1x8xf32>
    %112 = vector.multi_reduction <add>, %111, %cst_77 [2] : vector<1x8x8xf32> to vector<1x8xf32>
    %113 = vector.shape_cast %112 : vector<1x8xf32> to vector<1x8x1xf32>
    %114 = tpu.reciprocal %113 {approx = true} : vector<1x8x1xf32> -> vector<1x8x1xf32>
    %115 = vector.broadcast %114 : vector<1x8x1xf32> to vector<1x8x8xf32>
    %116 = arith.mulf %111, %115 : vector<1x8x8xf32>
    %117 = arith.truncf %116 : vector<1x8x8xf32> to vector<1x8x8xbf16>
    %c0_78 = arith.constant 0 : index
    %c2 = arith.constant 2 : index
    %c0_79 = arith.constant 0 : index
    %c0_80 = arith.constant 0 : index
    %118 = vector.load %arg19[%c0_78, %c2, %c0_79, %c0_80] : memref<1x4x8x8xbf16, #tpu.memory_space<vmem>>, vector<1x1x8x8xbf16>
    %119 = vector.shape_cast %118 : vector<1x1x8x8xbf16> to vector<1x8x8xbf16>
    %120 = vector.shape_cast %117 : vector<1x8x8xbf16> to vector<1x1x8x8xbf16>
    tpu.vector_store %arg19[%c0_78, %c2, %c0_79, %c0_80], %120 {strides = array<i32>} : memref<1x4x8x8xbf16, #tpu.memory_space<vmem>>, vector<1x1x8x8xbf16>,
    %121 = arith.truncf %116 : vector<1x8x8xf32> to vector<1x8x8xbf16>
    "tpu.trace_start"() <{level = 10 : i32, message = "bqk,bkd->bqd"}> : () -> ()
    %cst_81 = arith.constant dense<0.000000e+00> : vector<1x8x8xf32>
    %122 = tpu.matmul %121, %105, %cst_81 {dimension_numbers = #tpu.dot_dimension_numbers<[2], [1], [1], [2], [0, 0, 0, 1, 1, 2], [0], [0]>} : vector<1x8x8xbf16>, vector<1x8x8xbf16>, vector<1x8x8xf32> -> vector<1x8x8xf32>
    "tpu.trace_stop"() : () -> ()
    %c0_82 = arith.constant 0 : index
    %c0_83 = arith.constant 0 : index
    %c24 = arith.constant 24 : index
    %123 = vector.load %arg21[%c0_82, %c0_83, %c24] : memref<1x8x32xbf16, #tpu.memory_space<vmem>>, vector<1x8x8xbf16>
    %c0_84 = arith.constant 0 : index
    %c0_85 = arith.constant 0 : index
    %c24_86 = arith.constant 24 : index
    %124 = vector.load %arg22[%c0_84, %c0_85, %c24_86] : memref<1x8x32xbf16, #tpu.memory_space<vmem>>, vector<1x8x8xbf16>
    %c0_87 = arith.constant 0 : index
    %c0_88 = arith.constant 0 : index
    %c24_89 = arith.constant 24 : index
    %125 = vector.load %arg23[%c0_87, %c0_88, %c24_89] : memref<1x8x32xbf16, #tpu.memory_space<vmem>>, vector<1x8x8xbf16>
    "tpu.trace_start"() <{level = 10 : i32, message = "bqd,bkd->bqk"}> : () -> ()
    %cst_90 = arith.constant dense<0.000000e+00> : vector<1x8x8xf32>
    %126 = tpu.matmul %123, %124, %cst_90 {dimension_numbers = #tpu.dot_dimension_numbers<[2], [2], [1], [1], [0, 0, 0, 1, 1, 1], [0], [0]>} : vector<1x8x8xbf16>, vector<1x8x8xbf16>, vector<1x8x8xf32> -> vector<1x8x8xf32>
    "tpu.trace_stop"() : () -> ()
    %cst_91 = arith.constant dense<0xFF800000> : vector<1x8xf32>
    %127 = vector.multi_reduction <maximumf>, %126, %cst_91 [2] : vector<1x8x8xf32> to vector<1x8xf32>
    %128 = vector.shape_cast %127 : vector<1x8xf32> to vector<1x8x1xf32>
    %129 = vector.broadcast %128 : vector<1x8x1xf32> to vector<1x8x8xf32>
    %130 = arith.subf %126, %129 : vector<1x8x8xf32>
    %131 = math.exp %130 : vector<1x8x8xf32>
    %cst_92 = arith.constant dense<0.000000e+00> : vector<1x8xf32>
    %132 = vector.multi_reduction <add>, %131, %cst_92 [2] : vector<1x8x8xf32> to vector<1x8xf32>
    %133 = vector.shape_cast %132 : vector<1x8xf32> to vector<1x8x1xf32>
    %134 = tpu.reciprocal %133 {approx = true} : vector<1x8x1xf32> -> vector<1x8x1xf32>
    %135 = vector.broadcast %134 : vector<1x8x1xf32> to vector<1x8x8xf32>
    %136 = arith.mulf %131, %135 : vector<1x8x8xf32>
    %137 = arith.truncf %136 : vector<1x8x8xf32> to vector<1x8x8xbf16>
    %c0_93 = arith.constant 0 : index
    %c3 = arith.constant 3 : index
    %c0_94 = arith.constant 0 : index
    %c0_95 = arith.constant 0 : index
    %138 = vector.load %arg19[%c0_93, %c3, %c0_94, %c0_95] : memref<1x4x8x8xbf16, #tpu.memory_space<vmem>>, vector<1x1x8x8xbf16>
    %139 = vector.shape_cast %138 : vector<1x1x8x8xbf16> to vector<1x8x8xbf16>
    %140 = vector.shape_cast %137 : vector<1x8x8xbf16> to vector<1x1x8x8xbf16>
    tpu.vector_store %arg19[%c0_93, %c3, %c0_94, %c0_95], %140 {strides = array<i32>} : memref<1x4x8x8xbf16, #tpu.memory_space<vmem>>, vector<1x1x8x8xbf16>,
    %141 = arith.truncf %136 : vector<1x8x8xf32> to vector<1x8x8xbf16>
    "tpu.trace_start"() <{level = 10 : i32, message = "bqk,bkd->bqd"}> : () -> ()
    %cst_96 = arith.constant dense<0.000000e+00> : vector<1x8x8xf32>
    %142 = tpu.matmul %141, %125, %cst_96 {dimension_numbers = #tpu.dot_dimension_numbers<[2], [1], [1], [2], [0, 0, 0, 1, 1, 2], [0], [0]>} : vector<1x8x8xbf16>, vector<1x8x8xbf16>, vector<1x8x8xf32> -> vector<1x8x8xf32>
    "tpu.trace_stop"() : () -> ()
    %143 = tpu.concatenate %82, %102, %122, %142 in 2 : vector<1x8x8xf32>, vector<1x8x8xf32>, vector<1x8x8xf32>, vector<1x8x8xf32> -> vector<1x8x32xf32>
    %c0_97 = arith.constant 0 : index
    %c0_98 = arith.constant 0 : index
    %c0_99 = arith.constant 0 : index
    %144 = vector.load %arg20[%c0_97, %c0_98, %c0_99] : memref<1x8x32xf32, #tpu.memory_space<vmem>>, vector<1x8x32xf32>
    tpu.vector_store %arg20[%c0_97, %c0_98, %c0_99], %143 {strides = array<i32>} : memref<1x8x32xf32, #tpu.memory_space<vmem>>, vector<1x8x32xf32>,
    %145 = vector.shape_cast %143 : vector<1x8x32xf32> to vector<8x32xf32>
    %146 = arith.truncf %145 : vector<8x32xf32> to vector<8x32xbf16>
    %c0_100 = arith.constant 0 : index
    %c0_101 = arith.constant 0 : index
    %147 = vector.load %arg10[%c0_100, %c0_101] : memref<32x32xbf16, #tpu.memory_space<vmem>>, vector<32x32xbf16>
    %cst_102 = arith.constant dense<0.000000e+00> : vector<8x32xf32>
    %148 = tpu.matmul %146, %147, %cst_102 {dimension_numbers = #tpu.dot_dimension_numbers<[1], [0], [0], [1], [0, 0, 1, 1], [], []>} : vector<8x32xbf16>, vector<32x32xbf16>, vector<8x32xf32> -> vector<8x32xf32>
    %c0_103 = arith.constant 0 : index
    %c0_104 = arith.constant 0 : index
    %149 = vector.load %arg11[%c0_103, %c0_104] : memref<1x32xf32, #tpu.memory_space<vmem>>, vector<1x32xf32>
    %150 = vector.shape_cast %149 : vector<1x32xf32> to vector<32xf32>
    %151 = vector.shape_cast %150 : vector<32xf32> to vector<1x32xf32>
    %152 = vector.broadcast %151 : vector<1x32xf32> to vector<8x32xf32>
    %153 = arith.addf %148, %152 : vector<8x32xf32>
    %154 = arith.addf %153, %1 : vector<8x32xf32>
    %c0_105 = arith.constant 0 : index
    %c0_106 = arith.constant 0 : index
    %155 = vector.load %arg12[%c0_105, %c0_106] : memref<1x32xf32, #tpu.memory_space<vmem>>, vector<1x32xf32>
    %156 = vector.shape_cast %155 : vector<1x32xf32> to vector<32xf32>
    %c0_107 = arith.constant 0 : index
    %c0_108 = arith.constant 0 : index
    %157 = vector.load %arg13[%c0_107, %c0_108] : memref<1x32xf32, #tpu.memory_space<vmem>>, vector<1x32xf32>
    %158 = vector.shape_cast %157 : vector<1x32xf32> to vector<32xf32>
    %cst_109 = arith.constant dense<0.000000e+00> : vector<8xf32>
    %159 = vector.multi_reduction <add>, %154, %cst_109 [1] : vector<8x32xf32> to vector<8xf32>
    %160 = vector.shape_cast %159 : vector<8xf32> to vector<8x1xf32>
    %cst_110 = arith.constant 3.200000e+01 : f32
    %161 = vector.broadcast %cst_110 : f32 to vector<8x1xf32>
    %162 = arith.divf %160, %161 : vector<8x1xf32>
    %163 = vector.broadcast %162 : vector<8x1xf32> to vector<8x32xf32>
    %164 = arith.subf %154, %163 : vector<8x32xf32>
    %165 = arith.mulf %164, %164 : vector<8x32xf32>
    %cst_111 = arith.constant dense<0.000000e+00> : vector<8xf32>
    %166 = vector.multi_reduction <add>, %165, %cst_111 [1] : vector<8x32xf32> to vector<8xf32>
    %167 = vector.shape_cast %166 : vector<8xf32> to vector<8x1xf32>
    %cst_112 = arith.constant 3.200000e+01 : f32
    %168 = vector.broadcast %cst_112 : f32 to vector<8x1xf32>
    %169 = arith.divf %167, %168 : vector<8x1xf32>
    %170 = vector.broadcast %162 : vector<8x1xf32> to vector<8x32xf32>
    %171 = arith.subf %154, %170 : vector<8x32xf32>
    %cst_113 = arith.constant 9.99999997E-7 : f32
    %172 = vector.broadcast %cst_113 : f32 to vector<8x1xf32>
    %173 = arith.addf %169, %172 : vector<8x1xf32>
    %174 = math.rsqrt %173 : vector<8x1xf32>
    %175 = vector.broadcast %174 : vector<8x1xf32> to vector<8x32xf32>
    %176 = arith.mulf %171, %175 : vector<8x32xf32>
    %177 = vector.shape_cast %156 : vector<32xf32> to vector<1x32xf32>
    %178 = vector.broadcast %177 : vector<1x32xf32> to vector<8x32xf32>
    %179 = arith.mulf %176, %178 : vector<8x32xf32>
    %180 = vector.shape_cast %158 : vector<32xf32> to vector<1x32xf32>
    %181 = vector.broadcast %180 : vector<1x32xf32> to vector<8x32xf32>
    %182 = arith.addf %179, %181 : vector<8x32xf32>
    %183 = arith.truncf %182 : vector<8x32xf32> to vector<8x32xbf16>
    %c0_114 = arith.constant 0 : index
    %c0_115 = arith.constant 0 : index
    %184 = vector.load %arg14[%c0_114, %c0_115] : memref<32x64xbf16, #tpu.memory_space<vmem>>, vector<32x64xbf16>
    %cst_116 = arith.constant dense<0.000000e+00> : vector<8x64xf32>
    %185 = tpu.matmul %183, %184, %cst_116 {dimension_numbers = #tpu.dot_dimension_numbers<[1], [0], [0], [1], [0, 0, 1, 1], [], []>} : vector<8x32xbf16>, vector<32x64xbf16>, vector<8x64xf32> -> vector<8x64xf32>
    %c0_117 = arith.constant 0 : index
    %c0_118 = arith.constant 0 : index
    %186 = vector.load %arg15[%c0_117, %c0_118] : memref<1x64xf32, #tpu.memory_space<vmem>>, vector<1x64xf32>
    %187 = vector.shape_cast %186 : vector<1x64xf32> to vector<64xf32>
    %188 = vector.shape_cast %187 : vector<64xf32> to vector<1x64xf32>
    %189 = vector.broadcast %188 : vector<1x64xf32> to vector<8x64xf32>
    %190 = arith.addf %185, %189 : vector<8x64xf32>
    %191 = arith.mulf %190, %190 : vector<8x64xf32>
    %192 = arith.mulf %190, %191 : vector<8x64xf32>
    %cst_119 = arith.constant 4.471500e-02 : f32
    %193 = vector.broadcast %cst_119 : f32 to vector<8x64xf32>
    %194 = arith.mulf %193, %192 : vector<8x64xf32>
    %195 = arith.addf %190, %194 : vector<8x64xf32>
    %cst_120 = arith.constant 0.797884583 : f32
    %196 = vector.broadcast %cst_120 : f32 to vector<8x64xf32>
    %197 = arith.mulf %196, %195 : vector<8x64xf32>
    %198 = math.tanh %197 : vector<8x64xf32>
    %cst_121 = arith.constant 1.000000e+00 : f32
    %199 = vector.broadcast %cst_121 : f32 to vector<8x64xf32>
    %200 = arith.addf %199, %198 : vector<8x64xf32>
    %cst_122 = arith.constant 5.000000e-01 : f32
    %201 = vector.broadcast %cst_122 : f32 to vector<8x64xf32>
    %202 = arith.mulf %201, %200 : vector<8x64xf32>
    %203 = arith.mulf %190, %202 : vector<8x64xf32>
    %204 = arith.truncf %203 : vector<8x64xf32> to vector<8x64xbf16>
    %c0_123 = arith.constant 0 : index
    %c0_124 = arith.constant 0 : index
    %205 = vector.load %arg16[%c0_123, %c0_124] : memref<64x32xbf16, #tpu.memory_space<vmem>>, vector<64x32xbf16>
    %cst_125 = arith.constant dense<0.000000e+00> : vector<8x32xf32>
    %206 = tpu.matmul %204, %205, %cst_125 {dimension_numbers = #tpu.dot_dimension_numbers<[1], [0], [0], [1], [0, 0, 1, 1], [], []>} : vector<8x64xbf16>, vector<64x32xbf16>, vector<8x32xf32> -> vector<8x32xf32>
    %c0_126 = arith.constant 0 : index
    %c0_127 = arith.constant 0 : index
    %207 = vector.load %arg17[%c0_126, %c0_127] : memref<1x32xf32, #tpu.memory_space<vmem>>, vector<1x32xf32>
    %208 = vector.shape_cast %207 : vector<1x32xf32> to vector<32xf32>
    %209 = vector.shape_cast %208 : vector<32xf32> to vector<1x32xf32>
    %210 = vector.broadcast %209 : vector<1x32xf32> to vector<8x32xf32>
    %211 = arith.addf %206, %210 : vector<8x32xf32>
    %212 = arith.addf %211, %154 : vector<8x32xf32>
    %213 = vector.shape_cast %212 : vector<8x32xf32> to vector<1x8x32xf32>
    %c0_128 = arith.constant 0 : index
    %c0_129 = arith.constant 0 : index
    %c0_130 = arith.constant 0 : index
    %214 = vector.load %arg18[%c0_128, %c0_129, %c0_130] : memref<1x8x32xf32, #tpu.memory_space<vmem>>, vector<1x8x32xf32>
    tpu.vector_store %arg18[%c0_128, %c0_129, %c0_130], %213 {strides = array<i32>} : memref<1x8x32xf32, #tpu.memory_space<vmem>>, vector<1x8x32xf32>,
    return
  }
  func.func @transform_0(%arg0: i32) -> (i32, i32, i32) {
    %c0_i32 = arith.constant 0 : i32
    %c0_i32_0 = arith.constant 0 : i32
    %c0_i32_1 = arith.constant 0 : i32
    return %arg0, %c0_i32, %c0_i32_0 : i32, i32, i32
  }
  func.func @transform_1(%arg0: i32) -> (i32, i32) {
    %c0_i32 = arith.constant 0 : i32
    %c0_i32_0 = arith.constant 0 : i32
    %c0_i32_1 = arith.constant 0 : i32
    return %c0_i32, %c0_i32_0 : i32, i32
  }
  func.func @transform_2(%arg0: i32) -> (i32, i32) {
    %c0_i32 = arith.constant 0 : i32
    %c0_i32_0 = arith.constant 0 : i32
    %c0_i32_1 = arith.constant 0 : i32
    return %c0_i32, %c0_i32_0 : i32, i32
  }
  func.func @transform_3(%arg0: i32) -> (i32, i32) {
    %c0_i32 = arith.constant 0 : i32
    %c0_i32_0 = arith.constant 0 : i32
    %c0_i32_1 = arith.constant 0 : i32
    return %c0_i32, %c0_i32_0 : i32, i32
  }
  func.func @transform_4(%arg0: i32) -> (i32, i32) {
    %c0_i32 = arith.constant 0 : i32
    %c0_i32_0 = arith.constant 0 : i32
    %c0_i32_1 = arith.constant 0 : i32
    return %c0_i32, %c0_i32_0 : i32, i32
  }
  func.func @transform_5(%arg0: i32) -> (i32, i32) {
    %c0_i32 = arith.constant 0 : i32
    %c0_i32_0 = arith.constant 0 : i32
    %c0_i32_1 = arith.constant 0 : i32
    return %c0_i32, %c0_i32_0 : i32, i32
  }
  func.func @transform_6(%arg0: i32) -> (i32, i32) {
    %c0_i32 = arith.constant 0 : i32
    %c0_i32_0 = arith.constant 0 : i32
    %c0_i32_1 = arith.constant 0 : i32
    return %c0_i32, %c0_i32_0 : i32, i32
  }
  func.func @transform_7(%arg0: i32) -> (i32, i32) {
    %c0_i32 = arith.constant 0 : i32
    %c0_i32_0 = arith.constant 0 : i32
    %c0_i32_1 = arith.constant 0 : i32
    return %c0_i32, %c0_i32_0 : i32, i32
  }
  func.func @transform_8(%arg0: i32) -> (i32, i32) {
    %c0_i32 = arith.constant 0 : i32
    %c0_i32_0 = arith.constant 0 : i32
    %c0_i32_1 = arith.constant 0 : i32
    return %c0_i32, %c0_i32_0 : i32, i32
  }
  func.func @transform_9(%arg0: i32) -> (i32, i32) {
    %c0_i32 = arith.constant 0 : i32
    %c0_i32_0 = arith.constant 0 : i32
    %c0_i32_1 = arith.constant 0 : i32
    return %c0_i32, %c0_i32_0 : i32, i32
  }
  func.func @transform_10(%arg0: i32) -> (i32, i32) {
    %c0_i32 = arith.constant 0 : i32
    %c0_i32_0 = arith.constant 0 : i32
    %c0_i32_1 = arith.constant 0 : i32
    return %c0_i32, %c0_i32_0 : i32, i32
  }
  func.func @transform_11(%arg0: i32) -> (i32, i32) {
    %c0_i32 = arith.constant 0 : i32
    %c0_i32_0 = arith.constant 0 : i32
    %c0_i32_1 = arith.constant 0 : i32
    return %c0_i32, %c0_i32_0 : i32, i32
  }
  func.func @transform_12(%arg0: i32) -> (i32, i32) {
    %c0_i32 = arith.constant 0 : i32
    %c0_i32_0 = arith.constant 0 : i32
    %c0_i32_1 = arith.constant 0 : i32
    return %c0_i32, %c0_i32_0 : i32, i32
  }
  func.func @transform_13(%arg0: i32) -> (i32, i32) {
    %c0_i32 = arith.constant 0 : i32
    %c0_i32_0 = arith.constant 0 : i32
    %c0_i32_1 = arith.constant 0 : i32
    return %c0_i32, %c0_i32_0 : i32, i32
  }
  func.func @transform_14(%arg0: i32) -> (i32, i32) {
    %c0_i32 = arith.constant 0 : i32
    %c0_i32_0 = arith.constant 0 : i32
    %c0_i32_1 = arith.constant 0 : i32
    return %c0_i32, %c0_i32_0 : i32, i32
  }
  func.func @transform_15(%arg0: i32) -> (i32, i32) {
    %c0_i32 = arith.constant 0 : i32
    %c0_i32_0 = arith.constant 0 : i32
    %c0_i32_1 = arith.constant 0 : i32
    return %c0_i32, %c0_i32_0 : i32, i32
  }
  func.func @transform_16(%arg0: i32) -> (i32, i32) {
    %c0_i32 = arith.constant 0 : i32
    %c0_i32_0 = arith.constant 0 : i32
    %c0_i32_1 = arith.constant 0 : i32
    return %c0_i32, %c0_i32_0 : i32, i32
  }
  func.func @transform_17(%arg0: i32) -> (i32, i32, i32) {
    %c0_i32 = arith.constant 0 : i32
    %c0_i32_0 = arith.constant 0 : i32
    %c0_i32_1 = arith.constant 0 : i32
    return %arg0, %c0_i32, %c0_i32_0 : i32, i32, i32
  }
  func.func @transform_18(%arg0: i32) -> (i32, i32, i32, i32) {
    %c0_i32 = arith.constant 0 : i32
    %c0_i32_0 = arith.constant 0 : i32
    %c0_i32_1 = arith.constant 0 : i32
    %c0_i32_2 = arith.constant 0 : i32
    return %arg0, %c0_i32, %c0_i32_0, %c0_i32_1 : i32, i32, i32, i32
  }
  func.func @transform_19(%arg0: i32) -> (i32, i32, i32) {
    %c0_i32 = arith.constant 0 : i32
    %c0_i32_0 = arith.constant 0 : i32
    %c0_i32_1 = arith.constant 0 : i32
    return %arg0, %c0_i32, %c0_i32_0 : i32, i32, i32
  }
}

</mosaic_0001>

<bundles_post_ra>
// kernel: tpu_custom_call.1
= control target key start
LH: loop header
LB: loop body
LE: loop exit
PB: predicated region body
PF: predicated region fallthrough
CT: control target
= control target key end

     0   :  { %s3199_s0 = inlined_call_operand.vmem [shape: f32[2,8,32], index: 0, kind: input, shape index: {}]   ;;  %s3200_s1 = inlined_call_operand.hbm [shape: f32[1,32], index: 1, kind: input, shape index: {}]   ;;  %s3201_s2 = inlined_call_operand.hbm [shape: f32[1,32], index: 2, kind: input, shape index: {}]   ;;  %s3202_s3 = inlined_call_operand.vmem [shape: bf16[32,32], index: 3, kind: input, shape index: {}]   ;;  %s3203_s4 = inlined_call_operand.hbm [shape: f32[1,32], index: 4, kind: input, shape index: {}]   ;;  %s3204_s5 = inlined_call_operand.vmem [shape: bf16[32,32], index: 5, kind: input, shape index: {}]   ;;  %s3205_s6 = inlined_call_operand.hbm [shape: f32[1,32], index: 6, kind: input, shape index: {}]   ;;  %s3206_s7 = inlined_call_operand.hbm [shape: bf16[32,32], index: 7, kind: input, shape index: {}]   ;;  %s3207_s8 = inlined_call_operand.hbm [shape: f32[1,32], index: 8, kind: input, shape index: {}]   ;;  %s3208_s9 = inlined_call_operand.vmem [shape: bf16[32,32], index: 9, kind: input, shape index: {}]   ;;  %s3209_s10 = inlined_call_operand.vmem [shape: f32[1,32], index: 10, kind: input, shape index: {}]   ;;  %s3210_s11 = inlined_call_operand.vmem [shape: f32[1,32], index: 11, kind: input, shape index: {}]   ;;  %s3211_s12 = inlined_call_operand.vmem [shape: f32[1,32], index: 12, kind: input, shape index: {}]   ;;  %s3212_s13 = inlined_call_operand.hbm [shape: bf16[32,64], index: 13, kind: input, shape index: {}]   ;;  %s3213_s14 = inlined_call_operand.vmem [shape: f32[1,64], index: 14, kind: input, shape index: {}]   ;;  %s3214_s15 = inlined_call_operand.vmem [shape: bf16[64,32], index: 15, kind: input, shape index: {}]   ;;  %s3215_s16 = inlined_call_operand.vmem [shape: f32[1,32], index: 16, kind: input, shape index: {}]   ;;  %s3216_s17 = inlined_call_operand.hbm [shape: f32[2,8,32], index: 17, kind: output, shape index: {0}]   ;;  %s3217_s18 = inlined_call_operand.hbm [shape: bf16[2,4,8,8], index: 18, kind: output, shape index: {1}]   ;;  %s3218_s19 = inlined_call_operand.hbm [shape: f32[2,8,32], index: 19, kind: output, shape index: {2}]  }
   0x1   :  { %3233 = sst [smem:[#allocation33_spill]] %s3199_s0 }
   0x2   :  { %3234 = sst [smem:[#allocation34_spill]] %s3200_s1 }
   0x3   :  { %3235 = sst [smem:[#allocation35_spill]] %s3201_s2 }
   0x4   :  { %3236 = sst [smem:[#allocation36_spill]] %s3202_s3 }
   0x5   :  { %3237 = sst [smem:[#allocation37_spill]] %s3203_s4 }
   0x6   :  { %3238 = sst [smem:[#allocation38_spill]] %s3204_s5 }
   0x7   :  { %3239 = sst [smem:[#allocation39_spill]] %s3205_s6 }
   0x8   :  { %3240 = sst [smem:[#allocation40_spill]] %s3206_s7 }
   0x9   :  { %3241 = sst [smem:[#allocation41_spill]] %s3216_s17 }
   0xa   :  { %25 = vsyncpa [#allocation6], 0 }
   0xb   :  { %26 = vsyncpa [#allocation9], 0 }
   0xc   :  { %27 = vsyncpa [#allocation12], 0 }
   0xd   :  { %28 = vsyncpa [#allocation15], 0 }
   0xe   :  { %29 = vsyncpa [#allocation7], 0 }
   0xf   :  { %31 = vsyncpa [#allocation7 + $0x1], 0 }
  0x10   :  { %32 = vsyncpa [#allocation19], 0 }
  0x11   :  { %34 = vsyncpa [#allocation19 + $0x1], 0  ;;  %s2773_s0 = smov 0   ;;  %s2775_s30 = smov 0  }
  0x12   :  { %s2777_s20 = smov 0   ;;  %s2779_s21 = smov 0  }
  0x13 LB: > { %3242 = sst [smem:[#allocation27_spill]] %s2637_s0  ;;  %s2794_s1 = sadd.s32 4294967295, %s2649_s21   ;;  %s2649_s21 = sphi %s2779_s21, %s3278_s21   ;;  %s2645_s20 = sphi %s2777_s20, %s3280_s20   ;;  %s2641_s30 = sphi %s2775_s30, %s3282_s30   ;;  %s2637_s0 = sphi %s2773_s0, %s3281_s0  }
  0x14   : > { %3243 = sst [smem:[#allocation28_spill]] %s2645_s20  ;;  %s3220_s22 = sadd.s32 4294967294, %s2649_s21  }
  0x15   : > { %3244 = sst [smem:[#allocation29_spill]] %s2649_s21  ;;  %s2798_s2 = sadd.s32 1, %s2649_s21  }
  0x16   : > { %3245 = sst [smem:[#allocation30_spill]] %s2798_s2  ;;  %s409_s23 = sadd.s32 1, %s2645_s20 }
  0x17   : > { %s406_s24 = ssub.s32 %s2649_s21, %s2798_s2  ;;  %p419_p0 = scmp.ne.s32.totalorder %s2645_s20, %s2641_s30 }
  0x18   : > { %p407_p1 = scmp.eq.s32.totalorder %s406_s24, 0  ;;  %p420_p2 = scmp.eq.s32.totalorder %s2794_s1, 1 }
  0x19   : > { %p425_p3 = scmp.ne.s32.totalorder %s2641_s30, %s2637_s0  ;;  %p426_p4 = scmp.eq.s32.totalorder %s3220_s22, 1 }
  0x1a   : > { %s2811_s25 = scalar_select %p407_p1, %s2645_s20, %s409_s23  }
  0x1b   : > { %p2813_p5 = por %p420_p2, %p419_p0  ;;  %p2817_p6 = por %p426_p4, %p425_p3 }
  0x1c   : > { %3246 = sst [smem:[#allocation31_spill]] %s2811_s25  ;;  %p1941_p7 = scmp.ge.s32.totalorder %s2649_s21, 1 }
  0x1d   : > { %s3247_s3 = scalar_select %p2813_p5, 1, 0 }
  0x1e   : > { %s3248_s26 = scalar_select %p2817_p6, 1, 0 }
  0x1f   : > { %p485_p8 = scmp.lt.s32.totalorder %s2649_s21, 3  ;;  %p3228_p9 = scmp.eq.s32.totalorder %s2794_s1, 0 }
  0x20   : > { %3249 = sst [smem:[#allocation32_spill]] %s3248_s26  ;;  %s2651_s28 = smov [#allocation8]  }
  0x21   : > { %p2824_p10 = pnand %p1941_p7, %p485_p8  ;;  %s509_s29 = sshll.u32 %s2651_s28, 4  ;;  %s510_s29 = int_to_ptr.vmem [resolvable:$true] %s509_s29 }
  0x22   : > { %s2652_s23 = smov [#allocation11]   ;;  %s2653_s25 = smov [#allocation14]  }
  0x23   : > { %s3250_s27 = scalar_select %p2824_p10, 1, 0 }
  0x24   : > { %p2192_p11 = pneg %p2824_p10  ;;  %s537_s24 = sshll.u32 %s2652_s23, 4  ;;  %s538_s24 = int_to_ptr.vmem [resolvable:$true] %s537_s24 }
  0x25   : > { %s561_s20 = sshll.u32 %s2653_s25, 4  ;;  %s2346_s28 = scalar_lea.vmem %s510_s29, 16  ;;  %s2836_s20 = int_to_ptr.vmem [resolvable:$true] %s561_s20 }
  0x26   : > { %p2832_p12 = pnand %p3228_p9, %p2192_p11  ;;  %p2347_p0 = scmp.ne.s32.totalorder %s510_s29, %s2346_s28 }
  0x27   : > { %s2353_s23 = scalar_lea.vmem %s510_s29, 32  ;;  %p2354_p3 = scmp.lt.s32.totalorder %s510_s29, %s510_s29 }
  0x28   : > { %p2840_p13 = pneg %p2832_p12  ;;  %p2355_p4 = scmp.lt.s32.totalorder %s2353_s23, %s2346_s28 }
  0x2a   : > { %p2349_p1 = pnand %p2347_p0, %p2840_p13  ;;  %p2356_p7 = por %p2355_p4, %p2354_p3 }
  0x2c   : > { %p2350_p2 = pneg %p2349_p1 }
  0x2e   : > { %p2357_p8 = pnand %p2356_p7, %p2350_p2 }
  0x30   : > { %2360 = shalt.err (!%p2357_p8)
}
  0x31   : > { %s3253_s0 = sld [smem:[#allocation35_spill]]  ;;  %s2372_s21 = scalar_lea.vmem %s538_s24, 16 }
  0x32   : > { %p2373_p11 = scmp.ne.s32.totalorder %s538_s24, %s2372_s21  ;;  %s2379_s17 = scalar_lea.vmem %s538_s24, 32 }
  0x33   : > { %p2380_p0 = scmp.lt.s32.totalorder %s538_s24, %s538_s24  ;;  %p2381_p1 = scmp.lt.s32.totalorder %s2379_s17, %s2372_s21 }
  0x34   : > { %p2375_p9 = pnand %p2373_p11, %p2840_p13 }
  0x35   : > { %p2382_p5 = por %p2381_p1, %p2380_p0 }
  0x36   : > { %p2376_p6 = pneg %p2375_p9 }
  0x37   : > { %2198 = dma.hbm_to_vmem [thread:$0]  (!%p2832_p12), %s3253_s0, 16, %s510_s29, [#allocation9]  }
  0x38   : > { %p2383_p10 = pnand %p2382_p5, %p2376_p6 }
  0x3a   : > { %2386 = shalt.err (!%p2383_p10)
}
  0x3b   : > { %s3254_s6 = sld [smem:[#allocation39_spill]]  ;;  %s2398_s0 = scalar_lea.vmem %s2836_s20, 16 }
  0x3c   : > { %p2399_p2 = scmp.ne.s32.totalorder %s2836_s20, %s2398_s0  ;;  %s2405_s17 = scalar_lea.vmem %s2836_s20, 32 }
  0x3d   : > { %p2406_p5 = scmp.lt.s32.totalorder %s2836_s20, %s2836_s20  ;;  %p2407_p6 = scmp.lt.s32.totalorder %s2405_s17, %s2398_s0 }
  0x3e   : > { %p2401_p9 = pnand %p2399_p2, %p2840_p13 }
  0x3f   : > { %p2408_p10 = por %p2407_p6, %p2406_p5 }
  0x40   : > { %p2402_p3 = pneg %p2401_p9 }
  0x41   : > { %2204 = dma.hbm_to_vmem [thread:$0]  (!%p2832_p12), %s3254_s6, 16, %s538_s24, [#allocation12]  }
  0x42   : > { %p2409_p4 = pnand %p2408_p10, %p2402_p3 }
  0x44   : > { %2412 = shalt.err (!%p2409_p4)
}
  0x45   : > { %2210 = dma.hbm_to_vmem [thread:$0]  (!%p2832_p12), %s3207_s8, 16, %s2836_s20, [#allocation15]  }
  0x46   : > { %s2654_s29 = smov [#allocation5]   ;;  %s2655_s25 = smov [#allocation10]  }
  0x47   : > { %s498_s24 = sshll.u32 %s2654_s29, 4  ;;  %s523_s28 = sshll.u32 %s2655_s25, 4  ;;  %s499_s24 = int_to_ptr.vmem [resolvable:$true] %s498_s24  ;;  %s524_s28 = int_to_ptr.vmem [resolvable:$true] %s523_s28 }
  0x48   : > { %s2424_s23 = scalar_lea.vmem %s499_s24, 16  ;;  %s2431_s0 = scalar_lea.vmem %s499_s24, 32 }
  0x49   : > { %p2425_p7 = scmp.ne.s32.totalorder %s499_s24, %s2424_s23  ;;  %p2432_p0 = scmp.lt.s32.totalorder %s499_s24, %s499_s24 }
  0x4a   : > { %p2433_p1 = scmp.lt.s32.totalorder %s2431_s0, %s2424_s23 }
  0x4b   : > { %p2427_p8 = pnand %p2425_p7, %p2840_p13 }
  0x4c   : > { %p2434_p2 = por %p2433_p1, %p2432_p0 }
  0x4d   : > { %p2428_p11 = pneg %p2427_p8 }
  0x4f   : > { %p2435_p9 = pnand %p2434_p2, %p2428_p11 }
  0x51   : > { %2438 = shalt.err (!%p2435_p9)
}
  0x52   : > { %s3255_s21 = sld [smem:[#allocation34_spill]]  ;;  %s2450_s26 = scalar_lea.vmem %s524_s28, 16 }
  0x53   : > { %p2451_p3 = scmp.ne.s32.totalorder %s524_s28, %s2450_s26  ;;  %s2457_s29 = scalar_lea.vmem %s524_s28, 32 }
  0x54   : > { %p2458_p10 = scmp.lt.s32.totalorder %s524_s28, %s524_s28  ;;  %p2459_p4 = scmp.lt.s32.totalorder %s2457_s29, %s2450_s26 }
  0x55   : > { %p2453_p5 = pnand %p2451_p3, %p2840_p13 }
  0x56   : > { %p2460_p7 = por %p2459_p4, %p2458_p10 }
  0x57   : > { %p2454_p6 = pneg %p2453_p5 }
  0x58   : > { %2195 = dma.hbm_to_vmem [thread:$0]  (!%p2832_p12), %s3255_s21, 16, %s499_s24, [#allocation6]  }
  0x59   : > { %p2461_p8 = pnand %p2460_p7, %p2454_p6 }
  0x5b   : > { %2464 = shalt.err (!%p2461_p8)
}
  0x5c   : > { %s3256_s4 = sld [smem:[#allocation37_spill]]  ;;  %s2656_s24 = smov [#allocation13]  }
  0x5d   : > { %s547_s0 = sshll.u32 %s2656_s24, 4  ;;  %s548_s0 = int_to_ptr.vmem [resolvable:$true] %s547_s0 }
  0x5e   : > { %s2476_s17 = scalar_lea.vmem %s548_s0, 256  ;;  %p2484_p2 = scmp.lt.s32.totalorder %s548_s0, %s548_s0 }
  0x5f   : > { %p2477_p11 = scmp.ne.s32.totalorder %s548_s0, %s2476_s17  ;;  %p2485_p9 = scmp.lt.s32.totalorder %s2476_s17, %s2476_s17 }
  0x61   : > { %p2479_p0 = pnand %p2477_p11, %p2840_p13  ;;  %p2486_p3 = por %p2485_p9, %p2484_p2 }
  0x62   : > { %2201 = dma.hbm_to_vmem [thread:$0]  (!%p2832_p12), %s3256_s4, 16, %s524_s28, [#allocation9]  }
  0x63   : > { %p2480_p1 = pneg %p2479_p0 }
  0x65   : > { %p2487_p5 = pnand %p2486_p3, %p2480_p1 }
  0x67   : > { %2490 = shalt.err (!%p2487_p5)
}
  0x68   : > { %s2657_s20 = smov 64   ;;  %s2658_s21 = smov 4  }
  0x69   : > { %s3257_s7 = sld [smem:[#allocation40_spill]]  ;;  %s2659_s29 = smov [#allocation16]  }
  0x6a   : > { %s583_s25 = sshll.u32 %s2659_s29, 4  ;;  %s584_s25 = int_to_ptr.vmem [resolvable:$true] %s583_s25 }
  0x6b   : > { %s2502_s23 = scalar_lea.vmem %s584_s25, 256  ;;  %p2510_p7 = scmp.lt.s32.totalorder %s584_s25, %s584_s25 }
  0x6c   : > { %p2503_p6 = scmp.ne.s32.totalorder %s584_s25, %s2502_s23  ;;  %p2511_p8 = scmp.lt.s32.totalorder %s2502_s23, %s2502_s23 }
  0x6e   : > { %p2505_p10 = pnand %p2503_p6, %p2840_p13  ;;  %p2512_p11 = por %p2511_p8, %p2510_p7 }
  0x6f   : > { %2207 = dma.hbm_to_vmem [thread:$0]  (!%p2832_p12), %s3257_s7, 256, %s548_s0, [#allocation12], %s2657_s20, %s2657_s20, %s2658_s21  }
  0x70   : > { %p2506_p4 = pneg %p2505_p10 }
  0x72   : > { %p2513_p0 = pnand %p2512_p11, %p2506_p4 }
  0x74   : > { %2516 = shalt.err (!%p2513_p0)
}
  0x75   : > { %2213 = dma.hbm_to_vmem [thread:$0]  (!%p2832_p12), %s3212_s13, 256, %s584_s25, [#allocation15], %s2657_s20, %s2657_s20, %s2658_s21  }
  0x76   : > { %p3258_p1 = scmp.ne.s32.totalorder %s3250_s27, 0 }
  0x77   : > { %p3259_p2 = scmp.eq.s32.totalorder (!%p3258_p1), %s2794_s1, 0 }
  0x78   : > { %615 = sbr.rel (%p3258_p1) target bundleno = 2590 (0xa1e), region = 88 }
  0x7d   : > { %2612 = dma.done.wait (%p3259_p2), [#allocation6], 16   ;;  %p3260_p13 = pmov %p3259_p2 }
  0x7e   : > { %p3261_p9 = pmov %p3259_p2 }
  0x7f   : > { %2614 = vsyncadd (%p3260_p13), [#allocation6], 4294967280 }
  0x80   : > { %2616 = dma.done.wait (%p3261_p9), [#allocation9], 32   ;;  %p3262_p3 = pmov %p3259_p2 }
  0x81   : > { %p3263_p5 = pmov %p3259_p2 }
  0x82   : > { %2618 = vsyncadd (%p3262_p3), [#allocation9], 4294967264 }
  0x83   : > { %2620 = dma.done.wait (%p3263_p5), [#allocation12], 272   ;;  %p3264_p12 = pmov %p3259_p2 }
  0x84   : > { %p3265_p6 = pmov %p3259_p2 }
  0x85   : > { %2622 = vsyncadd (%p3264_p12), [#allocation12], 4294967024 }
  0x86   : > { %2624 = dma.done.wait (%p3265_p6), [#allocation15], 272   ;;  %p3266_p10 = pmov %p3259_p2 }
  0x87   : > { %p704_p4 = scmp.lt.s32.totalorder %s2794_s1, 1  ;;  %s3267_s20 = sld [smem:[#allocation33_spill]]  ;;  %vm712_vm0 = vcmask 261120   ;;  %v2291_v8 = vld [vmem:[#allocation13 + $0x8] sm:$0xff]   ;;  %v2660_v9 = vmov 0.0   ;;  %v2293_v11 = vld [vmem:[#allocation13] sm:$0xff]  }
  0x88   : > { %2626 = vsyncadd (%p3266_p10), [#allocation15], 4294967024  ;;  %s3268_s5 = sld [smem:[#allocation38_spill]]  ;;  %2058 = vmatprep.subr.bf16.mxu0 %v2660_v9  ;;  %2066 = vmatprep.subr.bf16.mxu1 %v2660_v9  ;;  %vm2661_vm1 = vmmov 0   ;;  %v1962_v16 = vld [vmem:[#allocation5] ss:$0 sm:$0xff] }
  0x89   : > { %s705_s22 = scalar_select %p704_p4, %s2794_s1, 1  ;;  %2067 = vmatpush3.bf16.msra.mxu1 %v2291_v8  ;;  %2062 = vmatprep.mubr.msk.bf16.mxu0 %vm2661_vm1, %v2660_v9  ;;  %v1963_v18 = vld [vmem:[#allocation8] ss:$0 sm:$0xff]  ;;  %v1964_v24 = vld [vmem:[#allocation11] ss:$0 sm:$0xff]  ;;  %vm936_vm2 = vcmask 257024  }
  0x8a   : > { %2068 = vmatprep.subr.bf16.mxu1 %v2660_v9  ;;  %2070 = vmatprep.mubr.msk.bf16.mxu1 %vm2661_vm1, %v2660_v9  ;;  %s3269_s17 = sld [smem:[#allocation36_spill]]  ;;  %v1968_v25 = vld [vmem:[#allocation14] ss:$0 sm:$0xff]  ;;  %v1972_v38 = vld [vmem:[#allocation10] ss:$0 sm:$0xff]  ;;  %vm945_vm3 = vcmask 64512  }
  0x8b   : > { %s1961_s2 = sshll.u32 %s705_s22, 3  ;;  %vm1009_vm4 = vcmask 1043456   ;;  %s2662_s27 = smov 112   ;;  %vm1004_vm5 = vcmask 60416   ;;  %vm1438_vm6 = vcmask 130048   ;;  %vm1440_vm7 = vcmask 195584  }
  0x8c   : > { %s2663_s0 = smov 120   ;;  %s2665_s22 = smov 8   ;;  %vm1652_vm8 = vcmask 523264  }
  0x8d   : > { %s707_s21 = scalar_lea.vmem %s3267_s20, %s1961_s2  ;;  %2069 = vmatpush3.bf16.msra.mxu1 %v2293_v11  ;;  %s2664_s20 = smov 104  }
  0x8e   : > { %v2922_v0 = vld [vmem:[%s707_s21] sm:$0xff]  ;;  %v2290_v7 = vld [vmem:[%s3268_s5 + $0x8] sm:$0xff]   ;;  %2082 = vmatprep.subr.bf16.mxu1 %v2660_v9  ;;  %s3002_s21 = sand.u32 1, %s2641_s30   ;;  %s2666_s2 = smov 16  }
  0x8f   : > { %v713_v1 = vsel %vm712_vm0, %v2922_v0, 0.0  ;;  %2059 = vmatpush3.bf16.msra.mxu0 %v2290_v7  ;;  %v2292_v10 = vld [vmem:[%s3268_s5] sm:$0xff]   ;;  %s1959_s26 = sshll.u32 %s3002_s21, 4  ;;  %s1703_s29 = sand.u32 1, %s2794_s1  }
  0x90   : > { %714 = vadd.xlane.f32.xlu0 %v713_v1  ;;  %2060 = vmatprep.subr.bf16.mxu0 %v2660_v9  ;;  %v2294_v21 = vld [vmem:[%s3269_s17 + $0x8] sm:$0xff]   ;;  %v2295_v23 = vld [vmem:[%s3269_s17] sm:$0xff]   ;;  %s3006_s28 = scalar_lea.vmem [#allocation18], %s1959_s26  ;;  %s2021_s25 = sshll.u32 %s2794_s1, 8 }
  0x91   : > { %s1735_s26 = sshll.u32 %s3006_s28, 4  ;;  %p3270_p8 = scmp.ne.s32.totalorder %s3247_s3, 0  ;;  %s3091_s26 = int_to_ptr.vmem [resolvable:$true] %s1735_s26 }
  0x93   : > { %2061 = vmatpush3.bf16.msra.mxu0 %v2292_v10 }
  0x94   : > { %2074 = vmatprep.subr.bf16.mxu0 %v2660_v9 }
 0x119   : > { %v715_v2 = vpop.xlane.xlu0 %714 }
 0x11a   : > { %v717_v3 = vmul.f32 0.03125, %v715_v2 }
 0x11c   : > { %v718_v4 = vsub.f32 %v2922_v0, %v717_v3 }
 0x11e   : > { %v719_v5 = vmul.f32 %v718_v4, %v718_v4 }
 0x120   : > { %v720_v6 = vsel %vm712_vm0, %v719_v5, 0.0 }
 0x121   : > { %721 = vadd.xlane.f32.xlu0 %v720_v6 }
 0x1aa   : > { %v722_v12 = vpop.xlane.xlu0 %721 }
 0x1ab   : > { %v723_v13 = vmul.f32 0.03125, %v722_v12 }
 0x1ad   : > { %v724_v14 = vadd.f32 1e-06, %v723_v13 }
 0x1af   : > { %2313 = vrsqrt.f32 %v724_v14 }
 0x1bc   : > { %v2314_v15 = vpop.eup %2313 }
 0x1bd   : > { %v726_v17 = vmul.f32 %v2314_v15, %v718_v4 }
 0x1bf   : > { %v733_v19 = vmul.f32 %v1962_v16, %v726_v17 }
 0x1c1   : > { %v740_v20 = vadd.f32 %v1963_v18, %v733_v19 }
 0x1c3   : > { %v741_v22 = vpack.c.bf16 %v740_v20, %v740_v20 }
 0x1c5   : > { %2063 = vmatmul.mubr.msk.bf16.vlgmr.msra.gmra.mxu0 %vm712_vm0, %v741_v22  ;;  %2071 = vmatmul.mubr.msk.bf16.vlgmr.msra.gmra.mxu1 %vm712_vm0, %v741_v22 }
 0x1c6   : > { %2075 = vmatpush3.bf16.msra.mxu0 %v2294_v21  ;;  %2078 = vmatprep.mubr.msk.bf16.mxu0 %vm2661_vm1, %v2660_v9 }
 0x1c7   : > { %2076 = vmatprep.subr.bf16.mxu0 %v2660_v9  ;;  %2084 = vmatprep.mubr.msk.bf16.mxu1 %vm2661_vm1, %v2660_v9 }
 0x1ca   : > { %2077 = vmatpush3.bf16.msra.mxu0 %v2295_v23 }
 0x1cb   : > { %2088 = vmatprep.subr.bf16.mxu0 %v2660_v9 }
 0x1cd   : > { %2079 = vmatmul.mubr.msk.bf16.vlgmr.msra.gmra.mxu0 %vm712_vm0, %v741_v22 }
 0x1ce   : > { %2090 = vmatprep.mubr.msk.bf16.mxu0 %vm2661_vm1, %v2660_v9 }
 0x285   : > { %v802_v26 = vpop.f32.mrf.mxu0  ;;  %v865_v27 = vpop.f32.mrf.mxu1 }
 0x286   : > { %v803_v28 = vadd.f32 %v1964_v24, %v802_v26  ;;  %v866_v29 = vadd.f32 %v1968_v25, %v865_v27 }
 0x287   : > { %v2064_v30 = vpop.f32.mrf.mxu0  ;;  %v2072_v31 = vpop.f32.mrf.mxu1 }
 0x288   : > { %v938_v32 = vpack.c.bf16 %v803_v28, %v803_v28  ;;  %v940_v33 = vpack.c.bf16 %v866_v29, %v866_v29 }
 0x289   : > { %v805_v34 = vpop.f32.mrf.mxu0  ;;  %v868_v35 = vpop.f32.mrf.mxu1 }
 0x28a   : > { %939 = vst.msk [vmem:[#allocation3] sm:$0xf] %vm936_vm2, %v938_v32  ;;  %941 = vst.msk [vmem:[#allocation4] sm:$0xf] %vm936_vm2, %v940_v33 }
 0x28b   : > { %v2065_v36 = vpop.f32.mrf.mxu0  ;;  %v2073_v37 = vpop.f32.mrf.mxu1 }
 0x28d   : > { %v928_v39 = vpop.f32.mrf.mxu0 }
 0x28e   : > { %v929_v40 = vadd.f32 %v1972_v38, %v928_v39 }
 0x28f   : > { %v2080_v41 = vpop.f32.mrf.mxu0 }
 0x290   : > { %v934_v42 = vmul.f32 0.35355338, %v929_v40 }
 0x291   : > { %v931_v43 = vpop.f32.mrf.mxu0  ;;  %v943_v44 = vld [vmem:[#allocation3] sm:$0xf]  ;;  %v944_v45 = vld [vmem:[#allocation4] sm:$0xf] }
 0x292   : > { %v935_v46 = vpack.c.bf16 %v934_v42, %v934_v42  ;;  %v950_v47 = vsel %vm945_vm3, %v943_v44, 0  ;;  %v1011_v48 = vsel %vm1009_vm4, %v944_v45, 0  ;;  %v2296_v49 = vld [vmem:[#allocation3] ss:$0 sps:$4 sm:$0xff]   ;;  %v2302_v39 = vld [vmem:[#allocation4] ss:$0 sps:$4 sm:$0xff]  }
 0x293   : > { %v2081_v50 = vpop.f32.mrf.mxu0  ;;  %2083 = vmatpush3.bf16.xpose.msra.mxu1 %v950_v47  ;;  %2089 = vmatpush3.bf16.msra.mxu0 %v1011_v48  ;;  %v2297_v51 = vld [vmem:[#allocation3] ss:$0 sps:$4 sm:$0xff]   ;;  %v2303_v43 = vld [vmem:[#allocation4] ss:$0 sps:$4 sm:$0xff]  }
 0x294   : > { %937 = vst.msk [vmem:[#allocation2] sm:$0xf] %vm936_vm2, %v935_v46  ;;  %1188 = vrot.lane.b32.xlu0 %v2296_v49, %s2662_s27  ;;  %2094 = vmatprep.subr.bf16.mxu1 %v2660_v9  ;;  %v2300_v55 = vld [vmem:[#allocation3] ss:$0 sps:$4 sm:$0xff]   ;;  %v2304_v50 = vld [vmem:[#allocation4] ss:$0 sps:$4 sm:$0xff]  }
 0x295   : > { %1064 = vrot.lane.b32.xlu1 %v2297_v51, %s2663_s0  ;;  %2100 = vmatprep.subr.bf16.mxu0 %v2660_v9 }
 0x29b   : > { %v942_v52 = vld [vmem:[#allocation2] sm:$0xf] }
 0x29c   : > { %v2298_v53 = vld [vmem:[#allocation2] ss:$0 sps:$4 sm:$0xff]   ;;  %2085 = vmatmul.mubr.msk.bf16.vlgmr.msra.gmra.mxu1 %vm945_vm3, %v942_v52 }
 0x29d   : > { %1059 = vrot.lane.b32.xlu1 %v2298_v53, %s2663_s0  ;;  %2096 = vmatprep.mubr.msk.bf16.mxu1 %vm2661_vm1, %v2660_v9  ;;  %v2299_v54 = vld [vmem:[#allocation2] ss:$0 sps:$4 sm:$0xff]  }
 0x29e   : > { %v2301_v56 = vld [vmem:[#allocation2] ss:$0 sps:$4 sm:$0xff]  }
 0x2a1   : > { %1183 = vrot.lane.b32.xlu1 %v2299_v54, %s2662_s27 }
 0x2a5   : > { %1312 = vrot.lane.b32.xlu1 %v2300_v55, %s2664_s20 }
 0x2a9   : > { %1307 = vrot.lane.b32.xlu1 %v2301_v56, %s2664_s20 }
 0x306   : > { %v1189_v59 = vpop.permute.xlu0 %1188 }
 0x307   : > { %v1065_v57 = vpop.permute.xlu1 %1064  ;;  %v1194_v61 = vsel %vm945_vm3, %v1189_v59, 0 }
 0x308   : > { %v1070_v58 = vsel %vm945_vm3, %v1065_v57, 0 }
 0x309   : > { %2095 = vmatpush3.bf16.xpose.msra.mxu1 %v1070_v58 }
 0x30a   : > { %2106 = vmatprep.subr.bf16.mxu1 %v2660_v9 }
 0x30f   : > { %v1060_v60 = vpop.permute.xlu1 %1059 }
 0x310   : > { %2097 = vmatmul.mubr.msk.bf16.vlgmr.msra.gmra.mxu1 %vm945_vm3, %v1060_v60 }
 0x311   : > { %2107 = vmatpush3.bf16.xpose.msra.mxu1 %v1194_v61  ;;  %2108 = vmatprep.mubr.msk.bf16.mxu1 %vm2661_vm1, %v2660_v9 }
 0x312   : > { %2118 = vmatprep.subr.bf16.mxu1 %v2660_v9 }
 0x313   : > { %v1184_v62 = vpop.permute.xlu1 %1183 }
 0x317   : > { %v1313_v63 = vpop.permute.xlu1 %1312 }
 0x318   : > { %v1318_v1 = vsel %vm945_vm3, %v1313_v63, 0  ;;  %2109 = vmatmul.mubr.msk.bf16.vlgmr.msra.gmra.mxu1 %vm945_vm3, %v1184_v62 }
 0x319   : > { %2119 = vmatpush3.bf16.xpose.msra.mxu1 %v1318_v1  ;;  %2120 = vmatprep.mubr.msk.bf16.mxu1 %vm2661_vm1, %v2660_v9 }
 0x31a   : > { %2130 = vmatprep.subr.bf16.mxu1 %v2660_v9 }
 0x31b   : > { %v1308_v2 = vpop.permute.xlu1 %1307 }
 0x320   : > { %2121 = vmatmul.mubr.msk.bf16.vlgmr.msra.gmra.mxu1 %vm945_vm3, %v1308_v2 }
 0x321   : > { %2134 = vmatprep.mubr.msk.bf16.mxu1 %vm2661_vm1, %v2660_v9 }
 0x35c   : > { %v986_v3 = vpop.f32.mrf.mxu1 }
 0x35d   : > { %v992_v4 = vsel %vm945_vm3, %v986_v3, -inf }
 0x35e   : > { %993 = vmax.xlane.f32.xlu1 %v992_v4  ;;  %v2086_v5 = vpop.f32.mrf.mxu1 }
 0x360   : > { %v989_v6 = vpop.f32.mrf.mxu1 }
 0x362   : > { %v2087_v7 = vpop.f32.mrf.mxu1 }
 0x3d0   : > { %v1106_v8 = vpop.f32.mrf.mxu1 }
 0x3d1   : > { %v1112_v10 = vsel %vm945_vm3, %v1106_v8, -inf }
 0x3d2   : > { %1113 = vmax.xlane.f32.xlu0 %v1112_v10  ;;  %v2098_v11 = vpop.f32.mrf.mxu1 }
 0x3d3   : > { %v2305_v11 = vld [vmem:[%s3208_s9 + $0x8] sm:$0xff]  }
 0x3d4   : > { %v1109_v12 = vpop.f32.mrf.mxu1  ;;  %2131 = vmatpush3.bf16.msra.mxu1 %v2305_v11 }
 0x3d5   : > { %v2306_v12 = vld [vmem:[%s3208_s9] sm:$0xff]   ;;  %2132 = vmatprep.subr.bf16.mxu1 %v2660_v9 }
 0x3d6   : > { %v2099_v13 = vpop.f32.mrf.mxu1 }
 0x3d8   : > { %v1230_v14 = vpop.f32.mrf.mxu1  ;;  %2133 = vmatpush3.bf16.msra.mxu1 %v2306_v12 }
 0x3d9   : > { %v1236_v15 = vsel %vm945_vm3, %v1230_v14, -inf  ;;  %2146 = vmatprep.subr.bf16.mxu1 %v2660_v9 }
 0x3da   : > { %1237 = vmax.xlane.f32.xlu1 %v1236_v15  ;;  %v2110_v16 = vpop.f32.mrf.mxu1 }
 0x3dc   : > { %v1233_v17 = vpop.f32.mrf.mxu1 }
 0x3de   : > { %v2111_v18 = vpop.f32.mrf.mxu1 }
 0x3e0   : > { %v1354_v19 = vpop.f32.mrf.mxu1 }
 0x3e1   : > { %v1360_v20 = vsel %vm945_vm3, %v1354_v19, -inf }
 0x3e2   : > { %1361 = vmax.xlane.f32.xlu1 %v1360_v20  ;;  %v2122_v21 = vpop.f32.mrf.mxu1 }
 0x3e4   : > { %v1357_v22 = vpop.f32.mrf.mxu1 }
 0x3e6   : > { %v2123_v23 = vpop.f32.mrf.mxu1 }
 0x3e7   : > { %v994_v24 = vpop.xlane.xlu1 %993 }
 0x3e8   : > { %v995_v25 = vsub.f32 %v986_v3, %v994_v24 }
 0x3ea   : > { %v996_v26 = vmul.f32 1.442695, %v995_v25 }
 0x3ec   : > { %2315 = vpow2.f32 %v996_v26 }
 0x3f9   : > { %v2316_v27 = vpop.eup %2315 }
 0x3fa   : > { %v998_v28 = vsel %vm945_vm3, %v2316_v27, 0.0 }
 0x3fb   : > { %999 = vadd.xlane.f32.xlu0 %v998_v28 }
 0x45b   : > { %v1114_v29 = vpop.xlane.xlu0 %1113 }
 0x45c   : > { %v1115_v30 = vsub.f32 %v1106_v8, %v1114_v29 }
 0x45e   : > { %v1116_v31 = vmul.f32 1.442695, %v1115_v30 }
 0x460   : > { %2317 = vpow2.f32 %v1116_v31 }
 0x463   : > { %v1238_v32 = vpop.xlane.xlu1 %1237 }
 0x464   : > { %v1239_v33 = vsub.f32 %v1230_v14, %v1238_v32  ;;  %v1996_v32 = vld [vmem:[%s3209_s10] ss:$0 sm:$0xff] }
 0x466   : > { %v1240_v34 = vmul.f32 1.442695, %v1239_v33 }
 0x468   : > { %2319 = vpow2.f32 %v1240_v34 }
 0x46b   : > { %v1362_v41 = vpop.xlane.xlu1 %1361 }
 0x46c   : > { %v1363_v42 = vsub.f32 %v1354_v19, %v1362_v41 }
 0x46d   : > { %v2318_v35 = vpop.eup %2317 }
 0x46e   : > { %v1118_v36 = vsel %vm945_vm3, %v2318_v35, 0.0  ;;  %v1364_v44 = vmul.f32 1.442695, %v1363_v42 }
 0x46f   : > { %1119 = vadd.xlane.f32.xlu1 %v1118_v36 }
 0x475   : > { %v2320_v37 = vpop.eup %2319 }
 0x476   : > { %v1242_v38 = vsel %vm945_vm3, %v2320_v37, 0.0 }
 0x477   : > { %1243 = vadd.xlane.f32.xlu0 %v1242_v38 }
 0x480   : > { %1253 = vrot.lane.b32.xlu1 %v2302_v39, %s2662_s27  ;;  %s2667_s27 = smov 24  }
 0x484   : > { %v1000_v40 = vpop.xlane.xlu0 %999 }
 0x485   : > { %2321 = vrcp.f32 %v1000_v40 }
 0x486   : > { %2323 = vpow2.f32 %v1364_v44 }
 0x48d   : > { %1129 = vrot.lane.b32.xlu0 %v2303_v43, %s2663_s0  ;;  %s3232_s0 = sshll.u32 %s3002_s21, 3 }
 0x492   : > { %v2322_v45 = vpop.eup %2321 }
 0x493   : > { %v1002_v46 = vmul.f32 %v2322_v45, %v2316_v27  ;;  %v2324_v48 = vpop.eup %2323  ;;  %v2307_v45 = vld [vmem:[#allocation16 + $0x8] sm:$0xff]  }
 0x494   : > { %v1366_v49 = vsel %vm945_vm3, %v2324_v48, 0.0 }
 0x495   : > { %v1003_v47 = vpack.c.bf16 %v1002_v46, %v1002_v46  ;;  %v2308_v46 = vld [vmem:[#allocation16] sm:$0xff]  }
 0x497   : > { %2091 = vmatmul.mubr.msk.bf16.vlgmr.msra.gmra.mxu0 %vm945_vm3, %v1003_v47  ;;  %1005 = vst.msk [vmem:[%s3006_s28] sm:$0xf] %vm1004_vm5, %v1003_v47 }
 0x498   : > { %2102 = vmatprep.mubr.msk.bf16.mxu0 %vm2661_vm1, %v2660_v9 }
 0x4a4   : > { %1367 = vadd.xlane.f32.xlu1 %v1366_v49 }
 0x4b5   : > { %1377 = vrot.lane.b32.xlu1 %v2304_v50, %s2664_s20  ;;  %s3047_s20 = scalar_lea.vmem [#allocation20], %s3232_s0  ;;  %v2000_v50 = vld [vmem:[%s3210_s11] ss:$0 sm:$0xff] }
 0x4f8   : > { %v1120_v51 = vpop.xlane.xlu1 %1119 }
 0x4f9   : > { %2325 = vrcp.f32 %v1120_v51 }
 0x4fc   : > { %v1254_v57 = vpop.permute.xlu1 %1253 }
 0x4fd   : > { %v1259_v59 = vsel %vm1009_vm4, %v1254_v57, 0  ;;  %v2310_v57 = vld [vmem:[%s3214_s15 + $0x10] sm:$0xff]  }
 0x500   : > { %v1244_v52 = vpop.xlane.xlu0 %1243 }
 0x501   : > { %2327 = vrcp.f32 %v1244_v52  ;;  %v2001_v52 = vld [vmem:[%s3211_s12] ss:$0 sm:$0xff] }
 0x504   : > { %v1130_v53 = vpop.permute.xlu0 %1129 }
 0x505   : > { %v1135_v54 = vsel %vm1009_vm4, %v1130_v53, 0 }
 0x506   : > { %v2326_v55 = vpop.eup %2325  ;;  %2101 = vmatpush3.bf16.msra.mxu0 %v1135_v54 }
 0x507   : > { %2112 = vmatprep.subr.bf16.mxu0 %v2660_v9  ;;  %v1122_v56 = vmul.f32 %v2326_v55, %v2318_v35 }
 0x509   : > { %v1123_v58 = vpack.c.bf16 %v1122_v56, %v1122_v56  ;;  %v2309_v56 = vld [vmem:[%s3214_s15 + $0x18] sm:$0xff]  }
 0x50b   : > { %2103 = vmatmul.mubr.msk.bf16.vlgmr.msra.gmra.mxu0 %vm945_vm3, %v1123_v58  ;;  %1981 = vst.msk [vmem:[%s3006_s28 + $0x4] sm:$0xf] %vm1004_vm5, %v1123_v58  ;;  %v2311_v58 = vld [vmem:[%s3214_s15 + $0x8] sm:$0xff]  }
 0x50c   : > { %2113 = vmatpush3.bf16.msra.mxu0 %v1259_v59  ;;  %2114 = vmatprep.mubr.msk.bf16.mxu0 %vm2661_vm1, %v2660_v9  ;;  %v2312_v59 = vld [vmem:[%s3214_s15] sm:$0xff]  }
 0x50d   : > { %2124 = vmatprep.subr.bf16.mxu0 %v2660_v9 }
 0x50e   : > { %v2328_v60 = vpop.eup %2327 }
 0x50f   : > { %v1246_v61 = vmul.f32 %v2328_v60, %v2320_v37  ;;  %v2002_v60 = vld [vmem:[%s3213_s14] ss:$0 sm:$0xff] }
 0x511   : > { %v1247_v62 = vpack.c.bf16 %v1246_v61, %v1246_v61 }
 0x513   : > { %2115 = vmatmul.mubr.msk.bf16.vlgmr.msra.gmra.mxu0 %vm945_vm3, %v1247_v62  ;;  %1987 = vst.msk [vmem:[%s3006_s28 + $0x8] sm:$0xf] %vm1004_vm5, %v1247_v62 }
 0x514   : > { %2126 = vmatprep.mubr.msk.bf16.mxu0 %vm2661_vm1, %v2660_v9 }
 0x52d   : > { %v1368_v63 = vpop.xlane.xlu1 %1367 }
 0x52e   : > { %2329 = vrcp.f32 %v1368_v63 }
 0x531   : > { %v1378_v1 = vpop.permute.xlu1 %1377 }
 0x532   : > { %v1383_v2 = vsel %vm1009_vm4, %v1378_v1, 0 }
 0x533   : > { %2125 = vmatpush3.bf16.msra.mxu0 %v1383_v2 }
 0x534   : > { %2138 = vmatprep.subr.bf16.mxu0 %v2660_v9 }
 0x53b   : > { %v2330_v3 = vpop.eup %2329 }
 0x53c   : > { %v1370_v4 = vmul.f32 %v2330_v3, %v2324_v48 }
 0x53e   : > { %v1371_v5 = vpack.c.bf16 %v1370_v4, %v1370_v4 }
 0x540   : > { %2127 = vmatmul.mubr.msk.bf16.vlgmr.msra.gmra.mxu0 %vm945_vm3, %v1371_v5  ;;  %1993 = vst.msk [vmem:[%s3006_s28 + $0xc] sm:$0xf] %vm1004_vm5, %v1371_v5  ;;  %s2668_s28 = smov [#allocation18]  }
 0x541   : > { %2142 = vmatprep.mubr.msk.bf16.mxu0 %vm2661_vm1, %v2660_v9  ;;  %2139 = vmatpush3.bf16.msra.mxu0 %v2307_v45  ;;  %s2521_s0 = sshll.u32 %s2668_s28, 4  ;;  %s2522_s0 = int_to_ptr.vmem [resolvable:$false] %s2521_s0 }
 0x542   : > { %2140 = vmatprep.subr.bf16.mxu0 %v2660_v9  ;;  %s2523_s4 = scalar_lea.vmem %s2522_s0, 512  ;;  %p2524_p1 = scmp.lt.s32.totalorder %s3091_s26, %s2522_s0 }
 0x545   : > { %2141 = vmatpush3.bf16.msra.mxu0 %v2308_v46 }
 0x557   : > { %v1047_v6 = vpop.f32.mrf.mxu0 }
 0x559   : > { %v2092_v7 = vpop.f32.mrf.mxu0 }
 0x55b   : > { %v1050_v8 = vpop.f32.mrf.mxu0 }
 0x55d   : > { %v2093_v10 = vpop.f32.mrf.mxu0 }
 0x5cb   : > { %v1171_v13 = vpop.f32.mrf.mxu0 }
 0x5cc   : > { %1426 = vrot.lane.b32.xlu0 %v1171_v13, %s2665_s22  ;;  %s3098_s22 = scalar_lea.hbm %s3217_s18, %s2021_s25 }
 0x5cd   : > { %v2104_v14 = vpop.f32.mrf.mxu0 }
 0x5cf   : > { %v1174_v15 = vpop.f32.mrf.mxu0 }
 0x5d1   : > { %v2105_v16 = vpop.f32.mrf.mxu0 }
 0x5d3   : > { %v1295_v17 = vpop.f32.mrf.mxu0 }
 0x5d4   : > { %1430 = vrot.lane.b32.xlu1 %v1295_v17, %s2666_s2  ;;  %s3100_s2 = scalar_lea.sflag [#allocation19], %s1703_s29 }
 0x5d5   : > { %v2116_v18 = vpop.f32.mrf.mxu0 }
 0x5d7   : > { %v1298_v19 = vpop.f32.mrf.mxu0 }
 0x5d9   : > { %v2117_v20 = vpop.f32.mrf.mxu0 }
 0x600   : > { %v1419_v21 = vpop.f32.mrf.mxu0 }
 0x601   : > { %1434 = vrot.lane.b32.xlu0 %v1419_v21, %s2667_s27  ;;  %s2517_s27 = scalar_lea.vmem %s3091_s26, 256 }
 0x602   : > { %v2128_v22 = vpop.f32.mrf.mxu0  ;;  %p2518_p7 = scmp.ne.s32.totalorder %s3091_s26, %s2517_s27  ;;  %p2525_p2 = scmp.lt.s32.totalorder %s2523_s4, %s2517_s27 }
 0x604   : > { %v1422_v23 = vpop.f32.mrf.mxu0  ;;  %p2519_p11 = pnand %p2518_p7, %p3270_p8  ;;  %p2526_p13 = por %p2525_p2, %p2524_p1 }
 0x606   : > { %v2129_v24 = vpop.f32.mrf.mxu0  ;;  %p2520_p0 = pneg %p2519_p11 }
 0x608   : > { %p2527_p9 = pnand %p2526_p13, %p2520_p0 }
 0x63e   : > { %v1427_v25 = vpop.permute.xlu0 %1426 }
 0x63f   : > { %v1437_v27 = vsel %vm945_vm3, %v1047_v6, %v1427_v25 }
 0x646   : > { %v1431_v26 = vpop.permute.xlu1 %1430 }
 0x647   : > { %v1439_v28 = vsel %vm1438_vm6, %v1437_v27, %v1431_v26 }
 0x673   : > { %v1435_v29 = vpop.permute.xlu0 %1434 }
 0x674   : > { %v1441_v30 = vsel %vm1440_vm7, %v1439_v28, %v1435_v29 }
 0x675   : > { %1442 = vst.msk [vmem:[%s3047_s20] sm:$0xff] %vm712_vm0, %v1441_v30  ;;  %v1443_v31 = vpack.c.bf16 %v1441_v30, %v1441_v30 }
 0x677   : > { %2135 = vmatmul.mubr.msk.bf16.vlgmr.msra.gmra.mxu1 %vm712_vm0, %v1443_v31 }
 0x678   : > { %2154 = vmatprep.mubr.msk.bf16.mxu1 %vm2661_vm1, %v2660_v9  ;;  %2147 = vmatpush3.bf16.msra.mxu1 %v2309_v56 }
 0x679   : > { %2148 = vmatprep.subr.bf16.mxu1 %v2660_v9 }
 0x67c   : > { %2149 = vmatpush3.bf16.msra.mxu1 %v2310_v57 }
 0x67d   : > { %2150 = vmatprep.subr.bf16.mxu1 %v2660_v9 }
 0x680   : > { %2151 = vmatpush3.bf16.msra.mxu1 %v2311_v58 }
 0x681   : > { %2152 = vmatprep.subr.bf16.mxu1 %v2660_v9 }
 0x684   : > { %2153 = vmatpush3.bf16.msra.mxu1 %v2312_v59 }
 0x737   : > { %v1504_v33 = vpop.f32.mrf.mxu1 }
 0x738   : > { %v1505_v34 = vadd.f32 %v1996_v32, %v1504_v33 }
 0x739   : > { %v2136_v35 = vpop.f32.mrf.mxu1 }
 0x73a   : > { %v3058_v36 = vadd.f32 %v1505_v34, %v2922_v0 }
 0x73b   : > { %v1507_v37 = vpop.f32.mrf.mxu1 }
 0x73c   : > { %v1513_v38 = vsel %vm712_vm0, %v3058_v36, 0.0 }
 0x73d   : > { %1514 = vadd.xlane.f32.xlu1 %v1513_v38  ;;  %v2137_v39 = vpop.f32.mrf.mxu1 }
 0x7c6   : > { %v1515_v40 = vpop.xlane.xlu1 %1514 }
 0x7c7   : > { %v1516_v41 = vmul.f32 0.03125, %v1515_v40 }
 0x7c9   : > { %v1517_v42 = vsub.f32 %v3058_v36, %v1516_v41 }
 0x7cb   : > { %v1518_v43 = vmul.f32 %v1517_v42, %v1517_v42 }
 0x7cd   : > { %v1519_v44 = vsel %vm712_vm0, %v1518_v43, 0.0 }
 0x7ce   : > { %1520 = vadd.xlane.f32.xlu0 %v1519_v44 }
 0x857   : > { %v1521_v0 = vpop.xlane.xlu0 %1520 }
 0x858   : > { %v1522_v47 = vmul.f32 0.03125, %v1521_v0 }
 0x85a   : > { %v1523_v48 = vadd.f32 1e-06, %v1522_v47 }
 0x85c   : > { %2331 = vrsqrt.f32 %v1523_v48 }
 0x869   : > { %v2332_v49 = vpop.eup %2331 }
 0x86a   : > { %v1525_v51 = vmul.f32 %v2332_v49, %v1517_v42 }
 0x86c   : > { %v1532_v53 = vmul.f32 %v2000_v50, %v1525_v51 }
 0x86e   : > { %v1539_v54 = vadd.f32 %v2001_v52, %v1532_v53 }
 0x870   : > { %v1540_v55 = vpack.c.bf16 %v1539_v54, %v1539_v54 }
 0x872   : > { %2143 = vmatmul.mubr.msk.bf16.vlgmr.msra.gmra.mxu0 %vm712_vm0, %v1540_v55 }
 0x932   : > { %v1601_v61 = vpop.f32.mrf.mxu0 }
 0x933   : > { %v1602_v62 = vadd.f32 %v2002_v60, %v1601_v61 }
 0x934   : > { %v2144_v63 = vpop.f32.mrf.mxu0 }
 0x935   : > { %v1608_v1 = vmul.f32 0.70710677, %v1602_v62  ;;  %v1607_v4 = vmul.f32 0.5, %v1602_v62 }
 0x936   : > { %v1604_v2 = vpop.f32.mrf.mxu0 }
 0x937   : > { %2333 = verf.f32 %v1608_v1 }
 0x938   : > { %v2145_v3 = vpop.f32.mrf.mxu0 }
 0x944   : > { %v2334_v9 = vpop.eup %2333 }
 0x945   : > { %v1610_v5 = vadd.f32 1.0, %v2334_v9 }
 0x947   : > { %v1611_v6 = vmul.f32 %v1610_v5, %v1607_v4 }
 0x949   : > { %v1612_v7 = vpack.c.bf16 %v1611_v6, %v1611_v6 }
 0x94b   : > { %2155 = vmatmul.mubr.msk.bf16.vlgmr.msra.gmra.mxu1 %vm1652_vm8, %v1612_v7 }
 0x94c   : > { %2530 = shalt.err (!%p2527_p9)
}
 0x94d   : > { %s2531_s29 = scalar_lea.hbm %s3098_s22, 256  ;;  %s2535_s24 = scalar_lea.hbm %s3217_s18, 512 }
 0x94e   : > { %p2532_p3 = scmp.ne.s32.totalorder %s3098_s22, %s2531_s29  ;;  %p2536_p6 = scmp.lt.s32.totalorder %s3098_s22, %s3217_s18 }
 0x94f   : > { %p2537_p10 = scmp.lt.s32.totalorder %s2535_s24, %s2531_s29 }
 0x950   : > { %p2533_p5 = pnand %p2532_p3, %p3270_p8 }
 0x951   : > { %p2538_p4 = por %p2537_p10, %p2536_p6 }
 0x952   : > { %p2534_p12 = pneg %p2533_p5 }
 0x954   : > { %p2539_p7 = pnand %p2538_p4, %p2534_p12 }
 0x956   : > { %2542 = shalt.err (!%p2539_p7)
}
 0x957   : > { %s2669_s4 = smov 64   ;;  %s2670_s0 = smov 4  }
 0x958   : > { %2187 = dma.vmem_to_hbm [thread:$0]  (%p3270_p8), %s3091_s26, 256, %s3098_s22, %s3100_s2, %s2669_s4, %s2669_s4, %s2670_s0  }
 0x959   : > { %s2015_s27 = sshll.u32 %s2794_s1, 7  ;;  %s1751_s23 = sshll.u32 %s3047_s20, 4  ;;  %s1752_s23 = int_to_ptr.vmem [resolvable:$true] %s1751_s23 }
 0x95a   : > { %s1749_s29 = scalar_lea.hbm %s3218_s19, %s2015_s27  ;;  %s2543_s24 = scalar_lea.vmem %s1752_s23, 128 }
 0x95b   : > { %p2544_p11 = scmp.ne.s32.totalorder %s1752_s23, %s2543_s24  ;;  %s2671_s28 = smov [#allocation20]  }
 0x95c   : > { %s2547_s6 = sshll.u32 %s2671_s28, 4  ;;  %s2548_s6 = int_to_ptr.vmem [resolvable:$false] %s2547_s6 }
 0x95d   : > { %p2545_p0 = pnand %p2544_p11, %p3270_p8  ;;  %s2549_s7 = scalar_lea.vmem %s2548_s6, 256 }
 0x95e   : > { %p2550_p2 = scmp.lt.s32.totalorder %s1752_s23, %s2548_s6  ;;  %p2551_p13 = scmp.lt.s32.totalorder %s2549_s7, %s2543_s24 }
 0x95f   : > { %p2546_p1 = pneg %p2545_p0 }
 0x960   : > { %p2552_p9 = por %p2551_p13, %p2550_p2 }
 0x962   : > { %p2553_p3 = pnand %p2552_p9, %p2546_p1 }
 0x964   : > { %2556 = shalt.err (!%p2553_p3)
}
 0x965   : > { %s2557_s26 = scalar_lea.hbm %s1749_s29, 128  ;;  %s2561_s4 = scalar_lea.hbm %s3218_s19, 256 }
 0x966   : > { %p2558_p5 = scmp.ne.s32.totalorder %s1749_s29, %s2557_s26  ;;  %p2562_p10 = scmp.lt.s32.totalorder %s1749_s29, %s3218_s19 }
 0x967   : > { %p2563_p4 = scmp.lt.s32.totalorder %s2561_s4, %s2557_s26 }
 0x968   : > { %p2559_p12 = pnand %p2558_p5, %p3270_p8 }
 0x969   : > { %p2564_p7 = por %p2563_p4, %p2562_p10 }
 0x96a   : > { %p2560_p6 = pneg %p2559_p12 }
 0x96c   : > { %p2565_p11 = pnand %p2564_p7, %p2560_p6 }
 0x96e   : > { %2568 = shalt.err (!%p2565_p11)
}
 0x96f   : > { %2188 = dma.vmem_to_hbm [thread:$0]  (%p3270_p8), %s1752_s23, 128, %s1749_s29, %s3100_s2   ;;  %v2006_v8 = vld [vmem:[%s3215_s16] ss:$0 sm:$0xff] }
 0x970   : > { %s3271_s25 = sshll.u32 %s3002_s21, 3  ;;  %s3272_s22 = sld [smem:[#allocation41_spill]] }
 0x971   : > { %s689_s24 = scalar_lea.vmem [#allocation17], %s3271_s25  ;;  %s1699_s2 = scalar_lea.sflag [#allocation7], %s3002_s21 }
 0x972   : > { %s1722_s28 = sshll.u32 %s689_s24, 4  ;;  %s2672_s1 = smov [#allocation17]   ;;  %s3156_s28 = int_to_ptr.vmem [resolvable:$true] %s1722_s28 }
 0x973   : > { %s2569_s29 = scalar_lea.vmem %s3156_s28, 128  ;;  %s2573_s23 = sshll.u32 %s2672_s1, 4  ;;  %s2574_s23 = int_to_ptr.vmem [resolvable:$false] %s2573_s23 }
 0x974   : > { %p2570_p0 = scmp.ne.s32.totalorder %s3156_s28, %s2569_s29  ;;  %p2576_p13 = scmp.lt.s32.totalorder %s3156_s28, %s2574_s23 }
 0x976   : > { %s3154_s4 = scalar_lea.hbm %s3272_s22, %s2015_s27  ;;  %p2571_p1 = pnand %p2570_p0, %p3270_p8 }
 0x977   : > { %s2575_s27 = scalar_lea.vmem %s2574_s23, 256 }
 0x978   : > { %p2572_p2 = pneg %p2571_p1  ;;  %p2577_p9 = scmp.lt.s32.totalorder %s2575_s27, %s2569_s29 }
 0x97a   : > { %p2578_p3 = por %p2577_p9, %p2576_p13 }
 0x97c   : > { %p2579_p5 = pnand %p2578_p3, %p2572_p2 }
 0xa0b   : > { %v1690_v10 = vpop.f32.mrf.mxu1 }
 0xa0c   : > { %v1691_v11 = vadd.f32 %v2006_v8, %v1690_v10 }
 0xa0d   : > { %v2156_v12 = vpop.f32.mrf.mxu1 }
 0xa0e   : > { %v1696_v13 = vadd.f32 %v1691_v11, %v3058_v36 }
 0xa0f   : > { %v1693_v14 = vpop.f32.mrf.mxu1 }
 0xa10   : > { %1697 = vst.msk [vmem:[%s689_s24] sm:$0xff] %vm712_vm0, %v1696_v13 }
 0xa11   : > { %v2157_v15 = vpop.f32.mrf.mxu1 }
 0xa12   : > { %2582 = shalt.err (!%p2579_p5)
}
 0xa13   : > { %s2583_s0 = scalar_lea.hbm %s3154_s4, 128  ;;  %s2587_s6 = scalar_lea.hbm %s3272_s22, 256 }
 0xa14   : > { %p2584_p12 = scmp.ne.s32.totalorder %s3154_s4, %s2583_s0  ;;  %p2588_p4 = scmp.lt.s32.totalorder %s3154_s4, %s3272_s22 }
 0xa15   : > { %p2589_p7 = scmp.lt.s32.totalorder %s2587_s6, %s2583_s0 }
 0xa16   : > { %p2585_p6 = pnand %p2584_p12, %p3270_p8 }
 0xa17   : > { %p2590_p11 = por %p2589_p7, %p2588_p4 }
 0xa18   : > { %p2586_p10 = pneg %p2585_p6 }
 0xa1a   : > { %p2591_p0 = pnand %p2590_p11, %p2586_p10 }
 0xa1c   : > { %2594 = shalt.err (!%p2591_p0)
}
 0xa1d   : > { %2186 = dma.vmem_to_hbm [thread:$0]  (%p3270_p8), %s3156_s28, 128, %s3154_s4, %s1699_s2  }
 0xa1e PF: > { %s3273_s24 = sld [smem:[#allocation29_spill]] }
 0xa1f   : > { %s3274_s26 = sld [smem:[#allocation27_spill]] }
 0xa20   : > { %s3275_s20 = sld [smem:[#allocation32_spill]] }
 0xa24   : > { %p2238_p1 = scmp.ge.s32.totalorder %s3273_s24, 2 }
 0xa25   : > { %s1763_s29 = sand.u32 1, %s3274_s26  }
 0xa26   : > { %p3276_p2 = scmp.ne.s32.totalorder %s3275_s20, 0  ;;  %s1764_s1 = scalar_lea.sflag [#allocation7], %s1763_s29 }
 0xa28   : > { %p2215_p13 = pnand %p2238_p1, %p3276_p2 }
 0xa2a   : > { %p2216_p9 = pneg %p2215_p13 }
 0xa2c   : > { %2628 = dma.done.wait (%p2216_p9), %s1764_s1, 128  }
 0xa2d   : > { %2630 = vsyncadd (%p2216_p9), %s1764_s1, 4294967168  ;;  %s3277_s23 = sadd.s32 4294967294, %s3273_s24  }
 0xa2e   : > { %s1772_s27 = sand.u32 1, %s3277_s23  }
 0xa2f   : > { %s1773_s0 = scalar_lea.sflag [#allocation19], %s1772_s27 }
 0xa30   : > { %2632 = dma.done.wait (%p2216_p9), %s1773_s0, 384  }
 0xa31   : > { %2634 = vsyncadd (%p2216_p9), %s1773_s0, 4294966912  ;;  %s3278_s21 = sld [smem:[#allocation30_spill]]  ;;  %s3281_s0 = smov %s2641_s30 }
 0xa32   : > { %s3279_s3 = sld [smem:[#allocation28_spill]] }
 0xa33   : > { %s3280_s20 = sld [smem:[#allocation31_spill]] }
 0xa37   : > { %p37_p8 = scmp.ge.s32.totalorder %s3278_s21, 4  }
 0xa38   : > { %s3282_s30 = smov %s3279_s3 }
 0xa39   :  { %39 = sbr.rel (!%p37_p8) target bundleno = 19 (0x13), region = 187 }
 0xa3e   :  { %1787 = vsyncpa [#allocation6], 1 }
 0xa3f   :  { %1789 = vsyncpa [#allocation6 + $0x1], 1 }
 0xa40   :  { %1790 = vsyncpa [#allocation9], 1 }
 0xa41   :  { %1791 = vsyncpa [#allocation12], 1 }
 0xa42   :  { %1792 = vsyncpa [#allocation15], 1 }
 0xa43   :  { %1793 = vsyncpa [#allocation7], 1 }
 0xa44   :  { %1795 = vsyncpa [#allocation7 + $0x1], 1 }
 0xa45   :  { %1796 = vsyncpa [#allocation19], 1 }
 0xa46   :  { %1798 = vsyncpa [#allocation19 + $0x1], 1 }

// kernel: tpu_custom_call.1
= control target key start
LH: loop header
LB: loop body
LE: loop exit
PB: predicated region body
PF: predicated region fallthrough
CT: control target
= control target key end

     0   :  { %s3199_s0 = inlined_call_operand.vmem [shape: f32[2,8,32], index: 0, kind: input, shape index: {}]   ;;  %s3200_s1 = inlined_call_operand.hbm [shape: f32[1,32], index: 1, kind: input, shape index: {}]   ;;  %s3201_s2 = inlined_call_operand.hbm [shape: f32[1,32], index: 2, kind: input, shape index: {}]   ;;  %s3202_s3 = inlined_call_operand.vmem [shape: bf16[32,32], index: 3, kind: input, shape index: {}]   ;;  %s3203_s4 = inlined_call_operand.hbm [shape: f32[1,32], index: 4, kind: input, shape index: {}]   ;;  %s3204_s5 = inlined_call_operand.vmem [shape: bf16[32,32], index: 5, kind: input, shape index: {}]   ;;  %s3205_s6 = inlined_call_operand.hbm [shape: f32[1,32], index: 6, kind: input, shape index: {}]   ;;  %s3206_s7 = inlined_call_operand.hbm [shape: bf16[32,32], index: 7, kind: input, shape index: {}]   ;;  %s3207_s8 = inlined_call_operand.hbm [shape: f32[1,32], index: 8, kind: input, shape index: {}]   ;;  %s3208_s9 = inlined_call_operand.vmem [shape: bf16[32,32], index: 9, kind: input, shape index: {}]   ;;  %s3209_s10 = inlined_call_operand.vmem [shape: f32[1,32], index: 10, kind: input, shape index: {}]   ;;  %s3210_s11 = inlined_call_operand.vmem [shape: f32[1,32], index: 11, kind: input, shape index: {}]   ;;  %s3211_s12 = inlined_call_operand.vmem [shape: f32[1,32], index: 12, kind: input, shape index: {}]   ;;  %s3212_s13 = inlined_call_operand.hbm [shape: bf16[32,64], index: 13, kind: input, shape index: {}]   ;;  %s3213_s14 = inlined_call_operand.vmem [shape: f32[1,64], index: 14, kind: input, shape index: {}]   ;;  %s3214_s15 = inlined_call_operand.vmem [shape: bf16[64,32], index: 15, kind: input, shape index: {}]   ;;  %s3215_s16 = inlined_call_operand.vmem [shape: f32[1,32], index: 16, kind: input, shape index: {}]   ;;  %s3216_s17 = inlined_call_operand.hbm [shape: f32[2,8,32], index: 17, kind: output, shape index: {0}]   ;;  %s3217_s18 = inlined_call_operand.hbm [shape: bf16[2,4,8,8], index: 18, kind: output, shape index: {1}]   ;;  %s3218_s19 = inlined_call_operand.hbm [shape: f32[2,8,32], index: 19, kind: output, shape index: {2}]  }
   0x1   :  { %3233 = sst [smem:[#allocation33_spill]] %s3199_s0 }
   0x2   :  { %3234 = sst [smem:[#allocation34_spill]] %s3200_s1 }
   0x3   :  { %3235 = sst [smem:[#allocation35_spill]] %s3201_s2 }
   0x4   :  { %3236 = sst [smem:[#allocation36_spill]] %s3202_s3 }
   0x5   :  { %3237 = sst [smem:[#allocation37_spill]] %s3203_s4 }
   0x6   :  { %3238 = sst [smem:[#allocation38_spill]] %s3204_s5 }
   0x7   :  { %3239 = sst [smem:[#allocation39_spill]] %s3205_s6 }
   0x8   :  { %3240 = sst [smem:[#allocation40_spill]] %s3206_s7 }
   0x9   :  { %3241 = sst [smem:[#allocation41_spill]] %s3216_s17 }
   0xa   :  { %25 = vsyncpa [#allocation6], 0 }
   0xb   :  { %26 = vsyncpa [#allocation9], 0 }
   0xc   :  { %27 = vsyncpa [#allocation12], 0 }
   0xd   :  { %28 = vsyncpa [#allocation15], 0 }
   0xe   :  { %29 = vsyncpa [#allocation7], 0 }
   0xf   :  { %31 = vsyncpa [#allocation7 + $0x1], 0 }
  0x10   :  { %32 = vsyncpa [#allocation19], 0 }
  0x11   :  { %34 = vsyncpa [#allocation19 + $0x1], 0  ;;  %s2773_s0 = smov 0   ;;  %s2775_s30 = smov 0  }
  0x12   :  { %s2777_s20 = smov 0   ;;  %s2779_s21 = smov 0  }
  0x13 LB: > { %3242 = sst [smem:[#allocation27_spill]] %s2637_s0  ;;  %s2794_s1 = sadd.s32 4294967295, %s2649_s21   ;;  %s2649_s21 = sphi %s2779_s21, %s3278_s21   ;;  %s2645_s20 = sphi %s2777_s20, %s3280_s20   ;;  %s2641_s30 = sphi %s2775_s30, %s3282_s30   ;;  %s2637_s0 = sphi %s2773_s0, %s3281_s0  }
  0x14   : > { %3243 = sst [smem:[#allocation28_spill]] %s2645_s20  ;;  %s3220_s22 = sadd.s32 4294967294, %s2649_s21  }
  0x15   : > { %3244 = sst [smem:[#allocation29_spill]] %s2649_s21  ;;  %s2798_s2 = sadd.s32 1, %s2649_s21  }
  0x16   : > { %3245 = sst [smem:[#allocation30_spill]] %s2798_s2  ;;  %s409_s23 = sadd.s32 1, %s2645_s20 }
  0x17   : > { %s406_s24 = ssub.s32 %s2649_s21, %s2798_s2  ;;  %p419_p0 = scmp.ne.s32.totalorder %s2645_s20, %s2641_s30 }
  0x18   : > { %p407_p1 = scmp.eq.s32.totalorder %s406_s24, 0  ;;  %p420_p2 = scmp.eq.s32.totalorder %s2794_s1, 1 }
  0x19   : > { %p425_p3 = scmp.ne.s32.totalorder %s2641_s30, %s2637_s0  ;;  %p426_p4 = scmp.eq.s32.totalorder %s3220_s22, 1 }
  0x1a   : > { %s2811_s25 = scalar_select %p407_p1, %s2645_s20, %s409_s23  }
  0x1b   : > { %p2813_p5 = por %p420_p2, %p419_p0  ;;  %p2817_p6 = por %p426_p4, %p425_p3 }
  0x1c   : > { %3246 = sst [smem:[#allocation31_spill]] %s2811_s25  ;;  %p1941_p7 = scmp.ge.s32.totalorder %s2649_s21, 1 }
  0x1d   : > { %s3247_s3 = scalar_select %p2813_p5, 1, 0 }
  0x1e   : > { %s3248_s26 = scalar_select %p2817_p6, 1, 0 }
  0x1f   : > { %p485_p8 = scmp.lt.s32.totalorder %s2649_s21, 3  ;;  %p3228_p9 = scmp.eq.s32.totalorder %s2794_s1, 0 }
  0x20   : > { %3249 = sst [smem:[#allocation32_spill]] %s3248_s26  ;;  %s2651_s28 = smov [#allocation8]  }
  0x21   : > { %p2824_p10 = pnand %p1941_p7, %p485_p8  ;;  %s509_s29 = sshll.u32 %s2651_s28, 4  ;;  %s510_s29 = int_to_ptr.vmem [resolvable:$true] %s509_s29 }
  0x22   : > { %s2652_s23 = smov [#allocation11]   ;;  %s2653_s25 = smov [#allocation14]  }
  0x23   : > { %s3250_s27 = scalar_select %p2824_p10, 1, 0 }
  0x24   : > { %p2192_p11 = pneg %p2824_p10  ;;  %s537_s24 = sshll.u32 %s2652_s23, 4  ;;  %s538_s24 = int_to_ptr.vmem [resolvable:$true] %s537_s24 }
  0x25   : > { %s561_s20 = sshll.u32 %s2653_s25, 4  ;;  %s2346_s28 = scalar_lea.vmem %s510_s29, 16  ;;  %s2836_s20 = int_to_ptr.vmem [resolvable:$true] %s561_s20 }
  0x26   : > { %p2832_p12 = pnand %p3228_p9, %p2192_p11  ;;  %p2347_p0 = scmp.ne.s32.totalorder %s510_s29, %s2346_s28 }
  0x27   : > { %s2353_s23 = scalar_lea.vmem %s510_s29, 32  ;;  %p2354_p3 = scmp.lt.s32.totalorder %s510_s29, %s510_s29 }
  0x28   : > { %p2840_p13 = pneg %p2832_p12  ;;  %p2355_p4 = scmp.lt.s32.totalorder %s2353_s23, %s2346_s28 }
  0x2a   : > { %p2349_p1 = pnand %p2347_p0, %p2840_p13  ;;  %p2356_p7 = por %p2355_p4, %p2354_p3 }
  0x2c   : > { %p2350_p2 = pneg %p2349_p1 }
  0x2e   : > { %p2357_p8 = pnand %p2356_p7, %p2350_p2 }
  0x30   : > { %2360 = shalt.err (!%p2357_p8)
}
  0x31   : > { %s3253_s0 = sld [smem:[#allocation35_spill]]  ;;  %s2372_s21 = scalar_lea.vmem %s538_s24, 16 }
  0x32   : > { %p2373_p11 = scmp.ne.s32.totalorder %s538_s24, %s2372_s21  ;;  %s2379_s17 = scalar_lea.vmem %s538_s24, 32 }
  0x33   : > { %p2380_p0 = scmp.lt.s32.totalorder %s538_s24, %s538_s24  ;;  %p2381_p1 = scmp.lt.s32.totalorder %s2379_s17, %s2372_s21 }
  0x34   : > { %p2375_p9 = pnand %p2373_p11, %p2840_p13 }
  0x35   : > { %p2382_p5 = por %p2381_p1, %p2380_p0 }
  0x36   : > { %p2376_p6 = pneg %p2375_p9 }
  0x37   : > { %2198 = dma.hbm_to_vmem [thread:$0]  (!%p2832_p12), %s3253_s0, 16, %s510_s29, [#allocation9]  }
  0x38   : > { %p2383_p10 = pnand %p2382_p5, %p2376_p6 }
  0x3a   : > { %2386 = shalt.err (!%p2383_p10)
}
  0x3b   : > { %s3254_s6 = sld [smem:[#allocation39_spill]]  ;;  %s2398_s0 = scalar_lea.vmem %s2836_s20, 16 }
  0x3c   : > { %p2399_p2 = scmp.ne.s32.totalorder %s2836_s20, %s2398_s0  ;;  %s2405_s17 = scalar_lea.vmem %s2836_s20, 32 }
  0x3d   : > { %p2406_p5 = scmp.lt.s32.totalorder %s2836_s20, %s2836_s20  ;;  %p2407_p6 = scmp.lt.s32.totalorder %s2405_s17, %s2398_s0 }
  0x3e   : > { %p2401_p9 = pnand %p2399_p2, %p2840_p13 }
  0x3f   : > { %p2408_p10 = por %p2407_p6, %p2406_p5 }
  0x40   : > { %p2402_p3 = pneg %p2401_p9 }
  0x41   : > { %2204 = dma.hbm_to_vmem [thread:$0]  (!%p2832_p12), %s3254_s6, 16, %s538_s24, [#allocation12]  }
  0x42   : > { %p2409_p4 = pnand %p2408_p10, %p2402_p3 }
  0x44   : > { %2412 = shalt.err (!%p2409_p4)
}
  0x45   : > { %2210 = dma.hbm_to_vmem [thread:$0]  (!%p2832_p12), %s3207_s8, 16, %s2836_s20, [#allocation15]  }
  0x46   : > { %s2654_s29 = smov [#allocation5]   ;;  %s2655_s25 = smov [#allocation10]  }
  0x47   : > { %s498_s24 = sshll.u32 %s2654_s29, 4  ;;  %s523_s28 = sshll.u32 %s2655_s25, 4  ;;  %s499_s24 = int_to_ptr.vmem [resolvable:$true] %s498_s24  ;;  %s524_s28 = int_to_ptr.vmem [resolvable:$true] %s523_s28 }
  0x48   : > { %s2424_s23 = scalar_lea.vmem %s499_s24, 16  ;;  %s2431_s0 = scalar_lea.vmem %s499_s24, 32 }
  0x49   : > { %p2425_p7 = scmp.ne.s32.totalorder %s499_s24, %s2424_s23  ;;  %p2432_p0 = scmp.lt.s32.totalorder %s499_s24, %s499_s24 }
  0x4a   : > { %p2433_p1 = scmp.lt.s32.totalorder %s2431_s0, %s2424_s23 }
  0x4b   : > { %p2427_p8 = pnand %p2425_p7, %p2840_p13 }
  0x4c   : > { %p2434_p2 = por %p2433_p1, %p2432_p0 }
  0x4d   : > { %p2428_p11 = pneg %p2427_p8 }
  0x4f   : > { %p2435_p9 = pnand %p2434_p2, %p2428_p11 }
  0x51   : > { %2438 = shalt.err (!%p2435_p9)
}
  0x52   : > { %s3255_s21 = sld [smem:[#allocation34_spill]]  ;;  %s2450_s26 = scalar_lea.vmem %s524_s28, 16 }
  0x53   : > { %p2451_p3 = scmp.ne.s32.totalorder %s524_s28, %s2450_s26  ;;  %s2457_s29 = scalar_lea.vmem %s524_s28, 32 }
  0x54   : > { %p2458_p10 = scmp.lt.s32.totalorder %s524_s28, %s524_s28  ;;  %p2459_p4 = scmp.lt.s32.totalorder %s2457_s29, %s2450_s26 }
  0x55   : > { %p2453_p5 = pnand %p2451_p3, %p2840_p13 }
  0x56   : > { %p2460_p7 = por %p2459_p4, %p2458_p10 }
  0x57   : > { %p2454_p6 = pneg %p2453_p5 }
  0x58   : > { %2195 = dma.hbm_to_vmem [thread:$0]  (!%p2832_p12), %s3255_s21, 16, %s499_s24, [#allocation6]  }
  0x59   : > { %p2461_p8 = pnand %p2460_p7, %p2454_p6 }
  0x5b   : > { %2464 = shalt.err (!%p2461_p8)
}
  0x5c   : > { %s3256_s4 = sld [smem:[#allocation37_spill]]  ;;  %s2656_s24 = smov [#allocation13]  }
  0x5d   : > { %s547_s0 = sshll.u32 %s2656_s24, 4  ;;  %s548_s0 = int_to_ptr.vmem [resolvable:$true] %s547_s0 }
  0x5e   : > { %s2476_s17 = scalar_lea.vmem %s548_s0, 256  ;;  %p2484_p2 = scmp.lt.s32.totalorder %s548_s0, %s548_s0 }
  0x5f   : > { %p2477_p11 = scmp.ne.s32.totalorder %s548_s0, %s2476_s17  ;;  %p2485_p9 = scmp.lt.s32.totalorder %s2476_s17, %s2476_s17 }
  0x61   : > { %p2479_p0 = pnand %p2477_p11, %p2840_p13  ;;  %p2486_p3 = por %p2485_p9, %p2484_p2 }
  0x62   : > { %2201 = dma.hbm_to_vmem [thread:$0]  (!%p2832_p12), %s3256_s4, 16, %s524_s28, [#allocation9]  }
  0x63   : > { %p2480_p1 = pneg %p2479_p0 }
  0x65   : > { %p2487_p5 = pnand %p2486_p3, %p2480_p1 }
  0x67   : > { %2490 = shalt.err (!%p2487_p5)
}
  0x68   : > { %s2657_s20 = smov 64   ;;  %s2658_s21 = smov 4  }
  0x69   : > { %s3257_s7 = sld [smem:[#allocation40_spill]]  ;;  %s2659_s29 = smov [#allocation16]  }
  0x6a   : > { %s583_s25 = sshll.u32 %s2659_s29, 4  ;;  %s584_s25 = int_to_ptr.vmem [resolvable:$true] %s583_s25 }
  0x6b   : > { %s2502_s23 = scalar_lea.vmem %s584_s25, 256  ;;  %p2510_p7 = scmp.lt.s32.totalorder %s584_s25, %s584_s25 }
  0x6c   : > { %p2503_p6 = scmp.ne.s32.totalorder %s584_s25, %s2502_s23  ;;  %p2511_p8 = scmp.lt.s32.totalorder %s2502_s23, %s2502_s23 }
  0x6e   : > { %p2505_p10 = pnand %p2503_p6, %p2840_p13  ;;  %p2512_p11 = por %p2511_p8, %p2510_p7 }
  0x6f   : > { %2207 = dma.hbm_to_vmem [thread:$0]  (!%p2832_p12), %s3257_s7, 256, %s548_s0, [#allocation12], %s2657_s20, %s2657_s20, %s2658_s21  }
  0x70   : > { %p2506_p4 = pneg %p2505_p10 }
  0x72   : > { %p2513_p0 = pnand %p2512_p11, %p2506_p4 }
  0x74   : > { %2516 = shalt.err (!%p2513_p0)
}
  0x75   : > { %2213 = dma.hbm_to_vmem [thread:$0]  (!%p2832_p12), %s3212_s13, 256, %s584_s25, [#allocation15], %s2657_s20, %s2657_s20, %s2658_s21  }
  0x76   : > { %p3258_p1 = scmp.ne.s32.totalorder %s3250_s27, 0 }
  0x77   : > { %p3259_p2 = scmp.eq.s32.totalorder (!%p3258_p1), %s2794_s1, 0 }
  0x78   : > { %615 = sbr.rel (%p3258_p1) target bundleno = 2590 (0xa1e), region = 88 }
  0x7d   : > { %2612 = dma.done.wait (%p3259_p2), [#allocation6], 16   ;;  %p3260_p13 = pmov %p3259_p2 }
  0x7e   : > { %p3261_p9 = pmov %p3259_p2 }
  0x7f   : > { %2614 = vsyncadd (%p3260_p13), [#allocation6], 4294967280 }
  0x80   : > { %2616 = dma.done.wait (%p3261_p9), [#allocation9], 32   ;;  %p3262_p3 = pmov %p3259_p2 }
  0x81   : > { %p3263_p5 = pmov %p3259_p2 }
  0x82   : > { %2618 = vsyncadd (%p3262_p3), [#allocation9], 4294967264 }
  0x83   : > { %2620 = dma.done.wait (%p3263_p5), [#allocation12], 272   ;;  %p3264_p12 = pmov %p3259_p2 }
  0x84   : > { %p3265_p6 = pmov %p3259_p2 }
  0x85   : > { %2622 = vsyncadd (%p3264_p12), [#allocation12], 4294967024 }
  0x86   : > { %2624 = dma.done.wait (%p3265_p6), [#allocation15], 272   ;;  %p3266_p10 = pmov %p3259_p2 }
  0x87   : > { %p704_p4 = scmp.lt.s32.totalorder %s2794_s1, 1  ;;  %s3267_s20 = sld [smem:[#allocation33_spill]]  ;;  %vm712_vm0 = vcmask 261120   ;;  %v2291_v8 = vld [vmem:[#allocation13 + $0x8] sm:$0xff]   ;;  %v2660_v9 = vmov 0.0   ;;  %v2293_v11 = vld [vmem:[#allocation13] sm:$0xff]  }
  0x88   : > { %2626 = vsyncadd (%p3266_p10), [#allocation15], 4294967024  ;;  %s3268_s5 = sld [smem:[#allocation38_spill]]  ;;  %2058 = vmatprep.subr.bf16.mxu0 %v2660_v9  ;;  %2066 = vmatprep.subr.bf16.mxu1 %v2660_v9  ;;  %vm2661_vm1 = vmmov 0   ;;  %v1962_v16 = vld [vmem:[#allocation5] ss:$0 sm:$0xff] }
  0x89   : > { %s705_s22 = scalar_select %p704_p4, %s2794_s1, 1  ;;  %2067 = vmatpush3.bf16.msra.mxu1 %v2291_v8  ;;  %2062 = vmatprep.mubr.msk.bf16.mxu0 %vm2661_vm1, %v2660_v9  ;;  %v1963_v18 = vld [vmem:[#allocation8] ss:$0 sm:$0xff]  ;;  %v1964_v24 = vld [vmem:[#allocation11] ss:$0 sm:$0xff]  ;;  %vm936_vm2 = vcmask 257024  }
  0x8a   : > { %2068 = vmatprep.subr.bf16.mxu1 %v2660_v9  ;;  %2070 = vmatprep.mubr.msk.bf16.mxu1 %vm2661_vm1, %v2660_v9  ;;  %s3269_s17 = sld [smem:[#allocation36_spill]]  ;;  %v1968_v25 = vld [vmem:[#allocation14] ss:$0 sm:$0xff]  ;;  %v1972_v38 = vld [vmem:[#allocation10] ss:$0 sm:$0xff]  ;;  %vm945_vm3 = vcmask 64512  }
  0x8b   : > { %s1961_s2 = sshll.u32 %s705_s22, 3  ;;  %vm1009_vm4 = vcmask 1043456   ;;  %s2662_s27 = smov 112   ;;  %vm1004_vm5 = vcmask 60416   ;;  %vm1438_vm6 = vcmask 130048   ;;  %vm1440_vm7 = vcmask 195584  }
  0x8c   : > { %s2663_s0 = smov 120   ;;  %s2665_s22 = smov 8   ;;  %vm1652_vm8 = vcmask 523264  }
  0x8d   : > { %s707_s21 = scalar_lea.vmem %s3267_s20, %s1961_s2  ;;  %2069 = vmatpush3.bf16.msra.mxu1 %v2293_v11  ;;  %s2664_s20 = smov 104  }
  0x8e   : > { %v2922_v0 = vld [vmem:[%s707_s21] sm:$0xff]  ;;  %v2290_v7 = vld [vmem:[%s3268_s5 + $0x8] sm:$0xff]   ;;  %2082 = vmatprep.subr.bf16.mxu1 %v2660_v9  ;;  %s3002_s21 = sand.u32 1, %s2641_s30   ;;  %s2666_s2 = smov 16  }
  0x8f   : > { %v713_v1 = vsel %vm712_vm0, %v2922_v0, 0.0  ;;  %2059 = vmatpush3.bf16.msra.mxu0 %v2290_v7  ;;  %v2292_v10 = vld [vmem:[%s3268_s5] sm:$0xff]   ;;  %s1959_s26 = sshll.u32 %s3002_s21, 4  ;;  %s1703_s29 = sand.u32 1, %s2794_s1  }
  0x90   : > { %714 = vadd.xlane.f32.xlu0 %v713_v1  ;;  %2060 = vmatprep.subr.bf16.mxu0 %v2660_v9  ;;  %v2294_v21 = vld [vmem:[%s3269_s17 + $0x8] sm:$0xff]   ;;  %v2295_v23 = vld [vmem:[%s3269_s17] sm:$0xff]   ;;  %s3006_s28 = scalar_lea.vmem [#allocation18], %s1959_s26  ;;  %s2021_s25 = sshll.u32 %s2794_s1, 8 }
  0x91   : > { %s1735_s26 = sshll.u32 %s3006_s28, 4  ;;  %p3270_p8 = scmp.ne.s32.totalorder %s3247_s3, 0  ;;  %s3091_s26 = int_to_ptr.vmem [resolvable:$true] %s1735_s26 }
  0x93   : > { %2061 = vmatpush3.bf16.msra.mxu0 %v2292_v10 }
  0x94   : > { %2074 = vmatprep.subr.bf16.mxu0 %v2660_v9 }
 0x119   : > { %v715_v2 = vpop.xlane.xlu0 %714 }
 0x11a   : > { %v717_v3 = vmul.f32 0.03125, %v715_v2 }
 0x11c   : > { %v718_v4 = vsub.f32 %v2922_v0, %v717_v3 }
 0x11e   : > { %v719_v5 = vmul.f32 %v718_v4, %v718_v4 }
 0x120   : > { %v720_v6 = vsel %vm712_vm0, %v719_v5, 0.0 }
 0x121   : > { %721 = vadd.xlane.f32.xlu0 %v720_v6 }
 0x1aa   : > { %v722_v12 = vpop.xlane.xlu0 %721 }
 0x1ab   : > { %v723_v13 = vmul.f32 0.03125, %v722_v12 }
 0x1ad   : > { %v724_v14 = vadd.f32 1e-06, %v723_v13 }
 0x1af   : > { %2313 = vrsqrt.f32 %v724_v14 }
 0x1bc   : > { %v2314_v15 = vpop.eup %2313 }
 0x1bd   : > { %v726_v17 = vmul.f32 %v2314_v15, %v718_v4 }
 0x1bf   : > { %v733_v19 = vmul.f32 %v1962_v16, %v726_v17 }
 0x1c1   : > { %v740_v20 = vadd.f32 %v1963_v18, %v733_v19 }
 0x1c3   : > { %v741_v22 = vpack.c.bf16 %v740_v20, %v740_v20 }
 0x1c5   : > { %2063 = vmatmul.mubr.msk.bf16.vlgmr.msra.gmra.mxu0 %vm712_vm0, %v741_v22  ;;  %2071 = vmatmul.mubr.msk.bf16.vlgmr.msra.gmra.mxu1 %vm712_vm0, %v741_v22 }
 0x1c6   : > { %2075 = vmatpush3.bf16.msra.mxu0 %v2294_v21  ;;  %2078 = vmatprep.mubr.msk.bf16.mxu0 %vm2661_vm1, %v2660_v9 }
 0x1c7   : > { %2076 = vmatprep.subr.bf16.mxu0 %v2660_v9  ;;  %2084 = vmatprep.mubr.msk.bf16.mxu1 %vm2661_vm1, %v2660_v9 }
 0x1ca   : > { %2077 = vmatpush3.bf16.msra.mxu0 %v2295_v23 }
 0x1cb   : > { %2088 = vmatprep.subr.bf16.mxu0 %v2660_v9 }
 0x1cd   : > { %2079 = vmatmul.mubr.msk.bf16.vlgmr.msra.gmra.mxu0 %vm712_vm0, %v741_v22 }
 0x1ce   : > { %2090 = vmatprep.mubr.msk.bf16.mxu0 %vm2661_vm1, %v2660_v9 }
 0x285   : > { %v802_v26 = vpop.f32.mrf.mxu0  ;;  %v865_v27 = vpop.f32.mrf.mxu1 }
 0x286   : > { %v803_v28 = vadd.f32 %v1964_v24, %v802_v26  ;;  %v866_v29 = vadd.f32 %v1968_v25, %v865_v27 }
 0x287   : > { %v2064_v30 = vpop.f32.mrf.mxu0  ;;  %v2072_v31 = vpop.f32.mrf.mxu1 }
 0x288   : > { %v938_v32 = vpack.c.bf16 %v803_v28, %v803_v28  ;;  %v940_v33 = vpack.c.bf16 %v866_v29, %v866_v29 }
 0x289   : > { %v805_v34 = vpop.f32.mrf.mxu0  ;;  %v868_v35 = vpop.f32.mrf.mxu1 }
 0x28a   : > { %939 = vst.msk [vmem:[#allocation3] sm:$0xf] %vm936_vm2, %v938_v32  ;;  %941 = vst.msk [vmem:[#allocation4] sm:$0xf] %vm936_vm2, %v940_v33 }
 0x28b   : > { %v2065_v36 = vpop.f32.mrf.mxu0  ;;  %v2073_v37 = vpop.f32.mrf.mxu1 }
 0x28d   : > { %v928_v39 = vpop.f32.mrf.mxu0 }
 0x28e   : > { %v929_v40 = vadd.f32 %v1972_v38, %v928_v39 }
 0x28f   : > { %v2080_v41 = vpop.f32.mrf.mxu0 }
 0x290   : > { %v934_v42 = vmul.f32 0.35355338, %v929_v40 }
 0x291   : > { %v931_v43 = vpop.f32.mrf.mxu0  ;;  %v943_v44 = vld [vmem:[#allocation3] sm:$0xf]  ;;  %v944_v45 = vld [vmem:[#allocation4] sm:$0xf] }
 0x292   : > { %v935_v46 = vpack.c.bf16 %v934_v42, %v934_v42  ;;  %v950_v47 = vsel %vm945_vm3, %v943_v44, 0  ;;  %v1011_v48 = vsel %vm1009_vm4, %v944_v45, 0  ;;  %v2296_v49 = vld [vmem:[#allocation3] ss:$0 sps:$4 sm:$0xff]   ;;  %v2302_v39 = vld [vmem:[#allocation4] ss:$0 sps:$4 sm:$0xff]  }
 0x293   : > { %v2081_v50 = vpop.f32.mrf.mxu0  ;;  %2083 = vmatpush3.bf16.xpose.msra.mxu1 %v950_v47  ;;  %2089 = vmatpush3.bf16.msra.mxu0 %v1011_v48  ;;  %v2297_v51 = vld [vmem:[#allocation3] ss:$0 sps:$4 sm:$0xff]   ;;  %v2303_v43 = vld [vmem:[#allocation4] ss:$0 sps:$4 sm:$0xff]  }
 0x294   : > { %937 = vst.msk [vmem:[#allocation2] sm:$0xf] %vm936_vm2, %v935_v46  ;;  %1188 = vrot.lane.b32.xlu0 %v2296_v49, %s2662_s27  ;;  %2094 = vmatprep.subr.bf16.mxu1 %v2660_v9  ;;  %v2300_v55 = vld [vmem:[#allocation3] ss:$0 sps:$4 sm:$0xff]   ;;  %v2304_v50 = vld [vmem:[#allocation4] ss:$0 sps:$4 sm:$0xff]  }
 0x295   : > { %1064 = vrot.lane.b32.xlu1 %v2297_v51, %s2663_s0  ;;  %2100 = vmatprep.subr.bf16.mxu0 %v2660_v9 }
 0x29b   : > { %v942_v52 = vld [vmem:[#allocation2] sm:$0xf] }
 0x29c   : > { %v2298_v53 = vld [vmem:[#allocation2] ss:$0 sps:$4 sm:$0xff]   ;;  %2085 = vmatmul.mubr.msk.bf16.vlgmr.msra.gmra.mxu1 %vm945_vm3, %v942_v52 }
 0x29d   : > { %1059 = vrot.lane.b32.xlu1 %v2298_v53, %s2663_s0  ;;  %2096 = vmatprep.mubr.msk.bf16.mxu1 %vm2661_vm1, %v2660_v9  ;;  %v2299_v54 = vld [vmem:[#allocation2] ss:$0 sps:$4 sm:$0xff]  }
 0x29e   : > { %v2301_v56 = vld [vmem:[#allocation2] ss:$0 sps:$4 sm:$0xff]  }
 0x2a1   : > { %1183 = vrot.lane.b32.xlu1 %v2299_v54, %s2662_s27 }
 0x2a5   : > { %1312 = vrot.lane.b32.xlu1 %v2300_v55, %s2664_s20 }
 0x2a9   : > { %1307 = vrot.lane.b32.xlu1 %v2301_v56, %s2664_s20 }
 0x306   : > { %v1189_v59 = vpop.permute.xlu0 %1188 }
 0x307   : > { %v1065_v57 = vpop.permute.xlu1 %1064  ;;  %v1194_v61 = vsel %vm945_vm3, %v1189_v59, 0 }
 0x308   : > { %v1070_v58 = vsel %vm945_vm3, %v1065_v57, 0 }
 0x309   : > { %2095 = vmatpush3.bf16.xpose.msra.mxu1 %v1070_v58 }
 0x30a   : > { %2106 = vmatprep.subr.bf16.mxu1 %v2660_v9 }
 0x30f   : > { %v1060_v60 = vpop.permute.xlu1 %1059 }
 0x310   : > { %2097 = vmatmul.mubr.msk.bf16.vlgmr.msra.gmra.mxu1 %vm945_vm3, %v1060_v60 }
 0x311   : > { %2107 = vmatpush3.bf16.xpose.msra.mxu1 %v1194_v61  ;;  %2108 = vmatprep.mubr.msk.bf16.mxu1 %vm2661_vm1, %v2660_v9 }
 0x312   : > { %2118 = vmatprep.subr.bf16.mxu1 %v2660_v9 }
 0x313   : > { %v1184_v62 = vpop.permute.xlu1 %1183 }
 0x317   : > { %v1313_v63 = vpop.permute.xlu1 %1312 }
 0x318   : > { %v1318_v1 = vsel %vm945_vm3, %v1313_v63, 0  ;;  %2109 = vmatmul.mubr.msk.bf16.vlgmr.msra.gmra.mxu1 %vm945_vm3, %v1184_v62 }
 0x319   : > { %2119 = vmatpush3.bf16.xpose.msra.mxu1 %v1318_v1  ;;  %2120 = vmatprep.mubr.msk.bf16.mxu1 %vm2661_vm1, %v2660_v9 }
 0x31a   : > { %2130 = vmatprep.subr.bf16.mxu1 %v2660_v9 }
 0x31b   : > { %v1308_v2 = vpop.permute.xlu1 %1307 }
 0x320   : > { %2121 = vmatmul.mubr.msk.bf16.vlgmr.msra.gmra.mxu1 %vm945_vm3, %v1308_v2 }
 0x321   : > { %2134 = vmatprep.mubr.msk.bf16.mxu1 %vm2661_vm1, %v2660_v9 }
 0x35c   : > { %v986_v3 = vpop.f32.mrf.mxu1 }
 0x35d   : > { %v992_v4 = vsel %vm945_vm3, %v986_v3, -inf }
 0x35e   : > { %993 = vmax.xlane.f32.xlu1 %v992_v4  ;;  %v2086_v5 = vpop.f32.mrf.mxu1 }
 0x360   : > { %v989_v6 = vpop.f32.mrf.mxu1 }
 0x362   : > { %v2087_v7 = vpop.f32.mrf.mxu1 }
 0x3d0   : > { %v1106_v8 = vpop.f32.mrf.mxu1 }
 0x3d1   : > { %v1112_v10 = vsel %vm945_vm3, %v1106_v8, -inf }
 0x3d2   : > { %1113 = vmax.xlane.f32.xlu0 %v1112_v10  ;;  %v2098_v11 = vpop.f32.mrf.mxu1 }
 0x3d3   : > { %v2305_v11 = vld [vmem:[%s3208_s9 + $0x8] sm:$0xff]  }
 0x3d4   : > { %v1109_v12 = vpop.f32.mrf.mxu1  ;;  %2131 = vmatpush3.bf16.msra.mxu1 %v2305_v11 }
 0x3d5   : > { %v2306_v12 = vld [vmem:[%s3208_s9] sm:$0xff]   ;;  %2132 = vmatprep.subr.bf16.mxu1 %v2660_v9 }
 0x3d6   : > { %v2099_v13 = vpop.f32.mrf.mxu1 }
 0x3d8   : > { %v1230_v14 = vpop.f32.mrf.mxu1  ;;  %2133 = vmatpush3.bf16.msra.mxu1 %v2306_v12 }
 0x3d9   : > { %v1236_v15 = vsel %vm945_vm3, %v1230_v14, -inf  ;;  %2146 = vmatprep.subr.bf16.mxu1 %v2660_v9 }
 0x3da   : > { %1237 = vmax.xlane.f32.xlu1 %v1236_v15  ;;  %v2110_v16 = vpop.f32.mrf.mxu1 }
 0x3dc   : > { %v1233_v17 = vpop.f32.mrf.mxu1 }
 0x3de   : > { %v2111_v18 = vpop.f32.mrf.mxu1 }
 0x3e0   : > { %v1354_v19 = vpop.f32.mrf.mxu1 }
 0x3e1   : > { %v1360_v20 = vsel %vm945_vm3, %v1354_v19, -inf }
 0x3e2   : > { %1361 = vmax.xlane.f32.xlu1 %v1360_v20  ;;  %v2122_v21 = vpop.f32.mrf.mxu1 }
 0x3e4   : > { %v1357_v22 = vpop.f32.mrf.mxu1 }
 0x3e6   : > { %v2123_v23 = vpop.f32.mrf.mxu1 }
 0x3e7   : > { %v994_v24 = vpop.xlane.xlu1 %993 }
 0x3e8   : > { %v995_v25 = vsub.f32 %v986_v3, %v994_v24 }
 0x3ea   : > { %v996_v26 = vmul.f32 1.442695, %v995_v25 }
 0x3ec   : > { %2315 = vpow2.f32 %v996_v26 }
 0x3f9   : > { %v2316_v27 = vpop.eup %2315 }
 0x3fa   : > { %v998_v28 = vsel %vm945_vm3, %v2316_v27, 0.0 }
 0x3fb   : > { %999 = vadd.xlane.f32.xlu0 %v998_v28 }
 0x45b   : > { %v1114_v29 = vpop.xlane.xlu0 %1113 }
 0x45c   : > { %v1115_v30 = vsub.f32 %v1106_v8, %v1114_v29 }
 0x45e   : > { %v1116_v31 = vmul.f32 1.442695, %v1115_v30 }
 0x460   : > { %2317 = vpow2.f32 %v1116_v31 }
 0x463   : > { %v1238_v32 = vpop.xlane.xlu1 %1237 }
 0x464   : > { %v1239_v33 = vsub.f32 %v1230_v14, %v1238_v32  ;;  %v1996_v32 = vld [vmem:[%s3209_s10] ss:$0 sm:$0xff] }
 0x466   : > { %v1240_v34 = vmul.f32 1.442695, %v1239_v33 }
 0x468   : > { %2319 = vpow2.f32 %v1240_v34 }
 0x46b   : > { %v1362_v41 = vpop.xlane.xlu1 %1361 }
 0x46c   : > { %v1363_v42 = vsub.f32 %v1354_v19, %v1362_v41 }
 0x46d   : > { %v2318_v35 = vpop.eup %2317 }
 0x46e   : > { %v1118_v36 = vsel %vm945_vm3, %v2318_v35, 0.0  ;;  %v1364_v44 = vmul.f32 1.442695, %v1363_v42 }
 0x46f   : > { %1119 = vadd.xlane.f32.xlu1 %v1118_v36 }
 0x475   : > { %v2320_v37 = vpop.eup %2319 }
 0x476   : > { %v1242_v38 = vsel %vm945_vm3, %v2320_v37, 0.0 }
 0x477   : > { %1243 = vadd.xlane.f32.xlu0 %v1242_v38 }
 0x480   : > { %1253 = vrot.lane.b32.xlu1 %v2302_v39, %s2662_s27  ;;  %s2667_s27 = smov 24  }
 0x484   : > { %v1000_v40 = vpop.xlane.xlu0 %999 }
 0x485   : > { %2321 = vrcp.f32 %v1000_v40 }
 0x486   : > { %2323 = vpow2.f32 %v1364_v44 }
 0x48d   : > { %1129 = vrot.lane.b32.xlu0 %v2303_v43, %s2663_s0  ;;  %s3232_s0 = sshll.u32 %s3002_s21, 3 }
 0x492   : > { %v2322_v45 = vpop.eup %2321 }
 0x493   : > { %v1002_v46 = vmul.f32 %v2322_v45, %v2316_v27  ;;  %v2324_v48 = vpop.eup %2323  ;;  %v2307_v45 = vld [vmem:[#allocation16 + $0x8] sm:$0xff]  }
 0x494   : > { %v1366_v49 = vsel %vm945_vm3, %v2324_v48, 0.0 }
 0x495   : > { %v1003_v47 = vpack.c.bf16 %v1002_v46, %v1002_v46  ;;  %v2308_v46 = vld [vmem:[#allocation16] sm:$0xff]  }
 0x497   : > { %2091 = vmatmul.mubr.msk.bf16.vlgmr.msra.gmra.mxu0 %vm945_vm3, %v1003_v47  ;;  %1005 = vst.msk [vmem:[%s3006_s28] sm:$0xf] %vm1004_vm5, %v1003_v47 }
 0x498   : > { %2102 = vmatprep.mubr.msk.bf16.mxu0 %vm2661_vm1, %v2660_v9 }
 0x4a4   : > { %1367 = vadd.xlane.f32.xlu1 %v1366_v49 }
 0x4b5   : > { %1377 = vrot.lane.b32.xlu1 %v2304_v50, %s2664_s20  ;;  %s3047_s20 = scalar_lea.vmem [#allocation20], %s3232_s0  ;;  %v2000_v50 = vld [vmem:[%s3210_s11] ss:$0 sm:$0xff] }
 0x4f8   : > { %v1120_v51 = vpop.xlane.xlu1 %1119 }
 0x4f9   : > { %2325 = vrcp.f32 %v1120_v51 }
 0x4fc   : > { %v1254_v57 = vpop.permute.xlu1 %1253 }
 0x4fd   : > { %v1259_v59 = vsel %vm1009_vm4, %v1254_v57, 0  ;;  %v2310_v57 = vld [vmem:[%s3214_s15 + $0x10] sm:$0xff]  }
 0x500   : > { %v1244_v52 = vpop.xlane.xlu0 %1243 }
 0x501   : > { %2327 = vrcp.f32 %v1244_v52  ;;  %v2001_v52 = vld [vmem:[%s3211_s12] ss:$0 sm:$0xff] }
 0x504   : > { %v1130_v53 = vpop.permute.xlu0 %1129 }
 0x505   : > { %v1135_v54 = vsel %vm1009_vm4, %v1130_v53, 0 }
 0x506   : > { %v2326_v55 = vpop.eup %2325  ;;  %2101 = vmatpush3.bf16.msra.mxu0 %v1135_v54 }
 0x507   : > { %2112 = vmatprep.subr.bf16.mxu0 %v2660_v9  ;;  %v1122_v56 = vmul.f32 %v2326_v55, %v2318_v35 }
 0x509   : > { %v1123_v58 = vpack.c.bf16 %v1122_v56, %v1122_v56  ;;  %v2309_v56 = vld [vmem:[%s3214_s15 + $0x18] sm:$0xff]  }
 0x50b   : > { %2103 = vmatmul.mubr.msk.bf16.vlgmr.msra.gmra.mxu0 %vm945_vm3, %v1123_v58  ;;  %1981 = vst.msk [vmem:[%s3006_s28 + $0x4] sm:$0xf] %vm1004_vm5, %v1123_v58  ;;  %v2311_v58 = vld [vmem:[%s3214_s15 + $0x8] sm:$0xff]  }
 0x50c   : > { %2113 = vmatpush3.bf16.msra.mxu0 %v1259_v59  ;;  %2114 = vmatprep.mubr.msk.bf16.mxu0 %vm2661_vm1, %v2660_v9  ;;  %v2312_v59 = vld [vmem:[%s3214_s15] sm:$0xff]  }
 0x50d   : > { %2124 = vmatprep.subr.bf16.mxu0 %v2660_v9 }
 0x50e   : > { %v2328_v60 = vpop.eup %2327 }
 0x50f   : > { %v1246_v61 = vmul.f32 %v2328_v60, %v2320_v37  ;;  %v2002_v60 = vld [vmem:[%s3213_s14] ss:$0 sm:$0xff] }
 0x511   : > { %v1247_v62 = vpack.c.bf16 %v1246_v61, %v1246_v61 }
 0x513   : > { %2115 = vmatmul.mubr.msk.bf16.vlgmr.msra.gmra.mxu0 %vm945_vm3, %v1247_v62  ;;  %1987 = vst.msk [vmem:[%s3006_s28 + $0x8] sm:$0xf] %vm1004_vm5, %v1247_v62 }
 0x514   : > { %2126 = vmatprep.mubr.msk.bf16.mxu0 %vm2661_vm1, %v2660_v9 }
 0x52d   : > { %v1368_v63 = vpop.xlane.xlu1 %1367 }
 0x52e   : > { %2329 = vrcp.f32 %v1368_v63 }
 0x531   : > { %v1378_v1 = vpop.permute.xlu1 %1377 }
 0x532   : > { %v1383_v2 = vsel %vm1009_vm4, %v1378_v1, 0 }
 0x533   : > { %2125 = vmatpush3.bf16.msra.mxu0 %v1383_v2 }
 0x534   : > { %2138 = vmatprep.subr.bf16.mxu0 %v2660_v9 }
 0x53b   : > { %v2330_v3 = vpop.eup %2329 }
 0x53c   : > { %v1370_v4 = vmul.f32 %v2330_v3, %v2324_v48 }
 0x53e   : > { %v1371_v5 = vpack.c.bf16 %v1370_v4, %v1370_v4 }
 0x540   : > { %2127 = vmatmul.mubr.msk.bf16.vlgmr.msra.gmra.mxu0 %vm945_vm3, %v1371_v5  ;;  %1993 = vst.msk [vmem:[%s3006_s28 + $0xc] sm:$0xf] %vm1004_vm5, %v1371_v5  ;;  %s2668_s28 = smov [#allocation18]  }
 0x541   : > { %2142 = vmatprep.mubr.msk.bf16.mxu0 %vm2661_vm1, %v2660_v9  ;;  %2139 = vmatpush3.bf16.msra.mxu0 %v2307_v45  ;;  %s2521_s0 = sshll.u32 %s2668_s28, 4  ;;  %s2522_s0 = int_to_ptr.vmem [resolvable:$false] %s2521_s0 }
 0x542   : > { %2140 = vmatprep.subr.bf16.mxu0 %v2660_v9  ;;  %s2523_s4 = scalar_lea.vmem %s2522_s0, 512  ;;  %p2524_p1 = scmp.lt.s32.totalorder %s3091_s26, %s2522_s0 }
 0x545   : > { %2141 = vmatpush3.bf16.msra.mxu0 %v2308_v46 }
 0x557   : > { %v1047_v6 = vpop.f32.mrf.mxu0 }
 0x559   : > { %v2092_v7 = vpop.f32.mrf.mxu0 }
 0x55b   : > { %v1050_v8 = vpop.f32.mrf.mxu0 }
 0x55d   : > { %v2093_v10 = vpop.f32.mrf.mxu0 }
 0x5cb   : > { %v1171_v13 = vpop.f32.mrf.mxu0 }
 0x5cc   : > { %1426 = vrot.lane.b32.xlu0 %v1171_v13, %s2665_s22  ;;  %s3098_s22 = scalar_lea.hbm %s3217_s18, %s2021_s25 }
 0x5cd   : > { %v2104_v14 = vpop.f32.mrf.mxu0 }
 0x5cf   : > { %v1174_v15 = vpop.f32.mrf.mxu0 }
 0x5d1   : > { %v2105_v16 = vpop.f32.mrf.mxu0 }
 0x5d3   : > { %v1295_v17 = vpop.f32.mrf.mxu0 }
 0x5d4   : > { %1430 = vrot.lane.b32.xlu1 %v1295_v17, %s2666_s2  ;;  %s3100_s2 = scalar_lea.sflag [#allocation19], %s1703_s29 }
 0x5d5   : > { %v2116_v18 = vpop.f32.mrf.mxu0 }
 0x5d7   : > { %v1298_v19 = vpop.f32.mrf.mxu0 }
 0x5d9   : > { %v2117_v20 = vpop.f32.mrf.mxu0 }
 0x600   : > { %v1419_v21 = vpop.f32.mrf.mxu0 }
 0x601   : > { %1434 = vrot.lane.b32.xlu0 %v1419_v21, %s2667_s27  ;;  %s2517_s27 = scalar_lea.vmem %s3091_s26, 256 }
 0x602   : > { %v2128_v22 = vpop.f32.mrf.mxu0  ;;  %p2518_p7 = scmp.ne.s32.totalorder %s3091_s26, %s2517_s27  ;;  %p2525_p2 = scmp.lt.s32.totalorder %s2523_s4, %s2517_s27 }
 0x604   : > { %v1422_v23 = vpop.f32.mrf.mxu0  ;;  %p2519_p11 = pnand %p2518_p7, %p3270_p8  ;;  %p2526_p13 = por %p2525_p2, %p2524_p1 }
 0x606   : > { %v2129_v24 = vpop.f32.mrf.mxu0  ;;  %p2520_p0 = pneg %p2519_p11 }
 0x608   : > { %p2527_p9 = pnand %p2526_p13, %p2520_p0 }
 0x63e   : > { %v1427_v25 = vpop.permute.xlu0 %1426 }
 0x63f   : > { %v1437_v27 = vsel %vm945_vm3, %v1047_v6, %v1427_v25 }
 0x646   : > { %v1431_v26 = vpop.permute.xlu1 %1430 }
 0x647   : > { %v1439_v28 = vsel %vm1438_vm6, %v1437_v27, %v1431_v26 }
 0x673   : > { %v1435_v29 = vpop.permute.xlu0 %1434 }
 0x674   : > { %v1441_v30 = vsel %vm1440_vm7, %v1439_v28, %v1435_v29 }
 0x675   : > { %1442 = vst.msk [vmem:[%s3047_s20] sm:$0xff] %vm712_vm0, %v1441_v30  ;;  %v1443_v31 = vpack.c.bf16 %v1441_v30, %v1441_v30 }
 0x677   : > { %2135 = vmatmul.mubr.msk.bf16.vlgmr.msra.gmra.mxu1 %vm712_vm0, %v1443_v31 }
 0x678   : > { %2154 = vmatprep.mubr.msk.bf16.mxu1 %vm2661_vm1, %v2660_v9  ;;  %2147 = vmatpush3.bf16.msra.mxu1 %v2309_v56 }
 0x679   : > { %2148 = vmatprep.subr.bf16.mxu1 %v2660_v9 }
 0x67c   : > { %2149 = vmatpush3.bf16.msra.mxu1 %v2310_v57 }
 0x67d   : > { %2150 = vmatprep.subr.bf16.mxu1 %v2660_v9 }
 0x680   : > { %2151 = vmatpush3.bf16.msra.mxu1 %v2311_v58 }
 0x681   : > { %2152 = vmatprep.subr.bf16.mxu1 %v2660_v9 }
 0x684   : > { %2153 = vmatpush3.bf16.msra.mxu1 %v2312_v59 }
 0x737   : > { %v1504_v33 = vpop.f32.mrf.mxu1 }
 0x738   : > { %v1505_v34 = vadd.f32 %v1996_v32, %v1504_v33 }
 0x739   : > { %v2136_v35 = vpop.f32.mrf.mxu1 }
 0x73a   : > { %v3058_v36 = vadd.f32 %v1505_v34, %v2922_v0 }
 0x73b   : > { %v1507_v37 = vpop.f32.mrf.mxu1 }
 0x73c   : > { %v1513_v38 = vsel %vm712_vm0, %v3058_v36, 0.0 }
 0x73d   : > { %1514 = vadd.xlane.f32.xlu1 %v1513_v38  ;;  %v2137_v39 = vpop.f32.mrf.mxu1 }
 0x7c6   : > { %v1515_v40 = vpop.xlane.xlu1 %1514 }
 0x7c7   : > { %v1516_v41 = vmul.f32 0.03125, %v1515_v40 }
 0x7c9   : > { %v1517_v42 = vsub.f32 %v3058_v36, %v1516_v41 }
 0x7cb   : > { %v1518_v43 = vmul.f32 %v1517_v42, %v1517_v42 }
 0x7cd   : > { %v1519_v44 = vsel %vm712_vm0, %v1518_v43, 0.0 }
 0x7ce   : > { %1520 = vadd.xlane.f32.xlu0 %v1519_v44 }
 0x857   : > { %v1521_v0 = vpop.xlane.xlu0 %1520 }
 0x858   : > { %v1522_v47 = vmul.f32 0.03125, %v1521_v0 }
 0x85a   : > { %v1523_v48 = vadd.f32 1e-06, %v1522_v47 }
 0x85c   : > { %2331 = vrsqrt.f32 %v1523_v48 }
 0x869   : > { %v2332_v49 = vpop.eup %2331 }
 0x86a   : > { %v1525_v51 = vmul.f32 %v2332_v49, %v1517_v42 }
 0x86c   : > { %v1532_v53 = vmul.f32 %v2000_v50, %v1525_v51 }
 0x86e   : > { %v1539_v54 = vadd.f32 %v2001_v52, %v1532_v53 }
 0x870   : > { %v1540_v55 = vpack.c.bf16 %v1539_v54, %v1539_v54 }
 0x872   : > { %2143 = vmatmul.mubr.msk.bf16.vlgmr.msra.gmra.mxu0 %vm712_vm0, %v1540_v55 }
 0x932   : > { %v1601_v61 = vpop.f32.mrf.mxu0 }
 0x933   : > { %v1602_v62 = vadd.f32 %v2002_v60, %v1601_v61 }
 0x934   : > { %v2144_v63 = vpop.f32.mrf.mxu0 }
 0x935   : > { %v1608_v1 = vmul.f32 0.70710677, %v1602_v62  ;;  %v1607_v4 = vmul.f32 0.5, %v1602_v62 }
 0x936   : > { %v1604_v2 = vpop.f32.mrf.mxu0 }
 0x937   : > { %2333 = verf.f32 %v1608_v1 }
 0x938   : > { %v2145_v3 = vpop.f32.mrf.mxu0 }
 0x944   : > { %v2334_v9 = vpop.eup %2333 }
 0x945   : > { %v1610_v5 = vadd.f32 1.0, %v2334_v9 }
 0x947   : > { %v1611_v6 = vmul.f32 %v1610_v5, %v1607_v4 }
 0x949   : > { %v1612_v7 = vpack.c.bf16 %v1611_v6, %v1611_v6 }
 0x94b   : > { %2155 = vmatmul.mubr.msk.bf16.vlgmr.msra.gmra.mxu1 %vm1652_vm8, %v1612_v7 }
 0x94c   : > { %2530 = shalt.err (!%p2527_p9)
}
 0x94d   : > { %s2531_s29 = scalar_lea.hbm %s3098_s22, 256  ;;  %s2535_s24 = scalar_lea.hbm %s3217_s18, 512 }
 0x94e   : > { %p2532_p3 = scmp.ne.s32.totalorder %s3098_s22, %s2531_s29  ;;  %p2536_p6 = scmp.lt.s32.totalorder %s3098_s22, %s3217_s18 }
 0x94f   : > { %p2537_p10 = scmp.lt.s32.totalorder %s2535_s24, %s2531_s29 }
 0x950   : > { %p2533_p5 = pnand %p2532_p3, %p3270_p8 }
 0x951   : > { %p2538_p4 = por %p2537_p10, %p2536_p6 }
 0x952   : > { %p2534_p12 = pneg %p2533_p5 }
 0x954   : > { %p2539_p7 = pnand %p2538_p4, %p2534_p12 }
 0x956   : > { %2542 = shalt.err (!%p2539_p7)
}
 0x957   : > { %s2669_s4 = smov 64   ;;  %s2670_s0 = smov 4  }
 0x958   : > { %2187 = dma.vmem_to_hbm [thread:$0]  (%p3270_p8), %s3091_s26, 256, %s3098_s22, %s3100_s2, %s2669_s4, %s2669_s4, %s2670_s0  }
 0x959   : > { %s2015_s27 = sshll.u32 %s2794_s1, 7  ;;  %s1751_s23 = sshll.u32 %s3047_s20, 4  ;;  %s1752_s23 = int_to_ptr.vmem [resolvable:$true] %s1751_s23 }
 0x95a   : > { %s1749_s29 = scalar_lea.hbm %s3218_s19, %s2015_s27  ;;  %s2543_s24 = scalar_lea.vmem %s1752_s23, 128 }
 0x95b   : > { %p2544_p11 = scmp.ne.s32.totalorder %s1752_s23, %s2543_s24  ;;  %s2671_s28 = smov [#allocation20]  }
 0x95c   : > { %s2547_s6 = sshll.u32 %s2671_s28, 4  ;;  %s2548_s6 = int_to_ptr.vmem [resolvable:$false] %s2547_s6 }
 0x95d   : > { %p2545_p0 = pnand %p2544_p11, %p3270_p8  ;;  %s2549_s7 = scalar_lea.vmem %s2548_s6, 256 }
 0x95e   : > { %p2550_p2 = scmp.lt.s32.totalorder %s1752_s23, %s2548_s6  ;;  %p2551_p13 = scmp.lt.s32.totalorder %s2549_s7, %s2543_s24 }
 0x95f   : > { %p2546_p1 = pneg %p2545_p0 }
 0x960   : > { %p2552_p9 = por %p2551_p13, %p2550_p2 }
 0x962   : > { %p2553_p3 = pnand %p2552_p9, %p2546_p1 }
 0x964   : > { %2556 = shalt.err (!%p2553_p3)
}
 0x965   : > { %s2557_s26 = scalar_lea.hbm %s1749_s29, 128  ;;  %s2561_s4 = scalar_lea.hbm %s3218_s19, 256 }
 0x966   : > { %p2558_p5 = scmp.ne.s32.totalorder %s1749_s29, %s2557_s26  ;;  %p2562_p10 = scmp.lt.s32.totalorder %s1749_s29, %s3218_s19 }
 0x967   : > { %p2563_p4 = scmp.lt.s32.totalorder %s2561_s4, %s2557_s26 }
 0x968   : > { %p2559_p12 = pnand %p2558_p5, %p3270_p8 }
 0x969   : > { %p2564_p7 = por %p2563_p4, %p2562_p10 }
 0x96a   : > { %p2560_p6 = pneg %p2559_p12 }
 0x96c   : > { %p2565_p11 = pnand %p2564_p7, %p2560_p6 }
 0x96e   : > { %2568 = shalt.err (!%p2565_p11)
}
 0x96f   : > { %2188 = dma.vmem_to_hbm [thread:$0]  (%p3270_p8), %s1752_s23, 128, %s1749_s29, %s3100_s2   ;;  %v2006_v8 = vld [vmem:[%s3215_s16] ss:$0 sm:$0xff] }
 0x970   : > { %s3271_s25 = sshll.u32 %s3002_s21, 3  ;;  %s3272_s22 = sld [smem:[#allocation41_spill]] }
 0x971   : > { %s689_s24 = scalar_lea.vmem [#allocation17], %s3271_s25  ;;  %s1699_s2 = scalar_lea.sflag [#allocation7], %s3002_s21 }
 0x972   : > { %s1722_s28 = sshll.u32 %s689_s24, 4  ;;  %s2672_s1 = smov [#allocation17]   ;;  %s3156_s28 = int_to_ptr.vmem [resolvable:$true] %s1722_s28 }
 0x973   : > { %s2569_s29 = scalar_lea.vmem %s3156_s28, 128  ;;  %s2573_s23 = sshll.u32 %s2672_s1, 4  ;;  %s2574_s23 = int_to_ptr.vmem [resolvable:$false] %s2573_s23 }
 0x974   : > { %p2570_p0 = scmp.ne.s32.totalorder %s3156_s28, %s2569_s29  ;;  %p2576_p13 = scmp.lt.s32.totalorder %s3156_s28, %s2574_s23 }
 0x976   : > { %s3154_s4 = scalar_lea.hbm %s3272_s22, %s2015_s27  ;;  %p2571_p1 = pnand %p2570_p0, %p3270_p8 }
 0x977   : > { %s2575_s27 = scalar_lea.vmem %s2574_s23, 256 }
 0x978   : > { %p2572_p2 = pneg %p2571_p1  ;;  %p2577_p9 = scmp.lt.s32.totalorder %s2575_s27, %s2569_s29 }
 0x97a   : > { %p2578_p3 = por %p2577_p9, %p2576_p13 }
 0x97c   : > { %p2579_p5 = pnand %p2578_p3, %p2572_p2 }
 0xa0b   : > { %v1690_v10 = vpop.f32.mrf.mxu1 }
 0xa0c   : > { %v1691_v11 = vadd.f32 %v2006_v8, %v1690_v10 }
 0xa0d   : > { %v2156_v12 = vpop.f32.mrf.mxu1 }
 0xa0e   : > { %v1696_v13 = vadd.f32 %v1691_v11, %v3058_v36 }
 0xa0f   : > { %v1693_v14 = vpop.f32.mrf.mxu1 }
 0xa10   : > { %1697 = vst.msk [vmem:[%s689_s24] sm:$0xff] %vm712_vm0, %v1696_v13 }
 0xa11   : > { %v2157_v15 = vpop.f32.mrf.mxu1 }
 0xa12   : > { %2582 = shalt.err (!%p2579_p5)
}
 0xa13   : > { %s2583_s0 = scalar_lea.hbm %s3154_s4, 128  ;;  %s2587_s6 = scalar_lea.hbm %s3272_s22, 256 }
 0xa14   : > { %p2584_p12 = scmp.ne.s32.totalorder %s3154_s4, %s2583_s0  ;;  %p2588_p4 = scmp.lt.s32.totalorder %s3154_s4, %s3272_s22 }
 0xa15   : > { %p2589_p7 = scmp.lt.s32.totalorder %s2587_s6, %s2583_s0 }
 0xa16   : > { %p2585_p6 = pnand %p2584_p12, %p3270_p8 }
 0xa17   : > { %p2590_p11 = por %p2589_p7, %p2588_p4 }
 0xa18   : > { %p2586_p10 = pneg %p2585_p6 }
 0xa1a   : > { %p2591_p0 = pnand %p2590_p11, %p2586_p10 }
 0xa1c   : > { %2594 = shalt.err (!%p2591_p0)
}
 0xa1d   : > { %2186 = dma.vmem_to_hbm [thread:$0]  (%p3270_p8), %s3156_s28, 128, %s3154_s4, %s1699_s2  }
 0xa1e PF: > { %s3273_s24 = sld [smem:[#allocation29_spill]] }
 0xa1f   : > { %s3274_s26 = sld [smem:[#allocation27_spill]] }
 0xa20   : > { %s3275_s20 = sld [smem:[#allocation32_spill]] }
 0xa24   : > { %p2238_p1 = scmp.ge.s32.totalorder %s3273_s24, 2 }
 0xa25   : > { %s1763_s29 = sand.u32 1, %s3274_s26  }
 0xa26   : > { %p3276_p2 = scmp.ne.s32.totalorder %s3275_s20, 0  ;;  %s1764_s1 = scalar_lea.sflag [#allocation7], %s1763_s29 }
 0xa28   : > { %p2215_p13 = pnand %p2238_p1, %p3276_p2 }
 0xa2a   : > { %p2216_p9 = pneg %p2215_p13 }
 0xa2c   : > { %2628 = dma.done.wait (%p2216_p9), %s1764_s1, 128  }
 0xa2d   : > { %2630 = vsyncadd (%p2216_p9), %s1764_s1, 4294967168  ;;  %s3277_s23 = sadd.s32 4294967294, %s3273_s24  }
 0xa2e   : > { %s1772_s27 = sand.u32 1, %s3277_s23  }
 0xa2f   : > { %s1773_s0 = scalar_lea.sflag [#allocation19], %s1772_s27 }
 0xa30   : > { %2632 = dma.done.wait (%p2216_p9), %s1773_s0, 384  }
 0xa31   : > { %2634 = vsyncadd (%p2216_p9), %s1773_s0, 4294966912  ;;  %s3278_s21 = sld [smem:[#allocation30_spill]]  ;;  %s3281_s0 = smov %s2641_s30 }
 0xa32   : > { %s3279_s3 = sld [smem:[#allocation28_spill]] }
 0xa33   : > { %s3280_s20 = sld [smem:[#allocation31_spill]] }
 0xa37   : > { %p37_p8 = scmp.ge.s32.totalorder %s3278_s21, 4  }
 0xa38   : > { %s3282_s30 = smov %s3279_s3 }
 0xa39   :  { %39 = sbr.rel (!%p37_p8) target bundleno = 19 (0x13), region = 187 }
 0xa3e   :  { %1787 = vsyncpa [#allocation6], 1 }
 0xa3f   :  { %1789 = vsyncpa [#allocation6 + $0x1], 1 }
 0xa40   :  { %1790 = vsyncpa [#allocation9], 1 }
 0xa41   :  { %1791 = vsyncpa [#allocation12], 1 }
 0xa42   :  { %1792 = vsyncpa [#allocation15], 1 }
 0xa43   :  { %1793 = vsyncpa [#allocation7], 1 }
 0xa44   :  { %1795 = vsyncpa [#allocation7 + $0x1], 1 }
 0xa45   :  { %1796 = vsyncpa [#allocation19], 1 }
 0xa46   :  { %1798 = vsyncpa [#allocation19 + $0x1], 1 }

// kernel: tpu_custom_call.1
= control target key start
LH: loop header
LB: loop body
LE: loop exit
PB: predicated region body
PF: predicated region fallthrough
CT: control target
= control target key end

     0   :  { %s3203_s0 = inlined_call_operand.vmem [shape: f32[2,8,32], index: 0, kind: input, shape index: {}]   ;;  %s3204_s1 = inlined_call_operand.hbm [shape: f32[1,32], index: 1, kind: input, shape index: {}]   ;;  %s3205_s2 = inlined_call_operand.hbm [shape: f32[1,32], index: 2, kind: input, shape index: {}]   ;;  %s3206_s3 = inlined_call_operand.vmem [shape: bf16[32,32], index: 3, kind: input, shape index: {}]   ;;  %s3207_s4 = inlined_call_operand.hbm [shape: f32[1,32], index: 4, kind: input, shape index: {}]   ;;  %s3208_s5 = inlined_call_operand.vmem [shape: bf16[32,32], index: 5, kind: input, shape index: {}]   ;;  %s3209_s6 = inlined_call_operand.hbm [shape: f32[1,32], index: 6, kind: input, shape index: {}]   ;;  %s3210_s7 = inlined_call_operand.hbm [shape: bf16[32,32], index: 7, kind: input, shape index: {}]   ;;  %s3211_s8 = inlined_call_operand.hbm [shape: f32[1,32], index: 8, kind: input, shape index: {}]   ;;  %s3212_s9 = inlined_call_operand.vmem [shape: bf16[32,32], index: 9, kind: input, shape index: {}]   ;;  %s3213_s10 = inlined_call_operand.vmem [shape: f32[1,32], index: 10, kind: input, shape index: {}]   ;;  %s3214_s11 = inlined_call_operand.vmem [shape: f32[1,32], index: 11, kind: input, shape index: {}]   ;;  %s3215_s12 = inlined_call_operand.vmem [shape: f32[1,32], index: 12, kind: input, shape index: {}]   ;;  %s3216_s13 = inlined_call_operand.hbm [shape: bf16[32,64], index: 13, kind: input, shape index: {}]   ;;  %s3217_s14 = inlined_call_operand.vmem [shape: f32[1,64], index: 14, kind: input, shape index: {}]   ;;  %s3218_s15 = inlined_call_operand.vmem [shape: bf16[64,32], index: 15, kind: input, shape index: {}]   ;;  %s3219_s16 = inlined_call_operand.vmem [shape: f32[1,32], index: 16, kind: input, shape index: {}]   ;;  %s3220_s17 = inlined_call_operand.hbm [shape: f32[2,8,32], index: 17, kind: output, shape index: {0}]   ;;  %s3221_s18 = inlined_call_operand.hbm [shape: bf16[2,4,8,8], index: 18, kind: output, shape index: {1}]   ;;  %s3222_s19 = inlined_call_operand.hbm [shape: f32[2,8,32], index: 19, kind: output, shape index: {2}]  }
   0x1   :  { %3237 = sst [smem:[#allocation33_spill]] %s3203_s0 }
   0x2   :  { %3238 = sst [smem:[#allocation34_spill]] %s3204_s1 }
   0x3   :  { %3239 = sst [smem:[#allocation35_spill]] %s3205_s2 }
   0x4   :  { %3240 = sst [smem:[#allocation36_spill]] %s3206_s3 }
   0x5   :  { %3241 = sst [smem:[#allocation37_spill]] %s3207_s4 }
   0x6   :  { %3242 = sst [smem:[#allocation38_spill]] %s3208_s5 }
   0x7   :  { %3243 = sst [smem:[#allocation39_spill]] %s3209_s6 }
   0x8   :  { %3244 = sst [smem:[#allocation40_spill]] %s3210_s7 }
   0x9   :  { %3245 = sst [smem:[#allocation41_spill]] %s3220_s17 }
   0xa   :  { %25 = vsyncpa [#allocation6], 0 }
   0xb   :  { %26 = vsyncpa [#allocation9], 0 }
   0xc   :  { %27 = vsyncpa [#allocation12], 0 }
   0xd   :  { %28 = vsyncpa [#allocation15], 0 }
   0xe   :  { %29 = vsyncpa [#allocation7], 0 }
   0xf   :  { %31 = vsyncpa [#allocation7 + $0x1], 0 }
  0x10   :  { %32 = vsyncpa [#allocation19], 0 }
  0x11   :  { %34 = vsyncpa [#allocation19 + $0x1], 0  ;;  %s2777_s0 = smov 0   ;;  %s2779_s30 = smov 0  }
  0x12   :  { %s2781_s20 = smov 0   ;;  %s2783_s21 = smov 0  }
  0x13 LB: > { %3246 = sst [smem:[#allocation27_spill]] %s2641_s0  ;;  %s2798_s1 = sadd.s32 4294967295, %s2653_s21   ;;  %s2653_s21 = sphi %s2783_s21, %s3282_s21   ;;  %s2649_s20 = sphi %s2781_s20, %s3284_s20   ;;  %s2645_s30 = sphi %s2779_s30, %s3286_s30   ;;  %s2641_s0 = sphi %s2777_s0, %s3285_s0  }
  0x14   : > { %3247 = sst [smem:[#allocation28_spill]] %s2649_s20  ;;  %s3224_s22 = sadd.s32 4294967294, %s2653_s21  }
  0x15   : > { %3248 = sst [smem:[#allocation29_spill]] %s2653_s21  ;;  %s2802_s2 = sadd.s32 1, %s2653_s21  }
  0x16   : > { %3249 = sst [smem:[#allocation30_spill]] %s2802_s2  ;;  %s409_s23 = sadd.s32 1, %s2649_s20 }
  0x17   : > { %s406_s24 = ssub.s32 %s2653_s21, %s2802_s2  ;;  %p419_p0 = scmp.ne.s32.totalorder %s2649_s20, %s2645_s30 }
  0x18   : > { %p407_p1 = scmp.eq.s32.totalorder %s406_s24, 0  ;;  %p420_p2 = scmp.eq.s32.totalorder %s2798_s1, 1 }
  0x19   : > { %p425_p3 = scmp.ne.s32.totalorder %s2645_s30, %s2641_s0  ;;  %p426_p4 = scmp.eq.s32.totalorder %s3224_s22, 1 }
  0x1a   : > { %s2815_s25 = scalar_select %p407_p1, %s2649_s20, %s409_s23  }
  0x1b   : > { %p2817_p5 = por %p420_p2, %p419_p0  ;;  %p2821_p6 = por %p426_p4, %p425_p3 }
  0x1c   : > { %3250 = sst [smem:[#allocation31_spill]] %s2815_s25  ;;  %p1945_p7 = scmp.ge.s32.totalorder %s2653_s21, 1 }
  0x1d   : > { %s3251_s3 = scalar_select %p2817_p5, 1, 0 }
  0x1e   : > { %s3252_s26 = scalar_select %p2821_p6, 1, 0 }
  0x1f   : > { %p485_p8 = scmp.lt.s32.totalorder %s2653_s21, 3  ;;  %p3232_p9 = scmp.eq.s32.totalorder %s2798_s1, 0 }
  0x20   : > { %3253 = sst [smem:[#allocation32_spill]] %s3252_s26  ;;  %s2655_s28 = smov [#allocation8]  }
  0x21   : > { %p2828_p10 = pnand %p1945_p7, %p485_p8  ;;  %s509_s29 = sshll.u32 %s2655_s28, 4  ;;  %s510_s29 = int_to_ptr.vmem [resolvable:$true] %s509_s29 }
  0x22   : > { %s2656_s23 = smov [#allocation11]   ;;  %s2657_s25 = smov [#allocation14]  }
  0x23   : > { %s3254_s27 = scalar_select %p2828_p10, 1, 0 }
  0x24   : > { %p2196_p11 = pneg %p2828_p10  ;;  %s537_s24 = sshll.u32 %s2656_s23, 4  ;;  %s538_s24 = int_to_ptr.vmem [resolvable:$true] %s537_s24 }
  0x25   : > { %s561_s20 = sshll.u32 %s2657_s25, 4  ;;  %s2350_s28 = scalar_lea.vmem %s510_s29, 16  ;;  %s2840_s20 = int_to_ptr.vmem [resolvable:$true] %s561_s20 }
  0x26   : > { %p2836_p12 = pnand %p3232_p9, %p2196_p11  ;;  %p2351_p0 = scmp.ne.s32.totalorder %s510_s29, %s2350_s28 }
  0x27   : > { %s2357_s23 = scalar_lea.vmem %s510_s29, 32  ;;  %p2358_p3 = scmp.lt.s32.totalorder %s510_s29, %s510_s29 }
  0x28   : > { %p2844_p13 = pneg %p2836_p12  ;;  %p2359_p4 = scmp.lt.s32.totalorder %s2357_s23, %s2350_s28 }
  0x2a   : > { %p2353_p1 = pnand %p2351_p0, %p2844_p13  ;;  %p2360_p7 = por %p2359_p4, %p2358_p3 }
  0x2c   : > { %p2354_p2 = pneg %p2353_p1 }
  0x2e   : > { %p2361_p8 = pnand %p2360_p7, %p2354_p2 }
  0x30   : > { %2364 = shalt.err (!%p2361_p8)
}
  0x31   : > { %s3257_s0 = sld [smem:[#allocation35_spill]]  ;;  %s2376_s21 = scalar_lea.vmem %s538_s24, 16 }
  0x32   : > { %p2377_p11 = scmp.ne.s32.totalorder %s538_s24, %s2376_s21  ;;  %s2383_s17 = scalar_lea.vmem %s538_s24, 32 }
  0x33   : > { %p2384_p0 = scmp.lt.s32.totalorder %s538_s24, %s538_s24  ;;  %p2385_p1 = scmp.lt.s32.totalorder %s2383_s17, %s2376_s21 }
  0x34   : > { %p2379_p9 = pnand %p2377_p11, %p2844_p13 }
  0x35   : > { %p2386_p5 = por %p2385_p1, %p2384_p0 }
  0x36   : > { %p2380_p6 = pneg %p2379_p9 }
  0x37   : > { %2202 = dma.hbm_to_vmem [thread:$0]  (!%p2836_p12), %s3257_s0, 16, %s510_s29, [#allocation9]  }
  0x38   : > { %p2387_p10 = pnand %p2386_p5, %p2380_p6 }
  0x3a   : > { %2390 = shalt.err (!%p2387_p10)
}
  0x3b   : > { %s3258_s6 = sld [smem:[#allocation39_spill]]  ;;  %s2402_s0 = scalar_lea.vmem %s2840_s20, 16 }
  0x3c   : > { %p2403_p2 = scmp.ne.s32.totalorder %s2840_s20, %s2402_s0  ;;  %s2409_s17 = scalar_lea.vmem %s2840_s20, 32 }
  0x3d   : > { %p2410_p5 = scmp.lt.s32.totalorder %s2840_s20, %s2840_s20  ;;  %p2411_p6 = scmp.lt.s32.totalorder %s2409_s17, %s2402_s0 }
  0x3e   : > { %p2405_p9 = pnand %p2403_p2, %p2844_p13 }
  0x3f   : > { %p2412_p10 = por %p2411_p6, %p2410_p5 }
  0x40   : > { %p2406_p3 = pneg %p2405_p9 }
  0x41   : > { %2208 = dma.hbm_to_vmem [thread:$0]  (!%p2836_p12), %s3258_s6, 16, %s538_s24, [#allocation12]  }
  0x42   : > { %p2413_p4 = pnand %p2412_p10, %p2406_p3 }
  0x44   : > { %2416 = shalt.err (!%p2413_p4)
}
  0x45   : > { %2214 = dma.hbm_to_vmem [thread:$0]  (!%p2836_p12), %s3211_s8, 16, %s2840_s20, [#allocation15]  }
  0x46   : > { %s2658_s29 = smov [#allocation5]   ;;  %s2659_s25 = smov [#allocation10]  }
  0x47   : > { %s498_s24 = sshll.u32 %s2658_s29, 4  ;;  %s523_s28 = sshll.u32 %s2659_s25, 4  ;;  %s499_s24 = int_to_ptr.vmem [resolvable:$true] %s498_s24  ;;  %s524_s28 = int_to_ptr.vmem [resolvable:$true] %s523_s28 }
  0x48   : > { %s2428_s23 = scalar_lea.vmem %s499_s24, 16  ;;  %s2435_s0 = scalar_lea.vmem %s499_s24, 32 }
  0x49   : > { %p2429_p7 = scmp.ne.s32.totalorder %s499_s24, %s2428_s23  ;;  %p2436_p0 = scmp.lt.s32.totalorder %s499_s24, %s499_s24 }
  0x4a   : > { %p2437_p1 = scmp.lt.s32.totalorder %s2435_s0, %s2428_s23 }
  0x4b   : > { %p2431_p8 = pnand %p2429_p7, %p2844_p13 }
  0x4c   : > { %p2438_p2 = por %p2437_p1, %p2436_p0 }
  0x4d   : > { %p2432_p11 = pneg %p2431_p8 }
  0x4f   : > { %p2439_p9 = pnand %p2438_p2, %p2432_p11 }
  0x51   : > { %2442 = shalt.err (!%p2439_p9)
}
  0x52   : > { %s3259_s21 = sld [smem:[#allocation34_spill]]  ;;  %s2454_s26 = scalar_lea.vmem %s524_s28, 16 }
  0x53   : > { %p2455_p3 = scmp.ne.s32.totalorder %s524_s28, %s2454_s26  ;;  %s2461_s29 = scalar_lea.vmem %s524_s28, 32 }
  0x54   : > { %p2462_p10 = scmp.lt.s32.totalorder %s524_s28, %s524_s28  ;;  %p2463_p4 = scmp.lt.s32.totalorder %s2461_s29, %s2454_s26 }
  0x55   : > { %p2457_p5 = pnand %p2455_p3, %p2844_p13 }
  0x56   : > { %p2464_p7 = por %p2463_p4, %p2462_p10 }
  0x57   : > { %p2458_p6 = pneg %p2457_p5 }
  0x58   : > { %2199 = dma.hbm_to_vmem [thread:$0]  (!%p2836_p12), %s3259_s21, 16, %s499_s24, [#allocation6]  }
  0x59   : > { %p2465_p8 = pnand %p2464_p7, %p2458_p6 }
  0x5b   : > { %2468 = shalt.err (!%p2465_p8)
}
  0x5c   : > { %s3260_s4 = sld [smem:[#allocation37_spill]]  ;;  %s2660_s24 = smov [#allocation13]  }
  0x5d   : > { %s547_s0 = sshll.u32 %s2660_s24, 4  ;;  %s548_s0 = int_to_ptr.vmem [resolvable:$true] %s547_s0 }
  0x5e   : > { %s2480_s17 = scalar_lea.vmem %s548_s0, 256  ;;  %p2488_p2 = scmp.lt.s32.totalorder %s548_s0, %s548_s0 }
  0x5f   : > { %p2481_p11 = scmp.ne.s32.totalorder %s548_s0, %s2480_s17  ;;  %p2489_p9 = scmp.lt.s32.totalorder %s2480_s17, %s2480_s17 }
  0x61   : > { %p2483_p0 = pnand %p2481_p11, %p2844_p13  ;;  %p2490_p3 = por %p2489_p9, %p2488_p2 }
  0x62   : > { %2205 = dma.hbm_to_vmem [thread:$0]  (!%p2836_p12), %s3260_s4, 16, %s524_s28, [#allocation9]  }
  0x63   : > { %p2484_p1 = pneg %p2483_p0 }
  0x65   : > { %p2491_p5 = pnand %p2490_p3, %p2484_p1 }
  0x67   : > { %2494 = shalt.err (!%p2491_p5)
}
  0x68   : > { %s2661_s20 = smov 64   ;;  %s2662_s21 = smov 4  }
  0x69   : > { %s3261_s7 = sld [smem:[#allocation40_spill]]  ;;  %s2663_s29 = smov [#allocation16]  }
  0x6a   : > { %s583_s25 = sshll.u32 %s2663_s29, 4  ;;  %s584_s25 = int_to_ptr.vmem [resolvable:$true] %s583_s25 }
  0x6b   : > { %s2506_s23 = scalar_lea.vmem %s584_s25, 256  ;;  %p2514_p7 = scmp.lt.s32.totalorder %s584_s25, %s584_s25 }
  0x6c   : > { %p2507_p6 = scmp.ne.s32.totalorder %s584_s25, %s2506_s23  ;;  %p2515_p8 = scmp.lt.s32.totalorder %s2506_s23, %s2506_s23 }
  0x6e   : > { %p2509_p10 = pnand %p2507_p6, %p2844_p13  ;;  %p2516_p11 = por %p2515_p8, %p2514_p7 }
  0x6f   : > { %2211 = dma.hbm_to_vmem [thread:$0]  (!%p2836_p12), %s3261_s7, 256, %s548_s0, [#allocation12], %s2661_s20, %s2661_s20, %s2662_s21  }
  0x70   : > { %p2510_p4 = pneg %p2509_p10 }
  0x72   : > { %p2517_p0 = pnand %p2516_p11, %p2510_p4 }
  0x74   : > { %2520 = shalt.err (!%p2517_p0)
}
  0x75   : > { %2217 = dma.hbm_to_vmem [thread:$0]  (!%p2836_p12), %s3216_s13, 256, %s584_s25, [#allocation15], %s2661_s20, %s2661_s20, %s2662_s21  }
  0x76   : > { %p3262_p1 = scmp.ne.s32.totalorder %s3254_s27, 0 }
  0x77   : > { %p3263_p2 = scmp.eq.s32.totalorder (!%p3262_p1), %s2798_s1, 0 }
  0x78   : > { %615 = sbr.rel (%p3262_p1) target bundleno = 2600 (0xa28), region = 88 }
  0x7d   : > { %2616 = dma.done.wait (%p3263_p2), [#allocation6], 16   ;;  %p3264_p13 = pmov %p3263_p2 }
  0x7e   : > { %p3265_p9 = pmov %p3263_p2 }
  0x7f   : > { %2618 = vsyncadd (%p3264_p13), [#allocation6], 4294967280 }
  0x80   : > { %2620 = dma.done.wait (%p3265_p9), [#allocation9], 32   ;;  %p3266_p3 = pmov %p3263_p2 }
  0x81   : > { %p3267_p5 = pmov %p3263_p2 }
  0x82   : > { %2622 = vsyncadd (%p3266_p3), [#allocation9], 4294967264 }
  0x83   : > { %2624 = dma.done.wait (%p3267_p5), [#allocation12], 272   ;;  %p3268_p12 = pmov %p3263_p2 }
  0x84   : > { %p3269_p6 = pmov %p3263_p2 }
  0x85   : > { %2626 = vsyncadd (%p3268_p12), [#allocation12], 4294967024 }
  0x86   : > { %2628 = dma.done.wait (%p3269_p6), [#allocation15], 272   ;;  %p3270_p10 = pmov %p3263_p2 }
  0x87   : > { %p704_p4 = scmp.lt.s32.totalorder %s2798_s1, 1  ;;  %s3271_s20 = sld [smem:[#allocation33_spill]]  ;;  %vm712_vm0 = vcmask 261120   ;;  %v2295_v8 = vld [vmem:[#allocation13 + $0x8] sm:$0xff]   ;;  %v2664_v9 = vmov 0.0   ;;  %v2297_v11 = vld [vmem:[#allocation13] sm:$0xff]  }
  0x88   : > { %2630 = vsyncadd (%p3270_p10), [#allocation15], 4294967024  ;;  %s3272_s5 = sld [smem:[#allocation38_spill]]  ;;  %2062 = vmatprep.subr.bf16.mxu0 %v2664_v9  ;;  %2070 = vmatprep.subr.bf16.mxu1 %v2664_v9  ;;  %vm2665_vm1 = vmmov 0   ;;  %v1966_v16 = vld [vmem:[#allocation5] ss:$0 sm:$0xff] }
  0x89   : > { %s705_s22 = scalar_select %p704_p4, %s2798_s1, 1  ;;  %2071 = vmatpush3.bf16.msra.mxu1 %v2295_v8  ;;  %2066 = vmatprep.mubr.msk.bf16.mxu0 %vm2665_vm1, %v2664_v9  ;;  %v1967_v18 = vld [vmem:[#allocation8] ss:$0 sm:$0xff]  ;;  %v1968_v24 = vld [vmem:[#allocation11] ss:$0 sm:$0xff]  ;;  %vm936_vm2 = vcmask 257024  }
  0x8a   : > { %2072 = vmatprep.subr.bf16.mxu1 %v2664_v9  ;;  %2074 = vmatprep.mubr.msk.bf16.mxu1 %vm2665_vm1, %v2664_v9  ;;  %s3273_s17 = sld [smem:[#allocation36_spill]]  ;;  %v1972_v25 = vld [vmem:[#allocation14] ss:$0 sm:$0xff]  ;;  %v1976_v38 = vld [vmem:[#allocation10] ss:$0 sm:$0xff]  ;;  %vm945_vm3 = vcmask 64512  }
  0x8b   : > { %s1965_s2 = sshll.u32 %s705_s22, 3  ;;  %vm1009_vm4 = vcmask 1043456   ;;  %s2666_s27 = smov 112   ;;  %vm1004_vm5 = vcmask 60416   ;;  %vm1438_vm6 = vcmask 130048   ;;  %vm1440_vm7 = vcmask 195584  }
  0x8c   : > { %s2667_s0 = smov 120   ;;  %s2669_s22 = smov 8   ;;  %vm1656_vm8 = vcmask 523264  }
  0x8d   : > { %s707_s21 = scalar_lea.vmem %s3271_s20, %s1965_s2  ;;  %2073 = vmatpush3.bf16.msra.mxu1 %v2297_v11  ;;  %s2668_s20 = smov 104  }
  0x8e   : > { %v2926_v0 = vld [vmem:[%s707_s21] sm:$0xff]  ;;  %v2294_v7 = vld [vmem:[%s3272_s5 + $0x8] sm:$0xff]   ;;  %2086 = vmatprep.subr.bf16.mxu1 %v2664_v9  ;;  %s3006_s21 = sand.u32 1, %s2645_s30   ;;  %s2670_s2 = smov 16  }
  0x8f   : > { %v713_v1 = vsel %vm712_vm0, %v2926_v0, 0.0  ;;  %2063 = vmatpush3.bf16.msra.mxu0 %v2294_v7  ;;  %v2296_v10 = vld [vmem:[%s3272_s5] sm:$0xff]   ;;  %s1963_s26 = sshll.u32 %s3006_s21, 4  ;;  %s1707_s29 = sand.u32 1, %s2798_s1  }
  0x90   : > { %714 = vadd.xlane.f32.xlu0 %v713_v1  ;;  %2064 = vmatprep.subr.bf16.mxu0 %v2664_v9  ;;  %v2298_v21 = vld [vmem:[%s3273_s17 + $0x8] sm:$0xff]   ;;  %v2299_v23 = vld [vmem:[%s3273_s17] sm:$0xff]   ;;  %s3010_s28 = scalar_lea.vmem [#allocation18], %s1963_s26  ;;  %s2025_s25 = sshll.u32 %s2798_s1, 8 }
  0x91   : > { %s1739_s26 = sshll.u32 %s3010_s28, 4  ;;  %p3274_p8 = scmp.ne.s32.totalorder %s3251_s3, 0  ;;  %s3095_s26 = int_to_ptr.vmem [resolvable:$true] %s1739_s26 }
  0x93   : > { %2065 = vmatpush3.bf16.msra.mxu0 %v2296_v10 }
  0x94   : > { %2078 = vmatprep.subr.bf16.mxu0 %v2664_v9 }
 0x119   : > { %v715_v2 = vpop.xlane.xlu0 %714 }
 0x11a   : > { %v717_v3 = vmul.f32 0.03125, %v715_v2 }
 0x11c   : > { %v718_v4 = vsub.f32 %v2926_v0, %v717_v3 }
 0x11e   : > { %v719_v5 = vmul.f32 %v718_v4, %v718_v4 }
 0x120   : > { %v720_v6 = vsel %vm712_vm0, %v719_v5, 0.0 }
 0x121   : > { %721 = vadd.xlane.f32.xlu0 %v720_v6 }
 0x1aa   : > { %v722_v12 = vpop.xlane.xlu0 %721 }
 0x1ab   : > { %v723_v13 = vmul.f32 0.03125, %v722_v12 }
 0x1ad   : > { %v724_v14 = vadd.f32 1e-06, %v723_v13 }
 0x1af   : > { %2317 = vrsqrt.f32 %v724_v14 }
 0x1bc   : > { %v2318_v15 = vpop.eup %2317 }
 0x1bd   : > { %v726_v17 = vmul.f32 %v2318_v15, %v718_v4 }
 0x1bf   : > { %v733_v19 = vmul.f32 %v1966_v16, %v726_v17 }
 0x1c1   : > { %v740_v20 = vadd.f32 %v1967_v18, %v733_v19 }
 0x1c3   : > { %v741_v22 = vpack.c.bf16 %v740_v20, %v740_v20 }
 0x1c5   : > { %2067 = vmatmul.mubr.msk.bf16.vlgmr.msra.gmra.mxu0 %vm712_vm0, %v741_v22  ;;  %2075 = vmatmul.mubr.msk.bf16.vlgmr.msra.gmra.mxu1 %vm712_vm0, %v741_v22 }
 0x1c6   : > { %2079 = vmatpush3.bf16.msra.mxu0 %v2298_v21  ;;  %2082 = vmatprep.mubr.msk.bf16.mxu0 %vm2665_vm1, %v2664_v9 }
 0x1c7   : > { %2080 = vmatprep.subr.bf16.mxu0 %v2664_v9  ;;  %2088 = vmatprep.mubr.msk.bf16.mxu1 %vm2665_vm1, %v2664_v9 }
 0x1ca   : > { %2081 = vmatpush3.bf16.msra.mxu0 %v2299_v23 }
 0x1cb   : > { %2092 = vmatprep.subr.bf16.mxu0 %v2664_v9 }
 0x1cd   : > { %2083 = vmatmul.mubr.msk.bf16.vlgmr.msra.gmra.mxu0 %vm712_vm0, %v741_v22 }
 0x1ce   : > { %2094 = vmatprep.mubr.msk.bf16.mxu0 %vm2665_vm1, %v2664_v9 }
 0x285   : > { %v802_v26 = vpop.f32.mrf.mxu0  ;;  %v865_v27 = vpop.f32.mrf.mxu1 }
 0x286   : > { %v803_v28 = vadd.f32 %v1968_v24, %v802_v26  ;;  %v866_v29 = vadd.f32 %v1972_v25, %v865_v27 }
 0x287   : > { %v2068_v30 = vpop.f32.mrf.mxu0  ;;  %v2076_v31 = vpop.f32.mrf.mxu1 }
 0x288   : > { %v938_v32 = vpack.c.bf16 %v803_v28, %v803_v28  ;;  %v940_v33 = vpack.c.bf16 %v866_v29, %v866_v29 }
 0x289   : > { %v805_v34 = vpop.f32.mrf.mxu0  ;;  %v868_v35 = vpop.f32.mrf.mxu1 }
 0x28a   : > { %939 = vst.msk [vmem:[#allocation3] sm:$0xf] %vm936_vm2, %v938_v32  ;;  %941 = vst.msk [vmem:[#allocation4] sm:$0xf] %vm936_vm2, %v940_v33 }
 0x28b   : > { %v2069_v36 = vpop.f32.mrf.mxu0  ;;  %v2077_v37 = vpop.f32.mrf.mxu1 }
 0x28d   : > { %v928_v39 = vpop.f32.mrf.mxu0 }
 0x28e   : > { %v929_v40 = vadd.f32 %v1976_v38, %v928_v39 }
 0x28f   : > { %v2084_v41 = vpop.f32.mrf.mxu0 }
 0x290   : > { %v934_v42 = vmul.f32 0.35355338, %v929_v40 }
 0x291   : > { %v931_v43 = vpop.f32.mrf.mxu0  ;;  %v943_v44 = vld [vmem:[#allocation3] sm:$0xf]  ;;  %v944_v45 = vld [vmem:[#allocation4] sm:$0xf] }
 0x292   : > { %v935_v46 = vpack.c.bf16 %v934_v42, %v934_v42  ;;  %v950_v47 = vsel %vm945_vm3, %v943_v44, 0  ;;  %v1011_v48 = vsel %vm1009_vm4, %v944_v45, 0  ;;  %v2300_v49 = vld [vmem:[#allocation3] ss:$0 sps:$4 sm:$0xff]   ;;  %v2306_v39 = vld [vmem:[#allocation4] ss:$0 sps:$4 sm:$0xff]  }
 0x293   : > { %v2085_v50 = vpop.f32.mrf.mxu0  ;;  %2087 = vmatpush3.bf16.xpose.msra.mxu1 %v950_v47  ;;  %2093 = vmatpush3.bf16.msra.mxu0 %v1011_v48  ;;  %v2301_v51 = vld [vmem:[#allocation3] ss:$0 sps:$4 sm:$0xff]   ;;  %v2307_v43 = vld [vmem:[#allocation4] ss:$0 sps:$4 sm:$0xff]  }
 0x294   : > { %937 = vst.msk [vmem:[#allocation2] sm:$0xf] %vm936_vm2, %v935_v46  ;;  %1188 = vrot.lane.b32.xlu0 %v2300_v49, %s2666_s27  ;;  %2098 = vmatprep.subr.bf16.mxu1 %v2664_v9  ;;  %v2304_v55 = vld [vmem:[#allocation3] ss:$0 sps:$4 sm:$0xff]   ;;  %v2308_v50 = vld [vmem:[#allocation4] ss:$0 sps:$4 sm:$0xff]  }
 0x295   : > { %1064 = vrot.lane.b32.xlu1 %v2301_v51, %s2667_s0  ;;  %2104 = vmatprep.subr.bf16.mxu0 %v2664_v9 }
 0x29b   : > { %v942_v52 = vld [vmem:[#allocation2] sm:$0xf] }
 0x29c   : > { %v2302_v53 = vld [vmem:[#allocation2] ss:$0 sps:$4 sm:$0xff]   ;;  %2089 = vmatmul.mubr.msk.bf16.vlgmr.msra.gmra.mxu1 %vm945_vm3, %v942_v52 }
 0x29d   : > { %1059 = vrot.lane.b32.xlu1 %v2302_v53, %s2667_s0  ;;  %2100 = vmatprep.mubr.msk.bf16.mxu1 %vm2665_vm1, %v2664_v9  ;;  %v2303_v54 = vld [vmem:[#allocation2] ss:$0 sps:$4 sm:$0xff]  }
 0x29e   : > { %v2305_v56 = vld [vmem:[#allocation2] ss:$0 sps:$4 sm:$0xff]  }
 0x2a1   : > { %1183 = vrot.lane.b32.xlu1 %v2303_v54, %s2666_s27 }
 0x2a5   : > { %1312 = vrot.lane.b32.xlu1 %v2304_v55, %s2668_s20 }
 0x2a9   : > { %1307 = vrot.lane.b32.xlu1 %v2305_v56, %s2668_s20 }
 0x306   : > { %v1189_v59 = vpop.permute.xlu0 %1188 }
 0x307   : > { %v1065_v57 = vpop.permute.xlu1 %1064  ;;  %v1194_v61 = vsel %vm945_vm3, %v1189_v59, 0 }
 0x308   : > { %v1070_v58 = vsel %vm945_vm3, %v1065_v57, 0 }
 0x309   : > { %2099 = vmatpush3.bf16.xpose.msra.mxu1 %v1070_v58 }
 0x30a   : > { %2110 = vmatprep.subr.bf16.mxu1 %v2664_v9 }
 0x30f   : > { %v1060_v60 = vpop.permute.xlu1 %1059 }
 0x310   : > { %2101 = vmatmul.mubr.msk.bf16.vlgmr.msra.gmra.mxu1 %vm945_vm3, %v1060_v60 }
 0x311   : > { %2111 = vmatpush3.bf16.xpose.msra.mxu1 %v1194_v61  ;;  %2112 = vmatprep.mubr.msk.bf16.mxu1 %vm2665_vm1, %v2664_v9 }
 0x312   : > { %2122 = vmatprep.subr.bf16.mxu1 %v2664_v9 }
 0x313   : > { %v1184_v62 = vpop.permute.xlu1 %1183 }
 0x317   : > { %v1313_v63 = vpop.permute.xlu1 %1312 }
 0x318   : > { %v1318_v1 = vsel %vm945_vm3, %v1313_v63, 0  ;;  %2113 = vmatmul.mubr.msk.bf16.vlgmr.msra.gmra.mxu1 %vm945_vm3, %v1184_v62 }
 0x319   : > { %2123 = vmatpush3.bf16.xpose.msra.mxu1 %v1318_v1  ;;  %2124 = vmatprep.mubr.msk.bf16.mxu1 %vm2665_vm1, %v2664_v9 }
 0x31a   : > { %2134 = vmatprep.subr.bf16.mxu1 %v2664_v9 }
 0x31b   : > { %v1308_v2 = vpop.permute.xlu1 %1307 }
 0x320   : > { %2125 = vmatmul.mubr.msk.bf16.vlgmr.msra.gmra.mxu1 %vm945_vm3, %v1308_v2 }
 0x321   : > { %2138 = vmatprep.mubr.msk.bf16.mxu1 %vm2665_vm1, %v2664_v9 }
 0x35c   : > { %v986_v3 = vpop.f32.mrf.mxu1 }
 0x35d   : > { %v992_v4 = vsel %vm945_vm3, %v986_v3, -inf }
 0x35e   : > { %993 = vmax.xlane.f32.xlu1 %v992_v4  ;;  %v2090_v5 = vpop.f32.mrf.mxu1 }
 0x360   : > { %v989_v6 = vpop.f32.mrf.mxu1 }
 0x362   : > { %v2091_v7 = vpop.f32.mrf.mxu1 }
 0x3d0   : > { %v1106_v8 = vpop.f32.mrf.mxu1 }
 0x3d1   : > { %v1112_v10 = vsel %vm945_vm3, %v1106_v8, -inf }
 0x3d2   : > { %1113 = vmax.xlane.f32.xlu0 %v1112_v10  ;;  %v2102_v11 = vpop.f32.mrf.mxu1 }
 0x3d3   : > { %v2309_v11 = vld [vmem:[%s3212_s9 + $0x8] sm:$0xff]  }
 0x3d4   : > { %v1109_v12 = vpop.f32.mrf.mxu1  ;;  %2135 = vmatpush3.bf16.msra.mxu1 %v2309_v11 }
 0x3d5   : > { %v2310_v12 = vld [vmem:[%s3212_s9] sm:$0xff]   ;;  %2136 = vmatprep.subr.bf16.mxu1 %v2664_v9 }
 0x3d6   : > { %v2103_v13 = vpop.f32.mrf.mxu1 }
 0x3d8   : > { %v1230_v14 = vpop.f32.mrf.mxu1  ;;  %2137 = vmatpush3.bf16.msra.mxu1 %v2310_v12 }
 0x3d9   : > { %v1236_v15 = vsel %vm945_vm3, %v1230_v14, -inf  ;;  %2150 = vmatprep.subr.bf16.mxu1 %v2664_v9 }
 0x3da   : > { %1237 = vmax.xlane.f32.xlu1 %v1236_v15  ;;  %v2114_v16 = vpop.f32.mrf.mxu1 }
 0x3dc   : > { %v1233_v17 = vpop.f32.mrf.mxu1 }
 0x3de   : > { %v2115_v18 = vpop.f32.mrf.mxu1 }
 0x3e0   : > { %v1354_v19 = vpop.f32.mrf.mxu1 }
 0x3e1   : > { %v1360_v20 = vsel %vm945_vm3, %v1354_v19, -inf }
 0x3e2   : > { %1361 = vmax.xlane.f32.xlu1 %v1360_v20  ;;  %v2126_v21 = vpop.f32.mrf.mxu1 }
 0x3e4   : > { %v1357_v22 = vpop.f32.mrf.mxu1 }
 0x3e6   : > { %v2127_v23 = vpop.f32.mrf.mxu1 }
 0x3e7   : > { %v994_v24 = vpop.xlane.xlu1 %993 }
 0x3e8   : > { %v995_v25 = vsub.f32 %v986_v3, %v994_v24 }
 0x3ea   : > { %v996_v26 = vmul.f32 1.442695, %v995_v25 }
 0x3ec   : > { %2319 = vpow2.f32 %v996_v26 }
 0x3f9   : > { %v2320_v27 = vpop.eup %2319 }
 0x3fa   : > { %v998_v28 = vsel %vm945_vm3, %v2320_v27, 0.0 }
 0x3fb   : > { %999 = vadd.xlane.f32.xlu0 %v998_v28 }
 0x45b   : > { %v1114_v29 = vpop.xlane.xlu0 %1113 }
 0x45c   : > { %v1115_v30 = vsub.f32 %v1106_v8, %v1114_v29 }
 0x45e   : > { %v1116_v31 = vmul.f32 1.442695, %v1115_v30 }
 0x460   : > { %2321 = vpow2.f32 %v1116_v31 }
 0x463   : > { %v1238_v32 = vpop.xlane.xlu1 %1237 }
 0x464   : > { %v1239_v33 = vsub.f32 %v1230_v14, %v1238_v32  ;;  %v2000_v32 = vld [vmem:[%s3213_s10] ss:$0 sm:$0xff] }
 0x466   : > { %v1240_v34 = vmul.f32 1.442695, %v1239_v33 }
 0x468   : > { %2323 = vpow2.f32 %v1240_v34 }
 0x46b   : > { %v1362_v41 = vpop.xlane.xlu1 %1361 }
 0x46c   : > { %v1363_v42 = vsub.f32 %v1354_v19, %v1362_v41 }
 0x46d   : > { %v2322_v35 = vpop.eup %2321 }
 0x46e   : > { %v1118_v36 = vsel %vm945_vm3, %v2322_v35, 0.0  ;;  %v1364_v44 = vmul.f32 1.442695, %v1363_v42 }
 0x46f   : > { %1119 = vadd.xlane.f32.xlu1 %v1118_v36 }
 0x475   : > { %v2324_v37 = vpop.eup %2323 }
 0x476   : > { %v1242_v38 = vsel %vm945_vm3, %v2324_v37, 0.0 }
 0x477   : > { %1243 = vadd.xlane.f32.xlu0 %v1242_v38 }
 0x480   : > { %1253 = vrot.lane.b32.xlu1 %v2306_v39, %s2666_s27  ;;  %s2671_s27 = smov 24  }
 0x484   : > { %v1000_v40 = vpop.xlane.xlu0 %999 }
 0x485   : > { %2325 = vrcp.f32 %v1000_v40 }
 0x486   : > { %2327 = vpow2.f32 %v1364_v44 }
 0x48d   : > { %1129 = vrot.lane.b32.xlu0 %v2307_v43, %s2667_s0  ;;  %s3236_s0 = sshll.u32 %s3006_s21, 3 }
 0x492   : > { %v2326_v45 = vpop.eup %2325 }
 0x493   : > { %v1002_v46 = vmul.f32 %v2326_v45, %v2320_v27  ;;  %v2328_v48 = vpop.eup %2327  ;;  %v2311_v45 = vld [vmem:[#allocation16 + $0x8] sm:$0xff]  }
 0x494   : > { %v1366_v49 = vsel %vm945_vm3, %v2328_v48, 0.0 }
 0x495   : > { %v1003_v47 = vpack.c.bf16 %v1002_v46, %v1002_v46  ;;  %v2312_v46 = vld [vmem:[#allocation16] sm:$0xff]  }
 0x497   : > { %2095 = vmatmul.mubr.msk.bf16.vlgmr.msra.gmra.mxu0 %vm945_vm3, %v1003_v47  ;;  %1005 = vst.msk [vmem:[%s3010_s28] sm:$0xf] %vm1004_vm5, %v1003_v47 }
 0x498   : > { %2106 = vmatprep.mubr.msk.bf16.mxu0 %vm2665_vm1, %v2664_v9 }
 0x4a4   : > { %1367 = vadd.xlane.f32.xlu1 %v1366_v49 }
 0x4b5   : > { %1377 = vrot.lane.b32.xlu1 %v2308_v50, %s2668_s20  ;;  %s3051_s20 = scalar_lea.vmem [#allocation20], %s3236_s0  ;;  %v2004_v50 = vld [vmem:[%s3214_s11] ss:$0 sm:$0xff] }
 0x4f8   : > { %v1120_v51 = vpop.xlane.xlu1 %1119 }
 0x4f9   : > { %2329 = vrcp.f32 %v1120_v51 }
 0x4fc   : > { %v1254_v57 = vpop.permute.xlu1 %1253 }
 0x4fd   : > { %v1259_v59 = vsel %vm1009_vm4, %v1254_v57, 0  ;;  %v2314_v57 = vld [vmem:[%s3218_s15 + $0x10] sm:$0xff]  }
 0x500   : > { %v1244_v52 = vpop.xlane.xlu0 %1243 }
 0x501   : > { %2331 = vrcp.f32 %v1244_v52  ;;  %v2005_v52 = vld [vmem:[%s3215_s12] ss:$0 sm:$0xff] }
 0x504   : > { %v1130_v53 = vpop.permute.xlu0 %1129 }
 0x505   : > { %v1135_v54 = vsel %vm1009_vm4, %v1130_v53, 0 }
 0x506   : > { %v2330_v55 = vpop.eup %2329  ;;  %2105 = vmatpush3.bf16.msra.mxu0 %v1135_v54 }
 0x507   : > { %2116 = vmatprep.subr.bf16.mxu0 %v2664_v9  ;;  %v1122_v56 = vmul.f32 %v2330_v55, %v2322_v35 }
 0x509   : > { %v1123_v58 = vpack.c.bf16 %v1122_v56, %v1122_v56  ;;  %v2313_v56 = vld [vmem:[%s3218_s15 + $0x18] sm:$0xff]  }
 0x50b   : > { %2107 = vmatmul.mubr.msk.bf16.vlgmr.msra.gmra.mxu0 %vm945_vm3, %v1123_v58  ;;  %1985 = vst.msk [vmem:[%s3010_s28 + $0x4] sm:$0xf] %vm1004_vm5, %v1123_v58  ;;  %v2315_v58 = vld [vmem:[%s3218_s15 + $0x8] sm:$0xff]  }
 0x50c   : > { %2117 = vmatpush3.bf16.msra.mxu0 %v1259_v59  ;;  %2118 = vmatprep.mubr.msk.bf16.mxu0 %vm2665_vm1, %v2664_v9  ;;  %v2316_v59 = vld [vmem:[%s3218_s15] sm:$0xff]  }
 0x50d   : > { %2128 = vmatprep.subr.bf16.mxu0 %v2664_v9 }
 0x50e   : > { %v2332_v60 = vpop.eup %2331 }
 0x50f   : > { %v1246_v61 = vmul.f32 %v2332_v60, %v2324_v37  ;;  %v2006_v60 = vld [vmem:[%s3217_s14] ss:$0 sm:$0xff] }
 0x511   : > { %v1247_v62 = vpack.c.bf16 %v1246_v61, %v1246_v61 }
 0x513   : > { %2119 = vmatmul.mubr.msk.bf16.vlgmr.msra.gmra.mxu0 %vm945_vm3, %v1247_v62  ;;  %1991 = vst.msk [vmem:[%s3010_s28 + $0x8] sm:$0xf] %vm1004_vm5, %v1247_v62 }
 0x514   : > { %2130 = vmatprep.mubr.msk.bf16.mxu0 %vm2665_vm1, %v2664_v9 }
 0x52d   : > { %v1368_v63 = vpop.xlane.xlu1 %1367 }
 0x52e   : > { %2333 = vrcp.f32 %v1368_v63 }
 0x531   : > { %v1378_v1 = vpop.permute.xlu1 %1377 }
 0x532   : > { %v1383_v2 = vsel %vm1009_vm4, %v1378_v1, 0 }
 0x533   : > { %2129 = vmatpush3.bf16.msra.mxu0 %v1383_v2 }
 0x534   : > { %2142 = vmatprep.subr.bf16.mxu0 %v2664_v9 }
 0x53b   : > { %v2334_v3 = vpop.eup %2333 }
 0x53c   : > { %v1370_v4 = vmul.f32 %v2334_v3, %v2328_v48 }
 0x53e   : > { %v1371_v5 = vpack.c.bf16 %v1370_v4, %v1370_v4 }
 0x540   : > { %2131 = vmatmul.mubr.msk.bf16.vlgmr.msra.gmra.mxu0 %vm945_vm3, %v1371_v5  ;;  %1997 = vst.msk [vmem:[%s3010_s28 + $0xc] sm:$0xf] %vm1004_vm5, %v1371_v5  ;;  %s2672_s28 = smov [#allocation18]  }
 0x541   : > { %2146 = vmatprep.mubr.msk.bf16.mxu0 %vm2665_vm1, %v2664_v9  ;;  %2143 = vmatpush3.bf16.msra.mxu0 %v2311_v45  ;;  %s2525_s0 = sshll.u32 %s2672_s28, 4  ;;  %s2526_s0 = int_to_ptr.vmem [resolvable:$false] %s2525_s0 }
 0x542   : > { %2144 = vmatprep.subr.bf16.mxu0 %v2664_v9  ;;  %s2527_s4 = scalar_lea.vmem %s2526_s0, 512  ;;  %p2528_p1 = scmp.lt.s32.totalorder %s3095_s26, %s2526_s0 }
 0x545   : > { %2145 = vmatpush3.bf16.msra.mxu0 %v2312_v46 }
 0x557   : > { %v1047_v6 = vpop.f32.mrf.mxu0 }
 0x559   : > { %v2096_v7 = vpop.f32.mrf.mxu0 }
 0x55b   : > { %v1050_v8 = vpop.f32.mrf.mxu0 }
 0x55d   : > { %v2097_v10 = vpop.f32.mrf.mxu0 }
 0x5cb   : > { %v1171_v13 = vpop.f32.mrf.mxu0 }
 0x5cc   : > { %1426 = vrot.lane.b32.xlu0 %v1171_v13, %s2669_s22  ;;  %s3102_s22 = scalar_lea.hbm %s3221_s18, %s2025_s25 }
 0x5cd   : > { %v2108_v14 = vpop.f32.mrf.mxu0 }
 0x5cf   : > { %v1174_v15 = vpop.f32.mrf.mxu0 }
 0x5d1   : > { %v2109_v16 = vpop.f32.mrf.mxu0 }
 0x5d3   : > { %v1295_v17 = vpop.f32.mrf.mxu0 }
 0x5d4   : > { %1430 = vrot.lane.b32.xlu1 %v1295_v17, %s2670_s2  ;;  %s3104_s2 = scalar_lea.sflag [#allocation19], %s1707_s29 }
 0x5d5   : > { %v2120_v18 = vpop.f32.mrf.mxu0 }
 0x5d7   : > { %v1298_v19 = vpop.f32.mrf.mxu0 }
 0x5d9   : > { %v2121_v20 = vpop.f32.mrf.mxu0 }
 0x600   : > { %v1419_v21 = vpop.f32.mrf.mxu0 }
 0x601   : > { %1434 = vrot.lane.b32.xlu0 %v1419_v21, %s2671_s27  ;;  %s2521_s27 = scalar_lea.vmem %s3095_s26, 256 }
 0x602   : > { %v2132_v22 = vpop.f32.mrf.mxu0  ;;  %p2522_p7 = scmp.ne.s32.totalorder %s3095_s26, %s2521_s27  ;;  %p2529_p2 = scmp.lt.s32.totalorder %s2527_s4, %s2521_s27 }
 0x604   : > { %v1422_v23 = vpop.f32.mrf.mxu0  ;;  %p2523_p11 = pnand %p2522_p7, %p3274_p8  ;;  %p2530_p13 = por %p2529_p2, %p2528_p1 }
 0x606   : > { %v2133_v24 = vpop.f32.mrf.mxu0  ;;  %p2524_p0 = pneg %p2523_p11 }
 0x608   : > { %p2531_p9 = pnand %p2530_p13, %p2524_p0 }
 0x63e   : > { %v1427_v25 = vpop.permute.xlu0 %1426 }
 0x63f   : > { %v1437_v27 = vsel %vm945_vm3, %v1047_v6, %v1427_v25 }
 0x646   : > { %v1431_v26 = vpop.permute.xlu1 %1430 }
 0x647   : > { %v1439_v28 = vsel %vm1438_vm6, %v1437_v27, %v1431_v26 }
 0x673   : > { %v1435_v29 = vpop.permute.xlu0 %1434 }
 0x674   : > { %v1441_v30 = vsel %vm1440_vm7, %v1439_v28, %v1435_v29 }
 0x675   : > { %1442 = vst.msk [vmem:[%s3051_s20] sm:$0xff] %vm712_vm0, %v1441_v30  ;;  %v1443_v31 = vpack.c.bf16 %v1441_v30, %v1441_v30 }
 0x677   : > { %2139 = vmatmul.mubr.msk.bf16.vlgmr.msra.gmra.mxu1 %vm712_vm0, %v1443_v31 }
 0x678   : > { %2158 = vmatprep.mubr.msk.bf16.mxu1 %vm2665_vm1, %v2664_v9  ;;  %2151 = vmatpush3.bf16.msra.mxu1 %v2313_v56 }
 0x679   : > { %2152 = vmatprep.subr.bf16.mxu1 %v2664_v9 }
 0x67c   : > { %2153 = vmatpush3.bf16.msra.mxu1 %v2314_v57 }
 0x67d   : > { %2154 = vmatprep.subr.bf16.mxu1 %v2664_v9 }
 0x680   : > { %2155 = vmatpush3.bf16.msra.mxu1 %v2315_v58 }
 0x681   : > { %2156 = vmatprep.subr.bf16.mxu1 %v2664_v9 }
 0x684   : > { %2157 = vmatpush3.bf16.msra.mxu1 %v2316_v59 }
 0x737   : > { %v1504_v33 = vpop.f32.mrf.mxu1 }
 0x738   : > { %v1505_v34 = vadd.f32 %v2000_v32, %v1504_v33 }
 0x739   : > { %v2140_v35 = vpop.f32.mrf.mxu1 }
 0x73a   : > { %v3062_v36 = vadd.f32 %v1505_v34, %v2926_v0 }
 0x73b   : > { %v1507_v37 = vpop.f32.mrf.mxu1 }
 0x73c   : > { %v1513_v38 = vsel %vm712_vm0, %v3062_v36, 0.0 }
 0x73d   : > { %1514 = vadd.xlane.f32.xlu1 %v1513_v38  ;;  %v2141_v39 = vpop.f32.mrf.mxu1 }
 0x7c6   : > { %v1515_v40 = vpop.xlane.xlu1 %1514 }
 0x7c7   : > { %v1516_v41 = vmul.f32 0.03125, %v1515_v40 }
 0x7c9   : > { %v1517_v42 = vsub.f32 %v3062_v36, %v1516_v41 }
 0x7cb   : > { %v1518_v43 = vmul.f32 %v1517_v42, %v1517_v42 }
 0x7cd   : > { %v1519_v44 = vsel %vm712_vm0, %v1518_v43, 0.0 }
 0x7ce   : > { %1520 = vadd.xlane.f32.xlu0 %v1519_v44 }
 0x857   : > { %v1521_v0 = vpop.xlane.xlu0 %1520 }
 0x858   : > { %v1522_v47 = vmul.f32 0.03125, %v1521_v0 }
 0x85a   : > { %v1523_v48 = vadd.f32 1e-06, %v1522_v47 }
 0x85c   : > { %2335 = vrsqrt.f32 %v1523_v48 }
 0x869   : > { %v2336_v49 = vpop.eup %2335 }
 0x86a   : > { %v1525_v51 = vmul.f32 %v2336_v49, %v1517_v42 }
 0x86c   : > { %v1532_v53 = vmul.f32 %v2004_v50, %v1525_v51 }
 0x86e   : > { %v1539_v54 = vadd.f32 %v2005_v52, %v1532_v53 }
 0x870   : > { %v1540_v55 = vpack.c.bf16 %v1539_v54, %v1539_v54 }
 0x872   : > { %2147 = vmatmul.mubr.msk.bf16.vlgmr.msra.gmra.mxu0 %vm712_vm0, %v1540_v55 }
 0x932   : > { %v1601_v61 = vpop.f32.mrf.mxu0 }
 0x933   : > { %v1602_v62 = vadd.f32 %v2006_v60, %v1601_v61 }
 0x934   : > { %v2148_v63 = vpop.f32.mrf.mxu0 }
 0x935   : > { %v1607_v1 = vmul.f32 %v1602_v62, %v1602_v62 }
 0x936   : > { %v1604_v2 = vpop.f32.mrf.mxu0 }
 0x937   : > { %v1608_v3 = vmul.f32 %v1607_v1, %v1602_v62 }
 0x938   : > { %v2149_v4 = vpop.f32.mrf.mxu0 }
 0x939   : > { %v1609_v9 = vmul.f32 0.044715, %v1608_v3 }
 0x93b   : > { %v1610_v5 = vadd.f32 %v1609_v9, %v1602_v62 }
 0x93d   : > { %v1611_v6 = vmul.f32 0.7978846, %v1610_v5 }
 0x93f   : > { %2337 = vtanh.f32 %v1611_v6 }
 0x94c   : > { %v2338_v7 = vpop.eup %2337 }
 0x94d   : > { %v1613_v8 = vadd.f32 1.0, %v2338_v7 }
 0x94f   : > { %v1614_v10 = vmul.f32 0.5, %v1613_v8 }
 0x951   : > { %v1615_v11 = vmul.f32 %v1614_v10, %v1602_v62 }
 0x953   : > { %v1616_v12 = vpack.c.bf16 %v1615_v11, %v1615_v11 }
 0x955   : > { %2159 = vmatmul.mubr.msk.bf16.vlgmr.msra.gmra.mxu1 %vm1656_vm8, %v1616_v12 }
 0x956   : > { %2534 = shalt.err (!%p2531_p9)
}
 0x957   : > { %s2535_s29 = scalar_lea.hbm %s3102_s22, 256  ;;  %s2539_s24 = scalar_lea.hbm %s3221_s18, 512 }
 0x958   : > { %p2536_p3 = scmp.ne.s32.totalorder %s3102_s22, %s2535_s29  ;;  %p2540_p6 = scmp.lt.s32.totalorder %s3102_s22, %s3221_s18 }
 0x959   : > { %p2541_p10 = scmp.lt.s32.totalorder %s2539_s24, %s2535_s29 }
 0x95a   : > { %p2537_p5 = pnand %p2536_p3, %p3274_p8 }
 0x95b   : > { %p2542_p4 = por %p2541_p10, %p2540_p6 }
 0x95c   : > { %p2538_p12 = pneg %p2537_p5 }
 0x95e   : > { %p2543_p7 = pnand %p2542_p4, %p2538_p12 }
 0x960   : > { %2546 = shalt.err (!%p2543_p7)
}
 0x961   : > { %s2673_s4 = smov 64   ;;  %s2674_s0 = smov 4  }
 0x962   : > { %2191 = dma.vmem_to_hbm [thread:$0]  (%p3274_p8), %s3095_s26, 256, %s3102_s22, %s3104_s2, %s2673_s4, %s2673_s4, %s2674_s0  }
 0x963   : > { %s2019_s27 = sshll.u32 %s2798_s1, 7  ;;  %s1755_s23 = sshll.u32 %s3051_s20, 4  ;;  %s1756_s23 = int_to_ptr.vmem [resolvable:$true] %s1755_s23 }
 0x964   : > { %s1753_s29 = scalar_lea.hbm %s3222_s19, %s2019_s27  ;;  %s2547_s24 = scalar_lea.vmem %s1756_s23, 128 }
 0x965   : > { %p2548_p11 = scmp.ne.s32.totalorder %s1756_s23, %s2547_s24  ;;  %s2675_s28 = smov [#allocation20]  }
 0x966   : > { %s2551_s6 = sshll.u32 %s2675_s28, 4  ;;  %s2552_s6 = int_to_ptr.vmem [resolvable:$false] %s2551_s6 }
 0x967   : > { %p2549_p0 = pnand %p2548_p11, %p3274_p8  ;;  %s2553_s7 = scalar_lea.vmem %s2552_s6, 256 }
 0x968   : > { %p2554_p2 = scmp.lt.s32.totalorder %s1756_s23, %s2552_s6  ;;  %p2555_p13 = scmp.lt.s32.totalorder %s2553_s7, %s2547_s24 }
 0x969   : > { %p2550_p1 = pneg %p2549_p0 }
 0x96a   : > { %p2556_p9 = por %p2555_p13, %p2554_p2 }
 0x96c   : > { %p2557_p3 = pnand %p2556_p9, %p2550_p1 }
 0x96e   : > { %2560 = shalt.err (!%p2557_p3)
}
 0x96f   : > { %s2561_s26 = scalar_lea.hbm %s1753_s29, 128  ;;  %s2565_s4 = scalar_lea.hbm %s3222_s19, 256 }
 0x970   : > { %p2562_p5 = scmp.ne.s32.totalorder %s1753_s29, %s2561_s26  ;;  %p2566_p10 = scmp.lt.s32.totalorder %s1753_s29, %s3222_s19 }
 0x971   : > { %p2567_p4 = scmp.lt.s32.totalorder %s2565_s4, %s2561_s26 }
 0x972   : > { %p2563_p12 = pnand %p2562_p5, %p3274_p8 }
 0x973   : > { %p2568_p7 = por %p2567_p4, %p2566_p10 }
 0x974   : > { %p2564_p6 = pneg %p2563_p12 }
 0x976   : > { %p2569_p11 = pnand %p2568_p7, %p2564_p6 }
 0x978   : > { %2572 = shalt.err (!%p2569_p11)
}
 0x979   : > { %2192 = dma.vmem_to_hbm [thread:$0]  (%p3274_p8), %s1756_s23, 128, %s1753_s29, %s3104_s2   ;;  %v2010_v13 = vld [vmem:[%s3219_s16] ss:$0 sm:$0xff] }
 0x97a   : > { %s3275_s25 = sshll.u32 %s3006_s21, 3  ;;  %s3276_s22 = sld [smem:[#allocation41_spill]] }
 0x97b   : > { %s689_s24 = scalar_lea.vmem [#allocation17], %s3275_s25  ;;  %s1703_s2 = scalar_lea.sflag [#allocation7], %s3006_s21 }
 0x97c   : > { %s1726_s28 = sshll.u32 %s689_s24, 4  ;;  %s2676_s1 = smov [#allocation17]   ;;  %s3160_s28 = int_to_ptr.vmem [resolvable:$true] %s1726_s28 }
 0x97d   : > { %s2573_s29 = scalar_lea.vmem %s3160_s28, 128  ;;  %s2577_s23 = sshll.u32 %s2676_s1, 4  ;;  %s2578_s23 = int_to_ptr.vmem [resolvable:$false] %s2577_s23 }
 0x97e   : > { %p2574_p0 = scmp.ne.s32.totalorder %s3160_s28, %s2573_s29  ;;  %p2580_p13 = scmp.lt.s32.totalorder %s3160_s28, %s2578_s23 }
 0x980   : > { %s3158_s4 = scalar_lea.hbm %s3276_s22, %s2019_s27  ;;  %p2575_p1 = pnand %p2574_p0, %p3274_p8 }
 0x981   : > { %s2579_s27 = scalar_lea.vmem %s2578_s23, 256 }
 0x982   : > { %p2576_p2 = pneg %p2575_p1  ;;  %p2581_p9 = scmp.lt.s32.totalorder %s2579_s27, %s2573_s29 }
 0x984   : > { %p2582_p3 = por %p2581_p9, %p2580_p13 }
 0x986   : > { %p2583_p5 = pnand %p2582_p3, %p2576_p2 }
 0xa15   : > { %v1694_v14 = vpop.f32.mrf.mxu1 }
 0xa16   : > { %v1695_v15 = vadd.f32 %v2010_v13, %v1694_v14 }
 0xa17   : > { %v2160_v16 = vpop.f32.mrf.mxu1 }
 0xa18   : > { %v1700_v17 = vadd.f32 %v1695_v15, %v3062_v36 }
 0xa19   : > { %v1697_v18 = vpop.f32.mrf.mxu1 }
 0xa1a   : > { %1701 = vst.msk [vmem:[%s689_s24] sm:$0xff] %vm712_vm0, %v1700_v17 }
 0xa1b   : > { %v2161_v19 = vpop.f32.mrf.mxu1 }
 0xa1c   : > { %2586 = shalt.err (!%p2583_p5)
}
 0xa1d   : > { %s2587_s0 = scalar_lea.hbm %s3158_s4, 128  ;;  %s2591_s6 = scalar_lea.hbm %s3276_s22, 256 }
 0xa1e   : > { %p2588_p12 = scmp.ne.s32.totalorder %s3158_s4, %s2587_s0  ;;  %p2592_p4 = scmp.lt.s32.totalorder %s3158_s4, %s3276_s22 }
 0xa1f   : > { %p2593_p7 = scmp.lt.s32.totalorder %s2591_s6, %s2587_s0 }
 0xa20   : > { %p2589_p6 = pnand %p2588_p12, %p3274_p8 }
 0xa21   : > { %p2594_p11 = por %p2593_p7, %p2592_p4 }
 0xa22   : > { %p2590_p10 = pneg %p2589_p6 }
 0xa24   : > { %p2595_p0 = pnand %p2594_p11, %p2590_p10 }
 0xa26   : > { %2598 = shalt.err (!%p2595_p0)
}
 0xa27   : > { %2190 = dma.vmem_to_hbm [thread:$0]  (%p3274_p8), %s3160_s28, 128, %s3158_s4, %s1703_s2  }
 0xa28 PF: > { %s3277_s24 = sld [smem:[#allocation29_spill]] }
 0xa29   : > { %s3278_s26 = sld [smem:[#allocation27_spill]] }
 0xa2a   : > { %s3279_s20 = sld [smem:[#allocation32_spill]] }
 0xa2e   : > { %p2242_p1 = scmp.ge.s32.totalorder %s3277_s24, 2 }
 0xa2f   : > { %s1767_s29 = sand.u32 1, %s3278_s26  }
 0xa30   : > { %p3280_p2 = scmp.ne.s32.totalorder %s3279_s20, 0  ;;  %s1768_s1 = scalar_lea.sflag [#allocation7], %s1767_s29 }
 0xa32   : > { %p2219_p13 = pnand %p2242_p1, %p3280_p2 }
 0xa34   : > { %p2220_p9 = pneg %p2219_p13 }
 0xa36   : > { %2632 = dma.done.wait (%p2220_p9), %s1768_s1, 128  }
 0xa37   : > { %2634 = vsyncadd (%p2220_p9), %s1768_s1, 4294967168  ;;  %s3281_s23 = sadd.s32 4294967294, %s3277_s24  }
 0xa38   : > { %s1776_s27 = sand.u32 1, %s3281_s23  }
 0xa39   : > { %s1777_s0 = scalar_lea.sflag [#allocation19], %s1776_s27 }
 0xa3a   : > { %2636 = dma.done.wait (%p2220_p9), %s1777_s0, 384  }
 0xa3b   : > { %2638 = vsyncadd (%p2220_p9), %s1777_s0, 4294966912  ;;  %s3282_s21 = sld [smem:[#allocation30_spill]]  ;;  %s3285_s0 = smov %s2645_s30 }
 0xa3c   : > { %s3283_s3 = sld [smem:[#allocation28_spill]] }
 0xa3d   : > { %s3284_s20 = sld [smem:[#allocation31_spill]] }
 0xa41   : > { %p37_p8 = scmp.ge.s32.totalorder %s3282_s21, 4  }
 0xa42   : > { %s3286_s30 = smov %s3283_s3 }
 0xa43   :  { %39 = sbr.rel (!%p37_p8) target bundleno = 19 (0x13), region = 187 }
 0xa48   :  { %1791 = vsyncpa [#allocation6], 1 }
 0xa49   :  { %1793 = vsyncpa [#allocation6 + $0x1], 1 }
 0xa4a   :  { %1794 = vsyncpa [#allocation9], 1 }
 0xa4b   :  { %1795 = vsyncpa [#allocation12], 1 }
 0xa4c   :  { %1796 = vsyncpa [#allocation15], 1 }
 0xa4d   :  { %1797 = vsyncpa [#allocation7], 1 }
 0xa4e   :  { %1799 = vsyncpa [#allocation7 + $0x1], 1 }
 0xa4f   :  { %1800 = vsyncpa [#allocation19], 1 }
 0xa50   :  { %1802 = vsyncpa [#allocation19 + $0x1], 1 }

// kernel: tpu_custom_call.1
= control target key start
LH: loop header
LB: loop body
LE: loop exit
PB: predicated region body
PF: predicated region fallthrough
CT: control target
= control target key end

     0   :  { %s3203_s0 = inlined_call_operand.vmem [shape: f32[2,8,32], index: 0, kind: input, shape index: {}]   ;;  %s3204_s1 = inlined_call_operand.hbm [shape: f32[1,32], index: 1, kind: input, shape index: {}]   ;;  %s3205_s2 = inlined_call_operand.hbm [shape: f32[1,32], index: 2, kind: input, shape index: {}]   ;;  %s3206_s3 = inlined_call_operand.vmem [shape: bf16[32,32], index: 3, kind: input, shape index: {}]   ;;  %s3207_s4 = inlined_call_operand.hbm [shape: f32[1,32], index: 4, kind: input, shape index: {}]   ;;  %s3208_s5 = inlined_call_operand.vmem [shape: bf16[32,32], index: 5, kind: input, shape index: {}]   ;;  %s3209_s6 = inlined_call_operand.hbm [shape: f32[1,32], index: 6, kind: input, shape index: {}]   ;;  %s3210_s7 = inlined_call_operand.hbm [shape: bf16[32,32], index: 7, kind: input, shape index: {}]   ;;  %s3211_s8 = inlined_call_operand.hbm [shape: f32[1,32], index: 8, kind: input, shape index: {}]   ;;  %s3212_s9 = inlined_call_operand.vmem [shape: bf16[32,32], index: 9, kind: input, shape index: {}]   ;;  %s3213_s10 = inlined_call_operand.vmem [shape: f32[1,32], index: 10, kind: input, shape index: {}]   ;;  %s3214_s11 = inlined_call_operand.vmem [shape: f32[1,32], index: 11, kind: input, shape index: {}]   ;;  %s3215_s12 = inlined_call_operand.vmem [shape: f32[1,32], index: 12, kind: input, shape index: {}]   ;;  %s3216_s13 = inlined_call_operand.hbm [shape: bf16[32,64], index: 13, kind: input, shape index: {}]   ;;  %s3217_s14 = inlined_call_operand.vmem [shape: f32[1,64], index: 14, kind: input, shape index: {}]   ;;  %s3218_s15 = inlined_call_operand.vmem [shape: bf16[64,32], index: 15, kind: input, shape index: {}]   ;;  %s3219_s16 = inlined_call_operand.vmem [shape: f32[1,32], index: 16, kind: input, shape index: {}]   ;;  %s3220_s17 = inlined_call_operand.hbm [shape: f32[2,8,32], index: 17, kind: output, shape index: {0}]   ;;  %s3221_s18 = inlined_call_operand.hbm [shape: bf16[2,4,8,8], index: 18, kind: output, shape index: {1}]   ;;  %s3222_s19 = inlined_call_operand.hbm [shape: f32[2,8,32], index: 19, kind: output, shape index: {2}]  }
   0x1   :  { %3237 = sst [smem:[#allocation33_spill]] %s3203_s0 }
   0x2   :  { %3238 = sst [smem:[#allocation34_spill]] %s3204_s1 }
   0x3   :  { %3239 = sst [smem:[#allocation35_spill]] %s3205_s2 }
   0x4   :  { %3240 = sst [smem:[#allocation36_spill]] %s3206_s3 }
   0x5   :  { %3241 = sst [smem:[#allocation37_spill]] %s3207_s4 }
   0x6   :  { %3242 = sst [smem:[#allocation38_spill]] %s3208_s5 }
   0x7   :  { %3243 = sst [smem:[#allocation39_spill]] %s3209_s6 }
   0x8   :  { %3244 = sst [smem:[#allocation40_spill]] %s3210_s7 }
   0x9   :  { %3245 = sst [smem:[#allocation41_spill]] %s3220_s17 }
   0xa   :  { %25 = vsyncpa [#allocation6], 0 }
   0xb   :  { %26 = vsyncpa [#allocation9], 0 }
   0xc   :  { %27 = vsyncpa [#allocation12], 0 }
   0xd   :  { %28 = vsyncpa [#allocation15], 0 }
   0xe   :  { %29 = vsyncpa [#allocation7], 0 }
   0xf   :  { %31 = vsyncpa [#allocation7 + $0x1], 0 }
  0x10   :  { %32 = vsyncpa [#allocation19], 0 }
  0x11   :  { %34 = vsyncpa [#allocation19 + $0x1], 0  ;;  %s2777_s0 = smov 0   ;;  %s2779_s30 = smov 0  }
  0x12   :  { %s2781_s20 = smov 0   ;;  %s2783_s21 = smov 0  }
  0x13 LB: > { %3246 = sst [smem:[#allocation27_spill]] %s2641_s0  ;;  %s2798_s1 = sadd.s32 4294967295, %s2653_s21   ;;  %s2653_s21 = sphi %s2783_s21, %s3282_s21   ;;  %s2649_s20 = sphi %s2781_s20, %s3284_s20   ;;  %s2645_s30 = sphi %s2779_s30, %s3286_s30   ;;  %s2641_s0 = sphi %s2777_s0, %s3285_s0  }
  0x14   : > { %3247 = sst [smem:[#allocation28_spill]] %s2649_s20  ;;  %s3224_s22 = sadd.s32 4294967294, %s2653_s21  }
  0x15   : > { %3248 = sst [smem:[#allocation29_spill]] %s2653_s21  ;;  %s2802_s2 = sadd.s32 1, %s2653_s21  }
  0x16   : > { %3249 = sst [smem:[#allocation30_spill]] %s2802_s2  ;;  %s409_s23 = sadd.s32 1, %s2649_s20 }
  0x17   : > { %s406_s24 = ssub.s32 %s2653_s21, %s2802_s2  ;;  %p419_p0 = scmp.ne.s32.totalorder %s2649_s20, %s2645_s30 }
  0x18   : > { %p407_p1 = scmp.eq.s32.totalorder %s406_s24, 0  ;;  %p420_p2 = scmp.eq.s32.totalorder %s2798_s1, 1 }
  0x19   : > { %p425_p3 = scmp.ne.s32.totalorder %s2645_s30, %s2641_s0  ;;  %p426_p4 = scmp.eq.s32.totalorder %s3224_s22, 1 }
  0x1a   : > { %s2815_s25 = scalar_select %p407_p1, %s2649_s20, %s409_s23  }
  0x1b   : > { %p2817_p5 = por %p420_p2, %p419_p0  ;;  %p2821_p6 = por %p426_p4, %p425_p3 }
  0x1c   : > { %3250 = sst [smem:[#allocation31_spill]] %s2815_s25  ;;  %p1945_p7 = scmp.ge.s32.totalorder %s2653_s21, 1 }
  0x1d   : > { %s3251_s3 = scalar_select %p2817_p5, 1, 0 }
  0x1e   : > { %s3252_s26 = scalar_select %p2821_p6, 1, 0 }
  0x1f   : > { %p485_p8 = scmp.lt.s32.totalorder %s2653_s21, 3  ;;  %p3232_p9 = scmp.eq.s32.totalorder %s2798_s1, 0 }
  0x20   : > { %3253 = sst [smem:[#allocation32_spill]] %s3252_s26  ;;  %s2655_s28 = smov [#allocation8]  }
  0x21   : > { %p2828_p10 = pnand %p1945_p7, %p485_p8  ;;  %s509_s29 = sshll.u32 %s2655_s28, 4  ;;  %s510_s29 = int_to_ptr.vmem [resolvable:$true] %s509_s29 }
  0x22   : > { %s2656_s23 = smov [#allocation11]   ;;  %s2657_s25 = smov [#allocation14]  }
  0x23   : > { %s3254_s27 = scalar_select %p2828_p10, 1, 0 }
  0x24   : > { %p2196_p11 = pneg %p2828_p10  ;;  %s537_s24 = sshll.u32 %s2656_s23, 4  ;;  %s538_s24 = int_to_ptr.vmem [resolvable:$true] %s537_s24 }
  0x25   : > { %s561_s20 = sshll.u32 %s2657_s25, 4  ;;  %s2350_s28 = scalar_lea.vmem %s510_s29, 16  ;;  %s2840_s20 = int_to_ptr.vmem [resolvable:$true] %s561_s20 }
  0x26   : > { %p2836_p12 = pnand %p3232_p9, %p2196_p11  ;;  %p2351_p0 = scmp.ne.s32.totalorder %s510_s29, %s2350_s28 }
  0x27   : > { %s2357_s23 = scalar_lea.vmem %s510_s29, 32  ;;  %p2358_p3 = scmp.lt.s32.totalorder %s510_s29, %s510_s29 }
  0x28   : > { %p2844_p13 = pneg %p2836_p12  ;;  %p2359_p4 = scmp.lt.s32.totalorder %s2357_s23, %s2350_s28 }
  0x2a   : > { %p2353_p1 = pnand %p2351_p0, %p2844_p13  ;;  %p2360_p7 = por %p2359_p4, %p2358_p3 }
  0x2c   : > { %p2354_p2 = pneg %p2353_p1 }
  0x2e   : > { %p2361_p8 = pnand %p2360_p7, %p2354_p2 }
  0x30   : > { %2364 = shalt.err (!%p2361_p8)
}
  0x31   : > { %s3257_s0 = sld [smem:[#allocation35_spill]]  ;;  %s2376_s21 = scalar_lea.vmem %s538_s24, 16 }
  0x32   : > { %p2377_p11 = scmp.ne.s32.totalorder %s538_s24, %s2376_s21  ;;  %s2383_s17 = scalar_lea.vmem %s538_s24, 32 }
  0x33   : > { %p2384_p0 = scmp.lt.s32.totalorder %s538_s24, %s538_s24  ;;  %p2385_p1 = scmp.lt.s32.totalorder %s2383_s17, %s2376_s21 }
  0x34   : > { %p2379_p9 = pnand %p2377_p11, %p2844_p13 }
  0x35   : > { %p2386_p5 = por %p2385_p1, %p2384_p0 }
  0x36   : > { %p2380_p6 = pneg %p2379_p9 }
  0x37   : > { %2202 = dma.hbm_to_vmem [thread:$0]  (!%p2836_p12), %s3257_s0, 16, %s510_s29, [#allocation9]  }
  0x38   : > { %p2387_p10 = pnand %p2386_p5, %p2380_p6 }
  0x3a   : > { %2390 = shalt.err (!%p2387_p10)
}
  0x3b   : > { %s3258_s6 = sld [smem:[#allocation39_spill]]  ;;  %s2402_s0 = scalar_lea.vmem %s2840_s20, 16 }
  0x3c   : > { %p2403_p2 = scmp.ne.s32.totalorder %s2840_s20, %s2402_s0  ;;  %s2409_s17 = scalar_lea.vmem %s2840_s20, 32 }
  0x3d   : > { %p2410_p5 = scmp.lt.s32.totalorder %s2840_s20, %s2840_s20  ;;  %p2411_p6 = scmp.lt.s32.totalorder %s2409_s17, %s2402_s0 }
  0x3e   : > { %p2405_p9 = pnand %p2403_p2, %p2844_p13 }
  0x3f   : > { %p2412_p10 = por %p2411_p6, %p2410_p5 }
  0x40   : > { %p2406_p3 = pneg %p2405_p9 }
  0x41   : > { %2208 = dma.hbm_to_vmem [thread:$0]  (!%p2836_p12), %s3258_s6, 16, %s538_s24, [#allocation12]  }
  0x42   : > { %p2413_p4 = pnand %p2412_p10, %p2406_p3 }
  0x44   : > { %2416 = shalt.err (!%p2413_p4)
}
  0x45   : > { %2214 = dma.hbm_to_vmem [thread:$0]  (!%p2836_p12), %s3211_s8, 16, %s2840_s20, [#allocation15]  }
  0x46   : > { %s2658_s29 = smov [#allocation5]   ;;  %s2659_s25 = smov [#allocation10]  }
  0x47   : > { %s498_s24 = sshll.u32 %s2658_s29, 4  ;;  %s523_s28 = sshll.u32 %s2659_s25, 4  ;;  %s499_s24 = int_to_ptr.vmem [resolvable:$true] %s498_s24  ;;  %s524_s28 = int_to_ptr.vmem [resolvable:$true] %s523_s28 }
  0x48   : > { %s2428_s23 = scalar_lea.vmem %s499_s24, 16  ;;  %s2435_s0 = scalar_lea.vmem %s499_s24, 32 }
  0x49   : > { %p2429_p7 = scmp.ne.s32.totalorder %s499_s24, %s2428_s23  ;;  %p2436_p0 = scmp.lt.s32.totalorder %s499_s24, %s499_s24 }
  0x4a   : > { %p2437_p1 = scmp.lt.s32.totalorder %s2435_s0, %s2428_s23 }
  0x4b   : > { %p2431_p8 = pnand %p2429_p7, %p2844_p13 }
  0x4c   : > { %p2438_p2 = por %p2437_p1, %p2436_p0 }
  0x4d   : > { %p2432_p11 = pneg %p2431_p8 }
  0x4f   : > { %p2439_p9 = pnand %p2438_p2, %p2432_p11 }
  0x51   : > { %2442 = shalt.err (!%p2439_p9)
}
  0x52   : > { %s3259_s21 = sld [smem:[#allocation34_spill]]  ;;  %s2454_s26 = scalar_lea.vmem %s524_s28, 16 }
  0x53   : > { %p2455_p3 = scmp.ne.s32.totalorder %s524_s28, %s2454_s26  ;;  %s2461_s29 = scalar_lea.vmem %s524_s28, 32 }
  0x54   : > { %p2462_p10 = scmp.lt.s32.totalorder %s524_s28, %s524_s28  ;;  %p2463_p4 = scmp.lt.s32.totalorder %s2461_s29, %s2454_s26 }
  0x55   : > { %p2457_p5 = pnand %p2455_p3, %p2844_p13 }
  0x56   : > { %p2464_p7 = por %p2463_p4, %p2462_p10 }
  0x57   : > { %p2458_p6 = pneg %p2457_p5 }
  0x58   : > { %2199 = dma.hbm_to_vmem [thread:$0]  (!%p2836_p12), %s3259_s21, 16, %s499_s24, [#allocation6]  }
  0x59   : > { %p2465_p8 = pnand %p2464_p7, %p2458_p6 }
  0x5b   : > { %2468 = shalt.err (!%p2465_p8)
}
  0x5c   : > { %s3260_s4 = sld [smem:[#allocation37_spill]]  ;;  %s2660_s24 = smov [#allocation13]  }
  0x5d   : > { %s547_s0 = sshll.u32 %s2660_s24, 4  ;;  %s548_s0 = int_to_ptr.vmem [resolvable:$true] %s547_s0 }
  0x5e   : > { %s2480_s17 = scalar_lea.vmem %s548_s0, 256  ;;  %p2488_p2 = scmp.lt.s32.totalorder %s548_s0, %s548_s0 }
  0x5f   : > { %p2481_p11 = scmp.ne.s32.totalorder %s548_s0, %s2480_s17  ;;  %p2489_p9 = scmp.lt.s32.totalorder %s2480_s17, %s2480_s17 }
  0x61   : > { %p2483_p0 = pnand %p2481_p11, %p2844_p13  ;;  %p2490_p3 = por %p2489_p9, %p2488_p2 }
  0x62   : > { %2205 = dma.hbm_to_vmem [thread:$0]  (!%p2836_p12), %s3260_s4, 16, %s524_s28, [#allocation9]  }
  0x63   : > { %p2484_p1 = pneg %p2483_p0 }
  0x65   : > { %p2491_p5 = pnand %p2490_p3, %p2484_p1 }
  0x67   : > { %2494 = shalt.err (!%p2491_p5)
}
  0x68   : > { %s2661_s20 = smov 64   ;;  %s2662_s21 = smov 4  }
  0x69   : > { %s3261_s7 = sld [smem:[#allocation40_spill]]  ;;  %s2663_s29 = smov [#allocation16]  }
  0x6a   : > { %s583_s25 = sshll.u32 %s2663_s29, 4  ;;  %s584_s25 = int_to_ptr.vmem [resolvable:$true] %s583_s25 }
  0x6b   : > { %s2506_s23 = scalar_lea.vmem %s584_s25, 256  ;;  %p2514_p7 = scmp.lt.s32.totalorder %s584_s25, %s584_s25 }
  0x6c   : > { %p2507_p6 = scmp.ne.s32.totalorder %s584_s25, %s2506_s23  ;;  %p2515_p8 = scmp.lt.s32.totalorder %s2506_s23, %s2506_s23 }
  0x6e   : > { %p2509_p10 = pnand %p2507_p6, %p2844_p13  ;;  %p2516_p11 = por %p2515_p8, %p2514_p7 }
  0x6f   : > { %2211 = dma.hbm_to_vmem [thread:$0]  (!%p2836_p12), %s3261_s7, 256, %s548_s0, [#allocation12], %s2661_s20, %s2661_s20, %s2662_s21  }
  0x70   : > { %p2510_p4 = pneg %p2509_p10 }
  0x72   : > { %p2517_p0 = pnand %p2516_p11, %p2510_p4 }
  0x74   : > { %2520 = shalt.err (!%p2517_p0)
}
  0x75   : > { %2217 = dma.hbm_to_vmem [thread:$0]  (!%p2836_p12), %s3216_s13, 256, %s584_s25, [#allocation15], %s2661_s20, %s2661_s20, %s2662_s21  }
  0x76   : > { %p3262_p1 = scmp.ne.s32.totalorder %s3254_s27, 0 }
  0x77   : > { %p3263_p2 = scmp.eq.s32.totalorder (!%p3262_p1), %s2798_s1, 0 }
  0x78   : > { %615 = sbr.rel (%p3262_p1) target bundleno = 2600 (0xa28), region = 88 }
  0x7d   : > { %2616 = dma.done.wait (%p3263_p2), [#allocation6], 16   ;;  %p3264_p13 = pmov %p3263_p2 }
  0x7e   : > { %p3265_p9 = pmov %p3263_p2 }
  0x7f   : > { %2618 = vsyncadd (%p3264_p13), [#allocation6], 4294967280 }
  0x80   : > { %2620 = dma.done.wait (%p3265_p9), [#allocation9], 32   ;;  %p3266_p3 = pmov %p3263_p2 }
  0x81   : > { %p3267_p5 = pmov %p3263_p2 }
  0x82   : > { %2622 = vsyncadd (%p3266_p3), [#allocation9], 4294967264 }
  0x83   : > { %2624 = dma.done.wait (%p3267_p5), [#allocation12], 272   ;;  %p3268_p12 = pmov %p3263_p2 }
  0x84   : > { %p3269_p6 = pmov %p3263_p2 }
  0x85   : > { %2626 = vsyncadd (%p3268_p12), [#allocation12], 4294967024 }
  0x86   : > { %2628 = dma.done.wait (%p3269_p6), [#allocation15], 272   ;;  %p3270_p10 = pmov %p3263_p2 }
  0x87   : > { %p704_p4 = scmp.lt.s32.totalorder %s2798_s1, 1  ;;  %s3271_s20 = sld [smem:[#allocation33_spill]]  ;;  %vm712_vm0 = vcmask 261120   ;;  %v2295_v8 = vld [vmem:[#allocation13 + $0x8] sm:$0xff]   ;;  %v2664_v9 = vmov 0.0   ;;  %v2297_v11 = vld [vmem:[#allocation13] sm:$0xff]  }
  0x88   : > { %2630 = vsyncadd (%p3270_p10), [#allocation15], 4294967024  ;;  %s3272_s5 = sld [smem:[#allocation38_spill]]  ;;  %2062 = vmatprep.subr.bf16.mxu0 %v2664_v9  ;;  %2070 = vmatprep.subr.bf16.mxu1 %v2664_v9  ;;  %vm2665_vm1 = vmmov 0   ;;  %v1966_v16 = vld [vmem:[#allocation5] ss:$0 sm:$0xff] }
  0x89   : > { %s705_s22 = scalar_select %p704_p4, %s2798_s1, 1  ;;  %2071 = vmatpush3.bf16.msra.mxu1 %v2295_v8  ;;  %2066 = vmatprep.mubr.msk.bf16.mxu0 %vm2665_vm1, %v2664_v9  ;;  %v1967_v18 = vld [vmem:[#allocation8] ss:$0 sm:$0xff]  ;;  %v1968_v24 = vld [vmem:[#allocation11] ss:$0 sm:$0xff]  ;;  %vm936_vm2 = vcmask 257024  }
  0x8a   : > { %2072 = vmatprep.subr.bf16.mxu1 %v2664_v9  ;;  %2074 = vmatprep.mubr.msk.bf16.mxu1 %vm2665_vm1, %v2664_v9  ;;  %s3273_s17 = sld [smem:[#allocation36_spill]]  ;;  %v1972_v25 = vld [vmem:[#allocation14] ss:$0 sm:$0xff]  ;;  %v1976_v38 = vld [vmem:[#allocation10] ss:$0 sm:$0xff]  ;;  %vm945_vm3 = vcmask 64512  }
  0x8b   : > { %s1965_s2 = sshll.u32 %s705_s22, 3  ;;  %vm1009_vm4 = vcmask 1043456   ;;  %s2666_s27 = smov 112   ;;  %vm1004_vm5 = vcmask 60416   ;;  %vm1438_vm6 = vcmask 130048   ;;  %vm1440_vm7 = vcmask 195584  }
  0x8c   : > { %s2667_s0 = smov 120   ;;  %s2669_s22 = smov 8   ;;  %vm1656_vm8 = vcmask 523264  }
  0x8d   : > { %s707_s21 = scalar_lea.vmem %s3271_s20, %s1965_s2  ;;  %2073 = vmatpush3.bf16.msra.mxu1 %v2297_v11  ;;  %s2668_s20 = smov 104  }
  0x8e   : > { %v2926_v0 = vld [vmem:[%s707_s21] sm:$0xff]  ;;  %v2294_v7 = vld [vmem:[%s3272_s5 + $0x8] sm:$0xff]   ;;  %2086 = vmatprep.subr.bf16.mxu1 %v2664_v9  ;;  %s3006_s21 = sand.u32 1, %s2645_s30   ;;  %s2670_s2 = smov 16  }
  0x8f   : > { %v713_v1 = vsel %vm712_vm0, %v2926_v0, 0.0  ;;  %2063 = vmatpush3.bf16.msra.mxu0 %v2294_v7  ;;  %v2296_v10 = vld [vmem:[%s3272_s5] sm:$0xff]   ;;  %s1963_s26 = sshll.u32 %s3006_s21, 4  ;;  %s1707_s29 = sand.u32 1, %s2798_s1  }
  0x90   : > { %714 = vadd.xlane.f32.xlu0 %v713_v1  ;;  %2064 = vmatprep.subr.bf16.mxu0 %v2664_v9  ;;  %v2298_v21 = vld [vmem:[%s3273_s17 + $0x8] sm:$0xff]   ;;  %v2299_v23 = vld [vmem:[%s3273_s17] sm:$0xff]   ;;  %s3010_s28 = scalar_lea.vmem [#allocation18], %s1963_s26  ;;  %s2025_s25 = sshll.u32 %s2798_s1, 8 }
  0x91   : > { %s1739_s26 = sshll.u32 %s3010_s28, 4  ;;  %p3274_p8 = scmp.ne.s32.totalorder %s3251_s3, 0  ;;  %s3095_s26 = int_to_ptr.vmem [resolvable:$true] %s1739_s26 }
  0x93   : > { %2065 = vmatpush3.bf16.msra.mxu0 %v2296_v10 }
  0x94   : > { %2078 = vmatprep.subr.bf16.mxu0 %v2664_v9 }
 0x119   : > { %v715_v2 = vpop.xlane.xlu0 %714 }
 0x11a   : > { %v717_v3 = vmul.f32 0.03125, %v715_v2 }
 0x11c   : > { %v718_v4 = vsub.f32 %v2926_v0, %v717_v3 }
 0x11e   : > { %v719_v5 = vmul.f32 %v718_v4, %v718_v4 }
 0x120   : > { %v720_v6 = vsel %vm712_vm0, %v719_v5, 0.0 }
 0x121   : > { %721 = vadd.xlane.f32.xlu0 %v720_v6 }
 0x1aa   : > { %v722_v12 = vpop.xlane.xlu0 %721 }
 0x1ab   : > { %v723_v13 = vmul.f32 0.03125, %v722_v12 }
 0x1ad   : > { %v724_v14 = vadd.f32 1e-06, %v723_v13 }
 0x1af   : > { %2317 = vrsqrt.f32 %v724_v14 }
 0x1bc   : > { %v2318_v15 = vpop.eup %2317 }
 0x1bd   : > { %v726_v17 = vmul.f32 %v2318_v15, %v718_v4 }
 0x1bf   : > { %v733_v19 = vmul.f32 %v1966_v16, %v726_v17 }
 0x1c1   : > { %v740_v20 = vadd.f32 %v1967_v18, %v733_v19 }
 0x1c3   : > { %v741_v22 = vpack.c.bf16 %v740_v20, %v740_v20 }
 0x1c5   : > { %2067 = vmatmul.mubr.msk.bf16.vlgmr.msra.gmra.mxu0 %vm712_vm0, %v741_v22  ;;  %2075 = vmatmul.mubr.msk.bf16.vlgmr.msra.gmra.mxu1 %vm712_vm0, %v741_v22 }
 0x1c6   : > { %2079 = vmatpush3.bf16.msra.mxu0 %v2298_v21  ;;  %2082 = vmatprep.mubr.msk.bf16.mxu0 %vm2665_vm1, %v2664_v9 }
 0x1c7   : > { %2080 = vmatprep.subr.bf16.mxu0 %v2664_v9  ;;  %2088 = vmatprep.mubr.msk.bf16.mxu1 %vm2665_vm1, %v2664_v9 }
 0x1ca   : > { %2081 = vmatpush3.bf16.msra.mxu0 %v2299_v23 }
 0x1cb   : > { %2092 = vmatprep.subr.bf16.mxu0 %v2664_v9 }
 0x1cd   : > { %2083 = vmatmul.mubr.msk.bf16.vlgmr.msra.gmra.mxu0 %vm712_vm0, %v741_v22 }
 0x1ce   : > { %2094 = vmatprep.mubr.msk.bf16.mxu0 %vm2665_vm1, %v2664_v9 }
 0x285   : > { %v802_v26 = vpop.f32.mrf.mxu0  ;;  %v865_v27 = vpop.f32.mrf.mxu1 }
 0x286   : > { %v803_v28 = vadd.f32 %v1968_v24, %v802_v26  ;;  %v866_v29 = vadd.f32 %v1972_v25, %v865_v27 }
 0x287   : > { %v2068_v30 = vpop.f32.mrf.mxu0  ;;  %v2076_v31 = vpop.f32.mrf.mxu1 }
 0x288   : > { %v938_v32 = vpack.c.bf16 %v803_v28, %v803_v28  ;;  %v940_v33 = vpack.c.bf16 %v866_v29, %v866_v29 }
 0x289   : > { %v805_v34 = vpop.f32.mrf.mxu0  ;;  %v868_v35 = vpop.f32.mrf.mxu1 }
 0x28a   : > { %939 = vst.msk [vmem:[#allocation3] sm:$0xf] %vm936_vm2, %v938_v32  ;;  %941 = vst.msk [vmem:[#allocation4] sm:$0xf] %vm936_vm2, %v940_v33 }
 0x28b   : > { %v2069_v36 = vpop.f32.mrf.mxu0  ;;  %v2077_v37 = vpop.f32.mrf.mxu1 }
 0x28d   : > { %v928_v39 = vpop.f32.mrf.mxu0 }
 0x28e   : > { %v929_v40 = vadd.f32 %v1976_v38, %v928_v39 }
 0x28f   : > { %v2084_v41 = vpop.f32.mrf.mxu0 }
 0x290   : > { %v934_v42 = vmul.f32 0.35355338, %v929_v40 }
 0x291   : > { %v931_v43 = vpop.f32.mrf.mxu0  ;;  %v943_v44 = vld [vmem:[#allocation3] sm:$0xf]  ;;  %v944_v45 = vld [vmem:[#allocation4] sm:$0xf] }
 0x292   : > { %v935_v46 = vpack.c.bf16 %v934_v42, %v934_v42  ;;  %v950_v47 = vsel %vm945_vm3, %v943_v44, 0  ;;  %v1011_v48 = vsel %vm1009_vm4, %v944_v45, 0  ;;  %v2300_v49 = vld [vmem:[#allocation3] ss:$0 sps:$4 sm:$0xff]   ;;  %v2306_v39 = vld [vmem:[#allocation4] ss:$0 sps:$4 sm:$0xff]  }
 0x293   : > { %v2085_v50 = vpop.f32.mrf.mxu0  ;;  %2087 = vmatpush3.bf16.xpose.msra.mxu1 %v950_v47  ;;  %2093 = vmatpush3.bf16.msra.mxu0 %v1011_v48  ;;  %v2301_v51 = vld [vmem:[#allocation3] ss:$0 sps:$4 sm:$0xff]   ;;  %v2307_v43 = vld [vmem:[#allocation4] ss:$0 sps:$4 sm:$0xff]  }
 0x294   : > { %937 = vst.msk [vmem:[#allocation2] sm:$0xf] %vm936_vm2, %v935_v46  ;;  %1188 = vrot.lane.b32.xlu0 %v2300_v49, %s2666_s27  ;;  %2098 = vmatprep.subr.bf16.mxu1 %v2664_v9  ;;  %v2304_v55 = vld [vmem:[#allocation3] ss:$0 sps:$4 sm:$0xff]   ;;  %v2308_v50 = vld [vmem:[#allocation4] ss:$0 sps:$4 sm:$0xff]  }
 0x295   : > { %1064 = vrot.lane.b32.xlu1 %v2301_v51, %s2667_s0  ;;  %2104 = vmatprep.subr.bf16.mxu0 %v2664_v9 }
 0x29b   : > { %v942_v52 = vld [vmem:[#allocation2] sm:$0xf] }
 0x29c   : > { %v2302_v53 = vld [vmem:[#allocation2] ss:$0 sps:$4 sm:$0xff]   ;;  %2089 = vmatmul.mubr.msk.bf16.vlgmr.msra.gmra.mxu1 %vm945_vm3, %v942_v52 }
 0x29d   : > { %1059 = vrot.lane.b32.xlu1 %v2302_v53, %s2667_s0  ;;  %2100 = vmatprep.mubr.msk.bf16.mxu1 %vm2665_vm1, %v2664_v9  ;;  %v2303_v54 = vld [vmem:[#allocation2] ss:$0 sps:$4 sm:$0xff]  }
 0x29e   : > { %v2305_v56 = vld [vmem:[#allocation2] ss:$0 sps:$4 sm:$0xff]  }
 0x2a1   : > { %1183 = vrot.lane.b32.xlu1 %v2303_v54, %s2666_s27 }
 0x2a5   : > { %1312 = vrot.lane.b32.xlu1 %v2304_v55, %s2668_s20 }
 0x2a9   : > { %1307 = vrot.lane.b32.xlu1 %v2305_v56, %s2668_s20 }
 0x306   : > { %v1189_v59 = vpop.permute.xlu0 %1188 }
 0x307   : > { %v1065_v57 = vpop.permute.xlu1 %1064  ;;  %v1194_v61 = vsel %vm945_vm3, %v1189_v59, 0 }
 0x308   : > { %v1070_v58 = vsel %vm945_vm3, %v1065_v57, 0 }
 0x309   : > { %2099 = vmatpush3.bf16.xpose.msra.mxu1 %v1070_v58 }
 0x30a   : > { %2110 = vmatprep.subr.bf16.mxu1 %v2664_v9 }
 0x30f   : > { %v1060_v60 = vpop.permute.xlu1 %1059 }
 0x310   : > { %2101 = vmatmul.mubr.msk.bf16.vlgmr.msra.gmra.mxu1 %vm945_vm3, %v1060_v60 }
 0x311   : > { %2111 = vmatpush3.bf16.xpose.msra.mxu1 %v1194_v61  ;;  %2112 = vmatprep.mubr.msk.bf16.mxu1 %vm2665_vm1, %v2664_v9 }
 0x312   : > { %2122 = vmatprep.subr.bf16.mxu1 %v2664_v9 }
 0x313   : > { %v1184_v62 = vpop.permute.xlu1 %1183 }
 0x317   : > { %v1313_v63 = vpop.permute.xlu1 %1312 }
 0x318   : > { %v1318_v1 = vsel %vm945_vm3, %v1313_v63, 0  ;;  %2113 = vmatmul.mubr.msk.bf16.vlgmr.msra.gmra.mxu1 %vm945_vm3, %v1184_v62 }
 0x319   : > { %2123 = vmatpush3.bf16.xpose.msra.mxu1 %v1318_v1  ;;  %2124 = vmatprep.mubr.msk.bf16.mxu1 %vm2665_vm1, %v2664_v9 }
 0x31a   : > { %2134 = vmatprep.subr.bf16.mxu1 %v2664_v9 }
 0x31b   : > { %v1308_v2 = vpop.permute.xlu1 %1307 }
 0x320   : > { %2125 = vmatmul.mubr.msk.bf16.vlgmr.msra.gmra.mxu1 %vm945_vm3, %v1308_v2 }
 0x321   : > { %2138 = vmatprep.mubr.msk.bf16.mxu1 %vm2665_vm1, %v2664_v9 }
 0x35c   : > { %v986_v3 = vpop.f32.mrf.mxu1 }
 0x35d   : > { %v992_v4 = vsel %vm945_vm3, %v986_v3, -inf }
 0x35e   : > { %993 = vmax.xlane.f32.xlu1 %v992_v4  ;;  %v2090_v5 = vpop.f32.mrf.mxu1 }
 0x360   : > { %v989_v6 = vpop.f32.mrf.mxu1 }
 0x362   : > { %v2091_v7 = vpop.f32.mrf.mxu1 }
 0x3d0   : > { %v1106_v8 = vpop.f32.mrf.mxu1 }
 0x3d1   : > { %v1112_v10 = vsel %vm945_vm3, %v1106_v8, -inf }
 0x3d2   : > { %1113 = vmax.xlane.f32.xlu0 %v1112_v10  ;;  %v2102_v11 = vpop.f32.mrf.mxu1 }
 0x3d3   : > { %v2309_v11 = vld [vmem:[%s3212_s9 + $0x8] sm:$0xff]  }
 0x3d4   : > { %v1109_v12 = vpop.f32.mrf.mxu1  ;;  %2135 = vmatpush3.bf16.msra.mxu1 %v2309_v11 }
 0x3d5   : > { %v2310_v12 = vld [vmem:[%s3212_s9] sm:$0xff]   ;;  %2136 = vmatprep.subr.bf16.mxu1 %v2664_v9 }
 0x3d6   : > { %v2103_v13 = vpop.f32.mrf.mxu1 }
 0x3d8   : > { %v1230_v14 = vpop.f32.mrf.mxu1  ;;  %2137 = vmatpush3.bf16.msra.mxu1 %v2310_v12 }
 0x3d9   : > { %v1236_v15 = vsel %vm945_vm3, %v1230_v14, -inf  ;;  %2150 = vmatprep.subr.bf16.mxu1 %v2664_v9 }
 0x3da   : > { %1237 = vmax.xlane.f32.xlu1 %v1236_v15  ;;  %v2114_v16 = vpop.f32.mrf.mxu1 }
 0x3dc   : > { %v1233_v17 = vpop.f32.mrf.mxu1 }
 0x3de   : > { %v2115_v18 = vpop.f32.mrf.mxu1 }
 0x3e0   : > { %v1354_v19 = vpop.f32.mrf.mxu1 }
 0x3e1   : > { %v1360_v20 = vsel %vm945_vm3, %v1354_v19, -inf }
 0x3e2   : > { %1361 = vmax.xlane.f32.xlu1 %v1360_v20  ;;  %v2126_v21 = vpop.f32.mrf.mxu1 }
 0x3e4   : > { %v1357_v22 = vpop.f32.mrf.mxu1 }
 0x3e6   : > { %v2127_v23 = vpop.f32.mrf.mxu1 }
 0x3e7   : > { %v994_v24 = vpop.xlane.xlu1 %993 }
 0x3e8   : > { %v995_v25 = vsub.f32 %v986_v3, %v994_v24 }
 0x3ea   : > { %v996_v26 = vmul.f32 1.442695, %v995_v25 }
 0x3ec   : > { %2319 = vpow2.f32 %v996_v26 }
 0x3f9   : > { %v2320_v27 = vpop.eup %2319 }
 0x3fa   : > { %v998_v28 = vsel %vm945_vm3, %v2320_v27, 0.0 }
 0x3fb   : > { %999 = vadd.xlane.f32.xlu0 %v998_v28 }
 0x45b   : > { %v1114_v29 = vpop.xlane.xlu0 %1113 }
 0x45c   : > { %v1115_v30 = vsub.f32 %v1106_v8, %v1114_v29 }
 0x45e   : > { %v1116_v31 = vmul.f32 1.442695, %v1115_v30 }
 0x460   : > { %2321 = vpow2.f32 %v1116_v31 }
 0x463   : > { %v1238_v32 = vpop.xlane.xlu1 %1237 }
 0x464   : > { %v1239_v33 = vsub.f32 %v1230_v14, %v1238_v32  ;;  %v2000_v32 = vld [vmem:[%s3213_s10] ss:$0 sm:$0xff] }
 0x466   : > { %v1240_v34 = vmul.f32 1.442695, %v1239_v33 }
 0x468   : > { %2323 = vpow2.f32 %v1240_v34 }
 0x46b   : > { %v1362_v41 = vpop.xlane.xlu1 %1361 }
 0x46c   : > { %v1363_v42 = vsub.f32 %v1354_v19, %v1362_v41 }
 0x46d   : > { %v2322_v35 = vpop.eup %2321 }
 0x46e   : > { %v1118_v36 = vsel %vm945_vm3, %v2322_v35, 0.0  ;;  %v1364_v44 = vmul.f32 1.442695, %v1363_v42 }
 0x46f   : > { %1119 = vadd.xlane.f32.xlu1 %v1118_v36 }
 0x475   : > { %v2324_v37 = vpop.eup %2323 }
 0x476   : > { %v1242_v38 = vsel %vm945_vm3, %v2324_v37, 0.0 }
 0x477   : > { %1243 = vadd.xlane.f32.xlu0 %v1242_v38 }
 0x480   : > { %1253 = vrot.lane.b32.xlu1 %v2306_v39, %s2666_s27  ;;  %s2671_s27 = smov 24  }
 0x484   : > { %v1000_v40 = vpop.xlane.xlu0 %999 }
 0x485   : > { %2325 = vrcp.f32 %v1000_v40 }
 0x486   : > { %2327 = vpow2.f32 %v1364_v44 }
 0x48d   : > { %1129 = vrot.lane.b32.xlu0 %v2307_v43, %s2667_s0  ;;  %s3236_s0 = sshll.u32 %s3006_s21, 3 }
 0x492   : > { %v2326_v45 = vpop.eup %2325 }
 0x493   : > { %v1002_v46 = vmul.f32 %v2326_v45, %v2320_v27  ;;  %v2328_v48 = vpop.eup %2327  ;;  %v2311_v45 = vld [vmem:[#allocation16 + $0x8] sm:$0xff]  }
 0x494   : > { %v1366_v49 = vsel %vm945_vm3, %v2328_v48, 0.0 }
 0x495   : > { %v1003_v47 = vpack.c.bf16 %v1002_v46, %v1002_v46  ;;  %v2312_v46 = vld [vmem:[#allocation16] sm:$0xff]  }
 0x497   : > { %2095 = vmatmul.mubr.msk.bf16.vlgmr.msra.gmra.mxu0 %vm945_vm3, %v1003_v47  ;;  %1005 = vst.msk [vmem:[%s3010_s28] sm:$0xf] %vm1004_vm5, %v1003_v47 }
 0x498   : > { %2106 = vmatprep.mubr.msk.bf16.mxu0 %vm2665_vm1, %v2664_v9 }
 0x4a4   : > { %1367 = vadd.xlane.f32.xlu1 %v1366_v49 }
 0x4b5   : > { %1377 = vrot.lane.b32.xlu1 %v2308_v50, %s2668_s20  ;;  %s3051_s20 = scalar_lea.vmem [#allocation20], %s3236_s0  ;;  %v2004_v50 = vld [vmem:[%s3214_s11] ss:$0 sm:$0xff] }
 0x4f8   : > { %v1120_v51 = vpop.xlane.xlu1 %1119 }
 0x4f9   : > { %2329 = vrcp.f32 %v1120_v51 }
 0x4fc   : > { %v1254_v57 = vpop.permute.xlu1 %1253 }
 0x4fd   : > { %v1259_v59 = vsel %vm1009_vm4, %v1254_v57, 0  ;;  %v2314_v57 = vld [vmem:[%s3218_s15 + $0x10] sm:$0xff]  }
 0x500   : > { %v1244_v52 = vpop.xlane.xlu0 %1243 }
 0x501   : > { %2331 = vrcp.f32 %v1244_v52  ;;  %v2005_v52 = vld [vmem:[%s3215_s12] ss:$0 sm:$0xff] }
 0x504   : > { %v1130_v53 = vpop.permute.xlu0 %1129 }
 0x505   : > { %v1135_v54 = vsel %vm1009_vm4, %v1130_v53, 0 }
 0x506   : > { %v2330_v55 = vpop.eup %2329  ;;  %2105 = vmatpush3.bf16.msra.mxu0 %v1135_v54 }
 0x507   : > { %2116 = vmatprep.subr.bf16.mxu0 %v2664_v9  ;;  %v1122_v56 = vmul.f32 %v2330_v55, %v2322_v35 }
 0x509   : > { %v1123_v58 = vpack.c.bf16 %v1122_v56, %v1122_v56  ;;  %v2313_v56 = vld [vmem:[%s3218_s15 + $0x18] sm:$0xff]  }
 0x50b   : > { %2107 = vmatmul.mubr.msk.bf16.vlgmr.msra.gmra.mxu0 %vm945_vm3, %v1123_v58  ;;  %1985 = vst.msk [vmem:[%s3010_s28 + $0x4] sm:$0xf] %vm1004_vm5, %v1123_v58  ;;  %v2315_v58 = vld [vmem:[%s3218_s15 + $0x8] sm:$0xff]  }
 0x50c   : > { %2117 = vmatpush3.bf16.msra.mxu0 %v1259_v59  ;;  %2118 = vmatprep.mubr.msk.bf16.mxu0 %vm2665_vm1, %v2664_v9  ;;  %v2316_v59 = vld [vmem:[%s3218_s15] sm:$0xff]  }
 0x50d   : > { %2128 = vmatprep.subr.bf16.mxu0 %v2664_v9 }
 0x50e   : > { %v2332_v60 = vpop.eup %2331 }
 0x50f   : > { %v1246_v61 = vmul.f32 %v2332_v60, %v2324_v37  ;;  %v2006_v60 = vld [vmem:[%s3217_s14] ss:$0 sm:$0xff] }
 0x511   : > { %v1247_v62 = vpack.c.bf16 %v1246_v61, %v1246_v61 }
 0x513   : > { %2119 = vmatmul.mubr.msk.bf16.vlgmr.msra.gmra.mxu0 %vm945_vm3, %v1247_v62  ;;  %1991 = vst.msk [vmem:[%s3010_s28 + $0x8] sm:$0xf] %vm1004_vm5, %v1247_v62 }
 0x514   : > { %2130 = vmatprep.mubr.msk.bf16.mxu0 %vm2665_vm1, %v2664_v9 }
 0x52d   : > { %v1368_v63 = vpop.xlane.xlu1 %1367 }
 0x52e   : > { %2333 = vrcp.f32 %v1368_v63 }
 0x531   : > { %v1378_v1 = vpop.permute.xlu1 %1377 }
 0x532   : > { %v1383_v2 = vsel %vm1009_vm4, %v1378_v1, 0 }
 0x533   : > { %2129 = vmatpush3.bf16.msra.mxu0 %v1383_v2 }
 0x534   : > { %2142 = vmatprep.subr.bf16.mxu0 %v2664_v9 }
 0x53b   : > { %v2334_v3 = vpop.eup %2333 }
 0x53c   : > { %v1370_v4 = vmul.f32 %v2334_v3, %v2328_v48 }
 0x53e   : > { %v1371_v5 = vpack.c.bf16 %v1370_v4, %v1370_v4 }
 0x540   : > { %2131 = vmatmul.mubr.msk.bf16.vlgmr.msra.gmra.mxu0 %vm945_vm3, %v1371_v5  ;;  %1997 = vst.msk [vmem:[%s3010_s28 + $0xc] sm:$0xf] %vm1004_vm5, %v1371_v5  ;;  %s2672_s28 = smov [#allocation18]  }
 0x541   : > { %2146 = vmatprep.mubr.msk.bf16.mxu0 %vm2665_vm1, %v2664_v9  ;;  %2143 = vmatpush3.bf16.msra.mxu0 %v2311_v45  ;;  %s2525_s0 = sshll.u32 %s2672_s28, 4  ;;  %s2526_s0 = int_to_ptr.vmem [resolvable:$false] %s2525_s0 }
 0x542   : > { %2144 = vmatprep.subr.bf16.mxu0 %v2664_v9  ;;  %s2527_s4 = scalar_lea.vmem %s2526_s0, 512  ;;  %p2528_p1 = scmp.lt.s32.totalorder %s3095_s26, %s2526_s0 }
 0x545   : > { %2145 = vmatpush3.bf16.msra.mxu0 %v2312_v46 }
 0x557   : > { %v1047_v6 = vpop.f32.mrf.mxu0 }
 0x559   : > { %v2096_v7 = vpop.f32.mrf.mxu0 }
 0x55b   : > { %v1050_v8 = vpop.f32.mrf.mxu0 }
 0x55d   : > { %v2097_v10 = vpop.f32.mrf.mxu0 }
 0x5cb   : > { %v1171_v13 = vpop.f32.mrf.mxu0 }
 0x5cc   : > { %1426 = vrot.lane.b32.xlu0 %v1171_v13, %s2669_s22  ;;  %s3102_s22 = scalar_lea.hbm %s3221_s18, %s2025_s25 }
 0x5cd   : > { %v2108_v14 = vpop.f32.mrf.mxu0 }
 0x5cf   : > { %v1174_v15 = vpop.f32.mrf.mxu0 }
 0x5d1   : > { %v2109_v16 = vpop.f32.mrf.mxu0 }
 0x5d3   : > { %v1295_v17 = vpop.f32.mrf.mxu0 }
 0x5d4   : > { %1430 = vrot.lane.b32.xlu1 %v1295_v17, %s2670_s2  ;;  %s3104_s2 = scalar_lea.sflag [#allocation19], %s1707_s29 }
 0x5d5   : > { %v2120_v18 = vpop.f32.mrf.mxu0 }
 0x5d7   : > { %v1298_v19 = vpop.f32.mrf.mxu0 }
 0x5d9   : > { %v2121_v20 = vpop.f32.mrf.mxu0 }
 0x600   : > { %v1419_v21 = vpop.f32.mrf.mxu0 }
 0x601   : > { %1434 = vrot.lane.b32.xlu0 %v1419_v21, %s2671_s27  ;;  %s2521_s27 = scalar_lea.vmem %s3095_s26, 256 }
 0x602   : > { %v2132_v22 = vpop.f32.mrf.mxu0  ;;  %p2522_p7 = scmp.ne.s32.totalorder %s3095_s26, %s2521_s27  ;;  %p2529_p2 = scmp.lt.s32.totalorder %s2527_s4, %s2521_s27 }
 0x604   : > { %v1422_v23 = vpop.f32.mrf.mxu0  ;;  %p2523_p11 = pnand %p2522_p7, %p3274_p8  ;;  %p2530_p13 = por %p2529_p2, %p2528_p1 }
 0x606   : > { %v2133_v24 = vpop.f32.mrf.mxu0  ;;  %p2524_p0 = pneg %p2523_p11 }
 0x608   : > { %p2531_p9 = pnand %p2530_p13, %p2524_p0 }
 0x63e   : > { %v1427_v25 = vpop.permute.xlu0 %1426 }
 0x63f   : > { %v1437_v27 = vsel %vm945_vm3, %v1047_v6, %v1427_v25 }
 0x646   : > { %v1431_v26 = vpop.permute.xlu1 %1430 }
 0x647   : > { %v1439_v28 = vsel %vm1438_vm6, %v1437_v27, %v1431_v26 }
 0x673   : > { %v1435_v29 = vpop.permute.xlu0 %1434 }
 0x674   : > { %v1441_v30 = vsel %vm1440_vm7, %v1439_v28, %v1435_v29 }
 0x675   : > { %1442 = vst.msk [vmem:[%s3051_s20] sm:$0xff] %vm712_vm0, %v1441_v30  ;;  %v1443_v31 = vpack.c.bf16 %v1441_v30, %v1441_v30 }
 0x677   : > { %2139 = vmatmul.mubr.msk.bf16.vlgmr.msra.gmra.mxu1 %vm712_vm0, %v1443_v31 }
 0x678   : > { %2158 = vmatprep.mubr.msk.bf16.mxu1 %vm2665_vm1, %v2664_v9  ;;  %2151 = vmatpush3.bf16.msra.mxu1 %v2313_v56 }
 0x679   : > { %2152 = vmatprep.subr.bf16.mxu1 %v2664_v9 }
 0x67c   : > { %2153 = vmatpush3.bf16.msra.mxu1 %v2314_v57 }
 0x67d   : > { %2154 = vmatprep.subr.bf16.mxu1 %v2664_v9 }
 0x680   : > { %2155 = vmatpush3.bf16.msra.mxu1 %v2315_v58 }
 0x681   : > { %2156 = vmatprep.subr.bf16.mxu1 %v2664_v9 }
 0x684   : > { %2157 = vmatpush3.bf16.msra.mxu1 %v2316_v59 }
 0x737   : > { %v1504_v33 = vpop.f32.mrf.mxu1 }
 0x738   : > { %v1505_v34 = vadd.f32 %v2000_v32, %v1504_v33 }
 0x739   : > { %v2140_v35 = vpop.f32.mrf.mxu1 }
 0x73a   : > { %v3062_v36 = vadd.f32 %v1505_v34, %v2926_v0 }
 0x73b   : > { %v1507_v37 = vpop.f32.mrf.mxu1 }
 0x73c   : > { %v1513_v38 = vsel %vm712_vm0, %v3062_v36, 0.0 }
 0x73d   : > { %1514 = vadd.xlane.f32.xlu1 %v1513_v38  ;;  %v2141_v39 = vpop.f32.mrf.mxu1 }
 0x7c6   : > { %v1515_v40 = vpop.xlane.xlu1 %1514 }
 0x7c7   : > { %v1516_v41 = vmul.f32 0.03125, %v1515_v40 }
 0x7c9   : > { %v1517_v42 = vsub.f32 %v3062_v36, %v1516_v41 }
 0x7cb   : > { %v1518_v43 = vmul.f32 %v1517_v42, %v1517_v42 }
 0x7cd   : > { %v1519_v44 = vsel %vm712_vm0, %v1518_v43, 0.0 }
 0x7ce   : > { %1520 = vadd.xlane.f32.xlu0 %v1519_v44 }
 0x857   : > { %v1521_v0 = vpop.xlane.xlu0 %1520 }
 0x858   : > { %v1522_v47 = vmul.f32 0.03125, %v1521_v0 }
 0x85a   : > { %v1523_v48 = vadd.f32 1e-06, %v1522_v47 }
 0x85c   : > { %2335 = vrsqrt.f32 %v1523_v48 }
 0x869   : > { %v2336_v49 = vpop.eup %2335 }
 0x86a   : > { %v1525_v51 = vmul.f32 %v2336_v49, %v1517_v42 }
 0x86c   : > { %v1532_v53 = vmul.f32 %v2004_v50, %v1525_v51 }
 0x86e   : > { %v1539_v54 = vadd.f32 %v2005_v52, %v1532_v53 }
 0x870   : > { %v1540_v55 = vpack.c.bf16 %v1539_v54, %v1539_v54 }
 0x872   : > { %2147 = vmatmul.mubr.msk.bf16.vlgmr.msra.gmra.mxu0 %vm712_vm0, %v1540_v55 }
 0x932   : > { %v1601_v61 = vpop.f32.mrf.mxu0 }
 0x933   : > { %v1602_v62 = vadd.f32 %v2006_v60, %v1601_v61 }
 0x934   : > { %v2148_v63 = vpop.f32.mrf.mxu0 }
 0x935   : > { %v1607_v1 = vmul.f32 %v1602_v62, %v1602_v62 }
 0x936   : > { %v1604_v2 = vpop.f32.mrf.mxu0 }
 0x937   : > { %v1608_v3 = vmul.f32 %v1607_v1, %v1602_v62 }
 0x938   : > { %v2149_v4 = vpop.f32.mrf.mxu0 }
 0x939   : > { %v1609_v9 = vmul.f32 0.044715, %v1608_v3 }
 0x93b   : > { %v1610_v5 = vadd.f32 %v1609_v9, %v1602_v62 }
 0x93d   : > { %v1611_v6 = vmul.f32 0.7978846, %v1610_v5 }
 0x93f   : > { %2337 = vtanh.f32 %v1611_v6 }
 0x94c   : > { %v2338_v7 = vpop.eup %2337 }
 0x94d   : > { %v1613_v8 = vadd.f32 1.0, %v2338_v7 }
 0x94f   : > { %v1614_v10 = vmul.f32 0.5, %v1613_v8 }
 0x951   : > { %v1615_v11 = vmul.f32 %v1614_v10, %v1602_v62 }
 0x953   : > { %v1616_v12 = vpack.c.bf16 %v1615_v11, %v1615_v11 }
 0x955   : > { %2159 = vmatmul.mubr.msk.bf16.vlgmr.msra.gmra.mxu1 %vm1656_vm8, %v1616_v12 }
 0x956   : > { %2534 = shalt.err (!%p2531_p9)
}
 0x957   : > { %s2535_s29 = scalar_lea.hbm %s3102_s22, 256  ;;  %s2539_s24 = scalar_lea.hbm %s3221_s18, 512 }
 0x958   : > { %p2536_p3 = scmp.ne.s32.totalorder %s3102_s22, %s2535_s29  ;;  %p2540_p6 = scmp.lt.s32.totalorder %s3102_s22, %s3221_s18 }
 0x959   : > { %p2541_p10 = scmp.lt.s32.totalorder %s2539_s24, %s2535_s29 }
 0x95a   : > { %p2537_p5 = pnand %p2536_p3, %p3274_p8 }
 0x95b   : > { %p2542_p4 = por %p2541_p10, %p2540_p6 }
 0x95c   : > { %p2538_p12 = pneg %p2537_p5 }
 0x95e   : > { %p2543_p7 = pnand %p2542_p4, %p2538_p12 }
 0x960   : > { %2546 = shalt.err (!%p2543_p7)
}
 0x961   : > { %s2673_s4 = smov 64   ;;  %s2674_s0 = smov 4  }
 0x962   : > { %2191 = dma.vmem_to_hbm [thread:$0]  (%p3274_p8), %s3095_s26, 256, %s3102_s22, %s3104_s2, %s2673_s4, %s2673_s4, %s2674_s0  }
 0x963   : > { %s2019_s27 = sshll.u32 %s2798_s1, 7  ;;  %s1755_s23 = sshll.u32 %s3051_s20, 4  ;;  %s1756_s23 = int_to_ptr.vmem [resolvable:$true] %s1755_s23 }
 0x964   : > { %s1753_s29 = scalar_lea.hbm %s3222_s19, %s2019_s27  ;;  %s2547_s24 = scalar_lea.vmem %s1756_s23, 128 }
 0x965   : > { %p2548_p11 = scmp.ne.s32.totalorder %s1756_s23, %s2547_s24  ;;  %s2675_s28 = smov [#allocation20]  }
 0x966   : > { %s2551_s6 = sshll.u32 %s2675_s28, 4  ;;  %s2552_s6 = int_to_ptr.vmem [resolvable:$false] %s2551_s6 }
 0x967   : > { %p2549_p0 = pnand %p2548_p11, %p3274_p8  ;;  %s2553_s7 = scalar_lea.vmem %s2552_s6, 256 }
 0x968   : > { %p2554_p2 = scmp.lt.s32.totalorder %s1756_s23, %s2552_s6  ;;  %p2555_p13 = scmp.lt.s32.totalorder %s2553_s7, %s2547_s24 }
 0x969   : > { %p2550_p1 = pneg %p2549_p0 }
 0x96a   : > { %p2556_p9 = por %p2555_p13, %p2554_p2 }
 0x96c   : > { %p2557_p3 = pnand %p2556_p9, %p2550_p1 }
 0x96e   : > { %2560 = shalt.err (!%p2557_p3)
}
 0x96f   : > { %s2561_s26 = scalar_lea.hbm %s1753_s29, 128  ;;  %s2565_s4 = scalar_lea.hbm %s3222_s19, 256 }
 0x970   : > { %p2562_p5 = scmp.ne.s32.totalorder %s1753_s29, %s2561_s26  ;;  %p2566_p10 = scmp.lt.s32.totalorder %s1753_s29, %s3222_s19 }
 0x971   : > { %p2567_p4 = scmp.lt.s32.totalorder %s2565_s4, %s2561_s26 }
 0x972   : > { %p2563_p12 = pnand %p2562_p5, %p3274_p8 }
 0x973   : > { %p2568_p7 = por %p2567_p4, %p2566_p10 }
 0x974   : > { %p2564_p6 = pneg %p2563_p12 }
 0x976   : > { %p2569_p11 = pnand %p2568_p7, %p2564_p6 }
 0x978   : > { %2572 = shalt.err (!%p2569_p11)
}
 0x979   : > { %2192 = dma.vmem_to_hbm [thread:$0]  (%p3274_p8), %s1756_s23, 128, %s1753_s29, %s3104_s2   ;;  %v2010_v13 = vld [vmem:[%s3219_s16] ss:$0 sm:$0xff] }
 0x97a   : > { %s3275_s25 = sshll.u32 %s3006_s21, 3  ;;  %s3276_s22 = sld [smem:[#allocation41_spill]] }
 0x97b   : > { %s689_s24 = scalar_lea.vmem [#allocation17], %s3275_s25  ;;  %s1703_s2 = scalar_lea.sflag [#allocation7], %s3006_s21 }
 0x97c   : > { %s1726_s28 = sshll.u32 %s689_s24, 4  ;;  %s2676_s1 = smov [#allocation17]   ;;  %s3160_s28 = int_to_ptr.vmem [resolvable:$true] %s1726_s28 }
 0x97d   : > { %s2573_s29 = scalar_lea.vmem %s3160_s28, 128  ;;  %s2577_s23 = sshll.u32 %s2676_s1, 4  ;;  %s2578_s23 = int_to_ptr.vmem [resolvable:$false] %s2577_s23 }
 0x97e   : > { %p2574_p0 = scmp.ne.s32.totalorder %s3160_s28, %s2573_s29  ;;  %p2580_p13 = scmp.lt.s32.totalorder %s3160_s28, %s2578_s23 }
 0x980   : > { %s3158_s4 = scalar_lea.hbm %s3276_s22, %s2019_s27  ;;  %p2575_p1 = pnand %p2574_p0, %p3274_p8 }
 0x981   : > { %s2579_s27 = scalar_lea.vmem %s2578_s23, 256 }
 0x982   : > { %p2576_p2 = pneg %p2575_p1  ;;  %p2581_p9 = scmp.lt.s32.totalorder %s2579_s27, %s2573_s29 }
 0x984   : > { %p2582_p3 = por %p2581_p9, %p2580_p13 }
 0x986   : > { %p2583_p5 = pnand %p2582_p3, %p2576_p2 }
 0xa15   : > { %v1694_v14 = vpop.f32.mrf.mxu1 }
 0xa16   : > { %v1695_v15 = vadd.f32 %v2010_v13, %v1694_v14 }
 0xa17   : > { %v2160_v16 = vpop.f32.mrf.mxu1 }
 0xa18   : > { %v1700_v17 = vadd.f32 %v1695_v15, %v3062_v36 }
 0xa19   : > { %v1697_v18 = vpop.f32.mrf.mxu1 }
 0xa1a   : > { %1701 = vst.msk [vmem:[%s689_s24] sm:$0xff] %vm712_vm0, %v1700_v17 }
 0xa1b   : > { %v2161_v19 = vpop.f32.mrf.mxu1 }
 0xa1c   : > { %2586 = shalt.err (!%p2583_p5)
}
 0xa1d   : > { %s2587_s0 = scalar_lea.hbm %s3158_s4, 128  ;;  %s2591_s6 = scalar_lea.hbm %s3276_s22, 256 }
 0xa1e   : > { %p2588_p12 = scmp.ne.s32.totalorder %s3158_s4, %s2587_s0  ;;  %p2592_p4 = scmp.lt.s32.totalorder %s3158_s4, %s3276_s22 }
 0xa1f   : > { %p2593_p7 = scmp.lt.s32.totalorder %s2591_s6, %s2587_s0 }
 0xa20   : > { %p2589_p6 = pnand %p2588_p12, %p3274_p8 }
 0xa21   : > { %p2594_p11 = por %p2593_p7, %p2592_p4 }
 0xa22   : > { %p2590_p10 = pneg %p2589_p6 }
 0xa24   : > { %p2595_p0 = pnand %p2594_p11, %p2590_p10 }
 0xa26   : > { %2598 = shalt.err (!%p2595_p0)
}
 0xa27   : > { %2190 = dma.vmem_to_hbm [thread:$0]  (%p3274_p8), %s3160_s28, 128, %s3158_s4, %s1703_s2  }
 0xa28 PF: > { %s3277_s24 = sld [smem:[#allocation29_spill]] }
 0xa29   : > { %s3278_s26 = sld [smem:[#allocation27_spill]] }
 0xa2a   : > { %s3279_s20 = sld [smem:[#allocation32_spill]] }
 0xa2e   : > { %p2242_p1 = scmp.ge.s32.totalorder %s3277_s24, 2 }
 0xa2f   : > { %s1767_s29 = sand.u32 1, %s3278_s26  }
 0xa30   : > { %p3280_p2 = scmp.ne.s32.totalorder %s3279_s20, 0  ;;  %s1768_s1 = scalar_lea.sflag [#allocation7], %s1767_s29 }
 0xa32   : > { %p2219_p13 = pnand %p2242_p1, %p3280_p2 }
 0xa34   : > { %p2220_p9 = pneg %p2219_p13 }
 0xa36   : > { %2632 = dma.done.wait (%p2220_p9), %s1768_s1, 128  }
 0xa37   : > { %2634 = vsyncadd (%p2220_p9), %s1768_s1, 4294967168  ;;  %s3281_s23 = sadd.s32 4294967294, %s3277_s24  }
 0xa38   : > { %s1776_s27 = sand.u32 1, %s3281_s23  }
 0xa39   : > { %s1777_s0 = scalar_lea.sflag [#allocation19], %s1776_s27 }
 0xa3a   : > { %2636 = dma.done.wait (%p2220_p9), %s1777_s0, 384  }
 0xa3b   : > { %2638 = vsyncadd (%p2220_p9), %s1777_s0, 4294966912  ;;  %s3282_s21 = sld [smem:[#allocation30_spill]]  ;;  %s3285_s0 = smov %s2645_s30 }
 0xa3c   : > { %s3283_s3 = sld [smem:[#allocation28_spill]] }
 0xa3d   : > { %s3284_s20 = sld [smem:[#allocation31_spill]] }
 0xa41   : > { %p37_p8 = scmp.ge.s32.totalorder %s3282_s21, 4  }
 0xa42   : > { %s3286_s30 = smov %s3283_s3 }
 0xa43   :  { %39 = sbr.rel (!%p37_p8) target bundleno = 19 (0x13), region = 187 }
 0xa48   :  { %1791 = vsyncpa [#allocation6], 1 }
 0xa49   :  { %1793 = vsyncpa [#allocation6 + $0x1], 1 }
 0xa4a   :  { %1794 = vsyncpa [#allocation9], 1 }
 0xa4b   :  { %1795 = vsyncpa [#allocation12], 1 }
 0xa4c   :  { %1796 = vsyncpa [#allocation15], 1 }
 0xa4d   :  { %1797 = vsyncpa [#allocation7], 1 }
 0xa4e   :  { %1799 = vsyncpa [#allocation7 + $0x1], 1 }
 0xa4f   :  { %1800 = vsyncpa [#allocation19], 1 }
 0xa50   :  { %1802 = vsyncpa [#allocation19 + $0x1], 1 }

</bundles_post_ra>
